<compile_context>
chip_gen: v7x
topology: tpu7x:2x2x1
jax: 0.10.0
libtpu: 0.0.40
codegen_flags: <defaults>
</compile_context>

<pallas_src>
import functools

import jax
import jax.numpy as jnp
import numpy as np
from jax import lax
from jax.experimental import pallas as pl
from jax.experimental.pallas import tpu as pltpu


_VMEM_LIMIT = 32 * 1024 * 1024   # explicit scoped-VMEM limit, safe on v5e/v6e/v7x


# ---------------------------------------------------------------------------
# helpers
# ---------------------------------------------------------------------------
def _round_up(x, m):
    return ((x + m - 1) // m) * m


def _pick_tile(dim, cands=(512, 256, 128)):
    """Largest candidate tile whose last-block waste stays under ~12.5%."""
    for t in cands:
        if dim >= t and (_round_up(dim, t) - dim) * 8 <= dim:
            return t
    return cands[-1]


def _pick_tk(k):
    """Reduction tile: full K when small, else an aligned divisor (no padding)."""
    if k <= 512:
        return k, k
    for t in (512, 256, 128):
        if k % t == 0:
            return t, k
    return 128, _round_up(k, 128)       # rare: requires zero-padding K


# ---------------------------------------------------------------------------
# Pallas kernel 1: tiled matmul + bias (+ optional LeakyReLU)  == Conv2d core
# ---------------------------------------------------------------------------
def _matmul_bias_act_kernel(p_ref, w_ref, b_ref, o_ref, acc_ref, *,
                            apply_lrelu, neg_slope):
    k = pl.program_id(2)

    @pl.when(k == 0)
    def _():
        acc_ref[...] = jnp.zeros_like(acc_ref)

    acc_ref[...] += jnp.dot(p_ref[...], w_ref[...],
                            preferred_element_type=jnp.float32)

    @pl.when(k == pl.num_programs(2) - 1)
    def _():
        out = acc_ref[...] + b_ref[...]
        if apply_lrelu:
            out = jnp.where(out >= 0, out, neg_slope * out)
        o_ref[...] = out.astype(o_ref.dtype)


def _matmul_bias_act(patches, weights, bias, apply_lrelu,
                     out_dtype=jnp.float32, matmul_dtype=jnp.bfloat16,
                     neg_slope=0.2):
    """out[m, n] = sum_k patches[m,k] * weights[k,n] + bias[n] (+ LeakyReLU)."""
    m, k = patches.shape
    _, n = weights.shape

    tk, kpad = _pick_tk(k)
    npad = _round_up(n, 128)
    tn = _pick_tile(npad, (256, 128))
    tm = _pick_tile(m, (512, 256, 128))
    # v7x megacore: keep at least 2 parallel (i, j) grid steps when possible.
    while pl.cdiv(m, tm) * (npad // tn) < 2 and tm > 16:
        tm //= 2
    tm = min(tm, _round_up(m, 8))

    p = patches.astype(matmul_dtype)
    w = weights.astype(matmul_dtype)
    if kpad != k:                          # rare: K has no aligned divisor
        p = jnp.pad(p, ((0, 0), (0, kpad - k)))
        w = jnp.pad(w, ((0, kpad - k), (0, 0)))
    if npad != n:
        w = jnp.pad(w, ((0, 0), (0, npad - n)))
    b = jnp.pad(bias.reshape(1, -1).astype(jnp.float32),
                ((0, 0), (0, npad - n)))

    dsize = jnp.dtype(matmul_dtype).itemsize
    kernel = functools.partial(_matmul_bias_act_kernel,
                               apply_lrelu=apply_lrelu, neg_slope=neg_slope)
    out = pl.pallas_call(
        kernel,
        out_shape=jax.ShapeDtypeStruct((m, npad), out_dtype),
        grid_spec=pltpu.PrefetchScalarGridSpec(
            num_scalar_prefetch=0,
            grid=(pl.cdiv(m, tm), npad // tn, kpad // tk),
            in_specs=[
                pl.BlockSpec((tm, tk), lambda i, j, kk: (i, kk)),
                pl.BlockSpec((tk, tn), lambda i, j, kk: (kk, j)),
                pl.BlockSpec((1, tn), lambda i, j, kk: (0, j)),
            ],
            out_specs=pl.BlockSpec((tm, tn), lambda i, j, kk: (i, j)),
            scratch_shapes=[pltpu.VMEM((tm, tn), jnp.float32)],
        ),
        compiler_params=pltpu.CompilerParams(
            dimension_semantics=("parallel", "parallel", "arbitrary"),
            vmem_limit_bytes=_VMEM_LIMIT,
        ),
        cost_estimate=pl.CostEstimate(
            flops=2 * m * npad * kpad,
            transcendentals=0,
            bytes_accessed=dsize * (m * kpad + kpad * npad) + 4 * m * npad),
    )(p, w, b)
    if npad != n:
        out = out[:, :n]
    return out


# ---------------------------------------------------------------------------
# Pallas kernel 2: matvec (Conv2d with C_out == 1, VPU row reduction)
# ---------------------------------------------------------------------------
def _matvec_kernel(p_ref, w_ref, o_ref, acc_ref):
    k = pl.program_id(1)

    @pl.when(k == 0)
    def _():
        acc_ref[...] = jnp.zeros_like(acc_ref)

    prod = p_ref[...].astype(jnp.float32) * w_ref[...].astype(jnp.float32)
    acc_ref[...] += jnp.sum(prod, axis=1, keepdims=True)

    @pl.when(k == pl.num_programs(1) - 1)
    def _():
        o_ref[...] = acc_ref[...].astype(o_ref.dtype)


def _matvec_bias(patches, w_col, bias, out_dtype=jnp.float32,
                 matmul_dtype=jnp.bfloat16):
    m, k = patches.shape
    tk, kpad = _pick_tk(k)

    p = patches.astype(matmul_dtype)
    w = w_col.reshape(1, k).astype(matmul_dtype)
    if kpad != k:
        p = jnp.pad(p, ((0, 0), (0, kpad - k)))
        w = jnp.pad(w, ((0, 0), (0, kpad - k)))

    tm = _pick_tile(m, (512, 256, 128))
    while pl.cdiv(m, tm) < 2 and tm > 16:       # keep >=2 parallel steps (v7x)
        tm //= 2
    tm = min(tm, _round_up(m, 8))

    out = pl.pallas_call(
        _matvec_kernel,
        out_shape=jax.ShapeDtypeStruct((m, 1), out_dtype),
        grid_spec=pltpu.PrefetchScalarGridSpec(
            num_scalar_prefetch=0,
            grid=(pl.cdiv(m, tm), kpad // tk),
            in_specs=[
                pl.BlockSpec((tm, tk), lambda i, kk: (i, kk)),
                pl.BlockSpec((1, tk), lambda i, kk: (0, kk)),
            ],
            out_specs=pl.BlockSpec((tm, 1), lambda i, kk: (i, 0)),
            scratch_shapes=[pltpu.VMEM((tm, 1), jnp.float32)],
        ),
        compiler_params=pltpu.CompilerParams(
            dimension_semantics=("parallel", "arbitrary"),
            vmem_limit_bytes=_VMEM_LIMIT,
        ),
    )(p, w)
    return out + bias.reshape(1, 1).astype(out_dtype)


# ---------------------------------------------------------------------------
# Pallas kernel 3: fused InstanceNorm2d (affine=False) + LeakyReLU, NHWC layout
# ---------------------------------------------------------------------------
def _instnorm_lrelu_nhwc_kernel(x_ref, o_ref, *, inv_hw, eps, neg_slope):
    x = x_ref[...].astype(jnp.float32)                 # (1, HW, TC)
    mean = jnp.sum(x, axis=1, keepdims=True) * inv_hw
    d = x - mean
    var = jnp.sum(d * d, axis=1, keepdims=True) * inv_hw
    y = d * lax.rsqrt(var + eps)
    y = jnp.where(y >= 0, y, neg_slope * y)
    o_ref[...] = y.astype(o_ref.dtype)


def _instance_norm_lrelu_nhwc(x_nhwc, eps=1e-5, neg_slope=0.2):
    n, oh, ow, c = x_nhwc.shape
    hw = oh * ow
    x3 = x_nhwc.reshape(n, hw, c)                      # free, row-major

    # Channel tile: full C, or a 128-multiple divisor of C that keeps the
    # (HW, tc) slab within a few MiB of VMEM.
    cands = [c] + [t for t in (512, 384, 256, 128) if t < c and c % t == 0]
    slab_budget = 6 << 20                              # f32 bytes per slab
    tc = None
    for t in cands:
        if hw * t * 4 <= slab_budget:
            tc = t
            break
    if tc is None:
        # TODO(synk): very large H*W needs a blocked two-pass (stats then
        # normalize) kernel; here we just raise the scoped-VMEM limit.
        tc = cands[-1]
    vmem_bytes = max(_VMEM_LIMIT, 4 * hw * tc * 4 + (4 << 20))

    kernel = functools.partial(_instnorm_lrelu_nhwc_kernel, inv_hw=1.0 / hw,
                               eps=eps, neg_slope=neg_slope)
    out = pl.pallas_call(
        kernel,
        out_shape=jax.ShapeDtypeStruct((n, hw, c), x_nhwc.dtype),
        grid_spec=pltpu.PrefetchScalarGridSpec(
            num_scalar_prefetch=0,
            grid=(n, c // tc),
            in_specs=[pl.BlockSpec((1, hw, tc), lambda i, j: (i, 0, j))],
            out_specs=pl.BlockSpec((1, hw, tc), lambda i, j: (i, 0, j)),
        ),
        compiler_params=pltpu.CompilerParams(
            dimension_semantics=("parallel", "parallel"),
            vmem_limit_bytes=vmem_bytes,
        ),
    )(x3)
    return out.reshape(n, oh, ow, c)


# ---------------------------------------------------------------------------
# layout glue: im2col, conv wrapper, inter-scale average pooling
# ---------------------------------------------------------------------------
def _im2col(x_nhwc, ksize, stride, pad):
    n, h, w, c = x_nhwc.shape
    oh = (h + 2 * pad - ksize) // stride + 1
    ow = (w + 2 * pad - ksize) // stride + 1
    xp = jnp.pad(x_nhwc, ((0, 0), (pad, pad), (pad, pad), (0, 0)))
    cols = []
    for kh in range(ksize):
        for kw in range(ksize):
            cols.append(lax.slice(
                xp,
                (0, kh, kw, 0),
                (n, kh + stride * (oh - 1) + 1, kw + stride * (ow - 1) + 1, c),
                (1, stride, stride, 1)))
    patches = jnp.stack(cols, axis=3)                  # (n, oh, ow, k*k, c)
    return patches.reshape(n * oh * ow, ksize * ksize * c), oh, ow


def _conv4x4(x_nhwc, w_hwio, bias, stride, pad, apply_lrelu, matmul_dtype):
    n = x_nhwc.shape[0]
    cout = w_hwio.shape[-1]
    patches, oh, ow = _im2col(x_nhwc, 4, stride, pad)
    wmat = w_hwio.reshape(-1, cout)                    # (kh,kw,cin) x cout
    if cout == 1:
        out = _matvec_bias(patches, wmat[:, 0], bias,
                           out_dtype=jnp.float32, matmul_dtype=matmul_dtype)
        if apply_lrelu:
            out = jnp.where(out >= 0, out, 0.2 * out)
    else:
        out = _matmul_bias_act(patches, wmat, bias, apply_lrelu,
                               out_dtype=jnp.float32, matmul_dtype=matmul_dtype)
    return out.reshape(n, oh, ow, cout)


def _avg_pool_3x3_s2_p1_nhwc(x_nhwc):
    # AvgPool2d(3, stride=2, padding=1, count_include_pad=False), NHWC layout
    zero = jnp.array(0.0, x_nhwc.dtype)
    sums = lax.reduce_window(x_nhwc, zero, lax.add, (1, 3, 3, 1),
                             (1, 2, 2, 1),
                             [(0, 0), (1, 1), (1, 1), (0, 0)])
    ones = jnp.ones(x_nhwc.shape[1:3], x_nhwc.dtype)
    counts = lax.reduce_window(ones, zero, lax.add, (3, 3), (2, 2),
                               [(1, 1), (1, 1)])
    return sums / counts[None, :, :, None]


def _avg_pool_3x3_s2_p1_nchw(x_nchw):
    zero = jnp.array(0.0, x_nchw.dtype)
    sums = lax.reduce_window(x_nchw, zero, lax.add, (1, 1, 3, 3),
                             (1, 1, 2, 2), [(0, 0), (0, 0), (1, 1), (1, 1)])
    ones = jnp.ones(x_nchw.shape[2:], x_nchw.dtype)
    counts = lax.reduce_window(ones, zero, lax.add, (3, 3), (2, 2),
                               [(1, 1), (1, 1)])
    return sums / counts


# ---------------------------------------------------------------------------
# MultiscaleDiscriminator forward (Pallas path, NHWC pipeline)
# ---------------------------------------------------------------------------
def multiscale_discriminator_forward(x_nchw, params,
                                     matmul_dtype=jnp.bfloat16):
    """Returns [n_dis][5] list of NCHW arrays, matching the PyTorch module."""
    outputs_all = []
    cur = jnp.transpose(x_nchw, (0, 2, 3, 1))          # NHWC once, up front
    for i, p in enumerate(params):
        if i > 0:
            cur = _avg_pool_3x3_s2_p1_nhwc(cur)
        outs = []
        # layer0: Conv + LeakyReLU
        y = _conv4x4(cur, p["w0"], p["b0"], 2, 2, True, matmul_dtype)
        outs.append(y)
        # layer1..3: Conv + InstanceNorm + LeakyReLU (all in NHWC)
        for li, stride in ((1, 2), (2, 2), (3, 1)):
            y = _conv4x4(y, p[f"w{li}"], p[f"b{li}"], stride, 2, False,
                         matmul_dtype)
            y = _instance_norm_lrelu_nhwc(y)
            outs.append(y)
        # layer4: Conv only (C_out = 1)
        y = _conv4x4(y, p["w4"], p["b4"], 1, 2, False, matmul_dtype)
        outs.append(y)
        # only the returned feature maps are transposed back to NCHW
        outputs_all.append([jnp.transpose(o, (0, 3, 1, 2)) for o in outs])
    return outputs_all


# ---------------------------------------------------------------------------
# pure-JAX reference (lax.conv / explicit IN / LeakyReLU)
# ---------------------------------------------------------------------------
def _conv_ref(x_nchw, w_hwio, b, stride, pad, matmul_dtype):
    y = lax.conv_general_dilated(
        x_nchw.astype(matmul_dtype), w_hwio.astype(matmul_dtype),
        (stride, stride), [(pad, pad), (pad, pad)],
        dimension_numbers=("NCHW", "HWIO", "NCHW"),
        preferred_element_type=jnp.float32,
        precision=lax.Precision.HIGHEST)
    return y + b.reshape(1, -1, 1, 1)


def _lrelu_ref(x, ns=0.2):
    return jnp.where(x >= 0, x, ns * x)


def _in_ref(x, eps=1e-5):
    mean = jnp.mean(x, axis=(2, 3), keepdims=True)
    var = jnp.mean((x - mean) ** 2, axis=(2, 3), keepdims=True)
    return (x - mean) / jnp.sqrt(var + eps)


def reference_forward(x_nchw, params, matmul_dtype=jnp.float32):
    outputs_all = []
    cur = x_nchw
    for i, p in enumerate(params):
        if i > 0:
            cur = _avg_pool_3x3_s2_p1_nchw(cur)
        outs = []
        y = _lrelu_ref(_conv_ref(cur, p["w0"], p["b0"], 2, 2, matmul_dtype))
        outs.append(y)
        for li, stride in ((1, 2), (2, 2), (3, 1)):
            y = _lrelu_ref(_in_ref(_conv_ref(y, p[f"w{li}"], p[f"b{li}"],
                                             stride, 2, matmul_dtype)))
            outs.append(y)
        y = _conv_ref(y, p["w4"], p["b4"], 1, 2, matmul_dtype)
        outs.append(y)
        outputs_all.append(outs)
    return outputs_all


# ---------------------------------------------------------------------------
# parameter init (matches the channel plan of the PyTorch module)
# ---------------------------------------------------------------------------
def init_params(key, n_in_channels=3, n_fmaps=64, n_dis=3):
    dims = [(n_in_channels, n_fmaps), (n_fmaps, 2 * n_fmaps),
            (2 * n_fmaps, 4 * n_fmaps), (4 * n_fmaps, 8 * n_fmaps),
            (8 * n_fmaps, 1)]
    params = []
    for _ in range(n_dis):
        p = {}
        for li, (cin, cout) in enumerate(dims):
            key, kw, kb = jax.random.split(key, 3)
            scale = 1.0 / np.sqrt(4 * 4 * cin)
            p[f"w{li}"] = scale * jax.random.normal(
                kw, (4, 4, cin, cout), jnp.float32)
            p[f"b{li}"] = scale * jax.random.normal(kb, (cout,), jnp.float32)
        params.append(p)
    return params


if __name__ == "__main__":
    key = jax.random.PRNGKey(0)
    kx, kp = jax.random.split(key)

    batch, n_in, n_fmaps, n_dis, spatial = 2, 3, 16, 3, 32
    x = jax.random.normal(kx, (batch, n_in, spatial, spatial), jnp.float32)
    params = init_params(kp, n_in, n_fmaps, n_dis)

    # --- exact-algorithm check: f32 MXU path vs f32 reference -------------
    fwd_f32 = jax.jit(functools.partial(multiscale_discriminator_forward,
                                        matmul_dtype=jnp.float32))
    outs_f32 = fwd_f32(x, params)
    jax.block_until_ready(outs_f32)
    ref_f32 = reference_forward(x, params, matmul_dtype=jnp.float32)
    assert len(outs_f32) == n_dis and all(len(o) == 5 for o in outs_f32)
    for d in range(n_dis):
        for l in range(5):
            assert outs_f32[d][l].shape == ref_f32[d][l].shape
            np.testing.assert_allclose(
                np.asarray(outs_f32[d][l]), np.asarray(ref_f32[d][l]),
                rtol=2e-3, atol=2e-3, err_msg=f"f32 scale{d} layer{l}")

    # --- fast path: bf16 MXU operands + f32 accumulation (default) --------
    fwd_bf16 = jax.jit(multiscale_discriminator_forward)
    outs_bf16 = fwd_bf16(x, params)
    jax.block_until_ready(outs_bf16)
    ref_bf16 = reference_forward(x, params, matmul_dtype=jnp.bfloat16)
    for d in range(n_dis):
        for l in range(5):
            np.testing.assert_allclose(
                np.asarray(outs_bf16[d][l]), np.asarray(ref_bf16[d][l]),
                rtol=1e-2, atol=1e-2, err_msg=f"bf16 scale{d} layer{l}")

    print("KERNEL_OK")
</pallas_src>

<mosaic_0001>
module attributes {stable_mosaic.version = 11 : i64} {
  func.func @_matmul_bias_act_kernel(%arg0: i32, %arg1: i32, %arg2: i32, %arg3: memref<128x48xf32, #tpu.memory_space<vmem>>, %arg4: memref<48x128xf32, #tpu.memory_space<vmem>>, %arg5: memref<1x128xf32, #tpu.memory_space<vmem>>, %arg6: memref<128x128xf32, #tpu.memory_space<vmem>>, %arg7: memref<128x128xf32, #tpu.memory_space<vmem>>) attributes {dimension_semantics = [#tpu.dimension_semantics<parallel>, #tpu.dimension_semantics<parallel>, #tpu.dimension_semantics<arbitrary>], iteration_bounds = array<i64: 5, 1, 1>, scalar_prefetch = 0 : i64, scratch_operands = 1 : i64, tpu.core_type = #tpu.core_type<tc>, window_params = [{transform_indices = @transform_0, window_bounds = array<i64: 128, 48>}, {transform_indices = @transform_1, window_bounds = array<i64: 48, 128>}, {transform_indices = @transform_2, window_bounds = array<i64: 1, 128>}, {transform_indices = @transform_3, window_bounds = array<i64: 128, 128>}]} {
    %c0_i32 = arith.constant 0 : i32
    %0 = arith.cmpi eq, %arg2, %c0_i32 : i32
    %1 = arith.extui %0 : i1 to i32
    %c0_i32_0 = arith.constant 0 : i32
    %2 = arith.cmpi ne, %1, %c0_i32_0 : i32
    scf.if %2 {
      %cst_10 = arith.constant 0.000000e+00 : f32
      %12 = vector.broadcast %cst_10 : f32 to vector<128x128xf32>
      %c0_11 = arith.constant 0 : index
      %c0_12 = arith.constant 0 : index
      %13 = vector.load %arg7[%c0_11, %c0_12] : memref<128x128xf32, #tpu.memory_space<vmem>>, vector<128x128xf32>
      tpu.vector_store %arg7[%c0_11, %c0_12], %12 {strides = array<i32>} : memref<128x128xf32, #tpu.memory_space<vmem>>, vector<128x128xf32>,
    } else {
    }
    %c0 = arith.constant 0 : index
    %c0_1 = arith.constant 0 : index
    %3 = vector.load %arg7[%c0, %c0_1] : memref<128x128xf32, #tpu.memory_space<vmem>>, vector<128x128xf32>
    %c0_2 = arith.constant 0 : index
    %c0_3 = arith.constant 0 : index
    %4 = vector.load %arg3[%c0_2, %c0_3] : memref<128x48xf32, #tpu.memory_space<vmem>>, vector<128x48xf32>
    %c0_4 = arith.constant 0 : index
    %c0_5 = arith.constant 0 : index
    %5 = vector.load %arg4[%c0_4, %c0_5] : memref<48x128xf32, #tpu.memory_space<vmem>>, vector<48x128xf32>
    %cst = arith.constant dense<0.000000e+00> : vector<128x128xf32>
    %6 = tpu.matmul %4, %5, %cst {dimension_numbers = #tpu.dot_dimension_numbers<[1], [0], [0], [1], [0, 0, 1, 1], [], []>} : vector<128x48xf32>, vector<48x128xf32>, vector<128x128xf32> -> vector<128x128xf32>
    %7 = arith.addf %3, %6 : vector<128x128xf32>
    %c0_6 = arith.constant 0 : index
    %c0_7 = arith.constant 0 : index
    %8 = vector.load %arg7[%c0_6, %c0_7] : memref<128x128xf32, #tpu.memory_space<vmem>>, vector<128x128xf32>
    tpu.vector_store %arg7[%c0_6, %c0_7], %7 {strides = array<i32>} : memref<128x128xf32, #tpu.memory_space<vmem>>, vector<128x128xf32>,
    %c0_i32_8 = arith.constant 0 : i32
    %9 = arith.cmpi eq, %arg2, %c0_i32_8 : i32
    %10 = arith.extui %9 : i1 to i32
    %c0_i32_9 = arith.constant 0 : i32
    %11 = arith.cmpi ne, %10, %c0_i32_9 : i32
    scf.if %11 {
      %c0_10 = arith.constant 0 : index
      %c0_11 = arith.constant 0 : index
      %12 = vector.load %arg7[%c0_10, %c0_11] : memref<128x128xf32, #tpu.memory_space<vmem>>, vector<128x128xf32>
      %c0_12 = arith.constant 0 : index
      %c0_13 = arith.constant 0 : index
      %13 = vector.load %arg5[%c0_12, %c0_13] : memref<1x128xf32, #tpu.memory_space<vmem>>, vector<1x128xf32>
      %14 = vector.broadcast %13 : vector<1x128xf32> to vector<128x128xf32>
      %15 = arith.addf %12, %14 : vector<128x128xf32>
      %cst_14 = arith.constant 0.000000e+00 : f32
      %16 = vector.broadcast %cst_14 : f32 to vector<128x128xf32>
      %17 = arith.cmpf oge, %15, %16 : vector<128x128xf32>
      %cst_15 = arith.constant 2.000000e-01 : f32
      %18 = vector.broadcast %cst_15 : f32 to vector<128x128xf32>
      %19 = arith.mulf %18, %15 : vector<128x128xf32>
      %20 = arith.select %17, %15, %19 : vector<128x128xi1>, vector<128x128xf32>
      %c0_16 = arith.constant 0 : index
      %c0_17 = arith.constant 0 : index
      %21 = vector.load %arg6[%c0_16, %c0_17] : memref<128x128xf32, #tpu.memory_space<vmem>>, vector<128x128xf32>
      tpu.vector_store %arg6[%c0_16, %c0_17], %20 {strides = array<i32>} : memref<128x128xf32, #tpu.memory_space<vmem>>, vector<128x128xf32>,
    } else {
    }
    return
  }
  func.func @transform_0(%arg0: i32, %arg1: i32, %arg2: i32) -> (i32, i32) {
    %c0_i32 = arith.constant 0 : i32
    return %arg0, %arg2 : i32, i32
  }
  func.func @transform_1(%arg0: i32, %arg1: i32, %arg2: i32) -> (i32, i32) {
    %c0_i32 = arith.constant 0 : i32
    return %arg2, %arg1 : i32, i32
  }
  func.func @transform_2(%arg0: i32, %arg1: i32, %arg2: i32) -> (i32, i32) {
    %c0_i32 = arith.constant 0 : i32
    %c0_i32_0 = arith.constant 0 : i32
    return %c0_i32, %arg1 : i32, i32
  }
  func.func @transform_3(%arg0: i32, %arg1: i32, %arg2: i32) -> (i32, i32) {
    %c0_i32 = arith.constant 0 : i32
    return %arg0, %arg1 : i32, i32
  }
}

module attributes {stable_mosaic.version = 11 : i64} {
  func.func @_matmul_bias_act_kernel(%arg0: i32, %arg1: i32, %arg2: i32, %arg3: memref<128x256xf32, #tpu.memory_space<vmem>>, %arg4: memref<256x128xf32, #tpu.memory_space<vmem>>, %arg5: memref<1x128xf32, #tpu.memory_space<vmem>>, %arg6: memref<128x128xf32, #tpu.memory_space<vmem>>, %arg7: memref<128x128xf32, #tpu.memory_space<vmem>>) attributes {dimension_semantics = [#tpu.dimension_semantics<parallel>, #tpu.dimension_semantics<parallel>, #tpu.dimension_semantics<arbitrary>], iteration_bounds = array<i64: 2, 1, 1>, scalar_prefetch = 0 : i64, scratch_operands = 1 : i64, tpu.core_type = #tpu.core_type<tc>, window_params = [{transform_indices = @transform_0, window_bounds = array<i64: 128, 256>}, {transform_indices = @transform_1, window_bounds = array<i64: 256, 128>}, {transform_indices = @transform_2, window_bounds = array<i64: 1, 128>}, {transform_indices = @transform_3, window_bounds = array<i64: 128, 128>}]} {
    %c0_i32 = arith.constant 0 : i32
    %0 = arith.cmpi eq, %arg2, %c0_i32 : i32
    %1 = arith.extui %0 : i1 to i32
    %c0_i32_0 = arith.constant 0 : i32
    %2 = arith.cmpi ne, %1, %c0_i32_0 : i32
    scf.if %2 {
      %cst_10 = arith.constant 0.000000e+00 : f32
      %12 = vector.broadcast %cst_10 : f32 to vector<128x128xf32>
      %c0_11 = arith.constant 0 : index
      %c0_12 = arith.constant 0 : index
      %13 = vector.load %arg7[%c0_11, %c0_12] : memref<128x128xf32, #tpu.memory_space<vmem>>, vector<128x128xf32>
      tpu.vector_store %arg7[%c0_11, %c0_12], %12 {strides = array<i32>} : memref<128x128xf32, #tpu.memory_space<vmem>>, vector<128x128xf32>,
    } else {
    }
    %c0 = arith.constant 0 : index
    %c0_1 = arith.constant 0 : index
    %3 = vector.load %arg7[%c0, %c0_1] : memref<128x128xf32, #tpu.memory_space<vmem>>, vector<128x128xf32>
    %c0_2 = arith.constant 0 : index
    %c0_3 = arith.constant 0 : index
    %4 = vector.load %arg3[%c0_2, %c0_3] : memref<128x256xf32, #tpu.memory_space<vmem>>, vector<128x256xf32>
    %c0_4 = arith.constant 0 : index
    %c0_5 = arith.constant 0 : index
    %5 = vector.load %arg4[%c0_4, %c0_5] : memref<256x128xf32, #tpu.memory_space<vmem>>, vector<256x128xf32>
    %cst = arith.constant dense<0.000000e+00> : vector<128x128xf32>
    %6 = tpu.matmul %4, %5, %cst {dimension_numbers = #tpu.dot_dimension_numbers<[1], [0], [0], [1], [0, 0, 1, 1], [], []>} : vector<128x256xf32>, vector<256x128xf32>, vector<128x128xf32> -> vector<128x128xf32>
    %7 = arith.addf %3, %6 : vector<128x128xf32>
    %c0_6 = arith.constant 0 : index
    %c0_7 = arith.constant 0 : index
    %8 = vector.load %arg7[%c0_6, %c0_7] : memref<128x128xf32, #tpu.memory_space<vmem>>, vector<128x128xf32>
    tpu.vector_store %arg7[%c0_6, %c0_7], %7 {strides = array<i32>} : memref<128x128xf32, #tpu.memory_space<vmem>>, vector<128x128xf32>,
    %c0_i32_8 = arith.constant 0 : i32
    %9 = arith.cmpi eq, %arg2, %c0_i32_8 : i32
    %10 = arith.extui %9 : i1 to i32
    %c0_i32_9 = arith.constant 0 : i32
    %11 = arith.cmpi ne, %10, %c0_i32_9 : i32
    scf.if %11 {
      %c0_10 = arith.constant 0 : index
      %c0_11 = arith.constant 0 : index
      %12 = vector.load %arg7[%c0_10, %c0_11] : memref<128x128xf32, #tpu.memory_space<vmem>>, vector<128x128xf32>
      %c0_12 = arith.constant 0 : index
      %c0_13 = arith.constant 0 : index
      %13 = vector.load %arg5[%c0_12, %c0_13] : memref<1x128xf32, #tpu.memory_space<vmem>>, vector<1x128xf32>
      %14 = vector.broadcast %13 : vector<1x128xf32> to vector<128x128xf32>
      %15 = arith.addf %12, %14 : vector<128x128xf32>
      %c0_14 = arith.constant 0 : index
      %c0_15 = arith.constant 0 : index
      %16 = vector.load %arg6[%c0_14, %c0_15] : memref<128x128xf32, #tpu.memory_space<vmem>>, vector<128x128xf32>
      tpu.vector_store %arg6[%c0_14, %c0_15], %15 {strides = array<i32>} : memref<128x128xf32, #tpu.memory_space<vmem>>, vector<128x128xf32>,
    } else {
    }
    return
  }
  func.func @transform_0(%arg0: i32, %arg1: i32, %arg2: i32) -> (i32, i32) {
    %c0_i32 = arith.constant 0 : i32
    return %arg0, %arg2 : i32, i32
  }
  func.func @transform_1(%arg0: i32, %arg1: i32, %arg2: i32) -> (i32, i32) {
    %c0_i32 = arith.constant 0 : i32
    return %arg2, %arg1 : i32, i32
  }
  func.func @transform_2(%arg0: i32, %arg1: i32, %arg2: i32) -> (i32, i32) {
    %c0_i32 = arith.constant 0 : i32
    %c0_i32_0 = arith.constant 0 : i32
    return %c0_i32, %arg1 : i32, i32
  }
  func.func @transform_3(%arg0: i32, %arg1: i32, %arg2: i32) -> (i32, i32) {
    %c0_i32 = arith.constant 0 : i32
    return %arg0, %arg1 : i32, i32
  }
}

module attributes {stable_mosaic.version = 11 : i64} {
  func.func @_instnorm_lrelu_nhwc_kernel(%arg0: i32, %arg1: i32, %arg2: memref<1x81x32xf32, #tpu.memory_space<vmem>>, %arg3: memref<1x81x32xf32, #tpu.memory_space<vmem>>) attributes {dimension_semantics = [#tpu.dimension_semantics<parallel>, #tpu.dimension_semantics<parallel>], iteration_bounds = array<i64: 2, 1>, scalar_prefetch = 0 : i64, scratch_operands = 0 : i64, tpu.core_type = #tpu.core_type<tc>, window_params = [{transform_indices = @transform_0, window_bounds = array<i64: 1, 81, 32>}, {transform_indices = @transform_1, window_bounds = array<i64: 1, 81, 32>}]} {
    %c0 = arith.constant 0 : index
    %c0_0 = arith.constant 0 : index
    %c0_1 = arith.constant 0 : index
    %0 = vector.load %arg2[%c0, %c0_0, %c0_1] : memref<1x81x32xf32, #tpu.memory_space<vmem>>, vector<1x81x32xf32>
    %cst = arith.constant dense<0.000000e+00> : vector<1x32xf32>
    %1 = vector.multi_reduction <add>, %0, %cst [1] : vector<1x81x32xf32> to vector<1x32xf32>
    %2 = vector.shape_cast %1 : vector<1x32xf32> to vector<1x1x32xf32>
    %cst_2 = arith.constant 0.0123456791 : f32
    %3 = vector.broadcast %cst_2 : f32 to vector<1x1x32xf32>
    %4 = arith.mulf %2, %3 : vector<1x1x32xf32>
    %5 = vector.broadcast %4 : vector<1x1x32xf32> to vector<1x81x32xf32>
    %6 = arith.subf %0, %5 : vector<1x81x32xf32>
    %7 = arith.mulf %6, %6 : vector<1x81x32xf32>
    %cst_3 = arith.constant dense<0.000000e+00> : vector<1x32xf32>
    %8 = vector.multi_reduction <add>, %7, %cst_3 [1] : vector<1x81x32xf32> to vector<1x32xf32>
    %9 = vector.shape_cast %8 : vector<1x32xf32> to vector<1x1x32xf32>
    %cst_4 = arith.constant 0.0123456791 : f32
    %10 = vector.broadcast %cst_4 : f32 to vector<1x1x32xf32>
    %11 = arith.mulf %9, %10 : vector<1x1x32xf32>
    %cst_5 = arith.constant 9.99999974E-6 : f32
    %12 = vector.broadcast %cst_5 : f32 to vector<1x1x32xf32>
    %13 = arith.addf %11, %12 : vector<1x1x32xf32>
    %14 = math.rsqrt %13 : vector<1x1x32xf32>
    %15 = vector.broadcast %14 : vector<1x1x32xf32> to vector<1x81x32xf32>
    %16 = arith.mulf %6, %15 : vector<1x81x32xf32>
    %cst_6 = arith.constant 0.000000e+00 : f32
    %17 = vector.broadcast %cst_6 : f32 to vector<1x81x32xf32>
    %18 = arith.cmpf oge, %16, %17 : vector<1x81x32xf32>
    %cst_7 = arith.constant 2.000000e-01 : f32
    %19 = vector.broadcast %cst_7 : f32 to vector<1x81x32xf32>
    %20 = arith.mulf %19, %16 : vector<1x81x32xf32>
    %21 = arith.select %18, %16, %20 : vector<1x81x32xi1>, vector<1x81x32xf32>
    %c0_8 = arith.constant 0 : index
    %c0_9 = arith.constant 0 : index
    %c0_10 = arith.constant 0 : index
    %22 = vector.load %arg3[%c0_8, %c0_9, %c0_10] : memref<1x81x32xf32, #tpu.memory_space<vmem>>, vector<1x81x32xf32>
    tpu.vector_store %arg3[%c0_8, %c0_9, %c0_10], %21 {strides = array<i32>} : memref<1x81x32xf32, #tpu.memory_space<vmem>>, vector<1x81x32xf32>,
    return
  }
  func.func @transform_0(%arg0: i32, %arg1: i32) -> (i32, i32, i32) {
    %c0_i32 = arith.constant 0 : i32
    %c0_i32_0 = arith.constant 0 : i32
    return %arg0, %c0_i32, %arg1 : i32, i32, i32
  }
  func.func @transform_1(%arg0: i32, %arg1: i32) -> (i32, i32, i32) {
    %c0_i32 = arith.constant 0 : i32
    %c0_i32_0 = arith.constant 0 : i32
    return %arg0, %c0_i32, %arg1 : i32, i32, i32
  }
}

module attributes {stable_mosaic.version = 11 : i64} {
  func.func @_matmul_bias_act_kernel(%arg0: i32, %arg1: i32, %arg2: i32, %arg3: memref<32x512xf32, #tpu.memory_space<vmem>>, %arg4: memref<512x128xf32, #tpu.memory_space<vmem>>, %arg5: memref<1x128xf32, #tpu.memory_space<vmem>>, %arg6: memref<32x128xf32, #tpu.memory_space<vmem>>, %arg7: memref<32x128xf32, #tpu.memory_space<vmem>>) attributes {dimension_semantics = [#tpu.dimension_semantics<parallel>, #tpu.dimension_semantics<parallel>, #tpu.dimension_semantics<arbitrary>], iteration_bounds = array<i64: 2, 1, 1>, scalar_prefetch = 0 : i64, scratch_operands = 1 : i64, tpu.core_type = #tpu.core_type<tc>, window_params = [{transform_indices = @transform_0, window_bounds = array<i64: 32, 512>}, {transform_indices = @transform_1, window_bounds = array<i64: 512, 128>}, {transform_indices = @transform_2, window_bounds = array<i64: 1, 128>}, {transform_indices = @transform_3, window_bounds = array<i64: 32, 128>}]} {
    %c0_i32 = arith.constant 0 : i32
    %0 = arith.cmpi eq, %arg2, %c0_i32 : i32
    %1 = arith.extui %0 : i1 to i32
    %c0_i32_0 = arith.constant 0 : i32
    %2 = arith.cmpi ne, %1, %c0_i32_0 : i32
    scf.if %2 {
      %cst_10 = arith.constant 0.000000e+00 : f32
      %12 = vector.broadcast %cst_10 : f32 to vector<32x128xf32>
      %c0_11 = arith.constant 0 : index
      %c0_12 = arith.constant 0 : index
      %13 = vector.load %arg7[%c0_11, %c0_12] : memref<32x128xf32, #tpu.memory_space<vmem>>, vector<32x128xf32>
      tpu.vector_store %arg7[%c0_11, %c0_12], %12 {strides = array<i32>} : memref<32x128xf32, #tpu.memory_space<vmem>>, vector<32x128xf32>,
    } else {
    }
    %c0 = arith.constant 0 : index
    %c0_1 = arith.constant 0 : index
    %3 = vector.load %arg7[%c0, %c0_1] : memref<32x128xf32, #tpu.memory_space<vmem>>, vector<32x128xf32>
    %c0_2 = arith.constant 0 : index
    %c0_3 = arith.constant 0 : index
    %4 = vector.load %arg3[%c0_2, %c0_3] : memref<32x512xf32, #tpu.memory_space<vmem>>, vector<32x512xf32>
    %c0_4 = arith.constant 0 : index
    %c0_5 = arith.constant 0 : index
    %5 = vector.load %arg4[%c0_4, %c0_5] : memref<512x128xf32, #tpu.memory_space<vmem>>, vector<512x128xf32>
    %cst = arith.constant dense<0.000000e+00> : vector<32x128xf32>
    %6 = tpu.matmul %4, %5, %cst {dimension_numbers = #tpu.dot_dimension_numbers<[1], [0], [0], [1], [0, 0, 1, 1], [], []>} : vector<32x512xf32>, vector<512x128xf32>, vector<32x128xf32> -> vector<32x128xf32>
    %7 = arith.addf %3, %6 : vector<32x128xf32>
    %c0_6 = arith.constant 0 : index
    %c0_7 = arith.constant 0 : index
    %8 = vector.load %arg7[%c0_6, %c0_7] : memref<32x128xf32, #tpu.memory_space<vmem>>, vector<32x128xf32>
    tpu.vector_store %arg7[%c0_6, %c0_7], %7 {strides = array<i32>} : memref<32x128xf32, #tpu.memory_space<vmem>>, vector<32x128xf32>,
    %c0_i32_8 = arith.constant 0 : i32
    %9 = arith.cmpi eq, %arg2, %c0_i32_8 : i32
    %10 = arith.extui %9 : i1 to i32
    %c0_i32_9 = arith.constant 0 : i32
    %11 = arith.cmpi ne, %10, %c0_i32_9 : i32
    scf.if %11 {
      %c0_10 = arith.constant 0 : index
      %c0_11 = arith.constant 0 : index
      %12 = vector.load %arg7[%c0_10, %c0_11] : memref<32x128xf32, #tpu.memory_space<vmem>>, vector<32x128xf32>
      %c0_12 = arith.constant 0 : index
      %c0_13 = arith.constant 0 : index
      %13 = vector.load %arg5[%c0_12, %c0_13] : memref<1x128xf32, #tpu.memory_space<vmem>>, vector<1x128xf32>
      %14 = vector.broadcast %13 : vector<1x128xf32> to vector<32x128xf32>
      %15 = arith.addf %12, %14 : vector<32x128xf32>
      %c0_14 = arith.constant 0 : index
      %c0_15 = arith.constant 0 : index
      %16 = vector.load %arg6[%c0_14, %c0_15] : memref<32x128xf32, #tpu.memory_space<vmem>>, vector<32x128xf32>
      tpu.vector_store %arg6[%c0_14, %c0_15], %15 {strides = array<i32>} : memref<32x128xf32, #tpu.memory_space<vmem>>, vector<32x128xf32>,
    } else {
    }
    return
  }
  func.func @transform_0(%arg0: i32, %arg1: i32, %arg2: i32) -> (i32, i32) {
    %c0_i32 = arith.constant 0 : i32
    return %arg0, %arg2 : i32, i32
  }
  func.func @transform_1(%arg0: i32, %arg1: i32, %arg2: i32) -> (i32, i32) {
    %c0_i32 = arith.constant 0 : i32
    return %arg2, %arg1 : i32, i32
  }
  func.func @transform_2(%arg0: i32, %arg1: i32, %arg2: i32) -> (i32, i32) {
    %c0_i32 = arith.constant 0 : i32
    %c0_i32_0 = arith.constant 0 : i32
    return %c0_i32, %arg1 : i32, i32
  }
  func.func @transform_3(%arg0: i32, %arg1: i32, %arg2: i32) -> (i32, i32) {
    %c0_i32 = arith.constant 0 : i32
    return %arg0, %arg1 : i32, i32
  }
}

module attributes {stable_mosaic.version = 11 : i64} {
  func.func @_instnorm_lrelu_nhwc_kernel(%arg0: i32, %arg1: i32, %arg2: memref<1x25x64xf32, #tpu.memory_space<vmem>>, %arg3: memref<1x25x64xf32, #tpu.memory_space<vmem>>) attributes {dimension_semantics = [#tpu.dimension_semantics<parallel>, #tpu.dimension_semantics<parallel>], iteration_bounds = array<i64: 2, 1>, scalar_prefetch = 0 : i64, scratch_operands = 0 : i64, tpu.core_type = #tpu.core_type<tc>, window_params = [{transform_indices = @transform_0, window_bounds = array<i64: 1, 25, 64>}, {transform_indices = @transform_1, window_bounds = array<i64: 1, 25, 64>}]} {
    %c0 = arith.constant 0 : index
    %c0_0 = arith.constant 0 : index
    %c0_1 = arith.constant 0 : index
    %0 = vector.load %arg2[%c0, %c0_0, %c0_1] : memref<1x25x64xf32, #tpu.memory_space<vmem>>, vector<1x25x64xf32>
    %cst = arith.constant dense<0.000000e+00> : vector<1x64xf32>
    %1 = vector.multi_reduction <add>, %0, %cst [1] : vector<1x25x64xf32> to vector<1x64xf32>
    %2 = vector.shape_cast %1 : vector<1x64xf32> to vector<1x1x64xf32>
    %cst_2 = arith.constant 4.000000e-02 : f32
    %3 = vector.broadcast %cst_2 : f32 to vector<1x1x64xf32>
    %4 = arith.mulf %2, %3 : vector<1x1x64xf32>
    %5 = vector.broadcast %4 : vector<1x1x64xf32> to vector<1x25x64xf32>
    %6 = arith.subf %0, %5 : vector<1x25x64xf32>
    %7 = arith.mulf %6, %6 : vector<1x25x64xf32>
    %cst_3 = arith.constant dense<0.000000e+00> : vector<1x64xf32>
    %8 = vector.multi_reduction <add>, %7, %cst_3 [1] : vector<1x25x64xf32> to vector<1x64xf32>
    %9 = vector.shape_cast %8 : vector<1x64xf32> to vector<1x1x64xf32>
    %cst_4 = arith.constant 4.000000e-02 : f32
    %10 = vector.broadcast %cst_4 : f32 to vector<1x1x64xf32>
    %11 = arith.mulf %9, %10 : vector<1x1x64xf32>
    %cst_5 = arith.constant 9.99999974E-6 : f32
    %12 = vector.broadcast %cst_5 : f32 to vector<1x1x64xf32>
    %13 = arith.addf %11, %12 : vector<1x1x64xf32>
    %14 = math.rsqrt %13 : vector<1x1x64xf32>
    %15 = vector.broadcast %14 : vector<1x1x64xf32> to vector<1x25x64xf32>
    %16 = arith.mulf %6, %15 : vector<1x25x64xf32>
    %cst_6 = arith.constant 0.000000e+00 : f32
    %17 = vector.broadcast %cst_6 : f32 to vector<1x25x64xf32>
    %18 = arith.cmpf oge, %16, %17 : vector<1x25x64xf32>
    %cst_7 = arith.constant 2.000000e-01 : f32
    %19 = vector.broadcast %cst_7 : f32 to vector<1x25x64xf32>
    %20 = arith.mulf %19, %16 : vector<1x25x64xf32>
    %21 = arith.select %18, %16, %20 : vector<1x25x64xi1>, vector<1x25x64xf32>
    %c0_8 = arith.constant 0 : index
    %c0_9 = arith.constant 0 : index
    %c0_10 = arith.constant 0 : index
    %22 = vector.load %arg3[%c0_8, %c0_9, %c0_10] : memref<1x25x64xf32, #tpu.memory_space<vmem>>, vector<1x25x64xf32>
    tpu.vector_store %arg3[%c0_8, %c0_9, %c0_10], %21 {strides = array<i32>} : memref<1x25x64xf32, #tpu.memory_space<vmem>>, vector<1x25x64xf32>,
    return
  }
  func.func @transform_0(%arg0: i32, %arg1: i32) -> (i32, i32, i32) {
    %c0_i32 = arith.constant 0 : i32
    %c0_i32_0 = arith.constant 0 : i32
    return %arg0, %c0_i32, %arg1 : i32, i32, i32
  }
  func.func @transform_1(%arg0: i32, %arg1: i32) -> (i32, i32, i32) {
    %c0_i32 = arith.constant 0 : i32
    %c0_i32_0 = arith.constant 0 : i32
    return %arg0, %c0_i32, %arg1 : i32, i32, i32
  }
}

module attributes {stable_mosaic.version = 11 : i64} {
  func.func @_instnorm_lrelu_nhwc_kernel(%arg0: i32, %arg1: i32, %arg2: memref<1x36x128xf32, #tpu.memory_space<vmem>>, %arg3: memref<1x36x128xf32, #tpu.memory_space<vmem>>) attributes {dimension_semantics = [#tpu.dimension_semantics<parallel>, #tpu.dimension_semantics<parallel>], iteration_bounds = array<i64: 2, 1>, scalar_prefetch = 0 : i64, scratch_operands = 0 : i64, tpu.core_type = #tpu.core_type<tc>, window_params = [{transform_indices = @transform_0, window_bounds = array<i64: 1, 36, 128>}, {transform_indices = @transform_1, window_bounds = array<i64: 1, 36, 128>}]} {
    %c0 = arith.constant 0 : index
    %c0_0 = arith.constant 0 : index
    %c0_1 = arith.constant 0 : index
    %0 = vector.load %arg2[%c0, %c0_0, %c0_1] : memref<1x36x128xf32, #tpu.memory_space<vmem>>, vector<1x36x128xf32>
    %cst = arith.constant dense<0.000000e+00> : vector<1x128xf32>
    %1 = vector.multi_reduction <add>, %0, %cst [1] : vector<1x36x128xf32> to vector<1x128xf32>
    %2 = vector.shape_cast %1 : vector<1x128xf32> to vector<1x1x128xf32>
    %cst_2 = arith.constant 0.027777778 : f32
    %3 = vector.broadcast %cst_2 : f32 to vector<1x1x128xf32>
    %4 = arith.mulf %2, %3 : vector<1x1x128xf32>
    %5 = vector.broadcast %4 : vector<1x1x128xf32> to vector<1x36x128xf32>
    %6 = arith.subf %0, %5 : vector<1x36x128xf32>
    %7 = arith.mulf %6, %6 : vector<1x36x128xf32>
    %cst_3 = arith.constant dense<0.000000e+00> : vector<1x128xf32>
    %8 = vector.multi_reduction <add>, %7, %cst_3 [1] : vector<1x36x128xf32> to vector<1x128xf32>
    %9 = vector.shape_cast %8 : vector<1x128xf32> to vector<1x1x128xf32>
    %cst_4 = arith.constant 0.027777778 : f32
    %10 = vector.broadcast %cst_4 : f32 to vector<1x1x128xf32>
    %11 = arith.mulf %9, %10 : vector<1x1x128xf32>
    %cst_5 = arith.constant 9.99999974E-6 : f32
    %12 = vector.broadcast %cst_5 : f32 to vector<1x1x128xf32>
    %13 = arith.addf %11, %12 : vector<1x1x128xf32>
    %14 = math.rsqrt %13 : vector<1x1x128xf32>
    %15 = vector.broadcast %14 : vector<1x1x128xf32> to vector<1x36x128xf32>
    %16 = arith.mulf %6, %15 : vector<1x36x128xf32>
    %cst_6 = arith.constant 0.000000e+00 : f32
    %17 = vector.broadcast %cst_6 : f32 to vector<1x36x128xf32>
    %18 = arith.cmpf oge, %16, %17 : vector<1x36x128xf32>
    %cst_7 = arith.constant 2.000000e-01 : f32
    %19 = vector.broadcast %cst_7 : f32 to vector<1x36x128xf32>
    %20 = arith.mulf %19, %16 : vector<1x36x128xf32>
    %21 = arith.select %18, %16, %20 : vector<1x36x128xi1>, vector<1x36x128xf32>
    %c0_8 = arith.constant 0 : index
    %c0_9 = arith.constant 0 : index
    %c0_10 = arith.constant 0 : index
    %22 = vector.load %arg3[%c0_8, %c0_9, %c0_10] : memref<1x36x128xf32, #tpu.memory_space<vmem>>, vector<1x36x128xf32>
    tpu.vector_store %arg3[%c0_8, %c0_9, %c0_10], %21 {strides = array<i32>} : memref<1x36x128xf32, #tpu.memory_space<vmem>>, vector<1x36x128xf32>,
    return
  }
  func.func @transform_0(%arg0: i32, %arg1: i32) -> (i32, i32, i32) {
    %c0_i32 = arith.constant 0 : i32
    %c0_i32_0 = arith.constant 0 : i32
    return %arg0, %c0_i32, %arg1 : i32, i32, i32
  }
  func.func @transform_1(%arg0: i32, %arg1: i32) -> (i32, i32, i32) {
    %c0_i32 = arith.constant 0 : i32
    %c0_i32_0 = arith.constant 0 : i32
    return %arg0, %c0_i32, %arg1 : i32, i32, i32
  }
}

module attributes {stable_mosaic.version = 11 : i64} {
  func.func @_matmul_bias_act_kernel(%arg0: i32, %arg1: i32, %arg2: i32, %arg3: memref<64x512xf32, #tpu.memory_space<vmem>>, %arg4: memref<512x128xf32, #tpu.memory_space<vmem>>, %arg5: memref<1x128xf32, #tpu.memory_space<vmem>>, %arg6: memref<64x128xf32, #tpu.memory_space<vmem>>, %arg7: memref<64x128xf32, #tpu.memory_space<vmem>>) attributes {dimension_semantics = [#tpu.dimension_semantics<parallel>, #tpu.dimension_semantics<parallel>, #tpu.dimension_semantics<arbitrary>], iteration_bounds = array<i64: 2, 1, 2>, scalar_prefetch = 0 : i64, scratch_operands = 1 : i64, tpu.core_type = #tpu.core_type<tc>, window_params = [{transform_indices = @transform_0, window_bounds = array<i64: 64, 512>}, {transform_indices = @transform_1, window_bounds = array<i64: 512, 128>}, {transform_indices = @transform_2, window_bounds = array<i64: 1, 128>}, {transform_indices = @transform_3, window_bounds = array<i64: 64, 128>}]} {
    %c0_i32 = arith.constant 0 : i32
    %0 = arith.cmpi eq, %arg2, %c0_i32 : i32
    %1 = arith.extui %0 : i1 to i32
    %c0_i32_0 = arith.constant 0 : i32
    %2 = arith.cmpi ne, %1, %c0_i32_0 : i32
    scf.if %2 {
      %cst_9 = arith.constant 0.000000e+00 : f32
      %12 = vector.broadcast %cst_9 : f32 to vector<64x128xf32>
      %c0_10 = arith.constant 0 : index
      %c0_11 = arith.constant 0 : index
      %13 = vector.load %arg7[%c0_10, %c0_11] : memref<64x128xf32, #tpu.memory_space<vmem>>, vector<64x128xf32>
      tpu.vector_store %arg7[%c0_10, %c0_11], %12 {strides = array<i32>} : memref<64x128xf32, #tpu.memory_space<vmem>>, vector<64x128xf32>,
    } else {
    }
    %c0 = arith.constant 0 : index
    %c0_1 = arith.constant 0 : index
    %3 = vector.load %arg7[%c0, %c0_1] : memref<64x128xf32, #tpu.memory_space<vmem>>, vector<64x128xf32>
    %c0_2 = arith.constant 0 : index
    %c0_3 = arith.constant 0 : index
    %4 = vector.load %arg3[%c0_2, %c0_3] : memref<64x512xf32, #tpu.memory_space<vmem>>, vector<64x512xf32>
    %c0_4 = arith.constant 0 : index
    %c0_5 = arith.constant 0 : index
    %5 = vector.load %arg4[%c0_4, %c0_5] : memref<512x128xf32, #tpu.memory_space<vmem>>, vector<512x128xf32>
    %cst = arith.constant dense<0.000000e+00> : vector<64x128xf32>
    %6 = tpu.matmul %4, %5, %cst {dimension_numbers = #tpu.dot_dimension_numbers<[1], [0], [0], [1], [0, 0, 1, 1], [], []>} : vector<64x512xf32>, vector<512x128xf32>, vector<64x128xf32> -> vector<64x128xf32>
    %7 = arith.addf %3, %6 : vector<64x128xf32>
    %c0_6 = arith.constant 0 : index
    %c0_7 = arith.constant 0 : index
    %8 = vector.load %arg7[%c0_6, %c0_7] : memref<64x128xf32, #tpu.memory_space<vmem>>, vector<64x128xf32>
    tpu.vector_store %arg7[%c0_6, %c0_7], %7 {strides = array<i32>} : memref<64x128xf32, #tpu.memory_space<vmem>>, vector<64x128xf32>,
    %c1_i32 = arith.constant 1 : i32
    %9 = arith.cmpi eq, %arg2, %c1_i32 : i32
    %10 = arith.extui %9 : i1 to i32
    %c0_i32_8 = arith.constant 0 : i32
    %11 = arith.cmpi ne, %10, %c0_i32_8 : i32
    scf.if %11 {
      %c0_9 = arith.constant 0 : index
      %c0_10 = arith.constant 0 : index
      %12 = vector.load %arg7[%c0_9, %c0_10] : memref<64x128xf32, #tpu.memory_space<vmem>>, vector<64x128xf32>
      %c0_11 = arith.constant 0 : index
      %c0_12 = arith.constant 0 : index
      %13 = vector.load %arg5[%c0_11, %c0_12] : memref<1x128xf32, #tpu.memory_space<vmem>>, vector<1x128xf32>
      %14 = vector.broadcast %13 : vector<1x128xf32> to vector<64x128xf32>
      %15 = arith.addf %12, %14 : vector<64x128xf32>
      %c0_13 = arith.constant 0 : index
      %c0_14 = arith.constant 0 : index
      %16 = vector.load %arg6[%c0_13, %c0_14] : memref<64x128xf32, #tpu.memory_space<vmem>>, vector<64x128xf32>
      tpu.vector_store %arg6[%c0_13, %c0_14], %15 {strides = array<i32>} : memref<64x128xf32, #tpu.memory_space<vmem>>, vector<64x128xf32>,
    } else {
    }
    return
  }
  func.func @transform_0(%arg0: i32, %arg1: i32, %arg2: i32) -> (i32, i32) {
    %c0_i32 = arith.constant 0 : i32
    return %arg0, %arg2 : i32, i32
  }
  func.func @transform_1(%arg0: i32, %arg1: i32, %arg2: i32) -> (i32, i32) {
    %c0_i32 = arith.constant 0 : i32
    return %arg2, %arg1 : i32, i32
  }
  func.func @transform_2(%arg0: i32, %arg1: i32, %arg2: i32) -> (i32, i32) {
    %c0_i32 = arith.constant 0 : i32
    %c0_i32_0 = arith.constant 0 : i32
    return %c0_i32, %arg1 : i32, i32
  }
  func.func @transform_3(%arg0: i32, %arg1: i32, %arg2: i32) -> (i32, i32) {
    %c0_i32 = arith.constant 0 : i32
    return %arg0, %arg1 : i32, i32
  }
}

module attributes {stable_mosaic.version = 11 : i64} {
  func.func @_matvec_kernel(%arg0: i32, %arg1: i32, %arg2: memref<64x512xf32, #tpu.memory_space<vmem>>, %arg3: memref<1x512xf32, #tpu.memory_space<vmem>>, %arg4: memref<64x1xf32, #tpu.memory_space<vmem>>, %arg5: memref<64x1xf32, #tpu.memory_space<vmem>>) attributes {dimension_semantics = [#tpu.dimension_semantics<parallel>, #tpu.dimension_semantics<arbitrary>], iteration_bounds = array<i64: 2, 4>, scalar_prefetch = 0 : i64, scratch_operands = 1 : i64, tpu.core_type = #tpu.core_type<tc>, window_params = [{transform_indices = @transform_0, window_bounds = array<i64: 64, 512>}, {transform_indices = @transform_1, window_bounds = array<i64: 1, 512>}, {transform_indices = @transform_2, window_bounds = array<i64: 64, 1>}]} {
    %c0_i32 = arith.constant 0 : i32
    %0 = arith.cmpi eq, %arg1, %c0_i32 : i32
    %1 = arith.extui %0 : i1 to i32
    %c0_i32_0 = arith.constant 0 : i32
    %2 = arith.cmpi ne, %1, %c0_i32_0 : i32
    scf.if %2 {
      %cst_9 = arith.constant 0.000000e+00 : f32
      %15 = vector.broadcast %cst_9 : f32 to vector<64x1xf32>
      %c0_10 = arith.constant 0 : index
      %c0_11 = arith.constant 0 : index
      %16 = vector.load %arg5[%c0_10, %c0_11] : memref<64x1xf32, #tpu.memory_space<vmem>>, vector<64x1xf32>
      tpu.vector_store %arg5[%c0_10, %c0_11], %15 {strides = array<i32>} : memref<64x1xf32, #tpu.memory_space<vmem>>, vector<64x1xf32>,
    } else {
    }
    %c0 = arith.constant 0 : index
    %c0_1 = arith.constant 0 : index
    %3 = vector.load %arg2[%c0, %c0_1] : memref<64x512xf32, #tpu.memory_space<vmem>>, vector<64x512xf32>
    %c0_2 = arith.constant 0 : index
    %c0_3 = arith.constant 0 : index
    %4 = vector.load %arg3[%c0_2, %c0_3] : memref<1x512xf32, #tpu.memory_space<vmem>>, vector<1x512xf32>
    %5 = vector.broadcast %4 : vector<1x512xf32> to vector<64x512xf32>
    %6 = arith.mulf %3, %5 : vector<64x512xf32>
    %c0_4 = arith.constant 0 : index
    %c0_5 = arith.constant 0 : index
    %7 = vector.load %arg5[%c0_4, %c0_5] : memref<64x1xf32, #tpu.memory_space<vmem>>, vector<64x1xf32>
    %cst = arith.constant dense<0.000000e+00> : vector<64xf32>
    %8 = vector.multi_reduction <add>, %6, %cst [1] : vector<64x512xf32> to vector<64xf32>
    %9 = vector.shape_cast %8 : vector<64xf32> to vector<64x1xf32>
    %10 = arith.addf %7, %9 : vector<64x1xf32>
    %c0_6 = arith.constant 0 : index
    %c0_7 = arith.constant 0 : index
    %11 = vector.load %arg5[%c0_6, %c0_7] : memref<64x1xf32, #tpu.memory_space<vmem>>, vector<64x1xf32>
    tpu.vector_store %arg5[%c0_6, %c0_7], %10 {strides = array<i32>} : memref<64x1xf32, #tpu.memory_space<vmem>>, vector<64x1xf32>,
    %c3_i32 = arith.constant 3 : i32
    %12 = arith.cmpi eq, %arg1, %c3_i32 : i32
    %13 = arith.extui %12 : i1 to i32
    %c0_i32_8 = arith.constant 0 : i32
    %14 = arith.cmpi ne, %13, %c0_i32_8 : i32
    scf.if %14 {
      %c0_9 = arith.constant 0 : index
      %c0_10 = arith.constant 0 : index
      %15 = vector.load %arg5[%c0_9, %c0_10] : memref<64x1xf32, #tpu.memory_space<vmem>>, vector<64x1xf32>
      %c0_11 = arith.constant 0 : index
      %c0_12 = arith.constant 0 : index
      %16 = vector.load %arg4[%c0_11, %c0_12] : memref<64x1xf32, #tpu.memory_space<vmem>>, vector<64x1xf32>
      tpu.vector_store %arg4[%c0_11, %c0_12], %15 {strides = array<i32>} : memref<64x1xf32, #tpu.memory_space<vmem>>, vector<64x1xf32>,
    } else {
    }
    return
  }
  func.func @transform_0(%arg0: i32, %arg1: i32) -> (i32, i32) {
    %c0_i32 = arith.constant 0 : i32
    return %arg0, %arg1 : i32, i32
  }
  func.func @transform_1(%arg0: i32, %arg1: i32) -> (i32, i32) {
    %c0_i32 = arith.constant 0 : i32
    %c0_i32_0 = arith.constant 0 : i32
    return %c0_i32, %arg1 : i32, i32
  }
  func.func @transform_2(%arg0: i32, %arg1: i32) -> (i32, i32) {
    %c0_i32 = arith.constant 0 : i32
    %c0_i32_0 = arith.constant 0 : i32
    return %arg0, %c0_i32 : i32, i32
  }
}

module attributes {stable_mosaic.version = 11 : i64} {
  func.func @_matmul_bias_act_kernel(%arg0: i32, %arg1: i32, %arg2: i32, %arg3: memref<128x48xf32, #tpu.memory_space<vmem>>, %arg4: memref<48x128xf32, #tpu.memory_space<vmem>>, %arg5: memref<1x128xf32, #tpu.memory_space<vmem>>, %arg6: memref<128x128xf32, #tpu.memory_space<vmem>>, %arg7: memref<128x128xf32, #tpu.memory_space<vmem>>) attributes {dimension_semantics = [#tpu.dimension_semantics<parallel>, #tpu.dimension_semantics<parallel>, #tpu.dimension_semantics<arbitrary>], iteration_bounds = array<i64: 2, 1, 1>, scalar_prefetch = 0 : i64, scratch_operands = 1 : i64, tpu.core_type = #tpu.core_type<tc>, window_params = [{transform_indices = @transform_0, window_bounds = array<i64: 128, 48>}, {transform_indices = @transform_1, window_bounds = array<i64: 48, 128>}, {transform_indices = @transform_2, window_bounds = array<i64: 1, 128>}, {transform_indices = @transform_3, window_bounds = array<i64: 128, 128>}]} {
    %c0_i32 = arith.constant 0 : i32
    %0 = arith.cmpi eq, %arg2, %c0_i32 : i32
    %1 = arith.extui %0 : i1 to i32
    %c0_i32_0 = arith.constant 0 : i32
    %2 = arith.cmpi ne, %1, %c0_i32_0 : i32
    scf.if %2 {
      %cst_10 = arith.constant 0.000000e+00 : f32
      %12 = vector.broadcast %cst_10 : f32 to vector<128x128xf32>
      %c0_11 = arith.constant 0 : index
      %c0_12 = arith.constant 0 : index
      %13 = vector.load %arg7[%c0_11, %c0_12] : memref<128x128xf32, #tpu.memory_space<vmem>>, vector<128x128xf32>
      tpu.vector_store %arg7[%c0_11, %c0_12], %12 {strides = array<i32>} : memref<128x128xf32, #tpu.memory_space<vmem>>, vector<128x128xf32>,
    } else {
    }
    %c0 = arith.constant 0 : index
    %c0_1 = arith.constant 0 : index
    %3 = vector.load %arg7[%c0, %c0_1] : memref<128x128xf32, #tpu.memory_space<vmem>>, vector<128x128xf32>
    %c0_2 = arith.constant 0 : index
    %c0_3 = arith.constant 0 : index
    %4 = vector.load %arg3[%c0_2, %c0_3] : memref<128x48xf32, #tpu.memory_space<vmem>>, vector<128x48xf32>
    %c0_4 = arith.constant 0 : index
    %c0_5 = arith.constant 0 : index
    %5 = vector.load %arg4[%c0_4, %c0_5] : memref<48x128xf32, #tpu.memory_space<vmem>>, vector<48x128xf32>
    %cst = arith.constant dense<0.000000e+00> : vector<128x128xf32>
    %6 = tpu.matmul %4, %5, %cst {dimension_numbers = #tpu.dot_dimension_numbers<[1], [0], [0], [1], [0, 0, 1, 1], [], []>} : vector<128x48xf32>, vector<48x128xf32>, vector<128x128xf32> -> vector<128x128xf32>
    %7 = arith.addf %3, %6 : vector<128x128xf32>
    %c0_6 = arith.constant 0 : index
    %c0_7 = arith.constant 0 : index
    %8 = vector.load %arg7[%c0_6, %c0_7] : memref<128x128xf32, #tpu.memory_space<vmem>>, vector<128x128xf32>
    tpu.vector_store %arg7[%c0_6, %c0_7], %7 {strides = array<i32>} : memref<128x128xf32, #tpu.memory_space<vmem>>, vector<128x128xf32>,
    %c0_i32_8 = arith.constant 0 : i32
    %9 = arith.cmpi eq, %arg2, %c0_i32_8 : i32
    %10 = arith.extui %9 : i1 to i32
    %c0_i32_9 = arith.constant 0 : i32
    %11 = arith.cmpi ne, %10, %c0_i32_9 : i32
    scf.if %11 {
      %c0_10 = arith.constant 0 : index
      %c0_11 = arith.constant 0 : index
      %12 = vector.load %arg7[%c0_10, %c0_11] : memref<128x128xf32, #tpu.memory_space<vmem>>, vector<128x128xf32>
      %c0_12 = arith.constant 0 : index
      %c0_13 = arith.constant 0 : index
      %13 = vector.load %arg5[%c0_12, %c0_13] : memref<1x128xf32, #tpu.memory_space<vmem>>, vector<1x128xf32>
      %14 = vector.broadcast %13 : vector<1x128xf32> to vector<128x128xf32>
      %15 = arith.addf %12, %14 : vector<128x128xf32>
      %cst_14 = arith.constant 0.000000e+00 : f32
      %16 = vector.broadcast %cst_14 : f32 to vector<128x128xf32>
      %17 = arith.cmpf oge, %15, %16 : vector<128x128xf32>
      %cst_15 = arith.constant 2.000000e-01 : f32
      %18 = vector.broadcast %cst_15 : f32 to vector<128x128xf32>
      %19 = arith.mulf %18, %15 : vector<128x128xf32>
      %20 = arith.select %17, %15, %19 : vector<128x128xi1>, vector<128x128xf32>
      %c0_16 = arith.constant 0 : index
      %c0_17 = arith.constant 0 : index
      %21 = vector.load %arg6[%c0_16, %c0_17] : memref<128x128xf32, #tpu.memory_space<vmem>>, vector<128x128xf32>
      tpu.vector_store %arg6[%c0_16, %c0_17], %20 {strides = array<i32>} : memref<128x128xf32, #tpu.memory_space<vmem>>, vector<128x128xf32>,
    } else {
    }
    return
  }
  func.func @transform_0(%arg0: i32, %arg1: i32, %arg2: i32) -> (i32, i32) {
    %c0_i32 = arith.constant 0 : i32
    return %arg0, %arg2 : i32, i32
  }
  func.func @transform_1(%arg0: i32, %arg1: i32, %arg2: i32) -> (i32, i32) {
    %c0_i32 = arith.constant 0 : i32
    return %arg2, %arg1 : i32, i32
  }
  func.func @transform_2(%arg0: i32, %arg1: i32, %arg2: i32) -> (i32, i32) {
    %c0_i32 = arith.constant 0 : i32
    %c0_i32_0 = arith.constant 0 : i32
    return %c0_i32, %arg1 : i32, i32
  }
  func.func @transform_3(%arg0: i32, %arg1: i32, %arg2: i32) -> (i32, i32) {
    %c0_i32 = arith.constant 0 : i32
    return %arg0, %arg1 : i32, i32
  }
}

module attributes {stable_mosaic.version = 11 : i64} {
  func.func @_instnorm_lrelu_nhwc_kernel(%arg0: i32, %arg1: i32, %arg2: memref<1x25x32xf32, #tpu.memory_space<vmem>>, %arg3: memref<1x25x32xf32, #tpu.memory_space<vmem>>) attributes {dimension_semantics = [#tpu.dimension_semantics<parallel>, #tpu.dimension_semantics<parallel>], iteration_bounds = array<i64: 2, 1>, scalar_prefetch = 0 : i64, scratch_operands = 0 : i64, tpu.core_type = #tpu.core_type<tc>, window_params = [{transform_indices = @transform_0, window_bounds = array<i64: 1, 25, 32>}, {transform_indices = @transform_1, window_bounds = array<i64: 1, 25, 32>}]} {
    %c0 = arith.constant 0 : index
    %c0_0 = arith.constant 0 : index
    %c0_1 = arith.constant 0 : index
    %0 = vector.load %arg2[%c0, %c0_0, %c0_1] : memref<1x25x32xf32, #tpu.memory_space<vmem>>, vector<1x25x32xf32>
    %cst = arith.constant dense<0.000000e+00> : vector<1x32xf32>
    %1 = vector.multi_reduction <add>, %0, %cst [1] : vector<1x25x32xf32> to vector<1x32xf32>
    %2 = vector.shape_cast %1 : vector<1x32xf32> to vector<1x1x32xf32>
    %cst_2 = arith.constant 4.000000e-02 : f32
    %3 = vector.broadcast %cst_2 : f32 to vector<1x1x32xf32>
    %4 = arith.mulf %2, %3 : vector<1x1x32xf32>
    %5 = vector.broadcast %4 : vector<1x1x32xf32> to vector<1x25x32xf32>
    %6 = arith.subf %0, %5 : vector<1x25x32xf32>
    %7 = arith.mulf %6, %6 : vector<1x25x32xf32>
    %cst_3 = arith.constant dense<0.000000e+00> : vector<1x32xf32>
    %8 = vector.multi_reduction <add>, %7, %cst_3 [1] : vector<1x25x32xf32> to vector<1x32xf32>
    %9 = vector.shape_cast %8 : vector<1x32xf32> to vector<1x1x32xf32>
    %cst_4 = arith.constant 4.000000e-02 : f32
    %10 = vector.broadcast %cst_4 : f32 to vector<1x1x32xf32>
    %11 = arith.mulf %9, %10 : vector<1x1x32xf32>
    %cst_5 = arith.constant 9.99999974E-6 : f32
    %12 = vector.broadcast %cst_5 : f32 to vector<1x1x32xf32>
    %13 = arith.addf %11, %12 : vector<1x1x32xf32>
    %14 = math.rsqrt %13 : vector<1x1x32xf32>
    %15 = vector.broadcast %14 : vector<1x1x32xf32> to vector<1x25x32xf32>
    %16 = arith.mulf %6, %15 : vector<1x25x32xf32>
    %cst_6 = arith.constant 0.000000e+00 : f32
    %17 = vector.broadcast %cst_6 : f32 to vector<1x25x32xf32>
    %18 = arith.cmpf oge, %16, %17 : vector<1x25x32xf32>
    %cst_7 = arith.constant 2.000000e-01 : f32
    %19 = vector.broadcast %cst_7 : f32 to vector<1x25x32xf32>
    %20 = arith.mulf %19, %16 : vector<1x25x32xf32>
    %21 = arith.select %18, %16, %20 : vector<1x25x32xi1>, vector<1x25x32xf32>
    %c0_8 = arith.constant 0 : index
    %c0_9 = arith.constant 0 : index
    %c0_10 = arith.constant 0 : index
    %22 = vector.load %arg3[%c0_8, %c0_9, %c0_10] : memref<1x25x32xf32, #tpu.memory_space<vmem>>, vector<1x25x32xf32>
    tpu.vector_store %arg3[%c0_8, %c0_9, %c0_10], %21 {strides = array<i32>} : memref<1x25x32xf32, #tpu.memory_space<vmem>>, vector<1x25x32xf32>,
    return
  }
  func.func @transform_0(%arg0: i32, %arg1: i32) -> (i32, i32, i32) {
    %c0_i32 = arith.constant 0 : i32
    %c0_i32_0 = arith.constant 0 : i32
    return %arg0, %c0_i32, %arg1 : i32, i32, i32
  }
  func.func @transform_1(%arg0: i32, %arg1: i32) -> (i32, i32, i32) {
    %c0_i32 = arith.constant 0 : i32
    %c0_i32_0 = arith.constant 0 : i32
    return %arg0, %c0_i32, %arg1 : i32, i32, i32
  }
}

module attributes {stable_mosaic.version = 11 : i64} {
  func.func @_matmul_bias_act_kernel(%arg0: i32, %arg1: i32, %arg2: i32, %arg3: memref<32x256xf32, #tpu.memory_space<vmem>>, %arg4: memref<256x128xf32, #tpu.memory_space<vmem>>, %arg5: memref<1x128xf32, #tpu.memory_space<vmem>>, %arg6: memref<32x128xf32, #tpu.memory_space<vmem>>, %arg7: memref<32x128xf32, #tpu.memory_space<vmem>>) attributes {dimension_semantics = [#tpu.dimension_semantics<parallel>, #tpu.dimension_semantics<parallel>, #tpu.dimension_semantics<arbitrary>], iteration_bounds = array<i64: 2, 1, 1>, scalar_prefetch = 0 : i64, scratch_operands = 1 : i64, tpu.core_type = #tpu.core_type<tc>, window_params = [{transform_indices = @transform_0, window_bounds = array<i64: 32, 256>}, {transform_indices = @transform_1, window_bounds = array<i64: 256, 128>}, {transform_indices = @transform_2, window_bounds = array<i64: 1, 128>}, {transform_indices = @transform_3, window_bounds = array<i64: 32, 128>}]} {
    %c0_i32 = arith.constant 0 : i32
    %0 = arith.cmpi eq, %arg2, %c0_i32 : i32
    %1 = arith.extui %0 : i1 to i32
    %c0_i32_0 = arith.constant 0 : i32
    %2 = arith.cmpi ne, %1, %c0_i32_0 : i32
    scf.if %2 {
      %cst_10 = arith.constant 0.000000e+00 : f32
      %12 = vector.broadcast %cst_10 : f32 to vector<32x128xf32>
      %c0_11 = arith.constant 0 : index
      %c0_12 = arith.constant 0 : index
      %13 = vector.load %arg7[%c0_11, %c0_12] : memref<32x128xf32, #tpu.memory_space<vmem>>, vector<32x128xf32>
      tpu.vector_store %arg7[%c0_11, %c0_12], %12 {strides = array<i32>} : memref<32x128xf32, #tpu.memory_space<vmem>>, vector<32x128xf32>,
    } else {
    }
    %c0 = arith.constant 0 : index
    %c0_1 = arith.constant 0 : index
    %3 = vector.load %arg7[%c0, %c0_1] : memref<32x128xf32, #tpu.memory_space<vmem>>, vector<32x128xf32>
    %c0_2 = arith.constant 0 : index
    %c0_3 = arith.constant 0 : index
    %4 = vector.load %arg3[%c0_2, %c0_3] : memref<32x256xf32, #tpu.memory_space<vmem>>, vector<32x256xf32>
    %c0_4 = arith.constant 0 : index
    %c0_5 = arith.constant 0 : index
    %5 = vector.load %arg4[%c0_4, %c0_5] : memref<256x128xf32, #tpu.memory_space<vmem>>, vector<256x128xf32>
    %cst = arith.constant dense<0.000000e+00> : vector<32x128xf32>
    %6 = tpu.matmul %4, %5, %cst {dimension_numbers = #tpu.dot_dimension_numbers<[1], [0], [0], [1], [0, 0, 1, 1], [], []>} : vector<32x256xf32>, vector<256x128xf32>, vector<32x128xf32> -> vector<32x128xf32>
    %7 = arith.addf %3, %6 : vector<32x128xf32>
    %c0_6 = arith.constant 0 : index
    %c0_7 = arith.constant 0 : index
    %8 = vector.load %arg7[%c0_6, %c0_7] : memref<32x128xf32, #tpu.memory_space<vmem>>, vector<32x128xf32>
    tpu.vector_store %arg7[%c0_6, %c0_7], %7 {strides = array<i32>} : memref<32x128xf32, #tpu.memory_space<vmem>>, vector<32x128xf32>,
    %c0_i32_8 = arith.constant 0 : i32
    %9 = arith.cmpi eq, %arg2, %c0_i32_8 : i32
    %10 = arith.extui %9 : i1 to i32
    %c0_i32_9 = arith.constant 0 : i32
    %11 = arith.cmpi ne, %10, %c0_i32_9 : i32
    scf.if %11 {
      %c0_10 = arith.constant 0 : index
      %c0_11 = arith.constant 0 : index
      %12 = vector.load %arg7[%c0_10, %c0_11] : memref<32x128xf32, #tpu.memory_space<vmem>>, vector<32x128xf32>
      %c0_12 = arith.constant 0 : index
      %c0_13 = arith.constant 0 : index
      %13 = vector.load %arg5[%c0_12, %c0_13] : memref<1x128xf32, #tpu.memory_space<vmem>>, vector<1x128xf32>
      %14 = vector.broadcast %13 : vector<1x128xf32> to vector<32x128xf32>
      %15 = arith.addf %12, %14 : vector<32x128xf32>
      %c0_14 = arith.constant 0 : index
      %c0_15 = arith.constant 0 : index
      %16 = vector.load %arg6[%c0_14, %c0_15] : memref<32x128xf32, #tpu.memory_space<vmem>>, vector<32x128xf32>
      tpu.vector_store %arg6[%c0_14, %c0_15], %15 {strides = array<i32>} : memref<32x128xf32, #tpu.memory_space<vmem>>, vector<32x128xf32>,
    } else {
    }
    return
  }
  func.func @transform_0(%arg0: i32, %arg1: i32, %arg2: i32) -> (i32, i32) {
    %c0_i32 = arith.constant 0 : i32
    return %arg0, %arg2 : i32, i32
  }
  func.func @transform_1(%arg0: i32, %arg1: i32, %arg2: i32) -> (i32, i32) {
    %c0_i32 = arith.constant 0 : i32
    return %arg2, %arg1 : i32, i32
  }
  func.func @transform_2(%arg0: i32, %arg1: i32, %arg2: i32) -> (i32, i32) {
    %c0_i32 = arith.constant 0 : i32
    %c0_i32_0 = arith.constant 0 : i32
    return %c0_i32, %arg1 : i32, i32
  }
  func.func @transform_3(%arg0: i32, %arg1: i32, %arg2: i32) -> (i32, i32) {
    %c0_i32 = arith.constant 0 : i32
    return %arg0, %arg1 : i32, i32
  }
}

module attributes {stable_mosaic.version = 11 : i64} {
  func.func @_matmul_bias_act_kernel(%arg0: i32, %arg1: i32, %arg2: i32, %arg3: memref<16x512xf32, #tpu.memory_space<vmem>>, %arg4: memref<512x128xf32, #tpu.memory_space<vmem>>, %arg5: memref<1x128xf32, #tpu.memory_space<vmem>>, %arg6: memref<16x128xf32, #tpu.memory_space<vmem>>, %arg7: memref<16x128xf32, #tpu.memory_space<vmem>>) attributes {dimension_semantics = [#tpu.dimension_semantics<parallel>, #tpu.dimension_semantics<parallel>, #tpu.dimension_semantics<arbitrary>], iteration_bounds = array<i64: 2, 1, 1>, scalar_prefetch = 0 : i64, scratch_operands = 1 : i64, tpu.core_type = #tpu.core_type<tc>, window_params = [{transform_indices = @transform_0, window_bounds = array<i64: 16, 512>}, {transform_indices = @transform_1, window_bounds = array<i64: 512, 128>}, {transform_indices = @transform_2, window_bounds = array<i64: 1, 128>}, {transform_indices = @transform_3, window_bounds = array<i64: 16, 128>}]} {
    %c0_i32 = arith.constant 0 : i32
    %0 = arith.cmpi eq, %arg2, %c0_i32 : i32
    %1 = arith.extui %0 : i1 to i32
    %c0_i32_0 = arith.constant 0 : i32
    %2 = arith.cmpi ne, %1, %c0_i32_0 : i32
    scf.if %2 {
      %cst_10 = arith.constant 0.000000e+00 : f32
      %12 = vector.broadcast %cst_10 : f32 to vector<16x128xf32>
      %c0_11 = arith.constant 0 : index
      %c0_12 = arith.constant 0 : index
      %13 = vector.load %arg7[%c0_11, %c0_12] : memref<16x128xf32, #tpu.memory_space<vmem>>, vector<16x128xf32>
      tpu.vector_store %arg7[%c0_11, %c0_12], %12 {strides = array<i32>} : memref<16x128xf32, #tpu.memory_space<vmem>>, vector<16x128xf32>,
    } else {
    }
    %c0 = arith.constant 0 : index
    %c0_1 = arith.constant 0 : index
    %3 = vector.load %arg7[%c0, %c0_1] : memref<16x128xf32, #tpu.memory_space<vmem>>, vector<16x128xf32>
    %c0_2 = arith.constant 0 : index
    %c0_3 = arith.constant 0 : index
    %4 = vector.load %arg3[%c0_2, %c0_3] : memref<16x512xf32, #tpu.memory_space<vmem>>, vector<16x512xf32>
    %c0_4 = arith.constant 0 : index
    %c0_5 = arith.constant 0 : index
    %5 = vector.load %arg4[%c0_4, %c0_5] : memref<512x128xf32, #tpu.memory_space<vmem>>, vector<512x128xf32>
    %cst = arith.constant dense<0.000000e+00> : vector<16x128xf32>
    %6 = tpu.matmul %4, %5, %cst {dimension_numbers = #tpu.dot_dimension_numbers<[1], [0], [0], [1], [0, 0, 1, 1], [], []>} : vector<16x512xf32>, vector<512x128xf32>, vector<16x128xf32> -> vector<16x128xf32>
    %7 = arith.addf %3, %6 : vector<16x128xf32>
    %c0_6 = arith.constant 0 : index
    %c0_7 = arith.constant 0 : index
    %8 = vector.load %arg7[%c0_6, %c0_7] : memref<16x128xf32, #tpu.memory_space<vmem>>, vector<16x128xf32>
    tpu.vector_store %arg7[%c0_6, %c0_7], %7 {strides = array<i32>} : memref<16x128xf32, #tpu.memory_space<vmem>>, vector<16x128xf32>,
    %c0_i32_8 = arith.constant 0 : i32
    %9 = arith.cmpi eq, %arg2, %c0_i32_8 : i32
    %10 = arith.extui %9 : i1 to i32
    %c0_i32_9 = arith.constant 0 : i32
    %11 = arith.cmpi ne, %10, %c0_i32_9 : i32
    scf.if %11 {
      %c0_10 = arith.constant 0 : index
      %c0_11 = arith.constant 0 : index
      %12 = vector.load %arg7[%c0_10, %c0_11] : memref<16x128xf32, #tpu.memory_space<vmem>>, vector<16x128xf32>
      %c0_12 = arith.constant 0 : index
      %c0_13 = arith.constant 0 : index
      %13 = vector.load %arg5[%c0_12, %c0_13] : memref<1x128xf32, #tpu.memory_space<vmem>>, vector<1x128xf32>
      %14 = vector.broadcast %13 : vector<1x128xf32> to vector<16x128xf32>
      %15 = arith.addf %12, %14 : vector<16x128xf32>
      %c0_14 = arith.constant 0 : index
      %c0_15 = arith.constant 0 : index
      %16 = vector.load %arg6[%c0_14, %c0_15] : memref<16x128xf32, #tpu.memory_space<vmem>>, vector<16x128xf32>
      tpu.vector_store %arg6[%c0_14, %c0_15], %15 {strides = array<i32>} : memref<16x128xf32, #tpu.memory_space<vmem>>, vector<16x128xf32>,
    } else {
    }
    return
  }
  func.func @transform_0(%arg0: i32, %arg1: i32, %arg2: i32) -> (i32, i32) {
    %c0_i32 = arith.constant 0 : i32
    return %arg0, %arg2 : i32, i32
  }
  func.func @transform_1(%arg0: i32, %arg1: i32, %arg2: i32) -> (i32, i32) {
    %c0_i32 = arith.constant 0 : i32
    return %arg2, %arg1 : i32, i32
  }
  func.func @transform_2(%arg0: i32, %arg1: i32, %arg2: i32) -> (i32, i32) {
    %c0_i32 = arith.constant 0 : i32
    %c0_i32_0 = arith.constant 0 : i32
    return %c0_i32, %arg1 : i32, i32
  }
  func.func @transform_3(%arg0: i32, %arg1: i32, %arg2: i32) -> (i32, i32) {
    %c0_i32 = arith.constant 0 : i32
    return %arg0, %arg1 : i32, i32
  }
}

module attributes {stable_mosaic.version = 11 : i64} {
  func.func @_instnorm_lrelu_nhwc_kernel(%arg0: i32, %arg1: i32, %arg2: memref<1x9x64xf32, #tpu.memory_space<vmem>>, %arg3: memref<1x9x64xf32, #tpu.memory_space<vmem>>) attributes {dimension_semantics = [#tpu.dimension_semantics<parallel>, #tpu.dimension_semantics<parallel>], iteration_bounds = array<i64: 2, 1>, scalar_prefetch = 0 : i64, scratch_operands = 0 : i64, tpu.core_type = #tpu.core_type<tc>, window_params = [{transform_indices = @transform_0, window_bounds = array<i64: 1, 9, 64>}, {transform_indices = @transform_1, window_bounds = array<i64: 1, 9, 64>}]} {
    %c0 = arith.constant 0 : index
    %c0_0 = arith.constant 0 : index
    %c0_1 = arith.constant 0 : index
    %0 = vector.load %arg2[%c0, %c0_0, %c0_1] : memref<1x9x64xf32, #tpu.memory_space<vmem>>, vector<1x9x64xf32>
    %cst = arith.constant dense<0.000000e+00> : vector<1x64xf32>
    %1 = vector.multi_reduction <add>, %0, %cst [1] : vector<1x9x64xf32> to vector<1x64xf32>
    %2 = vector.shape_cast %1 : vector<1x64xf32> to vector<1x1x64xf32>
    %cst_2 = arith.constant 0.111111112 : f32
    %3 = vector.broadcast %cst_2 : f32 to vector<1x1x64xf32>
    %4 = arith.mulf %2, %3 : vector<1x1x64xf32>
    %5 = vector.broadcast %4 : vector<1x1x64xf32> to vector<1x9x64xf32>
    %6 = arith.subf %0, %5 : vector<1x9x64xf32>
    %7 = arith.mulf %6, %6 : vector<1x9x64xf32>
    %cst_3 = arith.constant dense<0.000000e+00> : vector<1x64xf32>
    %8 = vector.multi_reduction <add>, %7, %cst_3 [1] : vector<1x9x64xf32> to vector<1x64xf32>
    %9 = vector.shape_cast %8 : vector<1x64xf32> to vector<1x1x64xf32>
    %cst_4 = arith.constant 0.111111112 : f32
    %10 = vector.broadcast %cst_4 : f32 to vector<1x1x64xf32>
    %11 = arith.mulf %9, %10 : vector<1x1x64xf32>
    %cst_5 = arith.constant 9.99999974E-6 : f32
    %12 = vector.broadcast %cst_5 : f32 to vector<1x1x64xf32>
    %13 = arith.addf %11, %12 : vector<1x1x64xf32>
    %14 = math.rsqrt %13 : vector<1x1x64xf32>
    %15 = vector.broadcast %14 : vector<1x1x64xf32> to vector<1x9x64xf32>
    %16 = arith.mulf %6, %15 : vector<1x9x64xf32>
    %cst_6 = arith.constant 0.000000e+00 : f32
    %17 = vector.broadcast %cst_6 : f32 to vector<1x9x64xf32>
    %18 = arith.cmpf oge, %16, %17 : vector<1x9x64xf32>
    %cst_7 = arith.constant 2.000000e-01 : f32
    %19 = vector.broadcast %cst_7 : f32 to vector<1x9x64xf32>
    %20 = arith.mulf %19, %16 : vector<1x9x64xf32>
    %21 = arith.select %18, %16, %20 : vector<1x9x64xi1>, vector<1x9x64xf32>
    %c0_8 = arith.constant 0 : index
    %c0_9 = arith.constant 0 : index
    %c0_10 = arith.constant 0 : index
    %22 = vector.load %arg3[%c0_8, %c0_9, %c0_10] : memref<1x9x64xf32, #tpu.memory_space<vmem>>, vector<1x9x64xf32>
    tpu.vector_store %arg3[%c0_8, %c0_9, %c0_10], %21 {strides = array<i32>} : memref<1x9x64xf32, #tpu.memory_space<vmem>>, vector<1x9x64xf32>,
    return
  }
  func.func @transform_0(%arg0: i32, %arg1: i32) -> (i32, i32, i32) {
    %c0_i32 = arith.constant 0 : i32
    %c0_i32_0 = arith.constant 0 : i32
    return %arg0, %c0_i32, %arg1 : i32, i32, i32
  }
  func.func @transform_1(%arg0: i32, %arg1: i32) -> (i32, i32, i32) {
    %c0_i32 = arith.constant 0 : i32
    %c0_i32_0 = arith.constant 0 : i32
    return %arg0, %c0_i32, %arg1 : i32, i32, i32
  }
}

module attributes {stable_mosaic.version = 11 : i64} {
  func.func @_instnorm_lrelu_nhwc_kernel(%arg0: i32, %arg1: i32, %arg2: memref<1x16x128xf32, #tpu.memory_space<vmem>>, %arg3: memref<1x16x128xf32, #tpu.memory_space<vmem>>) attributes {dimension_semantics = [#tpu.dimension_semantics<parallel>, #tpu.dimension_semantics<parallel>], iteration_bounds = array<i64: 2, 1>, scalar_prefetch = 0 : i64, scratch_operands = 0 : i64, tpu.core_type = #tpu.core_type<tc>, window_params = [{transform_indices = @transform_0, window_bounds = array<i64: 1, 16, 128>}, {transform_indices = @transform_1, window_bounds = array<i64: 1, 16, 128>}]} {
    %c0 = arith.constant 0 : index
    %c0_0 = arith.constant 0 : index
    %c0_1 = arith.constant 0 : index
    %0 = vector.load %arg2[%c0, %c0_0, %c0_1] : memref<1x16x128xf32, #tpu.memory_space<vmem>>, vector<1x16x128xf32>
    %cst = arith.constant dense<0.000000e+00> : vector<1x128xf32>
    %1 = vector.multi_reduction <add>, %0, %cst [1] : vector<1x16x128xf32> to vector<1x128xf32>
    %2 = vector.shape_cast %1 : vector<1x128xf32> to vector<1x1x128xf32>
    %cst_2 = arith.constant 6.250000e-02 : f32
    %3 = vector.broadcast %cst_2 : f32 to vector<1x1x128xf32>
    %4 = arith.mulf %2, %3 : vector<1x1x128xf32>
    %5 = vector.broadcast %4 : vector<1x1x128xf32> to vector<1x16x128xf32>
    %6 = arith.subf %0, %5 : vector<1x16x128xf32>
    %7 = arith.mulf %6, %6 : vector<1x16x128xf32>
    %cst_3 = arith.constant dense<0.000000e+00> : vector<1x128xf32>
    %8 = vector.multi_reduction <add>, %7, %cst_3 [1] : vector<1x16x128xf32> to vector<1x128xf32>
    %9 = vector.shape_cast %8 : vector<1x128xf32> to vector<1x1x128xf32>
    %cst_4 = arith.constant 6.250000e-02 : f32
    %10 = vector.broadcast %cst_4 : f32 to vector<1x1x128xf32>
    %11 = arith.mulf %9, %10 : vector<1x1x128xf32>
    %cst_5 = arith.constant 9.99999974E-6 : f32
    %12 = vector.broadcast %cst_5 : f32 to vector<1x1x128xf32>
    %13 = arith.addf %11, %12 : vector<1x1x128xf32>
    %14 = math.rsqrt %13 : vector<1x1x128xf32>
    %15 = vector.broadcast %14 : vector<1x1x128xf32> to vector<1x16x128xf32>
    %16 = arith.mulf %6, %15 : vector<1x16x128xf32>
    %cst_6 = arith.constant 0.000000e+00 : f32
    %17 = vector.broadcast %cst_6 : f32 to vector<1x16x128xf32>
    %18 = arith.cmpf oge, %16, %17 : vector<1x16x128xf32>
    %cst_7 = arith.constant 2.000000e-01 : f32
    %19 = vector.broadcast %cst_7 : f32 to vector<1x16x128xf32>
    %20 = arith.mulf %19, %16 : vector<1x16x128xf32>
    %21 = arith.select %18, %16, %20 : vector<1x16x128xi1>, vector<1x16x128xf32>
    %c0_8 = arith.constant 0 : index
    %c0_9 = arith.constant 0 : index
    %c0_10 = arith.constant 0 : index
    %22 = vector.load %arg3[%c0_8, %c0_9, %c0_10] : memref<1x16x128xf32, #tpu.memory_space<vmem>>, vector<1x16x128xf32>
    tpu.vector_store %arg3[%c0_8, %c0_9, %c0_10], %21 {strides = array<i32>} : memref<1x16x128xf32, #tpu.memory_space<vmem>>, vector<1x16x128xf32>,
    return
  }
  func.func @transform_0(%arg0: i32, %arg1: i32) -> (i32, i32, i32) {
    %c0_i32 = arith.constant 0 : i32
    %c0_i32_0 = arith.constant 0 : i32
    return %arg0, %c0_i32, %arg1 : i32, i32, i32
  }
  func.func @transform_1(%arg0: i32, %arg1: i32) -> (i32, i32, i32) {
    %c0_i32 = arith.constant 0 : i32
    %c0_i32_0 = arith.constant 0 : i32
    return %arg0, %c0_i32, %arg1 : i32, i32, i32
  }
}

module attributes {stable_mosaic.version = 11 : i64} {
  func.func @_matmul_bias_act_kernel(%arg0: i32, %arg1: i32, %arg2: i32, %arg3: memref<16x512xf32, #tpu.memory_space<vmem>>, %arg4: memref<512x128xf32, #tpu.memory_space<vmem>>, %arg5: memref<1x128xf32, #tpu.memory_space<vmem>>, %arg6: memref<16x128xf32, #tpu.memory_space<vmem>>, %arg7: memref<16x128xf32, #tpu.memory_space<vmem>>) attributes {dimension_semantics = [#tpu.dimension_semantics<parallel>, #tpu.dimension_semantics<parallel>, #tpu.dimension_semantics<arbitrary>], iteration_bounds = array<i64: 2, 1, 2>, scalar_prefetch = 0 : i64, scratch_operands = 1 : i64, tpu.core_type = #tpu.core_type<tc>, window_params = [{transform_indices = @transform_0, window_bounds = array<i64: 16, 512>}, {transform_indices = @transform_1, window_bounds = array<i64: 512, 128>}, {transform_indices = @transform_2, window_bounds = array<i64: 1, 128>}, {transform_indices = @transform_3, window_bounds = array<i64: 16, 128>}]} {
    %c0_i32 = arith.constant 0 : i32
    %0 = arith.cmpi eq, %arg2, %c0_i32 : i32
    %1 = arith.extui %0 : i1 to i32
    %c0_i32_0 = arith.constant 0 : i32
    %2 = arith.cmpi ne, %1, %c0_i32_0 : i32
    scf.if %2 {
      %cst_9 = arith.constant 0.000000e+00 : f32
      %12 = vector.broadcast %cst_9 : f32 to vector<16x128xf32>
      %c0_10 = arith.constant 0 : index
      %c0_11 = arith.constant 0 : index
      %13 = vector.load %arg7[%c0_10, %c0_11] : memref<16x128xf32, #tpu.memory_space<vmem>>, vector<16x128xf32>
      tpu.vector_store %arg7[%c0_10, %c0_11], %12 {strides = array<i32>} : memref<16x128xf32, #tpu.memory_space<vmem>>, vector<16x128xf32>,
    } else {
    }
    %c0 = arith.constant 0 : index
    %c0_1 = arith.constant 0 : index
    %3 = vector.load %arg7[%c0, %c0_1] : memref<16x128xf32, #tpu.memory_space<vmem>>, vector<16x128xf32>
    %c0_2 = arith.constant 0 : index
    %c0_3 = arith.constant 0 : index
    %4 = vector.load %arg3[%c0_2, %c0_3] : memref<16x512xf32, #tpu.memory_space<vmem>>, vector<16x512xf32>
    %c0_4 = arith.constant 0 : index
    %c0_5 = arith.constant 0 : index
    %5 = vector.load %arg4[%c0_4, %c0_5] : memref<512x128xf32, #tpu.memory_space<vmem>>, vector<512x128xf32>
    %cst = arith.constant dense<0.000000e+00> : vector<16x128xf32>
    %6 = tpu.matmul %4, %5, %cst {dimension_numbers = #tpu.dot_dimension_numbers<[1], [0], [0], [1], [0, 0, 1, 1], [], []>} : vector<16x512xf32>, vector<512x128xf32>, vector<16x128xf32> -> vector<16x128xf32>
    %7 = arith.addf %3, %6 : vector<16x128xf32>
    %c0_6 = arith.constant 0 : index
    %c0_7 = arith.constant 0 : index
    %8 = vector.load %arg7[%c0_6, %c0_7] : memref<16x128xf32, #tpu.memory_space<vmem>>, vector<16x128xf32>
    tpu.vector_store %arg7[%c0_6, %c0_7], %7 {strides = array<i32>} : memref<16x128xf32, #tpu.memory_space<vmem>>, vector<16x128xf32>,
    %c1_i32 = arith.constant 1 : i32
    %9 = arith.cmpi eq, %arg2, %c1_i32 : i32
    %10 = arith.extui %9 : i1 to i32
    %c0_i32_8 = arith.constant 0 : i32
    %11 = arith.cmpi ne, %10, %c0_i32_8 : i32
    scf.if %11 {
      %c0_9 = arith.constant 0 : index
      %c0_10 = arith.constant 0 : index
      %12 = vector.load %arg7[%c0_9, %c0_10] : memref<16x128xf32, #tpu.memory_space<vmem>>, vector<16x128xf32>
      %c0_11 = arith.constant 0 : index
      %c0_12 = arith.constant 0 : index
      %13 = vector.load %arg5[%c0_11, %c0_12] : memref<1x128xf32, #tpu.memory_space<vmem>>, vector<1x128xf32>
      %14 = vector.broadcast %13 : vector<1x128xf32> to vector<16x128xf32>
      %15 = arith.addf %12, %14 : vector<16x128xf32>
      %c0_13 = arith.constant 0 : index
      %c0_14 = arith.constant 0 : index
      %16 = vector.load %arg6[%c0_13, %c0_14] : memref<16x128xf32, #tpu.memory_space<vmem>>, vector<16x128xf32>
      tpu.vector_store %arg6[%c0_13, %c0_14], %15 {strides = array<i32>} : memref<16x128xf32, #tpu.memory_space<vmem>>, vector<16x128xf32>,
    } else {
    }
    return
  }
  func.func @transform_0(%arg0: i32, %arg1: i32, %arg2: i32) -> (i32, i32) {
    %c0_i32 = arith.constant 0 : i32
    return %arg0, %arg2 : i32, i32
  }
  func.func @transform_1(%arg0: i32, %arg1: i32, %arg2: i32) -> (i32, i32) {
    %c0_i32 = arith.constant 0 : i32
    return %arg2, %arg1 : i32, i32
  }
  func.func @transform_2(%arg0: i32, %arg1: i32, %arg2: i32) -> (i32, i32) {
    %c0_i32 = arith.constant 0 : i32
    %c0_i32_0 = arith.constant 0 : i32
    return %c0_i32, %arg1 : i32, i32
  }
  func.func @transform_3(%arg0: i32, %arg1: i32, %arg2: i32) -> (i32, i32) {
    %c0_i32 = arith.constant 0 : i32
    return %arg0, %arg1 : i32, i32
  }
}

module attributes {stable_mosaic.version = 11 : i64} {
  func.func @_matvec_kernel(%arg0: i32, %arg1: i32, %arg2: memref<32x512xf32, #tpu.memory_space<vmem>>, %arg3: memref<1x512xf32, #tpu.memory_space<vmem>>, %arg4: memref<32x1xf32, #tpu.memory_space<vmem>>, %arg5: memref<32x1xf32, #tpu.memory_space<vmem>>) attributes {dimension_semantics = [#tpu.dimension_semantics<parallel>, #tpu.dimension_semantics<arbitrary>], iteration_bounds = array<i64: 2, 4>, scalar_prefetch = 0 : i64, scratch_operands = 1 : i64, tpu.core_type = #tpu.core_type<tc>, window_params = [{transform_indices = @transform_0, window_bounds = array<i64: 32, 512>}, {transform_indices = @transform_1, window_bounds = array<i64: 1, 512>}, {transform_indices = @transform_2, window_bounds = array<i64: 32, 1>}]} {
    %c0_i32 = arith.constant 0 : i32
    %0 = arith.cmpi eq, %arg1, %c0_i32 : i32
    %1 = arith.extui %0 : i1 to i32
    %c0_i32_0 = arith.constant 0 : i32
    %2 = arith.cmpi ne, %1, %c0_i32_0 : i32
    scf.if %2 {
      %cst_9 = arith.constant 0.000000e+00 : f32
      %15 = vector.broadcast %cst_9 : f32 to vector<32x1xf32>
      %c0_10 = arith.constant 0 : index
      %c0_11 = arith.constant 0 : index
      %16 = vector.load %arg5[%c0_10, %c0_11] : memref<32x1xf32, #tpu.memory_space<vmem>>, vector<32x1xf32>
      tpu.vector_store %arg5[%c0_10, %c0_11], %15 {strides = array<i32>} : memref<32x1xf32, #tpu.memory_space<vmem>>, vector<32x1xf32>,
    } else {
    }
    %c0 = arith.constant 0 : index
    %c0_1 = arith.constant 0 : index
    %3 = vector.load %arg2[%c0, %c0_1] : memref<32x512xf32, #tpu.memory_space<vmem>>, vector<32x512xf32>
    %c0_2 = arith.constant 0 : index
    %c0_3 = arith.constant 0 : index
    %4 = vector.load %arg3[%c0_2, %c0_3] : memref<1x512xf32, #tpu.memory_space<vmem>>, vector<1x512xf32>
    %5 = vector.broadcast %4 : vector<1x512xf32> to vector<32x512xf32>
    %6 = arith.mulf %3, %5 : vector<32x512xf32>
    %c0_4 = arith.constant 0 : index
    %c0_5 = arith.constant 0 : index
    %7 = vector.load %arg5[%c0_4, %c0_5] : memref<32x1xf32, #tpu.memory_space<vmem>>, vector<32x1xf32>
    %cst = arith.constant dense<0.000000e+00> : vector<32xf32>
    %8 = vector.multi_reduction <add>, %6, %cst [1] : vector<32x512xf32> to vector<32xf32>
    %9 = vector.shape_cast %8 : vector<32xf32> to vector<32x1xf32>
    %10 = arith.addf %7, %9 : vector<32x1xf32>
    %c0_6 = arith.constant 0 : index
    %c0_7 = arith.constant 0 : index
    %11 = vector.load %arg5[%c0_6, %c0_7] : memref<32x1xf32, #tpu.memory_space<vmem>>, vector<32x1xf32>
    tpu.vector_store %arg5[%c0_6, %c0_7], %10 {strides = array<i32>} : memref<32x1xf32, #tpu.memory_space<vmem>>, vector<32x1xf32>,
    %c3_i32 = arith.constant 3 : i32
    %12 = arith.cmpi eq, %arg1, %c3_i32 : i32
    %13 = arith.extui %12 : i1 to i32
    %c0_i32_8 = arith.constant 0 : i32
    %14 = arith.cmpi ne, %13, %c0_i32_8 : i32
    scf.if %14 {
      %c0_9 = arith.constant 0 : index
      %c0_10 = arith.constant 0 : index
      %15 = vector.load %arg5[%c0_9, %c0_10] : memref<32x1xf32, #tpu.memory_space<vmem>>, vector<32x1xf32>
      %c0_11 = arith.constant 0 : index
      %c0_12 = arith.constant 0 : index
      %16 = vector.load %arg4[%c0_11, %c0_12] : memref<32x1xf32, #tpu.memory_space<vmem>>, vector<32x1xf32>
      tpu.vector_store %arg4[%c0_11, %c0_12], %15 {strides = array<i32>} : memref<32x1xf32, #tpu.memory_space<vmem>>, vector<32x1xf32>,
    } else {
    }
    return
  }
  func.func @transform_0(%arg0: i32, %arg1: i32) -> (i32, i32) {
    %c0_i32 = arith.constant 0 : i32
    return %arg0, %arg1 : i32, i32
  }
  func.func @transform_1(%arg0: i32, %arg1: i32) -> (i32, i32) {
    %c0_i32 = arith.constant 0 : i32
    %c0_i32_0 = arith.constant 0 : i32
    return %c0_i32, %arg1 : i32, i32
  }
  func.func @transform_2(%arg0: i32, %arg1: i32) -> (i32, i32) {
    %c0_i32 = arith.constant 0 : i32
    %c0_i32_0 = arith.constant 0 : i32
    return %arg0, %c0_i32 : i32, i32
  }
}

module attributes {stable_mosaic.version = 11 : i64} {
  func.func @_matmul_bias_act_kernel(%arg0: i32, %arg1: i32, %arg2: i32, %arg3: memref<32x48xf32, #tpu.memory_space<vmem>>, %arg4: memref<48x128xf32, #tpu.memory_space<vmem>>, %arg5: memref<1x128xf32, #tpu.memory_space<vmem>>, %arg6: memref<32x128xf32, #tpu.memory_space<vmem>>, %arg7: memref<32x128xf32, #tpu.memory_space<vmem>>) attributes {dimension_semantics = [#tpu.dimension_semantics<parallel>, #tpu.dimension_semantics<parallel>, #tpu.dimension_semantics<arbitrary>], iteration_bounds = array<i64: 2, 1, 1>, scalar_prefetch = 0 : i64, scratch_operands = 1 : i64, tpu.core_type = #tpu.core_type<tc>, window_params = [{transform_indices = @transform_0, window_bounds = array<i64: 32, 48>}, {transform_indices = @transform_1, window_bounds = array<i64: 48, 128>}, {transform_indices = @transform_2, window_bounds = array<i64: 1, 128>}, {transform_indices = @transform_3, window_bounds = array<i64: 32, 128>}]} {
    %c0_i32 = arith.constant 0 : i32
    %0 = arith.cmpi eq, %arg2, %c0_i32 : i32
    %1 = arith.extui %0 : i1 to i32
    %c0_i32_0 = arith.constant 0 : i32
    %2 = arith.cmpi ne, %1, %c0_i32_0 : i32
    scf.if %2 {
      %cst_10 = arith.constant 0.000000e+00 : f32
      %12 = vector.broadcast %cst_10 : f32 to vector<32x128xf32>
      %c0_11 = arith.constant 0 : index
      %c0_12 = arith.constant 0 : index
      %13 = vector.load %arg7[%c0_11, %c0_12] : memref<32x128xf32, #tpu.memory_space<vmem>>, vector<32x128xf32>
      tpu.vector_store %arg7[%c0_11, %c0_12], %12 {strides = array<i32>} : memref<32x128xf32, #tpu.memory_space<vmem>>, vector<32x128xf32>,
    } else {
    }
    %c0 = arith.constant 0 : index
    %c0_1 = arith.constant 0 : index
    %3 = vector.load %arg7[%c0, %c0_1] : memref<32x128xf32, #tpu.memory_space<vmem>>, vector<32x128xf32>
    %c0_2 = arith.constant 0 : index
    %c0_3 = arith.constant 0 : index
    %4 = vector.load %arg3[%c0_2, %c0_3] : memref<32x48xf32, #tpu.memory_space<vmem>>, vector<32x48xf32>
    %c0_4 = arith.constant 0 : index
    %c0_5 = arith.constant 0 : index
    %5 = vector.load %arg4[%c0_4, %c0_5] : memref<48x128xf32, #tpu.memory_space<vmem>>, vector<48x128xf32>
    %cst = arith.constant dense<0.000000e+00> : vector<32x128xf32>
    %6 = tpu.matmul %4, %5, %cst {dimension_numbers = #tpu.dot_dimension_numbers<[1], [0], [0], [1], [0, 0, 1, 1], [], []>} : vector<32x48xf32>, vector<48x128xf32>, vector<32x128xf32> -> vector<32x128xf32>
    %7 = arith.addf %3, %6 : vector<32x128xf32>
    %c0_6 = arith.constant 0 : index
    %c0_7 = arith.constant 0 : index
    %8 = vector.load %arg7[%c0_6, %c0_7] : memref<32x128xf32, #tpu.memory_space<vmem>>, vector<32x128xf32>
    tpu.vector_store %arg7[%c0_6, %c0_7], %7 {strides = array<i32>} : memref<32x128xf32, #tpu.memory_space<vmem>>, vector<32x128xf32>,
    %c0_i32_8 = arith.constant 0 : i32
    %9 = arith.cmpi eq, %arg2, %c0_i32_8 : i32
    %10 = arith.extui %9 : i1 to i32
    %c0_i32_9 = arith.constant 0 : i32
    %11 = arith.cmpi ne, %10, %c0_i32_9 : i32
    scf.if %11 {
      %c0_10 = arith.constant 0 : index
      %c0_11 = arith.constant 0 : index
      %12 = vector.load %arg7[%c0_10, %c0_11] : memref<32x128xf32, #tpu.memory_space<vmem>>, vector<32x128xf32>
      %c0_12 = arith.constant 0 : index
      %c0_13 = arith.constant 0 : index
      %13 = vector.load %arg5[%c0_12, %c0_13] : memref<1x128xf32, #tpu.memory_space<vmem>>, vector<1x128xf32>
      %14 = vector.broadcast %13 : vector<1x128xf32> to vector<32x128xf32>
      %15 = arith.addf %12, %14 : vector<32x128xf32>
      %cst_14 = arith.constant 0.000000e+00 : f32
      %16 = vector.broadcast %cst_14 : f32 to vector<32x128xf32>
      %17 = arith.cmpf oge, %15, %16 : vector<32x128xf32>
      %cst_15 = arith.constant 2.000000e-01 : f32
      %18 = vector.broadcast %cst_15 : f32 to vector<32x128xf32>
      %19 = arith.mulf %18, %15 : vector<32x128xf32>
      %20 = arith.select %17, %15, %19 : vector<32x128xi1>, vector<32x128xf32>
      %c0_16 = arith.constant 0 : index
      %c0_17 = arith.constant 0 : index
      %21 = vector.load %arg6[%c0_16, %c0_17] : memref<32x128xf32, #tpu.memory_space<vmem>>, vector<32x128xf32>
      tpu.vector_store %arg6[%c0_16, %c0_17], %20 {strides = array<i32>} : memref<32x128xf32, #tpu.memory_space<vmem>>, vector<32x128xf32>,
    } else {
    }
    return
  }
  func.func @transform_0(%arg0: i32, %arg1: i32, %arg2: i32) -> (i32, i32) {
    %c0_i32 = arith.constant 0 : i32
    return %arg0, %arg2 : i32, i32
  }
  func.func @transform_1(%arg0: i32, %arg1: i32, %arg2: i32) -> (i32, i32) {
    %c0_i32 = arith.constant 0 : i32
    return %arg2, %arg1 : i32, i32
  }
  func.func @transform_2(%arg0: i32, %arg1: i32, %arg2: i32) -> (i32, i32) {
    %c0_i32 = arith.constant 0 : i32
    %c0_i32_0 = arith.constant 0 : i32
    return %c0_i32, %arg1 : i32, i32
  }
  func.func @transform_3(%arg0: i32, %arg1: i32, %arg2: i32) -> (i32, i32) {
    %c0_i32 = arith.constant 0 : i32
    return %arg0, %arg1 : i32, i32
  }
}

module attributes {stable_mosaic.version = 11 : i64} {
  func.func @_matmul_bias_act_kernel(%arg0: i32, %arg1: i32, %arg2: i32, %arg3: memref<16x256xf32, #tpu.memory_space<vmem>>, %arg4: memref<256x128xf32, #tpu.memory_space<vmem>>, %arg5: memref<1x128xf32, #tpu.memory_space<vmem>>, %arg6: memref<16x128xf32, #tpu.memory_space<vmem>>, %arg7: memref<16x128xf32, #tpu.memory_space<vmem>>) attributes {dimension_semantics = [#tpu.dimension_semantics<parallel>, #tpu.dimension_semantics<parallel>, #tpu.dimension_semantics<arbitrary>], iteration_bounds = array<i64: 2, 1, 1>, scalar_prefetch = 0 : i64, scratch_operands = 1 : i64, tpu.core_type = #tpu.core_type<tc>, window_params = [{transform_indices = @transform_0, window_bounds = array<i64: 16, 256>}, {transform_indices = @transform_1, window_bounds = array<i64: 256, 128>}, {transform_indices = @transform_2, window_bounds = array<i64: 1, 128>}, {transform_indices = @transform_3, window_bounds = array<i64: 16, 128>}]} {
    %c0_i32 = arith.constant 0 : i32
    %0 = arith.cmpi eq, %arg2, %c0_i32 : i32
    %1 = arith.extui %0 : i1 to i32
    %c0_i32_0 = arith.constant 0 : i32
    %2 = arith.cmpi ne, %1, %c0_i32_0 : i32
    scf.if %2 {
      %cst_10 = arith.constant 0.000000e+00 : f32
      %12 = vector.broadcast %cst_10 : f32 to vector<16x128xf32>
      %c0_11 = arith.constant 0 : index
      %c0_12 = arith.constant 0 : index
      %13 = vector.load %arg7[%c0_11, %c0_12] : memref<16x128xf32, #tpu.memory_space<vmem>>, vector<16x128xf32>
      tpu.vector_store %arg7[%c0_11, %c0_12], %12 {strides = array<i32>} : memref<16x128xf32, #tpu.memory_space<vmem>>, vector<16x128xf32>,
    } else {
    }
    %c0 = arith.constant 0 : index
    %c0_1 = arith.constant 0 : index
    %3 = vector.load %arg7[%c0, %c0_1] : memref<16x128xf32, #tpu.memory_space<vmem>>, vector<16x128xf32>
    %c0_2 = arith.constant 0 : index
    %c0_3 = arith.constant 0 : index
    %4 = vector.load %arg3[%c0_2, %c0_3] : memref<16x256xf32, #tpu.memory_space<vmem>>, vector<16x256xf32>
    %c0_4 = arith.constant 0 : index
    %c0_5 = arith.constant 0 : index
    %5 = vector.load %arg4[%c0_4, %c0_5] : memref<256x128xf32, #tpu.memory_space<vmem>>, vector<256x128xf32>
    %cst = arith.constant dense<0.000000e+00> : vector<16x128xf32>
    %6 = tpu.matmul %4, %5, %cst {dimension_numbers = #tpu.dot_dimension_numbers<[1], [0], [0], [1], [0, 0, 1, 1], [], []>} : vector<16x256xf32>, vector<256x128xf32>, vector<16x128xf32> -> vector<16x128xf32>
    %7 = arith.addf %3, %6 : vector<16x128xf32>
    %c0_6 = arith.constant 0 : index
    %c0_7 = arith.constant 0 : index
    %8 = vector.load %arg7[%c0_6, %c0_7] : memref<16x128xf32, #tpu.memory_space<vmem>>, vector<16x128xf32>
    tpu.vector_store %arg7[%c0_6, %c0_7], %7 {strides = array<i32>} : memref<16x128xf32, #tpu.memory_space<vmem>>, vector<16x128xf32>,
    %c0_i32_8 = arith.constant 0 : i32
    %9 = arith.cmpi eq, %arg2, %c0_i32_8 : i32
    %10 = arith.extui %9 : i1 to i32
    %c0_i32_9 = arith.constant 0 : i32
    %11 = arith.cmpi ne, %10, %c0_i32_9 : i32
    scf.if %11 {
      %c0_10 = arith.constant 0 : index
      %c0_11 = arith.constant 0 : index
      %12 = vector.load %arg7[%c0_10, %c0_11] : memref<16x128xf32, #tpu.memory_space<vmem>>, vector<16x128xf32>
      %c0_12 = arith.constant 0 : index
      %c0_13 = arith.constant 0 : index
      %13 = vector.load %arg5[%c0_12, %c0_13] : memref<1x128xf32, #tpu.memory_space<vmem>>, vector<1x128xf32>
      %14 = vector.broadcast %13 : vector<1x128xf32> to vector<16x128xf32>
      %15 = arith.addf %12, %14 : vector<16x128xf32>
      %c0_14 = arith.constant 0 : index
      %c0_15 = arith.constant 0 : index
      %16 = vector.load %arg6[%c0_14, %c0_15] : memref<16x128xf32, #tpu.memory_space<vmem>>, vector<16x128xf32>
      tpu.vector_store %arg6[%c0_14, %c0_15], %15 {strides = array<i32>} : memref<16x128xf32, #tpu.memory_space<vmem>>, vector<16x128xf32>,
    } else {
    }
    return
  }
  func.func @transform_0(%arg0: i32, %arg1: i32, %arg2: i32) -> (i32, i32) {
    %c0_i32 = arith.constant 0 : i32
    return %arg0, %arg2 : i32, i32
  }
  func.func @transform_1(%arg0: i32, %arg1: i32, %arg2: i32) -> (i32, i32) {
    %c0_i32 = arith.constant 0 : i32
    return %arg2, %arg1 : i32, i32
  }
  func.func @transform_2(%arg0: i32, %arg1: i32, %arg2: i32) -> (i32, i32) {
    %c0_i32 = arith.constant 0 : i32
    %c0_i32_0 = arith.constant 0 : i32
    return %c0_i32, %arg1 : i32, i32
  }
  func.func @transform_3(%arg0: i32, %arg1: i32, %arg2: i32) -> (i32, i32) {
    %c0_i32 = arith.constant 0 : i32
    return %arg0, %arg1 : i32, i32
  }
}

module attributes {stable_mosaic.version = 11 : i64} {
  func.func @_instnorm_lrelu_nhwc_kernel(%arg0: i32, %arg1: i32, %arg2: memref<1x9x32xf32, #tpu.memory_space<vmem>>, %arg3: memref<1x9x32xf32, #tpu.memory_space<vmem>>) attributes {dimension_semantics = [#tpu.dimension_semantics<parallel>, #tpu.dimension_semantics<parallel>], iteration_bounds = array<i64: 2, 1>, scalar_prefetch = 0 : i64, scratch_operands = 0 : i64, tpu.core_type = #tpu.core_type<tc>, window_params = [{transform_indices = @transform_0, window_bounds = array<i64: 1, 9, 32>}, {transform_indices = @transform_1, window_bounds = array<i64: 1, 9, 32>}]} {
    %c0 = arith.constant 0 : index
    %c0_0 = arith.constant 0 : index
    %c0_1 = arith.constant 0 : index
    %0 = vector.load %arg2[%c0, %c0_0, %c0_1] : memref<1x9x32xf32, #tpu.memory_space<vmem>>, vector<1x9x32xf32>
    %cst = arith.constant dense<0.000000e+00> : vector<1x32xf32>
    %1 = vector.multi_reduction <add>, %0, %cst [1] : vector<1x9x32xf32> to vector<1x32xf32>
    %2 = vector.shape_cast %1 : vector<1x32xf32> to vector<1x1x32xf32>
    %cst_2 = arith.constant 0.111111112 : f32
    %3 = vector.broadcast %cst_2 : f32 to vector<1x1x32xf32>
    %4 = arith.mulf %2, %3 : vector<1x1x32xf32>
    %5 = vector.broadcast %4 : vector<1x1x32xf32> to vector<1x9x32xf32>
    %6 = arith.subf %0, %5 : vector<1x9x32xf32>
    %7 = arith.mulf %6, %6 : vector<1x9x32xf32>
    %cst_3 = arith.constant dense<0.000000e+00> : vector<1x32xf32>
    %8 = vector.multi_reduction <add>, %7, %cst_3 [1] : vector<1x9x32xf32> to vector<1x32xf32>
    %9 = vector.shape_cast %8 : vector<1x32xf32> to vector<1x1x32xf32>
    %cst_4 = arith.constant 0.111111112 : f32
    %10 = vector.broadcast %cst_4 : f32 to vector<1x1x32xf32>
    %11 = arith.mulf %9, %10 : vector<1x1x32xf32>
    %cst_5 = arith.constant 9.99999974E-6 : f32
    %12 = vector.broadcast %cst_5 : f32 to vector<1x1x32xf32>
    %13 = arith.addf %11, %12 : vector<1x1x32xf32>
    %14 = math.rsqrt %13 : vector<1x1x32xf32>
    %15 = vector.broadcast %14 : vector<1x1x32xf32> to vector<1x9x32xf32>
    %16 = arith.mulf %6, %15 : vector<1x9x32xf32>
    %cst_6 = arith.constant 0.000000e+00 : f32
    %17 = vector.broadcast %cst_6 : f32 to vector<1x9x32xf32>
    %18 = arith.cmpf oge, %16, %17 : vector<1x9x32xf32>
    %cst_7 = arith.constant 2.000000e-01 : f32
    %19 = vector.broadcast %cst_7 : f32 to vector<1x9x32xf32>
    %20 = arith.mulf %19, %16 : vector<1x9x32xf32>
    %21 = arith.select %18, %16, %20 : vector<1x9x32xi1>, vector<1x9x32xf32>
    %c0_8 = arith.constant 0 : index
    %c0_9 = arith.constant 0 : index
    %c0_10 = arith.constant 0 : index
    %22 = vector.load %arg3[%c0_8, %c0_9, %c0_10] : memref<1x9x32xf32, #tpu.memory_space<vmem>>, vector<1x9x32xf32>
    tpu.vector_store %arg3[%c0_8, %c0_9, %c0_10], %21 {strides = array<i32>} : memref<1x9x32xf32, #tpu.memory_space<vmem>>, vector<1x9x32xf32>,
    return
  }
  func.func @transform_0(%arg0: i32, %arg1: i32) -> (i32, i32, i32) {
    %c0_i32 = arith.constant 0 : i32
    %c0_i32_0 = arith.constant 0 : i32
    return %arg0, %c0_i32, %arg1 : i32, i32, i32
  }
  func.func @transform_1(%arg0: i32, %arg1: i32) -> (i32, i32, i32) {
    %c0_i32 = arith.constant 0 : i32
    %c0_i32_0 = arith.constant 0 : i32
    return %arg0, %c0_i32, %arg1 : i32, i32, i32
  }
}

module attributes {stable_mosaic.version = 11 : i64} {
  func.func @_matmul_bias_act_kernel(%arg0: i32, %arg1: i32, %arg2: i32, %arg3: memref<8x512xf32, #tpu.memory_space<vmem>>, %arg4: memref<512x128xf32, #tpu.memory_space<vmem>>, %arg5: memref<1x128xf32, #tpu.memory_space<vmem>>, %arg6: memref<8x128xf32, #tpu.memory_space<vmem>>, %arg7: memref<8x128xf32, #tpu.memory_space<vmem>>) attributes {dimension_semantics = [#tpu.dimension_semantics<parallel>, #tpu.dimension_semantics<parallel>, #tpu.dimension_semantics<arbitrary>], iteration_bounds = array<i64: 1, 1, 1>, scalar_prefetch = 0 : i64, scratch_operands = 1 : i64, tpu.core_type = #tpu.core_type<tc>, window_params = [{transform_indices = @transform_0, window_bounds = array<i64: 8, 512>}, {transform_indices = @transform_1, window_bounds = array<i64: 512, 128>}, {transform_indices = @transform_2, window_bounds = array<i64: 1, 128>}, {transform_indices = @transform_3, window_bounds = array<i64: 8, 128>}]} {
    %c0_i32 = arith.constant 0 : i32
    %0 = arith.cmpi eq, %arg2, %c0_i32 : i32
    %1 = arith.extui %0 : i1 to i32
    %c0_i32_0 = arith.constant 0 : i32
    %2 = arith.cmpi ne, %1, %c0_i32_0 : i32
    scf.if %2 {
      %cst_10 = arith.constant 0.000000e+00 : f32
      %12 = vector.broadcast %cst_10 : f32 to vector<8x128xf32>
      %c0_11 = arith.constant 0 : index
      %c0_12 = arith.constant 0 : index
      %13 = vector.load %arg7[%c0_11, %c0_12] : memref<8x128xf32, #tpu.memory_space<vmem>>, vector<8x128xf32>
      tpu.vector_store %arg7[%c0_11, %c0_12], %12 {strides = array<i32>} : memref<8x128xf32, #tpu.memory_space<vmem>>, vector<8x128xf32>,
    } else {
    }
    %c0 = arith.constant 0 : index
    %c0_1 = arith.constant 0 : index
    %3 = vector.load %arg7[%c0, %c0_1] : memref<8x128xf32, #tpu.memory_space<vmem>>, vector<8x128xf32>
    %c0_2 = arith.constant 0 : index
    %c0_3 = arith.constant 0 : index
    %4 = vector.load %arg3[%c0_2, %c0_3] : memref<8x512xf32, #tpu.memory_space<vmem>>, vector<8x512xf32>
    %c0_4 = arith.constant 0 : index
    %c0_5 = arith.constant 0 : index
    %5 = vector.load %arg4[%c0_4, %c0_5] : memref<512x128xf32, #tpu.memory_space<vmem>>, vector<512x128xf32>
    %cst = arith.constant dense<0.000000e+00> : vector<8x128xf32>
    %6 = tpu.matmul %4, %5, %cst {dimension_numbers = #tpu.dot_dimension_numbers<[1], [0], [0], [1], [0, 0, 1, 1], [], []>} : vector<8x512xf32>, vector<512x128xf32>, vector<8x128xf32> -> vector<8x128xf32>
    %7 = arith.addf %3, %6 : vector<8x128xf32>
    %c0_6 = arith.constant 0 : index
    %c0_7 = arith.constant 0 : index
    %8 = vector.load %arg7[%c0_6, %c0_7] : memref<8x128xf32, #tpu.memory_space<vmem>>, vector<8x128xf32>
    tpu.vector_store %arg7[%c0_6, %c0_7], %7 {strides = array<i32>} : memref<8x128xf32, #tpu.memory_space<vmem>>, vector<8x128xf32>,
    %c0_i32_8 = arith.constant 0 : i32
    %9 = arith.cmpi eq, %arg2, %c0_i32_8 : i32
    %10 = arith.extui %9 : i1 to i32
    %c0_i32_9 = arith.constant 0 : i32
    %11 = arith.cmpi ne, %10, %c0_i32_9 : i32
    scf.if %11 {
      %c0_10 = arith.constant 0 : index
      %c0_11 = arith.constant 0 : index
      %12 = vector.load %arg7[%c0_10, %c0_11] : memref<8x128xf32, #tpu.memory_space<vmem>>, vector<8x128xf32>
      %c0_12 = arith.constant 0 : index
      %c0_13 = arith.constant 0 : index
      %13 = vector.load %arg5[%c0_12, %c0_13] : memref<1x128xf32, #tpu.memory_space<vmem>>, vector<1x128xf32>
      %14 = vector.broadcast %13 : vector<1x128xf32> to vector<8x128xf32>
      %15 = arith.addf %12, %14 : vector<8x128xf32>
      %c0_14 = arith.constant 0 : index
      %c0_15 = arith.constant 0 : index
      %16 = vector.load %arg6[%c0_14, %c0_15] : memref<8x128xf32, #tpu.memory_space<vmem>>, vector<8x128xf32>
      tpu.vector_store %arg6[%c0_14, %c0_15], %15 {strides = array<i32>} : memref<8x128xf32, #tpu.memory_space<vmem>>, vector<8x128xf32>,
    } else {
    }
    return
  }
  func.func @transform_0(%arg0: i32, %arg1: i32, %arg2: i32) -> (i32, i32) {
    %c0_i32 = arith.constant 0 : i32
    return %arg0, %arg2 : i32, i32
  }
  func.func @transform_1(%arg0: i32, %arg1: i32, %arg2: i32) -> (i32, i32) {
    %c0_i32 = arith.constant 0 : i32
    return %arg2, %arg1 : i32, i32
  }
  func.func @transform_2(%arg0: i32, %arg1: i32, %arg2: i32) -> (i32, i32) {
    %c0_i32 = arith.constant 0 : i32
    %c0_i32_0 = arith.constant 0 : i32
    return %c0_i32, %arg1 : i32, i32
  }
  func.func @transform_3(%arg0: i32, %arg1: i32, %arg2: i32) -> (i32, i32) {
    %c0_i32 = arith.constant 0 : i32
    return %arg0, %arg1 : i32, i32
  }
}

module attributes {stable_mosaic.version = 11 : i64} {
  func.func @_instnorm_lrelu_nhwc_kernel(%arg0: i32, %arg1: i32, %arg2: memref<1x4x64xf32, #tpu.memory_space<vmem>>, %arg3: memref<1x4x64xf32, #tpu.memory_space<vmem>>) attributes {dimension_semantics = [#tpu.dimension_semantics<parallel>, #tpu.dimension_semantics<parallel>], iteration_bounds = array<i64: 2, 1>, scalar_prefetch = 0 : i64, scratch_operands = 0 : i64, tpu.core_type = #tpu.core_type<tc>, window_params = [{transform_indices = @transform_0, window_bounds = array<i64: 1, 4, 64>}, {transform_indices = @transform_1, window_bounds = array<i64: 1, 4, 64>}]} {
    %c0 = arith.constant 0 : index
    %c0_0 = arith.constant 0 : index
    %c0_1 = arith.constant 0 : index
    %0 = vector.load %arg2[%c0, %c0_0, %c0_1] : memref<1x4x64xf32, #tpu.memory_space<vmem>>, vector<1x4x64xf32>
    %cst = arith.constant dense<0.000000e+00> : vector<1x64xf32>
    %1 = vector.multi_reduction <add>, %0, %cst [1] : vector<1x4x64xf32> to vector<1x64xf32>
    %2 = vector.shape_cast %1 : vector<1x64xf32> to vector<1x1x64xf32>
    %cst_2 = arith.constant 2.500000e-01 : f32
    %3 = vector.broadcast %cst_2 : f32 to vector<1x1x64xf32>
    %4 = arith.mulf %2, %3 : vector<1x1x64xf32>
    %5 = vector.broadcast %4 : vector<1x1x64xf32> to vector<1x4x64xf32>
    %6 = arith.subf %0, %5 : vector<1x4x64xf32>
    %7 = arith.mulf %6, %6 : vector<1x4x64xf32>
    %cst_3 = arith.constant dense<0.000000e+00> : vector<1x64xf32>
    %8 = vector.multi_reduction <add>, %7, %cst_3 [1] : vector<1x4x64xf32> to vector<1x64xf32>
    %9 = vector.shape_cast %8 : vector<1x64xf32> to vector<1x1x64xf32>
    %cst_4 = arith.constant 2.500000e-01 : f32
    %10 = vector.broadcast %cst_4 : f32 to vector<1x1x64xf32>
    %11 = arith.mulf %9, %10 : vector<1x1x64xf32>
    %cst_5 = arith.constant 9.99999974E-6 : f32
    %12 = vector.broadcast %cst_5 : f32 to vector<1x1x64xf32>
    %13 = arith.addf %11, %12 : vector<1x1x64xf32>
    %14 = math.rsqrt %13 : vector<1x1x64xf32>
    %15 = vector.broadcast %14 : vector<1x1x64xf32> to vector<1x4x64xf32>
    %16 = arith.mulf %6, %15 : vector<1x4x64xf32>
    %cst_6 = arith.constant 0.000000e+00 : f32
    %17 = vector.broadcast %cst_6 : f32 to vector<1x4x64xf32>
    %18 = arith.cmpf oge, %16, %17 : vector<1x4x64xf32>
    %cst_7 = arith.constant 2.000000e-01 : f32
    %19 = vector.broadcast %cst_7 : f32 to vector<1x4x64xf32>
    %20 = arith.mulf %19, %16 : vector<1x4x64xf32>
    %21 = arith.select %18, %16, %20 : vector<1x4x64xi1>, vector<1x4x64xf32>
    %c0_8 = arith.constant 0 : index
    %c0_9 = arith.constant 0 : index
    %c0_10 = arith.constant 0 : index
    %22 = vector.load %arg3[%c0_8, %c0_9, %c0_10] : memref<1x4x64xf32, #tpu.memory_space<vmem>>, vector<1x4x64xf32>
    tpu.vector_store %arg3[%c0_8, %c0_9, %c0_10], %21 {strides = array<i32>} : memref<1x4x64xf32, #tpu.memory_space<vmem>>, vector<1x4x64xf32>,
    return
  }
  func.func @transform_0(%arg0: i32, %arg1: i32) -> (i32, i32, i32) {
    %c0_i32 = arith.constant 0 : i32
    %c0_i32_0 = arith.constant 0 : i32
    return %arg0, %c0_i32, %arg1 : i32, i32, i32
  }
  func.func @transform_1(%arg0: i32, %arg1: i32) -> (i32, i32, i32) {
    %c0_i32 = arith.constant 0 : i32
    %c0_i32_0 = arith.constant 0 : i32
    return %arg0, %c0_i32, %arg1 : i32, i32, i32
  }
}

module attributes {stable_mosaic.version = 11 : i64} {
  func.func @_matmul_bias_act_kernel(%arg0: i32, %arg1: i32, %arg2: i32, %arg3: memref<16x512xf32, #tpu.memory_space<vmem>>, %arg4: memref<512x128xf32, #tpu.memory_space<vmem>>, %arg5: memref<1x128xf32, #tpu.memory_space<vmem>>, %arg6: memref<16x128xf32, #tpu.memory_space<vmem>>, %arg7: memref<16x128xf32, #tpu.memory_space<vmem>>) attributes {dimension_semantics = [#tpu.dimension_semantics<parallel>, #tpu.dimension_semantics<parallel>, #tpu.dimension_semantics<arbitrary>], iteration_bounds = array<i64: 2, 1, 2>, scalar_prefetch = 0 : i64, scratch_operands = 1 : i64, tpu.core_type = #tpu.core_type<tc>, window_params = [{transform_indices = @transform_0, window_bounds = array<i64: 16, 512>}, {transform_indices = @transform_1, window_bounds = array<i64: 512, 128>}, {transform_indices = @transform_2, window_bounds = array<i64: 1, 128>}, {transform_indices = @transform_3, window_bounds = array<i64: 16, 128>}]} {
    %c0_i32 = arith.constant 0 : i32
    %0 = arith.cmpi eq, %arg2, %c0_i32 : i32
    %1 = arith.extui %0 : i1 to i32
    %c0_i32_0 = arith.constant 0 : i32
    %2 = arith.cmpi ne, %1, %c0_i32_0 : i32
    scf.if %2 {
      %cst_9 = arith.constant 0.000000e+00 : f32
      %12 = vector.broadcast %cst_9 : f32 to vector<16x128xf32>
      %c0_10 = arith.constant 0 : index
      %c0_11 = arith.constant 0 : index
      %13 = vector.load %arg7[%c0_10, %c0_11] : memref<16x128xf32, #tpu.memory_space<vmem>>, vector<16x128xf32>
      tpu.vector_store %arg7[%c0_10, %c0_11], %12 {strides = array<i32>} : memref<16x128xf32, #tpu.memory_space<vmem>>, vector<16x128xf32>,
    } else {
    }
    %c0 = arith.constant 0 : index
    %c0_1 = arith.constant 0 : index
    %3 = vector.load %arg7[%c0, %c0_1] : memref<16x128xf32, #tpu.memory_space<vmem>>, vector<16x128xf32>
    %c0_2 = arith.constant 0 : index
    %c0_3 = arith.constant 0 : index
    %4 = vector.load %arg3[%c0_2, %c0_3] : memref<16x512xf32, #tpu.memory_space<vmem>>, vector<16x512xf32>
    %c0_4 = arith.constant 0 : index
    %c0_5 = arith.constant 0 : index
    %5 = vector.load %arg4[%c0_4, %c0_5] : memref<512x128xf32, #tpu.memory_space<vmem>>, vector<512x128xf32>
    %cst = arith.constant dense<0.000000e+00> : vector<16x128xf32>
    %6 = tpu.matmul %4, %5, %cst {dimension_numbers = #tpu.dot_dimension_numbers<[1], [0], [0], [1], [0, 0, 1, 1], [], []>} : vector<16x512xf32>, vector<512x128xf32>, vector<16x128xf32> -> vector<16x128xf32>
    %7 = arith.addf %3, %6 : vector<16x128xf32>
    %c0_6 = arith.constant 0 : index
    %c0_7 = arith.constant 0 : index
    %8 = vector.load %arg7[%c0_6, %c0_7] : memref<16x128xf32, #tpu.memory_space<vmem>>, vector<16x128xf32>
    tpu.vector_store %arg7[%c0_6, %c0_7], %7 {strides = array<i32>} : memref<16x128xf32, #tpu.memory_space<vmem>>, vector<16x128xf32>,
    %c1_i32 = arith.constant 1 : i32
    %9 = arith.cmpi eq, %arg2, %c1_i32 : i32
    %10 = arith.extui %9 : i1 to i32
    %c0_i32_8 = arith.constant 0 : i32
    %11 = arith.cmpi ne, %10, %c0_i32_8 : i32
    scf.if %11 {
      %c0_9 = arith.constant 0 : index
      %c0_10 = arith.constant 0 : index
      %12 = vector.load %arg7[%c0_9, %c0_10] : memref<16x128xf32, #tpu.memory_space<vmem>>, vector<16x128xf32>
      %c0_11 = arith.constant 0 : index
      %c0_12 = arith.constant 0 : index
      %13 = vector.load %arg5[%c0_11, %c0_12] : memref<1x128xf32, #tpu.memory_space<vmem>>, vector<1x128xf32>
      %14 = vector.broadcast %13 : vector<1x128xf32> to vector<16x128xf32>
      %15 = arith.addf %12, %14 : vector<16x128xf32>
      %c0_13 = arith.constant 0 : index
      %c0_14 = arith.constant 0 : index
      %16 = vector.load %arg6[%c0_13, %c0_14] : memref<16x128xf32, #tpu.memory_space<vmem>>, vector<16x128xf32>
      tpu.vector_store %arg6[%c0_13, %c0_14], %15 {strides = array<i32>} : memref<16x128xf32, #tpu.memory_space<vmem>>, vector<16x128xf32>,
    } else {
    }
    return
  }
  func.func @transform_0(%arg0: i32, %arg1: i32, %arg2: i32) -> (i32, i32) {
    %c0_i32 = arith.constant 0 : i32
    return %arg0, %arg2 : i32, i32
  }
  func.func @transform_1(%arg0: i32, %arg1: i32, %arg2: i32) -> (i32, i32) {
    %c0_i32 = arith.constant 0 : i32
    return %arg2, %arg1 : i32, i32
  }
  func.func @transform_2(%arg0: i32, %arg1: i32, %arg2: i32) -> (i32, i32) {
    %c0_i32 = arith.constant 0 : i32
    %c0_i32_0 = arith.constant 0 : i32
    return %c0_i32, %arg1 : i32, i32
  }
  func.func @transform_3(%arg0: i32, %arg1: i32, %arg2: i32) -> (i32, i32) {
    %c0_i32 = arith.constant 0 : i32
    return %arg0, %arg1 : i32, i32
  }
}

module attributes {stable_mosaic.version = 11 : i64} {
  func.func @_instnorm_lrelu_nhwc_kernel(%arg0: i32, %arg1: i32, %arg2: memref<1x9x128xf32, #tpu.memory_space<vmem>>, %arg3: memref<1x9x128xf32, #tpu.memory_space<vmem>>) attributes {dimension_semantics = [#tpu.dimension_semantics<parallel>, #tpu.dimension_semantics<parallel>], iteration_bounds = array<i64: 2, 1>, scalar_prefetch = 0 : i64, scratch_operands = 0 : i64, tpu.core_type = #tpu.core_type<tc>, window_params = [{transform_indices = @transform_0, window_bounds = array<i64: 1, 9, 128>}, {transform_indices = @transform_1, window_bounds = array<i64: 1, 9, 128>}]} {
    %c0 = arith.constant 0 : index
    %c0_0 = arith.constant 0 : index
    %c0_1 = arith.constant 0 : index
    %0 = vector.load %arg2[%c0, %c0_0, %c0_1] : memref<1x9x128xf32, #tpu.memory_space<vmem>>, vector<1x9x128xf32>
    %cst = arith.constant dense<0.000000e+00> : vector<1x128xf32>
    %1 = vector.multi_reduction <add>, %0, %cst [1] : vector<1x9x128xf32> to vector<1x128xf32>
    %2 = vector.shape_cast %1 : vector<1x128xf32> to vector<1x1x128xf32>
    %cst_2 = arith.constant 0.111111112 : f32
    %3 = vector.broadcast %cst_2 : f32 to vector<1x1x128xf32>
    %4 = arith.mulf %2, %3 : vector<1x1x128xf32>
    %5 = vector.broadcast %4 : vector<1x1x128xf32> to vector<1x9x128xf32>
    %6 = arith.subf %0, %5 : vector<1x9x128xf32>
    %7 = arith.mulf %6, %6 : vector<1x9x128xf32>
    %cst_3 = arith.constant dense<0.000000e+00> : vector<1x128xf32>
    %8 = vector.multi_reduction <add>, %7, %cst_3 [1] : vector<1x9x128xf32> to vector<1x128xf32>
    %9 = vector.shape_cast %8 : vector<1x128xf32> to vector<1x1x128xf32>
    %cst_4 = arith.constant 0.111111112 : f32
    %10 = vector.broadcast %cst_4 : f32 to vector<1x1x128xf32>
    %11 = arith.mulf %9, %10 : vector<1x1x128xf32>
    %cst_5 = arith.constant 9.99999974E-6 : f32
    %12 = vector.broadcast %cst_5 : f32 to vector<1x1x128xf32>
    %13 = arith.addf %11, %12 : vector<1x1x128xf32>
    %14 = math.rsqrt %13 : vector<1x1x128xf32>
    %15 = vector.broadcast %14 : vector<1x1x128xf32> to vector<1x9x128xf32>
    %16 = arith.mulf %6, %15 : vector<1x9x128xf32>
    %cst_6 = arith.constant 0.000000e+00 : f32
    %17 = vector.broadcast %cst_6 : f32 to vector<1x9x128xf32>
    %18 = arith.cmpf oge, %16, %17 : vector<1x9x128xf32>
    %cst_7 = arith.constant 2.000000e-01 : f32
    %19 = vector.broadcast %cst_7 : f32 to vector<1x9x128xf32>
    %20 = arith.mulf %19, %16 : vector<1x9x128xf32>
    %21 = arith.select %18, %16, %20 : vector<1x9x128xi1>, vector<1x9x128xf32>
    %c0_8 = arith.constant 0 : index
    %c0_9 = arith.constant 0 : index
    %c0_10 = arith.constant 0 : index
    %22 = vector.load %arg3[%c0_8, %c0_9, %c0_10] : memref<1x9x128xf32, #tpu.memory_space<vmem>>, vector<1x9x128xf32>
    tpu.vector_store %arg3[%c0_8, %c0_9, %c0_10], %21 {strides = array<i32>} : memref<1x9x128xf32, #tpu.memory_space<vmem>>, vector<1x9x128xf32>,
    return
  }
  func.func @transform_0(%arg0: i32, %arg1: i32) -> (i32, i32, i32) {
    %c0_i32 = arith.constant 0 : i32
    %c0_i32_0 = arith.constant 0 : i32
    return %arg0, %c0_i32, %arg1 : i32, i32, i32
  }
  func.func @transform_1(%arg0: i32, %arg1: i32) -> (i32, i32, i32) {
    %c0_i32 = arith.constant 0 : i32
    %c0_i32_0 = arith.constant 0 : i32
    return %arg0, %c0_i32, %arg1 : i32, i32, i32
  }
}

module attributes {stable_mosaic.version = 11 : i64} {
  func.func @_matvec_kernel(%arg0: i32, %arg1: i32, %arg2: memref<16x512xf32, #tpu.memory_space<vmem>>, %arg3: memref<1x512xf32, #tpu.memory_space<vmem>>, %arg4: memref<16x1xf32, #tpu.memory_space<vmem>>, %arg5: memref<16x1xf32, #tpu.memory_space<vmem>>) attributes {dimension_semantics = [#tpu.dimension_semantics<parallel>, #tpu.dimension_semantics<arbitrary>], iteration_bounds = array<i64: 2, 4>, scalar_prefetch = 0 : i64, scratch_operands = 1 : i64, tpu.core_type = #tpu.core_type<tc>, window_params = [{transform_indices = @transform_0, window_bounds = array<i64: 16, 512>}, {transform_indices = @transform_1, window_bounds = array<i64: 1, 512>}, {transform_indices = @transform_2, window_bounds = array<i64: 16, 1>}]} {
    %c0_i32 = arith.constant 0 : i32
    %0 = arith.cmpi eq, %arg1, %c0_i32 : i32
    %1 = arith.extui %0 : i1 to i32
    %c0_i32_0 = arith.constant 0 : i32
    %2 = arith.cmpi ne, %1, %c0_i32_0 : i32
    scf.if %2 {
      %cst_9 = arith.constant 0.000000e+00 : f32
      %15 = vector.broadcast %cst_9 : f32 to vector<16x1xf32>
      %c0_10 = arith.constant 0 : index
      %c0_11 = arith.constant 0 : index
      %16 = vector.load %arg5[%c0_10, %c0_11] : memref<16x1xf32, #tpu.memory_space<vmem>>, vector<16x1xf32>
      tpu.vector_store %arg5[%c0_10, %c0_11], %15 {strides = array<i32>} : memref<16x1xf32, #tpu.memory_space<vmem>>, vector<16x1xf32>,
    } else {
    }
    %c0 = arith.constant 0 : index
    %c0_1 = arith.constant 0 : index
    %3 = vector.load %arg2[%c0, %c0_1] : memref<16x512xf32, #tpu.memory_space<vmem>>, vector<16x512xf32>
    %c0_2 = arith.constant 0 : index
    %c0_3 = arith.constant 0 : index
    %4 = vector.load %arg3[%c0_2, %c0_3] : memref<1x512xf32, #tpu.memory_space<vmem>>, vector<1x512xf32>
    %5 = vector.broadcast %4 : vector<1x512xf32> to vector<16x512xf32>
    %6 = arith.mulf %3, %5 : vector<16x512xf32>
    %c0_4 = arith.constant 0 : index
    %c0_5 = arith.constant 0 : index
    %7 = vector.load %arg5[%c0_4, %c0_5] : memref<16x1xf32, #tpu.memory_space<vmem>>, vector<16x1xf32>
    %cst = arith.constant dense<0.000000e+00> : vector<16xf32>
    %8 = vector.multi_reduction <add>, %6, %cst [1] : vector<16x512xf32> to vector<16xf32>
    %9 = vector.shape_cast %8 : vector<16xf32> to vector<16x1xf32>
    %10 = arith.addf %7, %9 : vector<16x1xf32>
    %c0_6 = arith.constant 0 : index
    %c0_7 = arith.constant 0 : index
    %11 = vector.load %arg5[%c0_6, %c0_7] : memref<16x1xf32, #tpu.memory_space<vmem>>, vector<16x1xf32>
    tpu.vector_store %arg5[%c0_6, %c0_7], %10 {strides = array<i32>} : memref<16x1xf32, #tpu.memory_space<vmem>>, vector<16x1xf32>,
    %c3_i32 = arith.constant 3 : i32
    %12 = arith.cmpi eq, %arg1, %c3_i32 : i32
    %13 = arith.extui %12 : i1 to i32
    %c0_i32_8 = arith.constant 0 : i32
    %14 = arith.cmpi ne, %13, %c0_i32_8 : i32
    scf.if %14 {
      %c0_9 = arith.constant 0 : index
      %c0_10 = arith.constant 0 : index
      %15 = vector.load %arg5[%c0_9, %c0_10] : memref<16x1xf32, #tpu.memory_space<vmem>>, vector<16x1xf32>
      %c0_11 = arith.constant 0 : index
      %c0_12 = arith.constant 0 : index
      %16 = vector.load %arg4[%c0_11, %c0_12] : memref<16x1xf32, #tpu.memory_space<vmem>>, vector<16x1xf32>
      tpu.vector_store %arg4[%c0_11, %c0_12], %15 {strides = array<i32>} : memref<16x1xf32, #tpu.memory_space<vmem>>, vector<16x1xf32>,
    } else {
    }
    return
  }
  func.func @transform_0(%arg0: i32, %arg1: i32) -> (i32, i32) {
    %c0_i32 = arith.constant 0 : i32
    return %arg0, %arg1 : i32, i32
  }
  func.func @transform_1(%arg0: i32, %arg1: i32) -> (i32, i32) {
    %c0_i32 = arith.constant 0 : i32
    %c0_i32_0 = arith.constant 0 : i32
    return %c0_i32, %arg1 : i32, i32
  }
  func.func @transform_2(%arg0: i32, %arg1: i32) -> (i32, i32) {
    %c0_i32 = arith.constant 0 : i32
    %c0_i32_0 = arith.constant 0 : i32
    return %arg0, %c0_i32 : i32, i32
  }
}

</mosaic_0001>

<bundles_post_ra>
// kernel: multiscale_discriminator_forward.24
= control target key start
LH: loop header
LB: loop body
LE: loop exit
PB: predicated region body
PF: predicated region fallthrough
CT: control target
= control target key end

     0   :  { %s1334_s12 = smov 0   ;;  %s1336_s13 = smov 0   ;;  %s1582_s0 = inlined_call_operand.vmem [shape: f32[578,48], index: 0, kind: input, shape index: {}]   ;;  %s1583_s1 = inlined_call_operand.vmem [shape: f32[48,128], index: 1, kind: input, shape index: {}]   ;;  %s1584_s2 = inlined_call_operand.vmem [shape: f32[1,128], index: 2, kind: input, shape index: {}]   ;;  %s1585_s3 = inlined_call_operand.vmem [shape: f32[578,128], index: 3, kind: output, shape index: {}]  }
   0x1   :  { %s1338_s14 = smov 0   ;;  %s1340_s15 = smov 0  }
   0x2   :  { %s1342_s16 = smov 0  }
   0x3 LB: > { %s983_s17 = sadd.s32 4294967295, %s1280_s16   ;;  %s32_s18 = sadd.s32 1, %s1276_s15  ;;  %s1280_s16 = sphi %s1342_s16, %s13_s16   ;;  %s1276_s15 = sphi %s1340_s15, %s1593_s15   ;;  %s1272_s14 = sphi %s1338_s14, %s1592_s14   ;;  %s1268_s13 = sphi %s1336_s13, %s1591_s13   ;;  %s1264_s12 = sphi %s1334_s12, %s1590_s12  }
   0x4   : > { %p34_p0 = scmp.ge.s32.totalorder %s32_s18, 5  ;;  %s123_s19 = sadd.s32 1, %s1268_s13 }
   0x5   : > { %p133_p1 = scmp.ne.s32.totalorder %s1268_s13, %s1264_s12  ;;  %p134_p2 = scmp.eq.s32.totalorder %s983_s17, 4 }
   0x6   : > { %s1595_s18 = smov (%p34_p0, %s32_s18), 0  ;;  %p989_p4 = scmp.ge.s32.totalorder %s1280_s16, 1 }
   0x7   : > { %p1366_p3 = por %p134_p2, %p133_p1  ;;  %s118_s21 = ssub.s32 %s1276_s15, %s1595_s18 }
   0x8   : > { %p196_p5 = scmp.lt.s32.totalorder %s1280_s16, 6  ;;  %p121_p6 = scmp.eq.s32.totalorder %s118_s21, 0 }
   0xa   : > { %p197_p7 = pnand %p989_p4, %p196_p5 }
   0xb   : > { %s1375_s22 = scalar_select %p121_p6, %s1268_s13, %s123_s19  }
   0xc   : > { %200 = sbr.rel (%p197_p7) target bundleno = 309 (0x135), region = 32  ;;  %v323_v0 = vld [vmem:[%s1583_s1] sm:$0xff] (!%p197_p7)  ;;  %v324_v1 = vld [vmem:[%s1583_s1 + $0x8] sm:$0xff] (!%p197_p7)  ;;  %v325_v2 = vld [vmem:[%s1583_s1 + $0x10] sm:$0xff] (!%p197_p7)  ;;  %s1387_s29 = sshll.u32 (!%p197_p7), %s1272_s14, 4  ;;  %vm329_vm0 = vcmask (!%p197_p7), 392192  }
   0xd   : > { %v1088_v3 = vpack.c.bf16 (!%p197_p7), %v324_v1, %v323_v0  ;;  %v326_v4 = vld [vmem:[%s1583_s1 + $0x18] sm:$0xff] (!%p197_p7)  ;;  %p242_p8 = scmp.lt.s32.totalorder (!%p197_p7), %s1387_s29, 72  ;;  %v327_v6 = vld [vmem:[%s1583_s1 + $0x20] sm:$0xff] (!%p197_p7)  ;;  %v328_v7 = vld [vmem:[%s1583_s1 + $0x28] sm:$0xff] (!%p197_p7)  ;;  %s234_s21 = sand.u32 (!%p197_p7), 1, %s1264_s12  }
   0xe   : > { %v1092_v5 = vpack.c.bf16 (!%p197_p7), %v326_v4, %v325_v2  ;;  %v1096_v8 = vpack.c.bf16 (!%p197_p7), %v328_v7, %v327_v6  ;;  %v1441_v25 = vld [vmem:[%s1584_s2] ss:$0 sm:$0xff] (!%p197_p7)  ;;  %s990_s25 = sshll.u32 (!%p197_p7), %s234_s21, 7 }
   0xf   : > { %1089 = vmatprep.subr.bf16.mxu0 (!%p197_p7), %v1088_v3  ;;  %1100 = vmatprep.subr.bf16.mxu1 (!%p197_p7), %v1088_v3  ;;  %s1447_s12 = scalar_lea.vmem (!%p197_p7), [#allocation3], %s990_s25  }
  0x10   : > { %1091 = vmatpush3.bf16.msra.mxu0 (!%p197_p7), %v1088_v3  ;;  %1103 = vmatpush3.bf16.msra.mxu1 (!%p197_p7), %v1088_v3 }
  0x11   : > { %1093 = vmatprep.subr.bf16.mxu0 (!%p197_p7), %v1092_v5  ;;  %1101 = vmatprep.subr.bf16.mxu1 (!%p197_p7), %v1092_v5 }
  0x13   : > { %s243_s9 = scalar_select %p242_p8, %s1387_s29, 72 }
  0x14   : > { %1095 = vmatpush3.bf16.msra.mxu0 %v1092_v5  ;;  %1104 = vmatpush3.bf16.msra.mxu1 %v1092_v5  ;;  %s669_s26 = ssub.s32 (%p1366_p3), 73, %s1387_s29  ;;  %s1027_s27 = sshll.u32 (%p1366_p3), %s1272_s14, 7 }
  0x15   : > { %s992_s10 = sshll.u32 %s243_s9, 3  ;;  %1097 = vmatprep.subr.bf16.mxu0 %v1096_v8  ;;  %1102 = vmatprep.subr.bf16.mxu1 %v1096_v8  ;;  %p670_p9 = scmp.lt.s32.totalorder (%p1366_p3), %s669_s26, 16 }
  0x16   : > { %s1403_s19 = scalar_lea.vmem %s1582_s0, %s992_s10  ;;  %s1484_s4 = scalar_lea.vmem (%p1366_p3), %s1585_s3, %s1027_s27  }
  0x17   : > { %v307_v9 = vld [vmem:[%s1403_s19] sm:$0xff]  ;;  %v308_v11 = vld [vmem:[%s1403_s19 + $0x8] sm:$0xff]  ;;  %v309_v13 = vld [vmem:[%s1403_s19 + $0x10] sm:$0xff] }
  0x18   : > { %v315_v10 = vld [vmem:[%s1403_s19 + $0x40] sm:$0xff]  ;;  %1064 = vmatprep.mubr.msk.f32.mxu0 %vm329_vm0, %v307_v9  ;;  %1099 = vmatpush3.bf16.msra.mxu0 %v1096_v8  ;;  %v316_v12 = vld [vmem:[%s1403_s19 + $0x48] sm:$0xff]  ;;  %v317_v14 = vld [vmem:[%s1403_s19 + $0x50] sm:$0xff] }
  0x19   : > { %1076 = vmatprep.mubr.msk.f32.mxu1 %vm329_vm0, %v315_v10  ;;  %1105 = vmatpush3.bf16.msra.mxu1 %v1096_v8  ;;  %v310_v15 = vld [vmem:[%s1403_s19 + $0x18] sm:$0xff]  ;;  %v311_v17 = vld [vmem:[%s1403_s19 + $0x20] sm:$0xff]  ;;  %v312_v19 = vld [vmem:[%s1403_s19 + $0x28] sm:$0xff] }
  0x1a   : > { %v318_v16 = vld [vmem:[%s1403_s19 + $0x58] sm:$0xff]  ;;  %v319_v18 = vld [vmem:[%s1403_s19 + $0x60] sm:$0xff]  ;;  %v320_v20 = vld [vmem:[%s1403_s19 + $0x68] sm:$0xff] }
  0x1b   : > { %1065 = vmatmul.mubr.msk.f32.vlgmr.msra.gmra.mrb[0].mxu0 %vm329_vm0, %v308_v11  ;;  %v313_v21 = vld [vmem:[%s1403_s19 + $0x30] sm:$0xff]  ;;  %v314_v23 = vld [vmem:[%s1403_s19 + $0x38] sm:$0xff] }
  0x1c   : > { %1077 = vmatmul.mubr.msk.f32.vlgmr.msra.gmra.mrb[0].mxu1 %vm329_vm0, %v316_v12  ;;  %1067 = vmatprep.mubr.msk.f32.mxu0 %vm329_vm0, %v309_v13  ;;  %v321_v22 = vld [vmem:[%s1403_s19 + $0x70] sm:$0xff]  ;;  %v322_v24 = vld [vmem:[%s1403_s19 + $0x78] sm:$0xff] }
  0x1d   : > { %1079 = vmatprep.mubr.msk.f32.mxu1 %vm329_vm0, %v317_v14 }
  0x1f   : > { %1068 = vmatmul.mubr.msk.f32.gmra.mrb[2].mxu0 %vm329_vm0, %v310_v15 }
  0x20   : > { %1080 = vmatmul.mubr.msk.f32.gmra.mrb[2].mxu1 %vm329_vm0, %v318_v16  ;;  %1070 = vmatprep.mubr.msk.f32.mxu0 %vm329_vm0, %v311_v17 }
  0x21   : > { %1082 = vmatprep.mubr.msk.f32.mxu1 %vm329_vm0, %v319_v18 }
  0x23   : > { %1071 = vmatmul.mubr.msk.f32.gmra.mrb[4].mxu0 %vm329_vm0, %v312_v19 }
  0x24   : > { %1083 = vmatmul.mubr.msk.f32.gmra.mrb[4].mxu1 %vm329_vm0, %v320_v20  ;;  %1073 = vmatprep.mubr.msk.f32.mxu0 %vm329_vm0, %v313_v21 }
  0x25   : > { %1085 = vmatprep.mubr.msk.f32.mxu1 %vm329_vm0, %v321_v22 }
  0x27   : > { %1074 = vmatmul.mubr.msk.f32.gmra.mrb[6].mxu0 %vm329_vm0, %v314_v23 }
  0x28   : > { %1086 = vmatmul.mubr.msk.f32.gmra.mrb[6].mxu1 %vm329_vm0, %v322_v24 }
  0xee   : > { %v1066_v26 = vpop.f32.mrb[0].mxu0 }
  0xef   : > { %v1078_v27 = vpop.f32.mrb[0].mxu1  ;;  %v582_v28 = vadd.f32 %v1066_v26, %v1441_v25  ;;  %v444_v30 = vpop.f32.mrb[1].mxu0 }
  0xf0   : > { %v590_v29 = vadd.f32 %v1078_v27, %v1441_v25  ;;  %v484_v31 = vpop.f32.mrb[1].mxu1  ;;  %v581_v32 = vadd.f32 %v1441_v25, %v444_v30 }
  0xf1   : > { %v589_v33 = vadd.f32 %v1441_v25, %v484_v31  ;;  %vm598_vm1 = vcmp.ge.f32.partialorder %v582_v28, 0.0  ;;  %v614_v34 = vmul.f32 0.2, %v582_v28 }
  0xf2   : > { %vm606_vm2 = vcmp.ge.f32.partialorder %v590_v29, 0.0  ;;  %v622_v35 = vmul.f32 0.2, %v590_v29  ;;  %vm597_vm3 = vcmp.ge.f32.partialorder %v581_v32, 0.0  ;;  %v613_v36 = vmul.f32 0.2, %v581_v32 }
  0xf3   : > { %vm605_vm4 = vcmp.ge.f32.partialorder %v589_v33, 0.0  ;;  %v621_v37 = vmul.f32 0.2, %v589_v33  ;;  %v630_v38 = vsel %vm598_vm1, %v582_v28, %v614_v34  ;;  %v1069_v40 = vpop.f32.mrb[2].mxu0  ;;  %v1081_v41 = vpop.f32.mrb[2].mxu1 }
  0xf4   : > { %v638_v39 = vsel %vm606_vm2, %v590_v29, %v622_v35  ;;  %646 = vst [vmem:[%s1447_s12 + $0x8] sm:$0xff] %v630_v38  ;;  %v629_v42 = vsel %vm597_vm3, %v581_v32, %v613_v36  ;;  %v584_v44 = vadd.f32 %v1069_v40, %v1441_v25  ;;  %v592_v45 = vadd.f32 %v1081_v41, %v1441_v25  ;;  %v454_v46 = vpop.f32.mrb[3].mxu0  ;;  %v494_v47 = vpop.f32.mrb[3].mxu1 }
  0xf5   : > { %654 = vst [vmem:[%s1447_s12 + $0x48] sm:$0xff] %v638_v39  ;;  %v637_v43 = vsel %vm605_vm4, %v589_v33, %v621_v37  ;;  %645 = vst [vmem:[%s1447_s12] sm:$0xff] %v629_v42  ;;  %v583_v48 = vadd.f32 %v1441_v25, %v454_v46  ;;  %v591_v49 = vadd.f32 %v1441_v25, %v494_v47 }
  0xf6   : > { %653 = vst [vmem:[%s1447_s12 + $0x40] sm:$0xff] %v637_v43  ;;  %vm600_vm5 = vcmp.ge.f32.partialorder %v584_v44, 0.0  ;;  %v616_v50 = vmul.f32 0.2, %v584_v44  ;;  %vm608_vm6 = vcmp.ge.f32.partialorder %v592_v45, 0.0  ;;  %v1072_v56 = vpop.f32.mrb[4].mxu0 }
  0xf7   : > { %v624_v51 = vmul.f32 0.2, %v592_v45  ;;  %vm599_vm7 = vcmp.ge.f32.partialorder %v583_v48, 0.0  ;;  %v615_v52 = vmul.f32 0.2, %v583_v48  ;;  %vm607_vm8 = vcmp.ge.f32.partialorder %v591_v49, 0.0 }
  0xf8   : > { %v623_v53 = vmul.f32 0.2, %v591_v49  ;;  %v632_v54 = vsel %vm600_vm5, %v584_v44, %v616_v50  ;;  %v1084_v57 = vpop.f32.mrb[4].mxu1  ;;  %v586_v60 = vadd.f32 %v1072_v56, %v1441_v25  ;;  %v464_v62 = vpop.f32.mrb[5].mxu0 }
  0xf9   : > { %v640_v55 = vsel %vm608_vm6, %v592_v45, %v624_v51  ;;  %648 = vst [vmem:[%s1447_s12 + $0x18] sm:$0xff] %v632_v54  ;;  %v631_v58 = vsel %vm599_vm7, %v583_v48, %v615_v52  ;;  %v594_v61 = vadd.f32 %v1084_v57, %v1441_v25  ;;  %v504_v63 = vpop.f32.mrb[5].mxu1  ;;  %v585_v0 = vadd.f32 %v1441_v25, %v464_v62 }
  0xfa   : > { %656 = vst [vmem:[%s1447_s12 + $0x58] sm:$0xff] %v640_v55  ;;  %v639_v59 = vsel %vm607_vm8, %v591_v49, %v623_v53  ;;  %647 = vst [vmem:[%s1447_s12 + $0x10] sm:$0xff] %v631_v58  ;;  %v593_v1 = vadd.f32 %v1441_v25, %v504_v63  ;;  %v1075_v2 = vpop.f32.mrb[6].mxu0  ;;  %vm602_vm9 = vcmp.ge.f32.partialorder %v586_v60, 0.0  ;;  %v618_v4 = vmul.f32 0.2, %v586_v60 }
  0xfb   : > { %655 = vst [vmem:[%s1447_s12 + $0x50] sm:$0xff] %v639_v59  ;;  %v1087_v3 = vpop.f32.mrb[6].mxu1  ;;  %vm610_vm10 = vcmp.ge.f32.partialorder %v594_v61, 0.0  ;;  %v626_v5 = vmul.f32 0.2, %v594_v61  ;;  %vm601_vm11 = vcmp.ge.f32.partialorder %v585_v0, 0.0  ;;  %v588_v10 = vadd.f32 %v1075_v2, %v1441_v25 }
  0xfc   : > { %v617_v6 = vmul.f32 0.2, %v585_v0  ;;  %vm609_vm12 = vcmp.ge.f32.partialorder %v593_v1, 0.0  ;;  %v625_v7 = vmul.f32 0.2, %v593_v1  ;;  %v634_v8 = vsel %vm602_vm9, %v586_v60, %v618_v4  ;;  %v474_v12 = vpop.f32.mrb[7].mxu0 }
  0xfd   : > { %v642_v9 = vsel %vm610_vm10, %v594_v61, %v626_v5  ;;  %v596_v11 = vadd.f32 %v1087_v3, %v1441_v25  ;;  %v514_v13 = vpop.f32.mrb[7].mxu1  ;;  %650 = vst [vmem:[%s1447_s12 + $0x28] sm:$0xff] %v634_v8  ;;  %v587_v16 = vadd.f32 %v1441_v25, %v474_v12  ;;  %vm604_vm13 = vcmp.ge.f32.partialorder %v588_v10, 0.0  ;;  %667 = sbr.rel (!%p1366_p3) target bundleno = 309 (0x135), region = 44 }
  0xfe   : > { %658 = vst [vmem:[%s1447_s12 + $0x68] sm:$0xff] %v642_v9  ;;  %v633_v14 = vsel %vm601_vm11, %v585_v0, %v617_v6  ;;  %v641_v15 = vsel %vm609_vm12, %v593_v1, %v625_v7  ;;  %v595_v17 = vadd.f32 %v1441_v25, %v514_v13  ;;  %v620_v18 = vmul.f32 0.2, %v588_v10 }
  0xff   : > { %649 = vst [vmem:[%s1447_s12 + $0x20] sm:$0xff] %v633_v14  ;;  %657 = vst [vmem:[%s1447_s12 + $0x60] sm:$0xff] %v641_v15  ;;  %vm612_vm14 = vcmp.ge.f32.partialorder %v596_v11, 0.0  ;;  %v628_v19 = vmul.f32 0.2, %v596_v11  ;;  %vm603_vm15 = vcmp.ge.f32.partialorder %v587_v16, 0.0 }
 0x100   : > { %v619_v20 = vmul.f32 0.2, %v587_v16  ;;  %vm611_vm0 = vcmp.ge.f32.partialorder %v595_v17, 0.0  ;;  %v627_v21 = vmul.f32 0.2, %v595_v17  ;;  %v636_v22 = vsel %vm604_vm13, %v588_v10, %v620_v18 }
 0x101   : > { %v644_v23 = vsel %vm612_vm14, %v596_v11, %v628_v19  ;;  %652 = vst [vmem:[%s1447_s12 + $0x38] sm:$0xff] %v636_v22 }
 0x102   : > { %660 = vst [vmem:[%s1447_s12 + $0x78] sm:$0xff] %v644_v23  ;;  %v635_v24 = vsel %vm603_vm15, %v587_v16, %v619_v20  ;;  %v643_v26 = vsel %vm611_vm0, %v595_v17, %v627_v21 }
 0x103   : > { %651 = vst [vmem:[%s1447_s12 + $0x30] sm:$0xff] %v635_v24  ;;  %659 = vst [vmem:[%s1447_s12 + $0x70] sm:$0xff] %v643_v26 }
 0x104   : > { %s1597_s26 = smov (!%p670_p9, %s669_s26), 16 }
 0x105   : > { %s1012_s5 = sshll.u32 %s1597_s26, 7 }
 0x106   : > { %p1015_p10 = scmp.eq.s32.totalorder %s1012_s5, 0 }
 0x107   : > { %s1490_s6 = sshrl.u32 (!%p1015_p10), %s1597_s26, 4 }
 0x108   : > { %679 = sbr.rel (%p1015_p10) target bundleno = 309 (0x135), region = 48  ;;  %p1016_p11 = scmp.le.s32.totalorder (!%p1015_p10), %s1490_s6, 0 }
 0x10f   : > { %910 = sbr.rel (%p1016_p11) target bundleno = 288 (0x120), region = 130  ;;  %s1587_s14 = smov (!%p1016_p11), %s1484_s4 }
 0x110   : > { %s1588_s20 = smov (!%p1016_p11), %s1447_s12  ;;  %s1499_s29 = smov (!%p1016_p11), 0  }
 0x111   : > { %s1501_s7 = smov (!%p1016_p11), 0  }
 0x116 LB: >> { %v771_v25 = vld [vmem:[%s1288_s20] sm:$0xff]  ;;  %v773_v27 = vld [vmem:[%s1288_s20 + $0x8] sm:$0xff]  ;;  %v775_v28 = vld [vmem:[%s1288_s20 + $0x10] sm:$0xff]  ;;  %s803_s8 = sadd.s32 1, %s1292_s29  ;;  %s765_s7 = sadd.s32 1, %s1296_s7   ;;  %s1296_s7 = sphi %s1501_s7, %s765_s7   ;;  %s1292_s29 = sphi %s1499_s29, %s1589_s29   ;;  %s1288_s20 = sphi %s1588_s20, %s808_s20   ;;  %s1284_s14 = sphi %s1587_s14, %s809_s14  }
 0x117   : >> { %772 = vst [vmem:[%s1284_s14] sm:$0xff] %v771_v25  ;;  %774 = vst [vmem:[%s1284_s14 + $0x8] sm:$0xff] %v773_v27  ;;  %v777_v29 = vld [vmem:[%s1288_s20 + $0x18] sm:$0xff]  ;;  %v779_v30 = vld [vmem:[%s1288_s20 + $0x20] sm:$0xff]  ;;  %p804_p12 = scmp.ge.s32.totalorder %s803_s8, %s1490_s6  ;;  %p764_p13 = scmp.ge.s32.totalorder %s765_s7, %s1490_s6 }
 0x118   : >> { %776 = vst [vmem:[%s1284_s14 + $0x10] sm:$0xff] %v775_v28  ;;  %v781_v31 = vld [vmem:[%s1288_s20 + $0x28] sm:$0xff]  ;;  %778 = vst [vmem:[%s1284_s14 + $0x18] sm:$0xff] %v777_v29  ;;  %v783_v32 = vld [vmem:[%s1288_s20 + $0x30] sm:$0xff] }
 0x119   : >> { %780 = vst [vmem:[%s1284_s14 + $0x20] sm:$0xff] %v779_v30  ;;  %782 = vst [vmem:[%s1284_s14 + $0x28] sm:$0xff] %v781_v31  ;;  %v785_v33 = vld [vmem:[%s1288_s20 + $0x38] sm:$0xff]  ;;  %v787_v34 = vld [vmem:[%s1288_s20 + $0x40] sm:$0xff]  ;;  %s1599_s8 = smov (%p804_p12, %s803_s8), 0  ;;  %767 = sbr.rel (!%p764_p13) target bundleno = 278 (0x116), region = 136 }
 0x11a   : >> { %784 = vst [vmem:[%s1284_s14 + $0x30] sm:$0xff] %v783_v32  ;;  %786 = vst [vmem:[%s1284_s14 + $0x38] sm:$0xff] %v785_v33  ;;  %v789_v35 = vld [vmem:[%s1288_s20 + $0x48] sm:$0xff]  ;;  %v791_v36 = vld [vmem:[%s1288_s20 + $0x50] sm:$0xff]  ;;  %s1017_s9 = sshll.u32 %s1599_s8, 7  ;;  %s1589_s29 = smov %s1599_s8 }
 0x11b   : >> { %788 = vst [vmem:[%s1284_s14 + $0x40] sm:$0xff] %v787_v34  ;;  %v793_v37 = vld [vmem:[%s1288_s20 + $0x58] sm:$0xff]  ;;  %790 = vst [vmem:[%s1284_s14 + $0x48] sm:$0xff] %v789_v35  ;;  %v795_v38 = vld [vmem:[%s1288_s20 + $0x60] sm:$0xff] }
 0x11c   : >> { %792 = vst [vmem:[%s1284_s14 + $0x50] sm:$0xff] %v791_v36  ;;  %794 = vst [vmem:[%s1284_s14 + $0x58] sm:$0xff] %v793_v37  ;;  %v797_v39 = vld [vmem:[%s1288_s20 + $0x68] sm:$0xff]  ;;  %v799_v40 = vld [vmem:[%s1288_s20 + $0x70] sm:$0xff] }
 0x11d   : >> { %796 = vst [vmem:[%s1284_s14 + $0x60] sm:$0xff] %v795_v38  ;;  %798 = vst [vmem:[%s1284_s14 + $0x68] sm:$0xff] %v797_v39  ;;  %v801_v41 = vld [vmem:[%s1288_s20 + $0x78] sm:$0xff]  ;;  %s808_s20 = scalar_lea.vmem %s1447_s12, %s1017_s9 [#allocation3]  }
 0x11e   : >> { %800 = vst [vmem:[%s1284_s14 + $0x70] sm:$0xff] %v799_v40  ;;  %802 = vst [vmem:[%s1284_s14 + $0x78] sm:$0xff] %v801_v41  ;;  %s809_s14 = scalar_lea.vmem %s1484_s4, %s1017_s9  }
 0x120 PF: > { %s1559_s10 = sand.u32 15, %s1597_s26   ;;  %s1028_s11 = sshll.u32 %s1490_s6, 7 }
 0x121   : > { %s814_s17 = scalar_lea.vmem %s1447_s12, %s1028_s11 [#allocation3]   ;;  %s816_s19 = scalar_lea.vmem %s1484_s4, %s1028_s11  }
 0x122   : > { %p1022_p0 = scmp.le.s32.totalorder %s1559_s10, 0 }
 0x123   : > { %s1298_s21 = smov (!%p1022_p0), %s816_s19   ;;  %s1302_s23 = smov (!%p1022_p0), %s814_s17  }
 0x124   : > { %924 = sbr.rel (%p1022_p0) target bundleno = 309 (0x135), region = 141  ;;  %s1306_s24 = smov (!%p1022_p0), 0  }
 0x125   : > { %s1310_s25 = smov (!%p1022_p0), 0  }
 0x12b LB: >> { %v826_v42 = vld [vmem:[%s1304_s23] sm:$0xff]  ;;  %s828_s26 = sadd.s32 1, %s1308_s24  ;;  %s820_s25 = sadd.s32 1, %s1312_s25   ;;  %s1312_s25 = sphi %s1310_s25, %s820_s25   ;;  %s1308_s24 = sphi %s1306_s24, %s1307_s24   ;;  %s1304_s23 = sphi %s1302_s23, %s833_s23   ;;  %s1300_s21 = sphi %s1298_s21, %s834_s21  }
 0x12c   : >> { %827 = vst [vmem:[%s1300_s21] sm:$0xff] %v826_v42  ;;  %p829_p1 = scmp.ge.s32.totalorder %s828_s26, %s1559_s10  ;;  %p819_p2 = scmp.ge.s32.totalorder %s820_s25, %s1559_s10 }
 0x12e   : >> { %s1601_s26 = smov (%p829_p1, %s828_s26), 0  ;;  %822 = sbr.rel (!%p819_p2) target bundleno = 299 (0x12b), region = 147 }
 0x12f   : >> { %s1023_s12 = sshll.u32 %s1601_s26, 3  ;;  %s1307_s24 = smov %s1601_s26  }
 0x130   : >> { %s833_s23 = scalar_lea.vmem %s814_s17, %s1023_s12 [#allocation3]   ;;  %s834_s21 = scalar_lea.vmem %s816_s19, %s1023_s12  }
 0x135 PF: > { %s13_s16 = sadd.s32 1, %s1280_s16   ;;  %s1590_s12 = smov %s1268_s13 }
 0x136   : > { %p10_p3 = scmp.ge.s32.totalorder %s13_s16, 7   ;;  %s1591_s13 = smov %s1375_s22 }
 0x137   : > { %s1592_s14 = smov %s1276_s15  ;;  %s1593_s15 = smov %s1595_s18 }
 0x138   :  { %12 = sbr.rel (!%p10_p3) target bundleno = 3 (0x3), region = 158 }

// kernel: multiscale_discriminator_forward.25
= control target key start
LH: loop header
LB: loop body
LE: loop exit
PB: predicated region body
PF: predicated region fallthrough
CT: control target
= control target key end

     0   :  { %s1333_s12 = smov 0   ;;  %s1335_s13 = smov 0   ;;  %s1659_s0 = inlined_call_operand.vmem [shape: f32[162,256], index: 0, kind: input, shape index: {}]   ;;  %s1660_s1 = inlined_call_operand.vmem [shape: f32[256,128], index: 1, kind: input, shape index: {}]   ;;  %s1661_s2 = inlined_call_operand.vmem [shape: f32[1,128], index: 2, kind: input, shape index: {}]   ;;  %s1662_s3 = inlined_call_operand.vmem [shape: f32[162,128], index: 3, kind: output, shape index: {}]  }
   0x1   :  { %s1337_s14 = smov 0   ;;  %s1339_s15 = smov 0  }
   0x2   :  { %s1341_s16 = smov 0  }
   0x3 LB: > { %s944_s17 = sadd.s32 4294967295, %s1279_s16   ;;  %s32_s18 = sadd.s32 1, %s1275_s15  ;;  %s1279_s16 = sphi %s1341_s16, %s13_s16   ;;  %s1275_s15 = sphi %s1339_s15, %s1670_s15   ;;  %s1271_s14 = sphi %s1337_s14, %s1669_s14   ;;  %s1267_s13 = sphi %s1335_s13, %s1668_s13   ;;  %s1263_s12 = sphi %s1333_s12, %s1667_s12  }
   0x4   : > { %p34_p0 = scmp.ge.s32.totalorder %s32_s18, 2  ;;  %s123_s19 = sadd.s32 1, %s1267_s13 }
   0x5   : > { %p133_p1 = scmp.ne.s32.totalorder %s1267_s13, %s1263_s12  ;;  %p134_p2 = scmp.eq.s32.totalorder %s944_s17, 1 }
   0x6   : > { %s1672_s18 = smov (%p34_p0, %s32_s18), 0  ;;  %p950_p4 = scmp.ge.s32.totalorder %s1279_s16, 1 }
   0x7   : > { %p1365_p3 = por %p134_p2, %p133_p1  ;;  %s118_s21 = ssub.s32 %s1275_s15, %s1672_s18 }
   0x8   : > { %p201_p5 = scmp.lt.s32.totalorder %s1279_s16, 3  ;;  %p121_p6 = scmp.eq.s32.totalorder %s118_s21, 0 }
   0xa   : > { %p202_p7 = pnand %p950_p4, %p201_p5 }
   0xb   : > { %s1374_s22 = scalar_select %p121_p6, %s1267_s13, %s123_s19  }
   0xc   : > { %205 = sbr.rel (%p202_p7) target bundleno = 343 (0x157), region = 32  ;;  %v368_v0 = vld [vmem:[%s1660_s1 + $0x80] sm:$0xff] (!%p202_p7)  ;;  %v369_v1 = vld [vmem:[%s1660_s1 + $0x88] sm:$0xff] (!%p202_p7)  ;;  %s1386_s29 = sshll.u32 (!%p202_p7), %s1271_s14, 4  ;;  %v370_v5 = vld [vmem:[%s1660_s1 + $0x90] sm:$0xff] (!%p202_p7) }
   0xd   : > { %v352_v2 = vld [vmem:[%s1660_s1] sm:$0xff] (!%p202_p7)  ;;  %v1057_v3 = vpack.c.bf16 (!%p202_p7), %v369_v1, %v368_v0  ;;  %v353_v4 = vld [vmem:[%s1660_s1 + $0x8] sm:$0xff] (!%p202_p7)  ;;  %v371_v6 = vld [vmem:[%s1660_s1 + $0x98] sm:$0xff] (!%p202_p7)  ;;  %p252_p8 = scmp.lt.s32.totalorder (!%p202_p7), %s1386_s29, 20  ;;  %s242_s21 = sand.u32 (!%p202_p7), 1, %s1263_s12  }
   0xe   : > { %v1059_v7 = vpack.c.bf16 (!%p202_p7), %v353_v4, %v352_v2  ;;  %v1061_v8 = vpack.c.bf16 (!%p202_p7), %v371_v6, %v370_v5  ;;  %v354_v9 = vld [vmem:[%s1660_s1 + $0x10] sm:$0xff] (!%p202_p7)  ;;  %v355_v10 = vld [vmem:[%s1660_s1 + $0x18] sm:$0xff] (!%p202_p7)  ;;  %v372_v11 = vld [vmem:[%s1660_s1 + $0xa0] sm:$0xff] (!%p202_p7)  ;;  %s951_s23 = sshll.u32 (!%p202_p7), %s242_s21, 7 }
   0xf   : > { %1058 = vmatprep.subr.bf16.mxu0 (!%p202_p7), %v1057_v3  ;;  %1089 = vmatprep.subr.bf16.mxu1 (!%p202_p7), %v1057_v3  ;;  %v373_v12 = vld [vmem:[%s1660_s1 + $0xa8] sm:$0xff] (!%p202_p7)  ;;  %v1063_v13 = vpack.c.bf16 (!%p202_p7), %v355_v10, %v354_v9  ;;  %v356_v15 = vld [vmem:[%s1660_s1 + $0x20] sm:$0xff] (!%p202_p7)  ;;  %v374_v17 = vld [vmem:[%s1660_s1 + $0xb0] sm:$0xff] (!%p202_p7)  ;;  %s1522_s12 = scalar_lea.vmem (!%p202_p7), [#allocation3], %s951_s23  }
  0x10   : > { %1060 = vmatpush3.bf16.msra.mxu0 (!%p202_p7), %v1059_v7  ;;  %1097 = vmatpush3.bf16.msra.mxu1 (!%p202_p7), %v1059_v7  ;;  %v1065_v14 = vpack.c.bf16 (!%p202_p7), %v373_v12, %v372_v11  ;;  %v357_v16 = vld [vmem:[%s1660_s1 + $0x28] sm:$0xff] (!%p202_p7)  ;;  %v375_v18 = vld [vmem:[%s1660_s1 + $0xb8] sm:$0xff] (!%p202_p7)  ;;  %v358_v21 = vld [vmem:[%s1660_s1 + $0x30] sm:$0xff] (!%p202_p7) }
  0x11   : > { %1062 = vmatprep.subr.bf16.mxu0 (!%p202_p7), %v1061_v8  ;;  %1090 = vmatprep.subr.bf16.mxu1 (!%p202_p7), %v1061_v8  ;;  %v1067_v19 = vpack.c.bf16 (!%p202_p7), %v357_v16, %v356_v15  ;;  %v1069_v20 = vpack.c.bf16 (!%p202_p7), %v375_v18, %v374_v17  ;;  %v359_v22 = vld [vmem:[%s1660_s1 + $0x38] sm:$0xff] (!%p202_p7)  ;;  %v376_v23 = vld [vmem:[%s1660_s1 + $0xc0] sm:$0xff] (!%p202_p7)  ;;  %v377_v24 = vld [vmem:[%s1660_s1 + $0xc8] sm:$0xff] (!%p202_p7) }
  0x12   : > { %v1071_v27 = vpack.c.bf16 (!%p202_p7), %v359_v22, %v358_v21  ;;  %v1073_v28 = vpack.c.bf16 (!%p202_p7), %v377_v24, %v376_v23  ;;  %v360_v29 = vld [vmem:[%s1660_s1 + $0x40] sm:$0xff] (!%p202_p7)  ;;  %v361_v30 = vld [vmem:[%s1660_s1 + $0x48] sm:$0xff] (!%p202_p7)  ;;  %v378_v31 = vld [vmem:[%s1660_s1 + $0xd0] sm:$0xff] (!%p202_p7) }
  0x13   : > { %s253_s25 = scalar_select %p252_p8, %s1386_s29, 20  ;;  %v379_v32 = vld [vmem:[%s1660_s1 + $0xd8] sm:$0xff]  ;;  %v1075_v33 = vpack.c.bf16 %v361_v30, %v360_v29  ;;  %v362_v35 = vld [vmem:[%s1660_s1 + $0x50] sm:$0xff]  ;;  %v380_v37 = vld [vmem:[%s1660_s1 + $0xe0] sm:$0xff] }
  0x14   : > { %1064 = vmatpush3.bf16.msra.mxu0 %v1063_v13  ;;  %1098 = vmatpush3.bf16.msra.mxu1 %v1063_v13  ;;  %v1077_v34 = vpack.c.bf16 %v379_v32, %v378_v31  ;;  %v363_v36 = vld [vmem:[%s1660_s1 + $0x58] sm:$0xff]  ;;  %v381_v38 = vld [vmem:[%s1660_s1 + $0xe8] sm:$0xff]  ;;  %v364_v41 = vld [vmem:[%s1660_s1 + $0x60] sm:$0xff]  ;;  %s974_s26 = sshll.u32 (%p1365_p3), %s1271_s14, 7 }
  0x15   : > { %s973_s4 = sshll.u32 %s253_s25, 4  ;;  %1066 = vmatprep.subr.bf16.mxu0 %v1065_v14  ;;  %1091 = vmatprep.subr.bf16.mxu1 %v1065_v14  ;;  %v1079_v39 = vpack.c.bf16 %v363_v36, %v362_v35  ;;  %v1081_v40 = vpack.c.bf16 %v381_v38, %v380_v37  ;;  %v365_v42 = vld [vmem:[%s1660_s1 + $0x68] sm:$0xff]  ;;  %v382_v43 = vld [vmem:[%s1660_s1 + $0xf0] sm:$0xff]  ;;  %v383_v44 = vld [vmem:[%s1660_s1 + $0xf8] sm:$0xff]  ;;  %s1561_s30 = scalar_lea.vmem (%p1365_p3), %s1662_s3, %s974_s26  }
  0x16   : > { %s1426_s11 = scalar_lea.vmem %s1659_s0, %s973_s4  ;;  %v1083_v45 = vpack.c.bf16 %v365_v42, %v364_v41  ;;  %v1085_v46 = vpack.c.bf16 %v383_v44, %v382_v43  ;;  %v366_v47 = vld [vmem:[%s1660_s1 + $0x70] sm:$0xff]  ;;  %v367_v48 = vld [vmem:[%s1660_s1 + $0x78] sm:$0xff] }
  0x17   : > { %v321_v25 = vld [vmem:[%s1426_s11 + $0x8] sm:$0xff]  ;;  %v1087_v49 = vpack.c.bf16 %v367_v48, %v366_v47  ;;  %v320_v50 = vld [vmem:[%s1426_s11] sm:$0xff]  ;;  %v323_v52 = vld [vmem:[%s1426_s11 + $0x18] sm:$0xff] }
  0x18   : > { %448 = vmatprep.mubr.f32.mxu0 %v321_v25  ;;  %v337_v26 = vld [vmem:[%s1426_s11 + $0x88] sm:$0xff]  ;;  %1068 = vmatpush3.bf16.msra.mxu0 %v1067_v19  ;;  %v336_v51 = vld [vmem:[%s1426_s11 + $0x80] sm:$0xff]  ;;  %v339_v53 = vld [vmem:[%s1426_s11 + $0x98] sm:$0xff] }
  0x19   : > { %1099 = vmatpush3.bf16.msra.mxu1 %v1067_v19  ;;  %1070 = vmatprep.subr.bf16.mxu0 %v1069_v20  ;;  %v322_v54 = vld [vmem:[%s1426_s11 + $0x10] sm:$0xff]  ;;  %v325_v56 = vld [vmem:[%s1426_s11 + $0x28] sm:$0xff]  ;;  %v324_v58 = vld [vmem:[%s1426_s11 + $0x20] sm:$0xff] }
  0x1a   : > { %1092 = vmatprep.subr.bf16.mxu1 %v1069_v20  ;;  %488 = vmatprep.mubr.f32.mxu1 %v337_v26  ;;  %v338_v55 = vld [vmem:[%s1426_s11 + $0x90] sm:$0xff]  ;;  %v341_v57 = vld [vmem:[%s1426_s11 + $0xa8] sm:$0xff]  ;;  %v340_v59 = vld [vmem:[%s1426_s11 + $0xa0] sm:$0xff] }
  0x1b   : > { %v327_v60 = vld [vmem:[%s1426_s11 + $0x38] sm:$0xff]  ;;  %v326_v62 = vld [vmem:[%s1426_s11 + $0x30] sm:$0xff]  ;;  %v329_v0 = vld [vmem:[%s1426_s11 + $0x48] sm:$0xff] }
  0x1c   : > { %1072 = vmatpush3.bf16.msra.mxu0 %v1071_v27  ;;  %v343_v61 = vld [vmem:[%s1426_s11 + $0xb8] sm:$0xff]  ;;  %v342_v63 = vld [vmem:[%s1426_s11 + $0xb0] sm:$0xff]  ;;  %v345_v1 = vld [vmem:[%s1426_s11 + $0xc8] sm:$0xff] }
  0x1d   : > { %1100 = vmatpush3.bf16.msra.mxu1 %v1071_v27  ;;  %1074 = vmatprep.subr.bf16.mxu0 %v1073_v28  ;;  %v328_v2 = vld [vmem:[%s1426_s11 + $0x40] sm:$0xff]  ;;  %v331_v4 = vld [vmem:[%s1426_s11 + $0x58] sm:$0xff]  ;;  %v330_v6 = vld [vmem:[%s1426_s11 + $0x50] sm:$0xff] }
  0x1e   : > { %1093 = vmatprep.subr.bf16.mxu1 %v1073_v28  ;;  %v344_v3 = vld [vmem:[%s1426_s11 + $0xc0] sm:$0xff]  ;;  %v347_v5 = vld [vmem:[%s1426_s11 + $0xd8] sm:$0xff]  ;;  %v346_v7 = vld [vmem:[%s1426_s11 + $0xd0] sm:$0xff] }
  0x1f   : > { %v333_v8 = vld [vmem:[%s1426_s11 + $0x68] sm:$0xff]  ;;  %v332_v10 = vld [vmem:[%s1426_s11 + $0x60] sm:$0xff]  ;;  %v335_v12 = vld [vmem:[%s1426_s11 + $0x78] sm:$0xff] }
  0x20   : > { %1076 = vmatpush3.bf16.msra.mxu0 %v1075_v33  ;;  %v349_v9 = vld [vmem:[%s1426_s11 + $0xe8] sm:$0xff]  ;;  %v348_v11 = vld [vmem:[%s1426_s11 + $0xe0] sm:$0xff]  ;;  %v351_v13 = vld [vmem:[%s1426_s11 + $0xf8] sm:$0xff] }
  0x21   : > { %1101 = vmatpush3.bf16.msra.mxu1 %v1075_v33  ;;  %1078 = vmatprep.subr.bf16.mxu0 %v1077_v34  ;;  %v334_v14 = vld [vmem:[%s1426_s11 + $0x70] sm:$0xff]  ;;  %v1518_v19 = vld [vmem:[%s1661_s2] ss:$0 sm:$0xff] }
  0x22   : > { %1094 = vmatprep.subr.bf16.mxu1 %v1077_v34  ;;  %v350_v15 = vld [vmem:[%s1426_s11 + $0xf0] sm:$0xff]  ;;  %s627_s11 = ssub.s32 (%p1365_p3), 21, %s1386_s29 }
  0x23   : > { %p628_p9 = scmp.lt.s32.totalorder (%p1365_p3), %s627_s11, 16 }
  0x24   : > { %1080 = vmatpush3.bf16.msra.mxu0 %v1079_v39 }
  0x25   : > { %1102 = vmatpush3.bf16.msra.mxu1 %v1079_v39  ;;  %1082 = vmatprep.subr.bf16.mxu0 %v1081_v40 }
  0x26   : > { %1095 = vmatprep.subr.bf16.mxu1 %v1081_v40 }
  0x28   : > { %1084 = vmatpush3.bf16.msra.mxu0 %v1083_v45 }
  0x29   : > { %1103 = vmatpush3.bf16.msra.mxu1 %v1083_v45  ;;  %1086 = vmatprep.subr.bf16.mxu0 %v1085_v46 }
  0x2a   : > { %1096 = vmatprep.subr.bf16.mxu1 %v1085_v46 }
  0x2c   : > { %1088 = vmatpush3.bf16.msra.mxu0 %v1087_v49 }
  0x2d   : > { %1104 = vmatpush3.bf16.msra.mxu1 %v1087_v49 }
  0x2f   : > { %449 = vmatmul.mubr.f32.vlgmr.msra.gmra.mrb[0].mxu0 %v320_v50 }
  0x30   : > { %489 = vmatmul.mubr.f32.vlgmr.msra.gmra.mrb[0].mxu1 %v336_v51  ;;  %453 = vmatprep.mubr.f32.mxu0 %v323_v52 }
  0x31   : > { %493 = vmatprep.mubr.f32.mxu1 %v339_v53 }
  0x33   : > { %454 = vmatmul.mubr.f32.gmra.mrb[2].mxu0 %v322_v54 }
  0x34   : > { %494 = vmatmul.mubr.f32.gmra.mrb[2].mxu1 %v338_v55  ;;  %458 = vmatprep.mubr.f32.mxu0 %v325_v56 }
  0x35   : > { %498 = vmatprep.mubr.f32.mxu1 %v341_v57 }
  0x37   : > { %459 = vmatmul.mubr.f32.gmra.mrb[4].mxu0 %v324_v58 }
  0x38   : > { %499 = vmatmul.mubr.f32.gmra.mrb[4].mxu1 %v340_v59  ;;  %463 = vmatprep.mubr.f32.mxu0 %v327_v60 }
  0x39   : > { %503 = vmatprep.mubr.f32.mxu1 %v343_v61 }
  0x3b   : > { %464 = vmatmul.mubr.f32.gmra.mrb[6].mxu0 %v326_v62 }
  0x3c   : > { %504 = vmatmul.mubr.f32.gmra.mrb[6].mxu1 %v342_v63  ;;  %468 = vmatprep.mubr.f32.mxu0 %v329_v0 }
  0x3d   : > { %508 = vmatprep.mubr.f32.mxu1 %v345_v1 }
  0x3f   : > { %469 = vmatmul.mubr.f32.gmra.mrb[8].mxu0 %v328_v2 }
  0x40   : > { %509 = vmatmul.mubr.f32.gmra.mrb[8].mxu1 %v344_v3  ;;  %473 = vmatprep.mubr.f32.mxu0 %v331_v4 }
  0x41   : > { %513 = vmatprep.mubr.f32.mxu1 %v347_v5 }
  0x43   : > { %474 = vmatmul.mubr.f32.gmra.mrb[10].mxu0 %v330_v6 }
  0x44   : > { %514 = vmatmul.mubr.f32.gmra.mrb[10].mxu1 %v346_v7  ;;  %478 = vmatprep.mubr.f32.mxu0 %v333_v8 }
  0x45   : > { %518 = vmatprep.mubr.f32.mxu1 %v349_v9 }
  0x47   : > { %479 = vmatmul.mubr.f32.gmra.mrb[12].mxu0 %v332_v10 }
  0x48   : > { %519 = vmatmul.mubr.f32.gmra.mrb[12].mxu1 %v348_v11  ;;  %483 = vmatprep.mubr.f32.mxu0 %v335_v12 }
  0x49   : > { %523 = vmatprep.mubr.f32.mxu1 %v351_v13 }
  0x4b   : > { %484 = vmatmul.mubr.f32.gmra.mrb[14].mxu0 %v334_v14 }
  0x4c   : > { %524 = vmatmul.mubr.f32.gmra.mrb[14].mxu1 %v350_v15 }
 0x102   : > { %v1009_v16 = vpop.f32.mrb[0].mxu0 }
 0x103   : > { %v1033_v17 = vpop.f32.mrb[0].mxu1  ;;  %v1010_v18 = vpop.f32.mrb[1].mxu0 }
 0x104   : > { %v1034_v20 = vpop.f32.mrb[1].mxu1  ;;  %v1011_v21 = vadd.f32 %v1010_v18, %v1009_v16 }
 0x105   : > { %v1035_v22 = vadd.f32 %v1034_v20, %v1033_v17 }
 0x106   : > { %v587_v23 = vadd.f32 %v1011_v21, %v1518_v19  ;;  %v1012_v25 = vpop.f32.mrb[2].mxu0 }
 0x107   : > { %v595_v24 = vadd.f32 %v1035_v22, %v1518_v19  ;;  %v1036_v26 = vpop.f32.mrb[2].mxu1  ;;  %v1013_v27 = vpop.f32.mrb[3].mxu0 }
 0x108   : > { %v1037_v28 = vpop.f32.mrb[3].mxu1  ;;  %603 = vst [vmem:[%s1522_s12] sm:$0xff] %v587_v23  ;;  %v1014_v29 = vadd.f32 %v1013_v27, %v1012_v25 }
 0x109   : > { %611 = vst [vmem:[%s1522_s12 + $0x40] sm:$0xff] %v595_v24  ;;  %v1038_v30 = vadd.f32 %v1037_v28, %v1036_v26 }
 0x10a   : > { %v588_v31 = vadd.f32 %v1014_v29, %v1518_v19  ;;  %v1015_v33 = vpop.f32.mrb[4].mxu0 }
 0x10b   : > { %v596_v32 = vadd.f32 %v1038_v30, %v1518_v19  ;;  %v1039_v34 = vpop.f32.mrb[4].mxu1  ;;  %v1016_v35 = vpop.f32.mrb[5].mxu0 }
 0x10c   : > { %v1040_v36 = vpop.f32.mrb[5].mxu1  ;;  %604 = vst [vmem:[%s1522_s12 + $0x8] sm:$0xff] %v588_v31  ;;  %v1017_v37 = vadd.f32 %v1016_v35, %v1015_v33 }
 0x10d   : > { %612 = vst [vmem:[%s1522_s12 + $0x48] sm:$0xff] %v596_v32  ;;  %v1041_v38 = vadd.f32 %v1040_v36, %v1039_v34 }
 0x10e   : > { %v589_v39 = vadd.f32 %v1017_v37, %v1518_v19  ;;  %v1018_v41 = vpop.f32.mrb[6].mxu0 }
 0x10f   : > { %v597_v40 = vadd.f32 %v1041_v38, %v1518_v19  ;;  %v1042_v42 = vpop.f32.mrb[6].mxu1  ;;  %v1019_v43 = vpop.f32.mrb[7].mxu0 }
 0x110   : > { %v1043_v44 = vpop.f32.mrb[7].mxu1  ;;  %605 = vst [vmem:[%s1522_s12 + $0x10] sm:$0xff] %v589_v39  ;;  %v1020_v45 = vadd.f32 %v1019_v43, %v1018_v41 }
 0x111   : > { %613 = vst [vmem:[%s1522_s12 + $0x50] sm:$0xff] %v597_v40  ;;  %v1044_v46 = vadd.f32 %v1043_v44, %v1042_v42 }
 0x112   : > { %v590_v47 = vadd.f32 %v1020_v45, %v1518_v19  ;;  %v1021_v49 = vpop.f32.mrb[8].mxu0 }
 0x113   : > { %v598_v48 = vadd.f32 %v1044_v46, %v1518_v19  ;;  %v1045_v50 = vpop.f32.mrb[8].mxu1  ;;  %v1022_v51 = vpop.f32.mrb[9].mxu0 }
 0x114   : > { %v1046_v52 = vpop.f32.mrb[9].mxu1  ;;  %606 = vst [vmem:[%s1522_s12 + $0x18] sm:$0xff] %v590_v47  ;;  %v1023_v53 = vadd.f32 %v1022_v51, %v1021_v49 }
 0x115   : > { %614 = vst [vmem:[%s1522_s12 + $0x58] sm:$0xff] %v598_v48  ;;  %v1047_v54 = vadd.f32 %v1046_v52, %v1045_v50 }
 0x116   : > { %v591_v55 = vadd.f32 %v1023_v53, %v1518_v19  ;;  %v1024_v57 = vpop.f32.mrb[10].mxu0 }
 0x117   : > { %v599_v56 = vadd.f32 %v1047_v54, %v1518_v19  ;;  %v1048_v58 = vpop.f32.mrb[10].mxu1  ;;  %v1025_v59 = vpop.f32.mrb[11].mxu0 }
 0x118   : > { %v1049_v60 = vpop.f32.mrb[11].mxu1  ;;  %607 = vst [vmem:[%s1522_s12 + $0x20] sm:$0xff] %v591_v55  ;;  %v1026_v61 = vadd.f32 %v1025_v59, %v1024_v57 }
 0x119   : > { %615 = vst [vmem:[%s1522_s12 + $0x60] sm:$0xff] %v599_v56  ;;  %v1050_v62 = vadd.f32 %v1049_v60, %v1048_v58 }
 0x11a   : > { %v592_v63 = vadd.f32 %v1026_v61, %v1518_v19  ;;  %v1027_v1 = vpop.f32.mrb[12].mxu0 }
 0x11b   : > { %v600_v0 = vadd.f32 %v1050_v62, %v1518_v19  ;;  %v1051_v2 = vpop.f32.mrb[12].mxu1  ;;  %v1028_v3 = vpop.f32.mrb[13].mxu0 }
 0x11c   : > { %v1052_v4 = vpop.f32.mrb[13].mxu1  ;;  %608 = vst [vmem:[%s1522_s12 + $0x28] sm:$0xff] %v592_v63  ;;  %v1029_v5 = vadd.f32 %v1028_v3, %v1027_v1 }
 0x11d   : > { %616 = vst [vmem:[%s1522_s12 + $0x68] sm:$0xff] %v600_v0  ;;  %v1053_v6 = vadd.f32 %v1052_v4, %v1051_v2 }
 0x11e   : > { %v593_v7 = vadd.f32 %v1029_v5, %v1518_v19  ;;  %v1030_v9 = vpop.f32.mrb[14].mxu0 }
 0x11f   : > { %v601_v8 = vadd.f32 %v1053_v6, %v1518_v19  ;;  %v1054_v10 = vpop.f32.mrb[14].mxu1  ;;  %v1031_v11 = vpop.f32.mrb[15].mxu0  ;;  %625 = sbr.rel (!%p1365_p3) target bundleno = 343 (0x157), region = 44 }
 0x120   : > { %v1055_v12 = vpop.f32.mrb[15].mxu1  ;;  %609 = vst [vmem:[%s1522_s12 + $0x30] sm:$0xff] %v593_v7  ;;  %v1032_v13 = vadd.f32 %v1031_v11, %v1030_v9 }
 0x121   : > { %617 = vst [vmem:[%s1522_s12 + $0x70] sm:$0xff] %v601_v8  ;;  %v1056_v14 = vadd.f32 %v1055_v12, %v1054_v10 }
 0x122   : > { %v594_v15 = vadd.f32 %v1032_v13, %v1518_v19 }
 0x123   : > { %v602_v16 = vadd.f32 %v1056_v14, %v1518_v19 }
 0x124   : > { %610 = vst [vmem:[%s1522_s12 + $0x38] sm:$0xff] %v594_v15 }
 0x125   : > { %618 = vst [vmem:[%s1522_s12 + $0x78] sm:$0xff] %v602_v16 }
 0x126   : > { %s1674_s11 = smov (!%p628_p9, %s627_s11), 16 }
 0x127   : > { %s958_s4 = sshll.u32 %s1674_s11, 7 }
 0x128   : > { %p961_p10 = scmp.eq.s32.totalorder %s958_s4, 0 }
 0x129   : > { %s1567_s5 = sshrl.u32 (!%p961_p10), %s1674_s11, 4 }
 0x12a   : > { %637 = sbr.rel (%p961_p10) target bundleno = 343 (0x157), region = 48  ;;  %p962_p11 = scmp.le.s32.totalorder (!%p961_p10), %s1567_s5, 0 }
 0x131   : > { %871 = sbr.rel (%p962_p11) target bundleno = 322 (0x142), region = 130  ;;  %s1664_s14 = smov (!%p962_p11), %s1561_s30 }
 0x132   : > { %s1665_s20 = smov (!%p962_p11), %s1522_s12  ;;  %s1576_s29 = smov (!%p962_p11), 0  }
 0x133   : > { %s1578_s6 = smov (!%p962_p11), 0  }
 0x138 LB: >> { %v729_v17 = vld [vmem:[%s1287_s20] sm:$0xff]  ;;  %v731_v18 = vld [vmem:[%s1287_s20 + $0x8] sm:$0xff]  ;;  %v733_v19 = vld [vmem:[%s1287_s20 + $0x10] sm:$0xff]  ;;  %s761_s7 = sadd.s32 1, %s1291_s29  ;;  %s723_s6 = sadd.s32 1, %s1295_s6   ;;  %s1295_s6 = sphi %s1578_s6, %s723_s6   ;;  %s1291_s29 = sphi %s1576_s29, %s1666_s29   ;;  %s1287_s20 = sphi %s1665_s20, %s766_s20   ;;  %s1283_s14 = sphi %s1664_s14, %s767_s14  }
 0x139   : >> { %730 = vst [vmem:[%s1283_s14] sm:$0xff] %v729_v17  ;;  %732 = vst [vmem:[%s1283_s14 + $0x8] sm:$0xff] %v731_v18  ;;  %v735_v20 = vld [vmem:[%s1287_s20 + $0x18] sm:$0xff]  ;;  %v737_v21 = vld [vmem:[%s1287_s20 + $0x20] sm:$0xff]  ;;  %p762_p12 = scmp.ge.s32.totalorder %s761_s7, %s1567_s5  ;;  %p722_p13 = scmp.ge.s32.totalorder %s723_s6, %s1567_s5 }
 0x13a   : >> { %734 = vst [vmem:[%s1283_s14 + $0x10] sm:$0xff] %v733_v19  ;;  %v739_v22 = vld [vmem:[%s1287_s20 + $0x28] sm:$0xff]  ;;  %736 = vst [vmem:[%s1283_s14 + $0x18] sm:$0xff] %v735_v20  ;;  %v741_v23 = vld [vmem:[%s1287_s20 + $0x30] sm:$0xff] }
 0x13b   : >> { %738 = vst [vmem:[%s1283_s14 + $0x20] sm:$0xff] %v737_v21  ;;  %740 = vst [vmem:[%s1283_s14 + $0x28] sm:$0xff] %v739_v22  ;;  %v743_v24 = vld [vmem:[%s1287_s20 + $0x38] sm:$0xff]  ;;  %v745_v25 = vld [vmem:[%s1287_s20 + $0x40] sm:$0xff]  ;;  %s1676_s7 = smov (%p762_p12, %s761_s7), 0  ;;  %725 = sbr.rel (!%p722_p13) target bundleno = 312 (0x138), region = 136 }
 0x13c   : >> { %742 = vst [vmem:[%s1283_s14 + $0x30] sm:$0xff] %v741_v23  ;;  %744 = vst [vmem:[%s1283_s14 + $0x38] sm:$0xff] %v743_v24  ;;  %v747_v26 = vld [vmem:[%s1287_s20 + $0x48] sm:$0xff]  ;;  %v749_v27 = vld [vmem:[%s1287_s20 + $0x50] sm:$0xff]  ;;  %s963_s8 = sshll.u32 %s1676_s7, 7  ;;  %s1666_s29 = smov %s1676_s7 }
 0x13d   : >> { %746 = vst [vmem:[%s1283_s14 + $0x40] sm:$0xff] %v745_v25  ;;  %v751_v28 = vld [vmem:[%s1287_s20 + $0x58] sm:$0xff]  ;;  %748 = vst [vmem:[%s1283_s14 + $0x48] sm:$0xff] %v747_v26  ;;  %v753_v29 = vld [vmem:[%s1287_s20 + $0x60] sm:$0xff] }
 0x13e   : >> { %750 = vst [vmem:[%s1283_s14 + $0x50] sm:$0xff] %v749_v27  ;;  %752 = vst [vmem:[%s1283_s14 + $0x58] sm:$0xff] %v751_v28  ;;  %v755_v30 = vld [vmem:[%s1287_s20 + $0x68] sm:$0xff]  ;;  %v757_v31 = vld [vmem:[%s1287_s20 + $0x70] sm:$0xff] }
 0x13f   : >> { %754 = vst [vmem:[%s1283_s14 + $0x60] sm:$0xff] %v753_v29  ;;  %756 = vst [vmem:[%s1283_s14 + $0x68] sm:$0xff] %v755_v30  ;;  %v759_v32 = vld [vmem:[%s1287_s20 + $0x78] sm:$0xff]  ;;  %s766_s20 = scalar_lea.vmem %s1522_s12, %s963_s8 [#allocation3]  }
 0x140   : >> { %758 = vst [vmem:[%s1283_s14 + $0x70] sm:$0xff] %v757_v31  ;;  %760 = vst [vmem:[%s1283_s14 + $0x78] sm:$0xff] %v759_v32  ;;  %s767_s14 = scalar_lea.vmem %s1561_s30, %s963_s8  }
 0x142 PF: > { %s1636_s9 = sand.u32 15, %s1674_s11   ;;  %s975_s10 = sshll.u32 %s1567_s5, 7 }
 0x143   : > { %s772_s17 = scalar_lea.vmem %s1522_s12, %s975_s10 [#allocation3]   ;;  %s774_s19 = scalar_lea.vmem %s1561_s30, %s975_s10  }
 0x144   : > { %p968_p0 = scmp.le.s32.totalorder %s1636_s9, 0 }
 0x145   : > { %s1297_s21 = smov (!%p968_p0), %s774_s19   ;;  %s1301_s23 = smov (!%p968_p0), %s772_s17  }
 0x146   : > { %885 = sbr.rel (%p968_p0) target bundleno = 343 (0x157), region = 141  ;;  %s1305_s24 = smov (!%p968_p0), 0  }
 0x147   : > { %s1309_s25 = smov (!%p968_p0), 0  }
 0x14d LB: >> { %v784_v33 = vld [vmem:[%s1303_s23] sm:$0xff]  ;;  %s786_s11 = sadd.s32 1, %s1307_s24  ;;  %s778_s25 = sadd.s32 1, %s1311_s25   ;;  %s1311_s25 = sphi %s1309_s25, %s778_s25   ;;  %s1307_s24 = sphi %s1305_s24, %s1306_s24   ;;  %s1303_s23 = sphi %s1301_s23, %s791_s23   ;;  %s1299_s21 = sphi %s1297_s21, %s792_s21  }
 0x14e   : >> { %785 = vst [vmem:[%s1299_s21] sm:$0xff] %v784_v33  ;;  %p787_p1 = scmp.ge.s32.totalorder %s786_s11, %s1636_s9  ;;  %p777_p2 = scmp.ge.s32.totalorder %s778_s25, %s1636_s9 }
 0x150   : >> { %s1678_s11 = smov (%p787_p1, %s786_s11), 0  ;;  %780 = sbr.rel (!%p777_p2) target bundleno = 333 (0x14d), region = 147 }
 0x151   : >> { %s969_s12 = sshll.u32 %s1678_s11, 3  ;;  %s1306_s24 = smov %s1678_s11  }
 0x152   : >> { %s791_s23 = scalar_lea.vmem %s772_s17, %s969_s12 [#allocation3]   ;;  %s792_s21 = scalar_lea.vmem %s774_s19, %s969_s12  }
 0x157 PF: > { %s13_s16 = sadd.s32 1, %s1279_s16   ;;  %s1667_s12 = smov %s1267_s13 }
 0x158   : > { %p10_p3 = scmp.ge.s32.totalorder %s13_s16, 4   ;;  %s1668_s13 = smov %s1374_s22 }
 0x159   : > { %s1669_s14 = smov %s1275_s15  ;;  %s1670_s15 = smov %s1672_s18 }
 0x15a   :  { %12 = sbr.rel (!%p10_p3) target bundleno = 3 (0x3), region = 158 }

// kernel: multiscale_discriminator_forward.26
= control target key start
LH: loop header
LB: loop body
LE: loop exit
PB: predicated region body
PF: predicated region fallthrough
CT: control target
= control target key end

     0   :  { %s449_s6 = smov 0   ;;  %s451_s7 = smov 0   ;;  %s550_s0 = inlined_call_operand.vmem [shape: f32[2,81,32], index: 0, kind: input, shape index: {}]   ;;  %s551_s1 = inlined_call_operand.vmem [shape: f32[2,81,32], index: 1, kind: output, shape index: {}]  }
   0x1   :  { %s453_s8 = smov 0  }
   0x2 LB: > { %s23_s9 = sadd.s32 1, %s433_s7  ;;  %p383_p0 = scmp.ge.s32.totalorder %s437_s8, 1  ;;  %s437_s8 = sphi %s453_s8, %s11_s8   ;;  %s433_s7 = sphi %s451_s7, %s553_s7   ;;  %s429_s6 = sphi %s449_s6, %s552_s6  }
   0x3   : > { %p25_p1 = scmp.ge.s32.totalorder %s23_s9, 2  ;;  %p106_p2 = scmp.lt.s32.totalorder %s437_s8, 3 }
   0x5   : > { %s555_s9 = smov (%p25_p1, %s23_s9), 0  ;;  %p107_p3 = pnand %p383_p0, %p106_p2 }
   0x6   : > { %p132_p4 = scmp.lt.s32.totalorder (!%p107_p3), %s429_s6, 1  ;;  %vm159_vm0 = vcmask (!%p107_p3), 261120   ;;  %vm179_vm1 = vcmask (!%p107_p3), 253952  }
   0x7   : > { %110 = sbr.rel (%p107_p3) target bundleno = 121 (0x79), region = 24 }
   0xe   : > { %s557_s6 = smov (!%p132_p4, %s429_s6), 1 }
   0xf   : > { %s388_s10 = smul.u32 88, %s557_s6 }
  0x11   : > { %s139_s13 = scalar_lea.vmem %s550_s0, %s388_s10  ;;  %s514_s16 = scalar_lea.vmem %s551_s1, %s388_s10 }
  0x12   : > { %v148_v0 = vld [vmem:[%s139_s13] sm:$0xff]  ;;  %v149_v1 = vld [vmem:[%s139_s13 + $0x8] sm:$0xff]  ;;  %v150_v2 = vld [vmem:[%s139_s13 + $0x10] sm:$0xff] }
  0x13   : > { %v151_v3 = vld [vmem:[%s139_s13 + $0x18] sm:$0xff]  ;;  %v160_v4 = vsel %vm159_vm0, %v148_v0, 0.0  ;;  %v161_v5 = vsel %vm159_vm0, %v149_v1, 0.0  ;;  %v163_v6 = vsel %vm159_vm0, %v150_v2, 0.0  ;;  %v152_v7 = vld [vmem:[%s139_s13 + $0x20] sm:$0xff]  ;;  %v153_v10 = vld [vmem:[%s139_s13 + $0x28] sm:$0xff] }
  0x14   : > { %v162_v8 = vadd.f32 %v161_v5, %v160_v4  ;;  %v165_v9 = vsel %vm159_vm0, %v151_v3, 0.0  ;;  %v167_v12 = vsel %vm159_vm0, %v152_v7, 0.0  ;;  %v154_v13 = vld [vmem:[%s139_s13 + $0x30] sm:$0xff]  ;;  %v169_v15 = vsel %vm159_vm0, %v153_v10, 0.0  ;;  %v155_v16 = vld [vmem:[%s139_s13 + $0x38] sm:$0xff]  ;;  %v156_v19 = vld [vmem:[%s139_s13 + $0x40] sm:$0xff] }
  0x15   : > { %v171_v18 = vsel %vm159_vm0, %v154_v13, 0.0  ;;  %v173_v21 = vsel %vm159_vm0, %v155_v16, 0.0  ;;  %v157_v22 = vld [vmem:[%s139_s13 + $0x48] sm:$0xff]  ;;  %v175_v24 = vsel %vm159_vm0, %v156_v19, 0.0  ;;  %v158_v25 = vld [vmem:[%s139_s13 + $0x50] sm:$0x1] }
  0x16   : > { %v164_v11 = vadd.f32 %v163_v6, %v162_v8  ;;  %v177_v27 = vsel %vm159_vm0, %v157_v22, 0.0  ;;  %v180_v29 = vsel %vm179_vm1, %v158_v25, 0.0 }
  0x18   : > { %v166_v14 = vadd.f32 %v165_v9, %v164_v11 }
  0x1a   : > { %v168_v17 = vadd.f32 %v167_v12, %v166_v14 }
  0x1c   : > { %v170_v20 = vadd.f32 %v169_v15, %v168_v17 }
  0x1e   : > { %v172_v23 = vadd.f32 %v171_v18, %v170_v20 }
  0x20   : > { %v174_v26 = vadd.f32 %v173_v21, %v172_v23 }
  0x22   : > { %v176_v28 = vadd.f32 %v175_v24, %v174_v26 }
  0x24   : > { %v178_v30 = vadd.f32 %v177_v27, %v176_v28 }
  0x26   : > { %v181_v31 = vadd.f32 %v180_v29, %v178_v30 }
  0x28   : > { %v182_v32 = vrot.slane %v181_v31, 4 }
  0x2a   : > { %v183_v33 = vadd.f32 %v182_v32, %v181_v31 }
  0x2c   : > { %v184_v34 = vrot.slane %v183_v33, 2 }
  0x2e   : > { %v185_v35 = vadd.f32 %v184_v34, %v183_v33 }
  0x30   : > { %v186_v36 = vrot.slane %v185_v35, 1 }
  0x32   : > { %v187_v37 = vadd.f32 %v186_v36, %v185_v35 }
  0x34   : > { %v188_v38 = vmul.f32 0.012345679, %v187_v37 }
  0x36   : > { %v189_v39 = vsub.f32 %v148_v0, %v188_v38  ;;  %v190_v40 = vsub.f32 %v149_v1, %v188_v38  ;;  %v191_v41 = vsub.f32 %v150_v2, %v188_v38  ;;  %v192_v42 = vsub.f32 %v151_v3, %v188_v38 }
  0x37   : > { %v193_v43 = vsub.f32 %v152_v7, %v188_v38  ;;  %v194_v45 = vsub.f32 %v153_v10, %v188_v38  ;;  %v195_v49 = vsub.f32 %v154_v13, %v188_v38  ;;  %v196_v55 = vsub.f32 %v155_v16, %v188_v38 }
  0x38   : > { %v200_v44 = vmul.f32 %v189_v39, %v189_v39  ;;  %v201_v46 = vmul.f32 %v190_v40, %v190_v40  ;;  %v202_v47 = vmul.f32 %v191_v41, %v191_v41  ;;  %v203_v48 = vmul.f32 %v192_v42, %v192_v42 }
  0x39   : > { %v204_v50 = vmul.f32 %v193_v43, %v193_v43  ;;  %v205_v56 = vmul.f32 %v194_v45, %v194_v45  ;;  %v490_v59 = vsub.f32 %v156_v19, %v188_v38  ;;  %v206_v60 = vmul.f32 %v195_v49, %v195_v49 }
  0x3a   : > { %v211_v51 = vsel %vm159_vm0, %v200_v44, 0.0  ;;  %v212_v52 = vsel %vm159_vm0, %v201_v46, 0.0  ;;  %v214_v54 = vsel %vm159_vm0, %v202_v47, 0.0  ;;  %v216_v57 = vsel %vm159_vm0, %v203_v48, 0.0 }
  0x3b   : > { %v213_v53 = vadd.f32 %v212_v52, %v211_v51  ;;  %v218_v61 = vsel %vm159_vm0, %v204_v50, 0.0  ;;  %v493_v63 = vsub.f32 %v157_v22, %v188_v38  ;;  %v207_v0 = vmul.f32 %v196_v55, %v196_v55 }
  0x3c   : > { %v220_v1 = vsel %vm159_vm0, %v205_v56, 0.0  ;;  %v496_v3 = vsub.f32 %v158_v25, %v188_v38  ;;  %v208_v4 = vmul.f32 %v490_v59, %v490_v59  ;;  %v222_v5 = vsel %vm159_vm0, %v206_v60, 0.0 }
  0x3d   : > { %v215_v58 = vadd.f32 %v214_v54, %v213_v53  ;;  %v209_v7 = vmul.f32 %v493_v63, %v493_v63  ;;  %v224_v8 = vsel %vm159_vm0, %v207_v0, 0.0 }
  0x3e   : > { %v210_v10 = vmul.f32 %v496_v3, %v496_v3  ;;  %v226_v11 = vsel %vm159_vm0, %v208_v4, 0.0 }
  0x3f   : > { %v217_v62 = vadd.f32 %v216_v57, %v215_v58  ;;  %v228_v13 = vsel %vm159_vm0, %v209_v7, 0.0 }
  0x40   : > { %v230_v15 = vsel %vm179_vm1, %v210_v10, 0.0 }
  0x41   : > { %v219_v2 = vadd.f32 %v218_v61, %v217_v62 }
  0x43   : > { %v221_v6 = vadd.f32 %v220_v1, %v219_v2 }
  0x45   : > { %v223_v9 = vadd.f32 %v222_v5, %v221_v6 }
  0x47   : > { %v225_v12 = vadd.f32 %v224_v8, %v223_v9 }
  0x49   : > { %v227_v14 = vadd.f32 %v226_v11, %v225_v12 }
  0x4b   : > { %v229_v16 = vadd.f32 %v228_v13, %v227_v14 }
  0x4d   : > { %v231_v17 = vadd.f32 %v230_v15, %v229_v16 }
  0x4f   : > { %v232_v18 = vrot.slane %v231_v17, 4 }
  0x51   : > { %v233_v19 = vadd.f32 %v232_v18, %v231_v17 }
  0x53   : > { %v234_v20 = vrot.slane %v233_v19, 2 }
  0x55   : > { %v235_v21 = vadd.f32 %v234_v20, %v233_v19 }
  0x57   : > { %v236_v22 = vrot.slane %v235_v21, 1 }
  0x59   : > { %v237_v23 = vadd.f32 %v236_v22, %v235_v21 }
  0x5b   : > { %v238_v24 = vmul.f32 0.012345679, %v237_v23 }
  0x5d   : > { %v239_v25 = vadd.f32 1e-05, %v238_v24 }
  0x5f   : > { %413 = vrsqrt.f32 %v239_v25 }
  0x69   : > { %v414_v26 = vpop.eup %413 }
  0x6a   : > { %v241_v27 = vmul.f32 %v414_v26, %v189_v39  ;;  %v242_v28 = vmul.f32 %v414_v26, %v190_v40  ;;  %v243_v29 = vmul.f32 %v414_v26, %v191_v41  ;;  %v244_v30 = vmul.f32 %v414_v26, %v192_v42 }
  0x6b   : > { %v245_v31 = vmul.f32 %v414_v26, %v193_v43  ;;  %v246_v32 = vmul.f32 %v414_v26, %v194_v45  ;;  %v247_v33 = vmul.f32 %v414_v26, %v195_v49  ;;  %v248_v34 = vmul.f32 %v414_v26, %v196_v55 }
  0x6c   : > { %vm252_vm2 = vcmp.ge.f32.partialorder %v241_v27, 0.0  ;;  %v263_v35 = vmul.f32 0.2, %v241_v27  ;;  %vm253_vm3 = vcmp.ge.f32.partialorder %v242_v28, 0.0  ;;  %v264_v36 = vmul.f32 0.2, %v242_v28 }
  0x6d   : > { %vm254_vm4 = vcmp.ge.f32.partialorder %v243_v29, 0.0  ;;  %v265_v37 = vmul.f32 0.2, %v243_v29  ;;  %vm255_vm5 = vcmp.ge.f32.partialorder %v244_v30, 0.0  ;;  %v266_v38 = vmul.f32 0.2, %v244_v30 }
  0x6e   : > { %v274_v39 = vsel %vm252_vm2, %v241_v27, %v263_v35  ;;  %v275_v40 = vsel %vm253_vm3, %v242_v28, %v264_v36  ;;  %vm256_vm6 = vcmp.ge.f32.partialorder %v245_v31, 0.0  ;;  %v267_v41 = vmul.f32 0.2, %v245_v31 }
  0x6f   : > { %285 = vst.msk [vmem:[%s514_s16] sm:$0xff] %vm159_vm0, %v274_v39  ;;  %286 = vst.msk [vmem:[%s514_s16 + $0x8] sm:$0xff] %vm159_vm0, %v275_v40  ;;  %v276_v42 = vsel %vm254_vm4, %v243_v29, %v265_v37  ;;  %v277_v43 = vsel %vm255_vm5, %v244_v30, %v266_v38  ;;  %vm257_vm7 = vcmp.ge.f32.partialorder %v246_v32, 0.0  ;;  %v268_v44 = vmul.f32 0.2, %v246_v32 }
  0x70   : > { %287 = vst.msk [vmem:[%s514_s16 + $0x10] sm:$0xff] %vm159_vm0, %v276_v42  ;;  %288 = vst.msk [vmem:[%s514_s16 + $0x18] sm:$0xff] %vm159_vm0, %v277_v43  ;;  %v278_v45 = vsel %vm256_vm6, %v245_v31, %v267_v41  ;;  %vm258_vm8 = vcmp.ge.f32.partialorder %v247_v33, 0.0  ;;  %v269_v46 = vmul.f32 0.2, %v247_v33  ;;  %vm259_vm9 = vcmp.ge.f32.partialorder %v248_v34, 0.0 }
  0x71   : > { %289 = vst.msk [vmem:[%s514_s16 + $0x20] sm:$0xff] %vm159_vm0, %v278_v45  ;;  %v279_v47 = vsel %vm257_vm7, %v246_v32, %v268_v44  ;;  %v270_v48 = vmul.f32 0.2, %v248_v34  ;;  %v249_v49 = vmul.f32 %v414_v26, %v490_v59  ;;  %v250_v50 = vmul.f32 %v414_v26, %v493_v63 }
  0x72   : > { %290 = vst.msk [vmem:[%s514_s16 + $0x28] sm:$0xff] %vm159_vm0, %v279_v47  ;;  %v280_v51 = vsel %vm258_vm8, %v247_v33, %v269_v46  ;;  %v251_v52 = vmul.f32 %v414_v26, %v496_v3 }
  0x73   : > { %291 = vst.msk [vmem:[%s514_s16 + $0x30] sm:$0xff] %vm159_vm0, %v280_v51  ;;  %v281_v53 = vsel %vm259_vm9, %v248_v34, %v270_v48  ;;  %vm260_vm10 = vcmp.ge.f32.partialorder %v249_v49, 0.0  ;;  %v271_v54 = vmul.f32 0.2, %v249_v49  ;;  %vm261_vm11 = vcmp.ge.f32.partialorder %v250_v50, 0.0 }
  0x74   : > { %292 = vst.msk [vmem:[%s514_s16 + $0x38] sm:$0xff] %vm159_vm0, %v281_v53  ;;  %v272_v55 = vmul.f32 0.2, %v250_v50  ;;  %vm262_vm12 = vcmp.ge.f32.partialorder %v251_v52, 0.0  ;;  %v273_v56 = vmul.f32 0.2, %v251_v52 }
  0x75   : > { %v282_v57 = vsel %vm260_vm10, %v249_v49, %v271_v54 }
  0x76   : > { %293 = vst.msk [vmem:[%s514_s16 + $0x40] sm:$0xff] %vm159_vm0, %v282_v57  ;;  %v283_v58 = vsel %vm261_vm11, %v250_v50, %v272_v55  ;;  %v284_v59 = vsel %vm262_vm12, %v251_v52, %v273_v56 }
  0x77   : > { %294 = vst.msk [vmem:[%s514_s16 + $0x48] sm:$0xff] %vm159_vm0, %v283_v58 }
  0x78   : > { %295 = vst.msk [vmem:[%s514_s16 + $0x50] sm:$0x1] %vm179_vm1, %v284_v59 }
  0x79 PF: > { %s11_s8 = sadd.s32 1, %s437_s8   ;;  %s552_s6 = smov %s433_s7 }
  0x7a   : > { %p8_p5 = scmp.ge.s32.totalorder %s11_s8, 4   ;;  %s553_s7 = smov %s555_s9 }
  0x7c   :  { %10 = sbr.rel (!%p8_p5) target bundleno = 2 (0x2), region = 54 }

// kernel: multiscale_discriminator_forward.27
= control target key start
LH: loop header
LB: loop body
LE: loop exit
PB: predicated region body
PF: predicated region fallthrough
CT: control target
= control target key end

     0   :  { %s1266_s12 = smov 0   ;;  %s1268_s13 = smov 0   ;;  %s1603_s0 = inlined_call_operand.vmem [shape: f32[50,512], index: 0, kind: input, shape index: {}]   ;;  %s1604_s1 = inlined_call_operand.vmem [shape: f32[512,128], index: 1, kind: input, shape index: {}]   ;;  %s1605_s2 = inlined_call_operand.vmem [shape: f32[1,128], index: 2, kind: input, shape index: {}]   ;;  %s1606_s3 = inlined_call_operand.vmem [shape: f32[50,128], index: 3, kind: output, shape index: {}]  }
   0x1   :  { %s1270_s14 = smov 0   ;;  %s1272_s15 = smov 0  }
   0x2   :  { %s1274_s16 = smov 0  }
   0x3 LB: > { %s853_s17 = sadd.s32 4294967295, %s1212_s16   ;;  %s32_s18 = sadd.s32 1, %s1208_s15  ;;  %s1212_s16 = sphi %s1274_s16, %s13_s16   ;;  %s1208_s15 = sphi %s1272_s15, %s1614_s15   ;;  %s1204_s14 = sphi %s1270_s14, %s1613_s14   ;;  %s1200_s13 = sphi %s1268_s13, %s1612_s13   ;;  %s1196_s12 = sphi %s1266_s12, %s1611_s12  }
   0x4   : > { %p34_p0 = scmp.ge.s32.totalorder %s32_s18, 2  ;;  %s123_s19 = sadd.s32 1, %s1200_s13 }
   0x5   : > { %p133_p1 = scmp.ne.s32.totalorder %s1200_s13, %s1196_s12  ;;  %p134_p2 = scmp.eq.s32.totalorder %s853_s17, 1 }
   0x6   : > { %s1616_s18 = smov (%p34_p0, %s32_s18), 0  ;;  %p859_p4 = scmp.ge.s32.totalorder %s1212_s16, 1 }
   0x7   : > { %p1298_p3 = por %p134_p2, %p133_p1  ;;  %s118_s21 = ssub.s32 %s1208_s15, %s1616_s18 }
   0x8   : > { %p201_p5 = scmp.lt.s32.totalorder %s1212_s16, 3  ;;  %p121_p6 = scmp.eq.s32.totalorder %s118_s21, 0 }
   0xa   : > { %p202_p7 = pnand %p859_p4, %p201_p5 }
   0xb   : > { %s1307_s22 = scalar_select %p121_p6, %s1200_s13, %s123_s19  }
   0xc   : > { %205 = sbr.rel (%p202_p7) target bundleno = 330 (0x14a), region = 32  ;;  %v328_v0 = vld [vmem:[%s1604_s1 + $0x80] sm:$0xff] (!%p202_p7)  ;;  %v329_v1 = vld [vmem:[%s1604_s1 + $0x88] sm:$0xff] (!%p202_p7)  ;;  %v330_v11 = vld [vmem:[%s1604_s1 + $0x90] sm:$0xff] (!%p202_p7)  ;;  %s1355_s7 = sshll.u32 (!%p202_p7), %s1204_s14, 2 }
   0xd   : > { %v360_v2 = vld [vmem:[%s1604_s1 + $0x180] sm:$0xff] (!%p202_p7)  ;;  %v974_v3 = vpack.c.bf16 (!%p202_p7), %v329_v1, %v328_v0  ;;  %v361_v4 = vld [vmem:[%s1604_s1 + $0x188] sm:$0xff] (!%p202_p7)  ;;  %v331_v13 = vld [vmem:[%s1604_s1 + $0x98] sm:$0xff] (!%p202_p7)  ;;  %p252_p8 = scmp.lt.s32.totalorder (!%p202_p7), %s1355_s7, 6  ;;  %s242_s30 = sand.u32 (!%p202_p7), 1, %s1196_s12  }
   0xe   : > { %v312_v5 = vld [vmem:[%s1604_s1] sm:$0xff] (!%p202_p7)  ;;  %v313_v6 = vld [vmem:[%s1604_s1 + $0x8] sm:$0xff] (!%p202_p7)  ;;  %v1006_v7 = vpack.c.bf16 (!%p202_p7), %v361_v4, %v360_v2  ;;  %v362_v14 = vld [vmem:[%s1604_s1 + $0x190] sm:$0xff] (!%p202_p7)  ;;  %v978_v16 = vpack.c.bf16 (!%p202_p7), %v331_v13, %v330_v11  ;;  %s860_s4 = sshll.u32 (!%p202_p7), %s242_s30, 5 }
   0xf   : > { %v976_v8 = vpack.c.bf16 (!%p202_p7), %v313_v6, %v312_v5  ;;  %v344_v9 = vld [vmem:[%s1604_s1 + $0x100] sm:$0xff] (!%p202_p7)  ;;  %v345_v10 = vld [vmem:[%s1604_s1 + $0x108] sm:$0xff] (!%p202_p7)  ;;  %975 = vmatprep.subr.bf16.mxu0 (!%p202_p7), %v974_v3  ;;  %v363_v15 = vld [vmem:[%s1604_s1 + $0x198] sm:$0xff] (!%p202_p7)  ;;  %s1536_s12 = scalar_lea.vmem (!%p202_p7), [#allocation3], %s860_s4  }
  0x10   : > { %v1008_v12 = vpack.c.bf16 (!%p202_p7), %v345_v10, %v344_v9  ;;  %1007 = vmatprep.subr.bf16.mxu1 (!%p202_p7), %v1006_v7  ;;  %v1010_v17 = vpack.c.bf16 (!%p202_p7), %v363_v15, %v362_v14  ;;  %v314_v18 = vld [vmem:[%s1604_s1 + $0x10] sm:$0xff] (!%p202_p7)  ;;  %v315_v19 = vld [vmem:[%s1604_s1 + $0x18] sm:$0xff] (!%p202_p7)  ;;  %v332_v23 = vld [vmem:[%s1604_s1 + $0xa0] sm:$0xff] (!%p202_p7) }
  0x11   : > { %977 = vmatpush3.bf16.msra.mxu0 (!%p202_p7), %v976_v8  ;;  %v346_v20 = vld [vmem:[%s1604_s1 + $0x110] sm:$0xff] (!%p202_p7)  ;;  %v980_v21 = vpack.c.bf16 (!%p202_p7), %v315_v19, %v314_v18  ;;  %v347_v22 = vld [vmem:[%s1604_s1 + $0x118] sm:$0xff] (!%p202_p7)  ;;  %v333_v24 = vld [vmem:[%s1604_s1 + $0xa8] sm:$0xff] (!%p202_p7) }
  0x12   : > { %1009 = vmatpush3.bf16.msra.mxu1 (!%p202_p7), %v1008_v12  ;;  %979 = vmatprep.subr.bf16.mxu0 (!%p202_p7), %v978_v16  ;;  %v1012_v25 = vpack.c.bf16 (!%p202_p7), %v347_v22, %v346_v20  ;;  %v982_v26 = vpack.c.bf16 (!%p202_p7), %v333_v24, %v332_v23  ;;  %v364_v27 = vld [vmem:[%s1604_s1 + $0x1a0] sm:$0xff] (!%p202_p7)  ;;  %v365_v28 = vld [vmem:[%s1604_s1 + $0x1a8] sm:$0xff] (!%p202_p7)  ;;  %v334_v35 = vld [vmem:[%s1604_s1 + $0xb0] sm:$0xff] (!%p202_p7) }
  0x13   : > { %1011 = vmatprep.subr.bf16.mxu1 %v1010_v17  ;;  %v316_v29 = vld [vmem:[%s1604_s1 + $0x20] sm:$0xff]  ;;  %v1014_v30 = vpack.c.bf16 %v365_v28, %v364_v27  ;;  %v317_v31 = vld [vmem:[%s1604_s1 + $0x28] sm:$0xff]  ;;  %v335_v36 = vld [vmem:[%s1604_s1 + $0xb8] sm:$0xff]  ;;  %s1424_s21 = scalar_select %p252_p8, %s1355_s7, 6 }
  0x14   : > { %v348_v32 = vld [vmem:[%s1604_s1 + $0x120] sm:$0xff]  ;;  %v349_v33 = vld [vmem:[%s1604_s1 + $0x128] sm:$0xff]  ;;  %v984_v34 = vpack.c.bf16 %v317_v31, %v316_v29  ;;  %v366_v37 = vld [vmem:[%s1604_s1 + $0x1b0] sm:$0xff]  ;;  %v986_v39 = vpack.c.bf16 %v335_v36, %v334_v35  ;;  %s883_s8 = sshll.u32 (%p1298_p3), %s1204_s14, 5 }
  0x15   : > { %981 = vmatpush3.bf16.msra.mxu0 %v980_v21  ;;  %v1016_v38 = vpack.c.bf16 %v349_v33, %v348_v32  ;;  %v367_v40 = vld [vmem:[%s1604_s1 + $0x1b8] sm:$0xff]  ;;  %v318_v41 = vld [vmem:[%s1604_s1 + $0x30] sm:$0xff]  ;;  %v336_v46 = vld [vmem:[%s1604_s1 + $0xc0] sm:$0xff]  ;;  %s882_s19 = sshll.u32 %s1424_s21, 5  ;;  %s1549_s17 = scalar_lea.vmem (%p1298_p3), %s1606_s3, %s883_s8  }
  0x16   : > { %1013 = vmatpush3.bf16.msra.mxu1 %v1012_v25  ;;  %983 = vmatprep.subr.bf16.mxu0 %v982_v26  ;;  %v319_v42 = vld [vmem:[%s1604_s1 + $0x38] sm:$0xff]  ;;  %v1018_v43 = vpack.c.bf16 %v367_v40, %v366_v37  ;;  %v350_v44 = vld [vmem:[%s1604_s1 + $0x130] sm:$0xff]  ;;  %v337_v47 = vld [vmem:[%s1604_s1 + $0xc8] sm:$0xff]  ;;  %s1472_s10 = scalar_lea.vmem %s1603_s0, %s882_s19 }
  0x17   : > { %1015 = vmatprep.subr.bf16.mxu1 %v1014_v30  ;;  %v351_v45 = vld [vmem:[%s1604_s1 + $0x138] sm:$0xff]  ;;  %v368_v48 = vld [vmem:[%s1604_s1 + $0x1c0] sm:$0xff]  ;;  %v369_v49 = vld [vmem:[%s1604_s1 + $0x1c8] sm:$0xff]  ;;  %v988_v50 = vpack.c.bf16 %v319_v42, %v318_v41  ;;  %v990_v52 = vpack.c.bf16 %v337_v47, %v336_v46 }
  0x18   : > { %v1020_v51 = vpack.c.bf16 %v351_v45, %v350_v44  ;;  %v320_v53 = vld [vmem:[%s1604_s1 + $0x40] sm:$0xff]  ;;  %v321_v54 = vld [vmem:[%s1604_s1 + $0x48] sm:$0xff]  ;;  %v1022_v56 = vpack.c.bf16 %v369_v49, %v368_v48  ;;  %v338_v58 = vld [vmem:[%s1604_s1 + $0xd0] sm:$0xff] }
  0x19   : > { %985 = vmatpush3.bf16.msra.mxu0 %v984_v34  ;;  %v352_v55 = vld [vmem:[%s1604_s1 + $0x140] sm:$0xff]  ;;  %v353_v57 = vld [vmem:[%s1604_s1 + $0x148] sm:$0xff]  ;;  %v339_v59 = vld [vmem:[%s1604_s1 + $0xd8] sm:$0xff]  ;;  %v992_v62 = vpack.c.bf16 %v321_v54, %v320_v53 }
  0x1a   : > { %1017 = vmatpush3.bf16.msra.mxu1 %v1016_v38  ;;  %987 = vmatprep.subr.bf16.mxu0 %v986_v39  ;;  %v370_v60 = vld [vmem:[%s1604_s1 + $0x1d0] sm:$0xff]  ;;  %v371_v61 = vld [vmem:[%s1604_s1 + $0x1d8] sm:$0xff]  ;;  %v1024_v63 = vpack.c.bf16 %v353_v57, %v352_v55  ;;  %v994_v0 = vpack.c.bf16 %v339_v59, %v338_v58  ;;  %v340_v6 = vld [vmem:[%s1604_s1 + $0xe0] sm:$0xff] }
  0x1b   : > { %1019 = vmatprep.subr.bf16.mxu1 %v1018_v43  ;;  %v322_v1 = vld [vmem:[%s1604_s1 + $0x50] sm:$0xff]  ;;  %v323_v2 = vld [vmem:[%s1604_s1 + $0x58] sm:$0xff]  ;;  %v1026_v4 = vpack.c.bf16 %v371_v61, %v370_v60  ;;  %v341_v7 = vld [vmem:[%s1604_s1 + $0xe8] sm:$0xff] }
  0x1c   : > { %v354_v3 = vld [vmem:[%s1604_s1 + $0x150] sm:$0xff]  ;;  %v355_v5 = vld [vmem:[%s1604_s1 + $0x158] sm:$0xff]  ;;  %v372_v8 = vld [vmem:[%s1604_s1 + $0x1e0] sm:$0xff]  ;;  %v996_v10 = vpack.c.bf16 %v323_v2, %v322_v1  ;;  %v998_v14 = vpack.c.bf16 %v341_v7, %v340_v6 }
  0x1d   : > { %989 = vmatpush3.bf16.msra.mxu0 %v988_v50  ;;  %v373_v9 = vld [vmem:[%s1604_s1 + $0x1e8] sm:$0xff]  ;;  %v324_v11 = vld [vmem:[%s1604_s1 + $0x60] sm:$0xff]  ;;  %v1028_v13 = vpack.c.bf16 %v355_v5, %v354_v3  ;;  %v299_v17 = vld [vmem:[%s1472_s10 + $0x18] sm:$0xff] }
  0x1e   : > { %1021 = vmatpush3.bf16.msra.mxu1 %v1020_v51  ;;  %991 = vmatprep.subr.bf16.mxu0 %v990_v52  ;;  %v325_v12 = vld [vmem:[%s1604_s1 + $0x68] sm:$0xff]  ;;  %v356_v15 = vld [vmem:[%s1604_s1 + $0x160] sm:$0xff]  ;;  %v1030_v18 = vpack.c.bf16 %v373_v9, %v372_v8  ;;  %v342_v20 = vld [vmem:[%s1604_s1 + $0xf0] sm:$0xff] }
  0x1f   : > { %1023 = vmatprep.subr.bf16.mxu1 %v1022_v56  ;;  %v297_v16 = vld [vmem:[%s1472_s10 + $0x8] sm:$0xff]  ;;  %v343_v21 = vld [vmem:[%s1604_s1 + $0xf8] sm:$0xff]  ;;  %v374_v22 = vld [vmem:[%s1604_s1 + $0x1f0] sm:$0xff]  ;;  %525 = vmatprep.mubr.f32.mxu1 %v299_v17  ;;  %v1000_v24 = vpack.c.bf16 %v325_v12, %v324_v11 }
  0x20   : > { %v357_v19 = vld [vmem:[%s1604_s1 + $0x168] sm:$0xff]  ;;  %440 = vmatprep.mubr.f32.mxu0 %v297_v16  ;;  %v375_v23 = vld [vmem:[%s1604_s1 + $0x1f8] sm:$0xff]  ;;  %v1002_v26 = vpack.c.bf16 %v343_v21, %v342_v20  ;;  %v326_v27 = vld [vmem:[%s1604_s1 + $0x70] sm:$0xff] }
  0x21   : > { %993 = vmatpush3.bf16.msra.mxu0 %v992_v62  ;;  %v1032_v25 = vpack.c.bf16 %v357_v19, %v356_v15  ;;  %v327_v28 = vld [vmem:[%s1604_s1 + $0x78] sm:$0xff]  ;;  %v1034_v29 = vpack.c.bf16 %v375_v23, %v374_v22  ;;  %v358_v30 = vld [vmem:[%s1604_s1 + $0x170] sm:$0xff]  ;;  %v296_v34 = vld [vmem:[%s1472_s10] sm:$0xff] }
  0x22   : > { %1025 = vmatpush3.bf16.msra.mxu1 %v1024_v63  ;;  %995 = vmatprep.subr.bf16.mxu0 %v994_v0  ;;  %v359_v31 = vld [vmem:[%s1604_s1 + $0x178] sm:$0xff]  ;;  %v1004_v32 = vpack.c.bf16 %v327_v28, %v326_v27  ;;  %v298_v35 = vld [vmem:[%s1472_s10 + $0x10] sm:$0xff]  ;;  %v301_v36 = vld [vmem:[%s1472_s10 + $0x28] sm:$0xff] }
  0x23   : > { %1027 = vmatprep.subr.bf16.mxu1 %v1026_v4  ;;  %v1036_v33 = vpack.c.bf16 %v359_v31, %v358_v30  ;;  %v303_v37 = vld [vmem:[%s1472_s10 + $0x38] sm:$0xff]  ;;  %v300_v38 = vld [vmem:[%s1472_s10 + $0x20] sm:$0xff]  ;;  %v302_v39 = vld [vmem:[%s1472_s10 + $0x30] sm:$0xff] }
  0x24   : > { %v305_v40 = vld [vmem:[%s1472_s10 + $0x48] sm:$0xff]  ;;  %v307_v41 = vld [vmem:[%s1472_s10 + $0x58] sm:$0xff]  ;;  %v304_v42 = vld [vmem:[%s1472_s10 + $0x40] sm:$0xff] }
  0x25   : > { %997 = vmatpush3.bf16.msra.mxu0 %v996_v10  ;;  %v306_v43 = vld [vmem:[%s1472_s10 + $0x50] sm:$0xff]  ;;  %v309_v44 = vld [vmem:[%s1472_s10 + $0x68] sm:$0xff]  ;;  %v311_v45 = vld [vmem:[%s1472_s10 + $0x78] sm:$0xff] }
  0x26   : > { %1029 = vmatpush3.bf16.msra.mxu1 %v1028_v13  ;;  %999 = vmatprep.subr.bf16.mxu0 %v998_v14  ;;  %v308_v46 = vld [vmem:[%s1472_s10 + $0x60] sm:$0xff]  ;;  %v310_v47 = vld [vmem:[%s1472_s10 + $0x70] sm:$0xff]  ;;  %s584_s10 = ssub.s32 (%p1298_p3), 7, %s1355_s7 }
  0x27   : > { %1031 = vmatprep.subr.bf16.mxu1 %v1030_v18  ;;  %v864_v54 = vld [vmem:[%s1605_s2] ss:$0 sm:$0xff]  ;;  %p585_p9 = scmp.lt.s32.totalorder (%p1298_p3), %s584_s10, 4 }
  0x29   : > { %1001 = vmatpush3.bf16.msra.mxu0 %v1000_v24 }
  0x2a   : > { %1033 = vmatpush3.bf16.msra.mxu1 %v1032_v25  ;;  %1003 = vmatprep.subr.bf16.mxu0 %v1002_v26 }
  0x2b   : > { %1035 = vmatprep.subr.bf16.mxu1 %v1034_v29 }
  0x2d   : > { %1005 = vmatpush3.bf16.msra.mxu0 %v1004_v32 }
  0x2e   : > { %1037 = vmatpush3.bf16.msra.mxu1 %v1036_v33 }
  0x30   : > { %441 = vmatmul.mubr.f32.vlgmr.msra.gmra.mrb[0].mxu0 %v296_v34 }
  0x31   : > { %526 = vmatmul.mubr.f32.vlgmr.msra.gmra.mrb[0].mxu1 %v298_v35  ;;  %445 = vmatprep.mubr.f32.mxu0 %v301_v36 }
  0x32   : > { %530 = vmatprep.mubr.f32.mxu1 %v303_v37 }
  0x34   : > { %446 = vmatmul.mubr.f32.gmra.mrb[2].mxu0 %v300_v38 }
  0x35   : > { %531 = vmatmul.mubr.f32.gmra.mrb[2].mxu1 %v302_v39  ;;  %450 = vmatprep.mubr.f32.mxu0 %v305_v40 }
  0x36   : > { %535 = vmatprep.mubr.f32.mxu1 %v307_v41 }
  0x38   : > { %451 = vmatmul.mubr.f32.gmra.mrb[4].mxu0 %v304_v42 }
  0x39   : > { %536 = vmatmul.mubr.f32.gmra.mrb[4].mxu1 %v306_v43  ;;  %455 = vmatprep.mubr.f32.mxu0 %v309_v44 }
  0x3a   : > { %540 = vmatprep.mubr.f32.mxu1 %v311_v45 }
  0x3c   : > { %456 = vmatmul.mubr.f32.gmra.mrb[6].mxu0 %v308_v46 }
  0x3d   : > { %541 = vmatmul.mubr.f32.gmra.mrb[6].mxu1 %v310_v47 }
 0x103   : > { %v918_v48 = vpop.f32.mrb[0].mxu0 }
 0x104   : > { %v962_v49 = vpop.f32.mrb[0].mxu1  ;;  %v919_v50 = vpop.f32.mrb[1].mxu0 }
 0x105   : > { %v920_v51 = vadd.f32 %v919_v50, %v918_v48  ;;  %v963_v52 = vpop.f32.mrb[1].mxu1 }
 0x106   : > { %v964_v53 = vadd.f32 %v963_v52, %v962_v49 }
 0x107   : > { %v921_v55 = vpop.f32.mrb[2].mxu0 }
 0x108   : > { %v528_v56 = vadd.f32 %v964_v53, %v920_v51  ;;  %v965_v57 = vpop.f32.mrb[2].mxu1  ;;  %v922_v58 = vpop.f32.mrb[3].mxu0 }
 0x109   : > { %v923_v59 = vadd.f32 %v922_v58, %v921_v55  ;;  %v966_v60 = vpop.f32.mrb[3].mxu1 }
 0x10a   : > { %v568_v61 = vadd.f32 %v864_v54, %v528_v56  ;;  %v967_v62 = vadd.f32 %v966_v60, %v965_v57 }
 0x10b   : > { %v924_v63 = vpop.f32.mrb[4].mxu0 }
 0x10c   : > { %572 = vst [vmem:[%s1536_s12] sm:$0xff] %v568_v61  ;;  %v533_v0 = vadd.f32 %v967_v62, %v923_v59  ;;  %v968_v1 = vpop.f32.mrb[4].mxu1  ;;  %v925_v2 = vpop.f32.mrb[5].mxu0 }
 0x10d   : > { %v926_v3 = vadd.f32 %v925_v2, %v924_v63  ;;  %v969_v4 = vpop.f32.mrb[5].mxu1 }
 0x10e   : > { %v569_v5 = vadd.f32 %v864_v54, %v533_v0  ;;  %v970_v6 = vadd.f32 %v969_v4, %v968_v1 }
 0x10f   : > { %v927_v7 = vpop.f32.mrb[6].mxu0 }
 0x110   : > { %573 = vst [vmem:[%s1536_s12 + $0x8] sm:$0xff] %v569_v5  ;;  %v538_v8 = vadd.f32 %v970_v6, %v926_v3  ;;  %v971_v9 = vpop.f32.mrb[6].mxu1  ;;  %v928_v10 = vpop.f32.mrb[7].mxu0 }
 0x111   : > { %v929_v11 = vadd.f32 %v928_v10, %v927_v7  ;;  %v972_v12 = vpop.f32.mrb[7].mxu1 }
 0x112   : > { %v570_v13 = vadd.f32 %v864_v54, %v538_v8  ;;  %v973_v14 = vadd.f32 %v972_v12, %v971_v9  ;;  %582 = sbr.rel (!%p1298_p3) target bundleno = 330 (0x14a), region = 44 }
 0x114   : > { %574 = vst [vmem:[%s1536_s12 + $0x10] sm:$0xff] %v570_v13  ;;  %v543_v15 = vadd.f32 %v973_v14, %v929_v11 }
 0x116   : > { %v571_v16 = vadd.f32 %v864_v54, %v543_v15 }
 0x118   : > { %575 = vst [vmem:[%s1536_s12 + $0x18] sm:$0xff] %v571_v16 }
 0x119   : > { %s1618_s10 = smov (!%p585_p9, %s584_s10), 4 }
 0x11a   : > { %s867_s23 = sshll.u32 %s1618_s10, 7 }
 0x11b   : > { %p870_p10 = scmp.eq.s32.totalorder %s867_s23, 0 }
 0x11c   : > { %s1555_s24 = sshrl.u32 (!%p870_p10), %s1618_s10, 2 }
 0x11d   : > { %594 = sbr.rel (%p870_p10) target bundleno = 330 (0x14a), region = 48  ;;  %p871_p11 = scmp.le.s32.totalorder (!%p870_p10), %s1555_s24, 0 }
 0x124   : > { %780 = sbr.rel (%p871_p11) target bundleno = 309 (0x135), region = 130  ;;  %s1608_s14 = smov (!%p871_p11), %s1549_s17 }
 0x125   : > { %s1609_s20 = smov (!%p871_p11), %s1536_s12  ;;  %s1564_s7 = smov (!%p871_p11), 0  }
 0x126   : > { %s1226_s25 = smov (!%p871_p11), 0  }
 0x12b LB: >> { %v662_v17 = vld [vmem:[%s1220_s20] sm:$0xff]  ;;  %v664_v18 = vld [vmem:[%s1220_s20 + $0x8] sm:$0xff]  ;;  %v666_v19 = vld [vmem:[%s1220_s20 + $0x10] sm:$0xff]  ;;  %s670_s26 = sadd.s32 1, %s1224_s7  ;;  %s656_s25 = sadd.s32 1, %s1228_s25   ;;  %s1228_s25 = sphi %s1226_s25, %s656_s25   ;;  %s1224_s7 = sphi %s1564_s7, %s1610_s7   ;;  %s1220_s20 = sphi %s1609_s20, %s675_s20   ;;  %s1216_s14 = sphi %s1608_s14, %s676_s14  }
 0x12c   : >> { %663 = vst [vmem:[%s1216_s14] sm:$0xff] %v662_v17  ;;  %665 = vst [vmem:[%s1216_s14 + $0x8] sm:$0xff] %v664_v18  ;;  %v668_v20 = vld [vmem:[%s1220_s20 + $0x18] sm:$0xff]  ;;  %p671_p12 = scmp.ge.s32.totalorder %s670_s26, %s1555_s24  ;;  %p655_p13 = scmp.ge.s32.totalorder %s656_s25, %s1555_s24 }
 0x12d   : >> { %667 = vst [vmem:[%s1216_s14 + $0x10] sm:$0xff] %v666_v19  ;;  %669 = vst [vmem:[%s1216_s14 + $0x18] sm:$0xff] %v668_v20 }
 0x12e   : >> { %s1620_s26 = smov (%p671_p12, %s670_s26), 0  ;;  %658 = sbr.rel (!%p655_p13) target bundleno = 299 (0x12b), region = 136 }
 0x12f   : >> { %s872_s27 = sshll.u32 %s1620_s26, 5  ;;  %s1610_s7 = smov %s1620_s26 }
 0x130   : >> { %s675_s20 = scalar_lea.vmem %s1536_s12, %s872_s27 [#allocation3]   ;;  %s676_s14 = scalar_lea.vmem %s1549_s17, %s872_s27  }
 0x135 PF: > { %s1580_s28 = sand.u32 3, %s1618_s10   ;;  %s884_s19 = sshll.u32 %s1555_s24, 5 }
 0x136   : > { %s681_s21 = scalar_lea.vmem %s1536_s12, %s884_s19 [#allocation3]   ;;  %s683_s29 = scalar_lea.vmem %s1549_s17, %s884_s19  }
 0x137   : > { %p877_p0 = scmp.le.s32.totalorder %s1580_s28, 0 }
 0x138   : > { %s1230_s30 = smov (!%p877_p0), %s683_s29   ;;  %s1234_s4 = smov (!%p877_p0), %s681_s21  }
 0x139   : > { %794 = sbr.rel (%p877_p0) target bundleno = 330 (0x14a), region = 141  ;;  %s1238_s5 = smov (!%p877_p0), 0  }
 0x13a   : > { %s1242_s6 = smov (!%p877_p0), 0  }
 0x140 LB: >> { %v693_v21 = vld [vmem:[%s1236_s4] sm:$0xff]  ;;  %s695_s10 = sadd.s32 1, %s1240_s5  ;;  %s687_s6 = sadd.s32 1, %s1244_s6   ;;  %s1244_s6 = sphi %s1242_s6, %s687_s6   ;;  %s1240_s5 = sphi %s1238_s5, %s1239_s5   ;;  %s1236_s4 = sphi %s1234_s4, %s700_s4   ;;  %s1232_s30 = sphi %s1230_s30, %s701_s30  }
 0x141   : >> { %694 = vst [vmem:[%s1232_s30] sm:$0xff] %v693_v21  ;;  %p696_p1 = scmp.ge.s32.totalorder %s695_s10, %s1580_s28  ;;  %p686_p2 = scmp.ge.s32.totalorder %s687_s6, %s1580_s28 }
 0x143   : >> { %s1622_s10 = smov (%p696_p1, %s695_s10), 0  ;;  %689 = sbr.rel (!%p686_p2) target bundleno = 320 (0x140), region = 147 }
 0x144   : >> { %s878_s12 = sshll.u32 %s1622_s10, 3  ;;  %s1239_s5 = smov %s1622_s10  }
 0x145   : >> { %s700_s4 = scalar_lea.vmem %s681_s21, %s878_s12 [#allocation3]   ;;  %s701_s30 = scalar_lea.vmem %s683_s29, %s878_s12  }
 0x14a PF: > { %s13_s16 = sadd.s32 1, %s1212_s16   ;;  %s1611_s12 = smov %s1200_s13 }
 0x14b   : > { %p10_p3 = scmp.ge.s32.totalorder %s13_s16, 4   ;;  %s1612_s13 = smov %s1307_s22 }
 0x14c   : > { %s1613_s14 = smov %s1208_s15  ;;  %s1614_s15 = smov %s1616_s18 }
 0x14d   :  { %12 = sbr.rel (!%p10_p3) target bundleno = 3 (0x3), region = 158 }

// kernel: multiscale_discriminator_forward.28
= control target key start
LH: loop header
LB: loop body
LE: loop exit
PB: predicated region body
PF: predicated region fallthrough
CT: control target
= control target key end

     0   :  { %s368_s6 = smov 0   ;;  %s370_s7 = smov 0   ;;  %s420_s0 = inlined_call_operand.vmem [shape: f32[2,25,64], index: 0, kind: input, shape index: {}]   ;;  %s421_s1 = inlined_call_operand.vmem [shape: f32[2,25,64], index: 1, kind: output, shape index: {}]  }
   0x1   :  { %s372_s8 = smov 0  }
   0x2 LB: > { %s23_s9 = sadd.s32 1, %s352_s7  ;;  %p299_p0 = scmp.ge.s32.totalorder %s356_s8, 1  ;;  %s356_s8 = sphi %s372_s8, %s11_s8   ;;  %s352_s7 = sphi %s370_s7, %s423_s7   ;;  %s348_s6 = sphi %s368_s6, %s422_s6  }
   0x3   : > { %p25_p1 = scmp.ge.s32.totalorder %s23_s9, 2  ;;  %p106_p2 = scmp.lt.s32.totalorder %s356_s8, 3 }
   0x5   : > { %s425_s9 = smov (%p25_p1, %s23_s9), 0  ;;  %p107_p3 = pnand %p299_p0, %p106_p2 }
   0x6   : > { %p132_p4 = scmp.lt.s32.totalorder (!%p107_p3), %s348_s6, 1  ;;  %vm152_vm0 = vcmask (!%p107_p3), 523264   ;;  %vm158_vm1 = vcmask (!%p107_p3), 516096  }
   0x7   : > { %110 = sbr.rel (%p107_p3) target bundleno = 85 (0x55), region = 24 }
   0xe   : > { %s427_s6 = smov (!%p132_p4, %s348_s6), 1 }
   0xf   : > { %s306_s10 = sshll.u32 %s427_s6, 5 }
  0x10   : > { %s139_s13 = scalar_lea.vmem %s420_s0, %s306_s10  ;;  %s147_s16 = scalar_lea.vmem %s421_s1, %s306_s10 }
  0x11   : > { %v148_v0 = vld [vmem:[%s139_s13] sm:$0xff]  ;;  %v149_v1 = vld [vmem:[%s139_s13 + $0x8] sm:$0xff]  ;;  %v150_v2 = vld [vmem:[%s139_s13 + $0x10] sm:$0xff] }
  0x12   : > { %v151_v3 = vld [vmem:[%s139_s13 + $0x18] sm:$0x1]  ;;  %v153_v4 = vsel %vm152_vm0, %v148_v0, 0.0  ;;  %v154_v5 = vsel %vm152_vm0, %v149_v1, 0.0  ;;  %v156_v6 = vsel %vm152_vm0, %v150_v2, 0.0 }
  0x13   : > { %v155_v7 = vadd.f32 %v154_v5, %v153_v4  ;;  %v159_v8 = vsel %vm158_vm1, %v151_v3, 0.0 }
  0x15   : > { %v157_v9 = vadd.f32 %v156_v6, %v155_v7 }
  0x17   : > { %v160_v10 = vadd.f32 %v159_v8, %v157_v9 }
  0x19   : > { %v161_v11 = vrot.slane %v160_v10, 4 }
  0x1b   : > { %v162_v12 = vadd.f32 %v161_v11, %v160_v10 }
  0x1d   : > { %v163_v13 = vrot.slane %v162_v12, 2 }
  0x1f   : > { %v164_v14 = vadd.f32 %v163_v13, %v162_v12 }
  0x21   : > { %v165_v15 = vrot.slane %v164_v14, 1 }
  0x23   : > { %v166_v16 = vadd.f32 %v165_v15, %v164_v14 }
  0x25   : > { %v167_v17 = vmul.f32 0.04, %v166_v16 }
  0x27   : > { %v168_v18 = vsub.f32 %v148_v0, %v167_v17  ;;  %v169_v19 = vsub.f32 %v149_v1, %v167_v17  ;;  %v170_v20 = vsub.f32 %v150_v2, %v167_v17  ;;  %v171_v21 = vsub.f32 %v151_v3, %v167_v17 }
  0x29   : > { %v172_v22 = vmul.f32 %v168_v18, %v168_v18  ;;  %v173_v23 = vmul.f32 %v169_v19, %v169_v19  ;;  %v174_v24 = vmul.f32 %v170_v20, %v170_v20  ;;  %v175_v25 = vmul.f32 %v171_v21, %v171_v21 }
  0x2b   : > { %v176_v26 = vsel %vm152_vm0, %v172_v22, 0.0  ;;  %v177_v27 = vsel %vm152_vm0, %v173_v23, 0.0  ;;  %v179_v28 = vsel %vm152_vm0, %v174_v24, 0.0  ;;  %v181_v30 = vsel %vm158_vm1, %v175_v25, 0.0 }
  0x2c   : > { %v178_v29 = vadd.f32 %v177_v27, %v176_v26 }
  0x2e   : > { %v180_v31 = vadd.f32 %v179_v28, %v178_v29 }
  0x30   : > { %v182_v32 = vadd.f32 %v181_v30, %v180_v31 }
  0x32   : > { %v183_v33 = vrot.slane %v182_v32, 4 }
  0x34   : > { %v184_v34 = vadd.f32 %v183_v33, %v182_v32 }
  0x36   : > { %v185_v35 = vrot.slane %v184_v34, 2 }
  0x38   : > { %v186_v36 = vadd.f32 %v185_v35, %v184_v34 }
  0x3a   : > { %v187_v37 = vrot.slane %v186_v36, 1 }
  0x3c   : > { %v188_v38 = vadd.f32 %v187_v37, %v186_v36 }
  0x3e   : > { %v189_v39 = vmul.f32 0.04, %v188_v38 }
  0x40   : > { %v190_v40 = vadd.f32 1e-05, %v189_v39 }
  0x42   : > { %332 = vrsqrt.f32 %v190_v40 }
  0x4c   : > { %v333_v41 = vpop.eup %332 }
  0x4d   : > { %v192_v42 = vmul.f32 %v333_v41, %v168_v18  ;;  %v193_v43 = vmul.f32 %v333_v41, %v169_v19  ;;  %v194_v44 = vmul.f32 %v333_v41, %v170_v20  ;;  %v195_v45 = vmul.f32 %v333_v41, %v171_v21 }
  0x4f   : > { %vm196_vm2 = vcmp.ge.f32.partialorder %v192_v42, 0.0  ;;  %v200_v46 = vmul.f32 0.2, %v192_v42  ;;  %vm197_vm3 = vcmp.ge.f32.partialorder %v193_v43, 0.0  ;;  %v201_v47 = vmul.f32 0.2, %v193_v43 }
  0x50   : > { %vm198_vm4 = vcmp.ge.f32.partialorder %v194_v44, 0.0  ;;  %v202_v48 = vmul.f32 0.2, %v194_v44  ;;  %vm199_vm5 = vcmp.ge.f32.partialorder %v195_v45, 0.0  ;;  %v203_v49 = vmul.f32 0.2, %v195_v45 }
  0x51   : > { %v204_v50 = vsel %vm196_vm2, %v192_v42, %v200_v46  ;;  %v205_v51 = vsel %vm197_vm3, %v193_v43, %v201_v47 }
  0x52   : > { %208 = vst.msk [vmem:[%s147_s16] sm:$0xff] %vm152_vm0, %v204_v50  ;;  %209 = vst.msk [vmem:[%s147_s16 + $0x8] sm:$0xff] %vm152_vm0, %v205_v51  ;;  %v206_v52 = vsel %vm198_vm4, %v194_v44, %v202_v48  ;;  %v207_v53 = vsel %vm199_vm5, %v195_v45, %v203_v49 }
  0x53   : > { %210 = vst.msk [vmem:[%s147_s16 + $0x10] sm:$0xff] %vm152_vm0, %v206_v52 }
  0x54   : > { %211 = vst.msk [vmem:[%s147_s16 + $0x18] sm:$0x1] %vm158_vm1, %v207_v53 }
  0x55 PF: > { %s11_s8 = sadd.s32 1, %s356_s8   ;;  %s422_s6 = smov %s352_s7 }
  0x56   : > { %p8_p5 = scmp.ge.s32.totalorder %s11_s8, 4   ;;  %s423_s7 = smov %s425_s9 }
  0x58   :  { %10 = sbr.rel (!%p8_p5) target bundleno = 2 (0x2), region = 54 }

// kernel: multiscale_discriminator_forward.30
= control target key start
LH: loop header
LB: loop body
LE: loop exit
PB: predicated region body
PF: predicated region fallthrough
CT: control target
= control target key end

     0   :  { %s368_s6 = smov 0   ;;  %s370_s7 = smov 0   ;;  %s410_s0 = inlined_call_operand.vmem [shape: f32[2,36,128], index: 0, kind: input, shape index: {}]   ;;  %s411_s1 = inlined_call_operand.vmem [shape: f32[2,36,128], index: 1, kind: output, shape index: {}]  }
   0x1   :  { %s372_s8 = smov 0  }
   0x2 LB: > { %s23_s9 = sadd.s32 1, %s352_s7  ;;  %p302_p0 = scmp.ge.s32.totalorder %s356_s8, 1  ;;  %s356_s8 = sphi %s372_s8, %s11_s8   ;;  %s352_s7 = sphi %s370_s7, %s413_s7   ;;  %s348_s6 = sphi %s368_s6, %s412_s6  }
   0x3   : > { %p25_p1 = scmp.ge.s32.totalorder %s23_s9, 2  ;;  %p106_p2 = scmp.lt.s32.totalorder %s356_s8, 3 }
   0x5   : > { %s415_s9 = smov (%p25_p1, %s23_s9), 0  ;;  %p107_p3 = pnand %p302_p0, %p106_p2 }
   0x6   : > { %p132_p4 = scmp.lt.s32.totalorder (!%p107_p3), %s348_s6, 1  ;;  %vm156_vm0 = vcmask (!%p107_p3), 1043456  }
   0x7   : > { %110 = sbr.rel (%p107_p3) target bundleno = 88 (0x58), region = 24 }
   0xe   : > { %s417_s6 = smov (!%p132_p4, %s348_s6), 1 }
   0xf   : > { %s307_s10 = smul.u32 40, %s417_s6 }
  0x11   : > { %s139_s13 = scalar_lea.vmem %s410_s0, %s307_s10  ;;  %s147_s16 = scalar_lea.vmem %s411_s1, %s307_s10 }
  0x12   : > { %v148_v0 = vld [vmem:[%s139_s13] sm:$0xff]  ;;  %v149_v1 = vld [vmem:[%s139_s13 + $0x8] sm:$0xff]  ;;  %v150_v2 = vld [vmem:[%s139_s13 + $0x10] sm:$0xff] }
  0x13   : > { %v152_v3 = vld [vmem:[%s139_s13 + $0x20] sm:$0xf]  ;;  %v153_v4 = vadd.f32 %v149_v1, %v148_v0  ;;  %v151_v5 = vld [vmem:[%s139_s13 + $0x18] sm:$0xff] }
  0x14   : > { %v157_v7 = vsel %vm156_vm0, %v152_v3, 0.0 }
  0x15   : > { %v154_v6 = vadd.f32 %v153_v4, %v150_v2 }
  0x17   : > { %v155_v8 = vadd.f32 %v154_v6, %v151_v5 }
  0x19   : > { %v158_v9 = vadd.f32 %v157_v7, %v155_v8 }
  0x1b   : > { %v159_v10 = vrot.slane %v158_v9, 4 }
  0x1d   : > { %v160_v11 = vadd.f32 %v159_v10, %v158_v9 }
  0x1f   : > { %v161_v12 = vrot.slane %v160_v11, 2 }
  0x21   : > { %v162_v13 = vadd.f32 %v161_v12, %v160_v11 }
  0x23   : > { %v163_v14 = vrot.slane %v162_v13, 1 }
  0x25   : > { %v164_v15 = vadd.f32 %v163_v14, %v162_v13 }
  0x27   : > { %v165_v16 = vmul.f32 0.027777778, %v164_v15 }
  0x29   : > { %v166_v17 = vsub.f32 %v148_v0, %v165_v16  ;;  %v167_v18 = vsub.f32 %v149_v1, %v165_v16  ;;  %v168_v19 = vsub.f32 %v150_v2, %v165_v16  ;;  %v169_v20 = vsub.f32 %v151_v5, %v165_v16 }
  0x2a   : > { %v170_v21 = vsub.f32 %v152_v3, %v165_v16 }
  0x2b   : > { %v171_v22 = vmul.f32 %v166_v17, %v166_v17  ;;  %v172_v23 = vmul.f32 %v167_v18, %v167_v18  ;;  %v173_v24 = vmul.f32 %v168_v19, %v168_v19  ;;  %v174_v26 = vmul.f32 %v169_v20, %v169_v20 }
  0x2c   : > { %v175_v25 = vmul.f32 %v170_v21, %v170_v21 }
  0x2d   : > { %v176_v27 = vadd.f32 %v172_v23, %v171_v22 }
  0x2e   : > { %v179_v29 = vsel %vm156_vm0, %v175_v25, 0.0 }
  0x2f   : > { %v177_v28 = vadd.f32 %v176_v27, %v173_v24 }
  0x31   : > { %v178_v30 = vadd.f32 %v177_v28, %v174_v26 }
  0x33   : > { %v180_v31 = vadd.f32 %v179_v29, %v178_v30 }
  0x35   : > { %v181_v32 = vrot.slane %v180_v31, 4 }
  0x37   : > { %v182_v33 = vadd.f32 %v181_v32, %v180_v31 }
  0x39   : > { %v183_v34 = vrot.slane %v182_v33, 2 }
  0x3b   : > { %v184_v35 = vadd.f32 %v183_v34, %v182_v33 }
  0x3d   : > { %v185_v36 = vrot.slane %v184_v35, 1 }
  0x3f   : > { %v186_v37 = vadd.f32 %v185_v36, %v184_v35 }
  0x41   : > { %v187_v38 = vmul.f32 0.027777778, %v186_v37 }
  0x43   : > { %v188_v39 = vadd.f32 1e-05, %v187_v38 }
  0x45   : > { %332 = vrsqrt.f32 %v188_v39 }
  0x4f   : > { %v333_v40 = vpop.eup %332 }
  0x50   : > { %v190_v41 = vmul.f32 %v333_v40, %v166_v17  ;;  %v191_v42 = vmul.f32 %v333_v40, %v167_v18  ;;  %v192_v43 = vmul.f32 %v333_v40, %v168_v19  ;;  %v193_v44 = vmul.f32 %v333_v40, %v169_v20 }
  0x51   : > { %v194_v45 = vmul.f32 %v333_v40, %v170_v21 }
  0x52   : > { %vm195_vm1 = vcmp.ge.f32.partialorder %v190_v41, 0.0  ;;  %v200_v46 = vmul.f32 0.2, %v190_v41  ;;  %vm196_vm2 = vcmp.ge.f32.partialorder %v191_v42, 0.0  ;;  %v201_v47 = vmul.f32 0.2, %v191_v42 }
  0x53   : > { %vm197_vm3 = vcmp.ge.f32.partialorder %v192_v43, 0.0  ;;  %v202_v48 = vmul.f32 0.2, %v192_v43  ;;  %vm198_vm4 = vcmp.ge.f32.partialorder %v193_v44, 0.0  ;;  %v203_v49 = vmul.f32 0.2, %v193_v44 }
  0x54   : > { %v205_v50 = vsel %vm195_vm1, %v190_v41, %v200_v46  ;;  %v206_v51 = vsel %vm196_vm2, %v191_v42, %v201_v47  ;;  %vm199_vm5 = vcmp.ge.f32.partialorder %v194_v45, 0.0  ;;  %v204_v52 = vmul.f32 0.2, %v194_v45 }
  0x55   : > { %210 = vst [vmem:[%s147_s16] sm:$0xff] %v205_v50  ;;  %211 = vst [vmem:[%s147_s16 + $0x8] sm:$0xff] %v206_v51  ;;  %v207_v53 = vsel %vm197_vm3, %v192_v43, %v202_v48  ;;  %v208_v54 = vsel %vm198_vm4, %v193_v44, %v203_v49 }
  0x56   : > { %212 = vst [vmem:[%s147_s16 + $0x10] sm:$0xff] %v207_v53  ;;  %213 = vst [vmem:[%s147_s16 + $0x18] sm:$0xff] %v208_v54  ;;  %v209_v55 = vsel %vm199_vm5, %v194_v45, %v204_v52 }
  0x57   : > { %214 = vst [vmem:[%s147_s16 + $0x20] sm:$0xf] %v209_v55 }
  0x58 PF: > { %s11_s8 = sadd.s32 1, %s356_s8   ;;  %s412_s6 = smov %s352_s7 }
  0x59   : > { %p8_p5 = scmp.ge.s32.totalorder %s11_s8, 4   ;;  %s413_s7 = smov %s415_s9 }
  0x5b   :  { %10 = sbr.rel (!%p8_p5) target bundleno = 2 (0x2), region = 54 }

// kernel: multiscale_discriminator_forward.29
= control target key start
LH: loop header
LB: loop body
LE: loop exit
PB: predicated region body
PF: predicated region fallthrough
CT: control target
= control target key end

     0   :  { %s2174_s0 = inlined_call_operand.vmem [shape: f32[72,1024], index: 0, kind: input, shape index: {}]   ;;  %s2175_s1 = inlined_call_operand.vmem [shape: f32[1024,128], index: 1, kind: input, shape index: {}]   ;;  %s2176_s2 = inlined_call_operand.vmem [shape: f32[1,128], index: 2, kind: input, shape index: {}]   ;;  %s2177_s3 = inlined_call_operand.vmem [shape: f32[72,128], index: 3, kind: output, shape index: {}]  }
   0x1   :  { %2179 = sst [smem:[#allocation6_spill]] %s2174_s0 }
   0x2   :  { %s1741_s12 = smov 0   ;;  %s1743_s13 = smov 0  }
   0x3   :  { %s1745_s14 = smov 0   ;;  %s1747_s15 = smov 0  }
   0x4   :  { %s1749_s16 = smov 0   ;;  %s1751_s17 = smov 0  }
   0x5   :  { %s1753_s18 = smov 0   ;;  %s1755_s19 = smov 0  }
   0x6   :  { %s1757_s20 = smov 0  }
   0x7 LB: > { %s25_s21 = sadd.s32 1, %s1646_s18  ;;  %s32_s22 = sadd.s32 1, %s1650_s19  ;;  %s1654_s20 = sphi %s1757_s20, %s13_s20   ;;  %s1650_s19 = sphi %s1755_s19, %s2202_s19   ;;  %s1646_s18 = sphi %s1753_s18, %s2201_s18   ;;  %s1642_s17 = sphi %s1751_s17, %s2200_s17   ;;  %s1638_s16 = sphi %s1749_s16, %s2199_s16   ;;  %s1634_s15 = sphi %s1747_s15, %s2198_s15   ;;  %s1630_s14 = sphi %s1745_s14, %s2197_s14   ;;  %s1626_s13 = sphi %s1743_s13, %s2196_s13   ;;  %s1622_s12 = sphi %s1741_s12, %s2195_s12  }
   0x8   : > { %p26_p0 = scmp.ge.s32.totalorder %s25_s21, 2  ;;  %p48_p1 = scmp.ne.s32.totalorder %s1634_s15, %s1630_s14 }
   0x9   : > { %s1088_s23 = sadd.s32 4294967295, %s1654_s20   ;;  %p49_p2 = scmp.eq.s32.totalorder %s1654_s20, 0 }
   0xa   : > { %s2204_s21 = smov (%p26_p0, %s25_s21), 0  ;;  %s2206_s22 = smov (!%p26_p0, %s32_s22), %s1650_s19 }
   0xb   : > { %p34_p3 = scmp.ge.s32.totalorder %s2206_s22, 2  ;;  %s37_s24 = ssub.s32 %s1646_s18, %s2204_s21 }
   0xc   : > { %p1797_p4 = por %p49_p2, %p48_p1  ;;  %p133_p5 = scmp.ne.s32.totalorder %s1626_s13, %s1622_s12 }
   0xd   : > { %s2208_s22 = smov (%p34_p3, %s2206_s22), 0  ;;  %s41_s26 = sadd.s32 1, %s1634_s15 }
   0xe   : > { %2181 = sst [smem:[#allocation5_spill]] %s2208_s22  ;;  %p134_p6 = scmp.eq.s32.totalorder %s1088_s23, 3 }
   0xf   : > { %s36_s27 = ssub.s32 %s1650_s19, %s2208_s22  ;;  %s123_s28 = sadd.s32 1, %s1626_s13 }
  0x10   : > { %s38_s29 = sor.u32 %s37_s24, %s36_s27  ;;  %p121_p7 = scmp.eq.s32.totalorder %s36_s27, 0 }
  0x11   : > { %p39_p8 = scmp.eq.s32.totalorder %s38_s29, 0  ;;  %p1809_p9 = por %p134_p6, %p133_p5 }
  0x12   : > { %s1814_s4 = scalar_select %p121_p7, %s1626_s13, %s123_s28  }
  0x13   : > { %s1817_s5 = scalar_select %p39_p8, %s1634_s15, %s41_s26  }
  0x14   : > { %p1092_p10 = scmp.ge.s32.totalorder %s1654_s20, 4 }
  0x16   : > { %162 = sbr.rel (%p1092_p10) target bundleno = 92 (0x5c), region = 20 }
  0x1d   : > { %165 = sbr.rel (!%p1797_p4) target bundleno = 92 (0x5c), region = 24  ;;  %s167_s6 = sand.u32 (%p1797_p4), 1, %s1634_s15  }
  0x1e   : > { %s1094_s7 = sshll.u32 (%p1797_p4), %s1650_s19, 3  ;;  %s1093_s8 = sshll.u32 (%p1797_p4), %s167_s6, 8 }
  0x1f   : > { %s1095_s9 = sshll.u32 (%p1797_p4), %s1646_s18, 2  ;;  %s172_s10 = ssub.s32 (%p1797_p4), 9, %s1094_s7 }
  0x20   : > { %p173_p11 = scmp.lt.s32.totalorder (%p1797_p4), %s172_s10, 8  ;;  %s1137_s11 = sshll.u32 (%p1797_p4), %s1650_s19, 6 }
  0x21   : > { %s179_s23 = sadd.s32 (%p1797_p4), %s1137_s11, %s1095_s9  ;;  %s2183_s0 = sld [smem:[#allocation6_spill]] (%p1797_p4) }
  0x22   : > { %s1100_s24 = sshll.u32 (%p1797_p4), %s179_s23, 3  ;;  %s1834_s29 = scalar_lea.vmem (%p1797_p4), [#allocation3], %s1093_s8  }
  0x24   : > { %s2210_s10 = smov (!%p173_p11, %s172_s10), 8 }
  0x25   : > { %s1136_s26 = sshll.u32 %s2210_s10, 9 }
  0x26   : > { %p1101_p12 = scmp.eq.s32.totalorder %s1136_s26, 0 }
  0x27   : > { %s1832_s28 = scalar_lea.vmem %s2183_s0, %s1100_s24   ;;  %s1837_s6 = sshrl.u32 (!%p1101_p12), %s2210_s10, 3 }
  0x28   : > { %184 = sbr.rel (%p1101_p12) target bundleno = 92 (0x5c), region = 28  ;;  %p1102_p13 = scmp.le.s32.totalorder (!%p1101_p12), %s1837_s6, 0 }
  0x2f   : > { %987 = sbr.rel (%p1102_p13) target bundleno = 71 (0x47), region = 167  ;;  %s2184_s7 = smov (!%p1102_p13), %s1834_s29 }
  0x30   : > { %s2185_s9 = smov (!%p1102_p13), %s1832_s28  ;;  %s1846_s11 = smov (!%p1102_p13), 0  }
  0x31   : > { %s1848_s23 = smov (!%p1102_p13), 0  }
  0x36 LB: >> { %v197_v0 = vld [vmem:[%s1662_s9] sm:$0xff]  ;;  %s261_s8 = sadd.s32 1, %s1666_s11  ;;  %v213_v8 = vld [vmem:[%s1662_s9 + $0x8] sm:$0xff]  ;;  %v229_v16 = vld [vmem:[%s1662_s9 + $0x10] sm:$0xff]  ;;  %s191_s23 = sadd.s32 1, %s1670_s23   ;;  %s1670_s23 = sphi %s1848_s23, %s191_s23   ;;  %s1666_s11 = sphi %s1846_s11, %s2188_s11   ;;  %s1662_s9 = sphi %s2185_s9, %s2187_s9   ;;  %s1658_s7 = sphi %s2184_s7, %s2186_s7  }
  0x37   : >> { %v199_v1 = vld [vmem:[%s1662_s9 + $0x40] sm:$0xff]  ;;  %198 = vst [vmem:[%s1658_s7] sm:$0xff] %v197_v0  ;;  %p262_p0 = scmp.ge.s32.totalorder %s261_s8, %s1837_s6  ;;  %214 = vst [vmem:[%s1658_s7 + $0x8] sm:$0xff] %v213_v8  ;;  %v215_v9 = vld [vmem:[%s1662_s9 + $0x48] sm:$0xff]  ;;  %p190_p1 = scmp.ge.s32.totalorder %s191_s23, %s1837_s6 }
  0x38   : >> { %v201_v2 = vld [vmem:[%s1662_s9 + $0x80] sm:$0xff]  ;;  %200 = vst [vmem:[%s1658_s7 + $0x20] sm:$0xff] %v199_v1  ;;  %v217_v10 = vld [vmem:[%s1662_s9 + $0x88] sm:$0xff]  ;;  %216 = vst [vmem:[%s1658_s7 + $0x28] sm:$0xff] %v215_v9 }
  0x39   : >> { %202 = vst [vmem:[%s1658_s7 + $0x40] sm:$0xff] %v201_v2  ;;  %v203_v3 = vld [vmem:[%s1662_s9 + $0xc0] sm:$0xff]  ;;  %v219_v11 = vld [vmem:[%s1662_s9 + $0xc8] sm:$0xff]  ;;  %s2212_s8 = smov (%p262_p0, %s261_s8), 0  ;;  %218 = vst [vmem:[%s1658_s7 + $0x48] sm:$0xff] %v217_v10 }
  0x3a   : >> { %v205_v4 = vld [vmem:[%s1662_s9 + $0x100] sm:$0xff]  ;;  %204 = vst [vmem:[%s1658_s7 + $0x60] sm:$0xff] %v203_v3  ;;  %220 = vst [vmem:[%s1658_s7 + $0x68] sm:$0xff] %v219_v11  ;;  %v221_v12 = vld [vmem:[%s1662_s9 + $0x108] sm:$0xff]  ;;  %s1103_s24 = sshll.u32 %s2212_s8, 9  ;;  %s1104_s26 = sshll.u32 %s2212_s8, 8 }
  0x3b   : >> { %v207_v5 = vld [vmem:[%s1662_s9 + $0x140] sm:$0xff]  ;;  %206 = vst [vmem:[%s1658_s7 + $0x80] sm:$0xff] %v205_v4  ;;  %v223_v13 = vld [vmem:[%s1662_s9 + $0x148] sm:$0xff]  ;;  %222 = vst [vmem:[%s1658_s7 + $0x88] sm:$0xff] %v221_v12  ;;  %s1905_s27 = scalar_lea.vmem %s1832_s28, %s1103_s24   ;;  %s267_s25 = scalar_lea.vmem %s1834_s29, %s1104_s26 [#allocation3]  }
  0x3c   : >> { %208 = vst [vmem:[%s1658_s7 + $0xa0] sm:$0xff] %v207_v5  ;;  %v209_v6 = vld [vmem:[%s1662_s9 + $0x180] sm:$0xff]  ;;  %v225_v14 = vld [vmem:[%s1662_s9 + $0x188] sm:$0xff]  ;;  %224 = vst [vmem:[%s1658_s7 + $0xa8] sm:$0xff] %v223_v13  ;;  %s2188_s11 = smov %s2212_s8 }
  0x3d   : >> { %v211_v7 = vld [vmem:[%s1662_s9 + $0x1c0] sm:$0xff]  ;;  %210 = vst [vmem:[%s1658_s7 + $0xc0] sm:$0xff] %v209_v6  ;;  %226 = vst [vmem:[%s1658_s7 + $0xc8] sm:$0xff] %v225_v14  ;;  %v227_v15 = vld [vmem:[%s1662_s9 + $0x1c8] sm:$0xff] }
  0x3e   : >> { %212 = vst [vmem:[%s1658_s7 + $0xe0] sm:$0xff] %v211_v7  ;;  %v231_v17 = vld [vmem:[%s1662_s9 + $0x50] sm:$0xff]  ;;  %228 = vst [vmem:[%s1658_s7 + $0xe8] sm:$0xff] %v227_v15  ;;  %v245_v24 = vld [vmem:[%s1662_s9 + $0x18] sm:$0xff] }
  0x3f   : >> { %230 = vst [vmem:[%s1658_s7 + $0x10] sm:$0xff] %v229_v16  ;;  %232 = vst [vmem:[%s1658_s7 + $0x30] sm:$0xff] %v231_v17  ;;  %v233_v18 = vld [vmem:[%s1662_s9 + $0x90] sm:$0xff]  ;;  %v247_v25 = vld [vmem:[%s1662_s9 + $0x58] sm:$0xff] }
  0x40   : >> { %v235_v19 = vld [vmem:[%s1662_s9 + $0xd0] sm:$0xff]  ;;  %234 = vst [vmem:[%s1658_s7 + $0x50] sm:$0xff] %v233_v18  ;;  %v249_v26 = vld [vmem:[%s1662_s9 + $0x98] sm:$0xff]  ;;  %246 = vst [vmem:[%s1658_s7 + $0x18] sm:$0xff] %v245_v24  ;;  %193 = sbr.rel (!%p190_p1) target bundleno = 54 (0x36), region = 173 }
  0x41   : >> { %v237_v20 = vld [vmem:[%s1662_s9 + $0x110] sm:$0xff]  ;;  %236 = vst [vmem:[%s1658_s7 + $0x70] sm:$0xff] %v235_v19  ;;  %248 = vst [vmem:[%s1658_s7 + $0x38] sm:$0xff] %v247_v25  ;;  %v251_v27 = vld [vmem:[%s1662_s9 + $0xd8] sm:$0xff] }
  0x42   : >> { %238 = vst [vmem:[%s1658_s7 + $0x90] sm:$0xff] %v237_v20  ;;  %v239_v21 = vld [vmem:[%s1662_s9 + $0x150] sm:$0xff]  ;;  %250 = vst [vmem:[%s1658_s7 + $0x58] sm:$0xff] %v249_v26  ;;  %v253_v28 = vld [vmem:[%s1662_s9 + $0x118] sm:$0xff] }
  0x43   : >> { %v241_v22 = vld [vmem:[%s1662_s9 + $0x190] sm:$0xff]  ;;  %240 = vst [vmem:[%s1658_s7 + $0xb0] sm:$0xff] %v239_v21  ;;  %v255_v29 = vld [vmem:[%s1662_s9 + $0x158] sm:$0xff]  ;;  %252 = vst [vmem:[%s1658_s7 + $0x78] sm:$0xff] %v251_v27 }
  0x44   : >> { %v243_v23 = vld [vmem:[%s1662_s9 + $0x1d0] sm:$0xff]  ;;  %242 = vst [vmem:[%s1658_s7 + $0xd0] sm:$0xff] %v241_v22  ;;  %254 = vst [vmem:[%s1658_s7 + $0x98] sm:$0xff] %v253_v28  ;;  %v257_v30 = vld [vmem:[%s1662_s9 + $0x198] sm:$0xff] }
  0x45   : >> { %244 = vst [vmem:[%s1658_s7 + $0xf0] sm:$0xff] %v243_v23  ;;  %256 = vst [vmem:[%s1658_s7 + $0xb8] sm:$0xff] %v255_v29  ;;  %v259_v31 = vld [vmem:[%s1662_s9 + $0x1d8] sm:$0xff]  ;;  %s2187_s9 = smov %s1905_s27 }
  0x46   : >> { %258 = vst [vmem:[%s1658_s7 + $0xd8] sm:$0xff] %v257_v30  ;;  %260 = vst [vmem:[%s1658_s7 + $0xf8] sm:$0xff] %v259_v31  ;;  %s2186_s7 = smov %s267_s25 }
  0x47 PF: > { %s1946_s24 = sand.u32 7, %s2210_s10   ;;  %s1138_s26 = sshll.u32 %s1837_s6, 9 }
  0x48   : > { %s1950_s0 = scalar_lea.vmem %s1832_s28, %s1138_s26   ;;  %s1139_s22 = sshll.u32 %s1837_s6, 8 }
  0x49   : > { %s1954_s25 = scalar_lea.vmem %s1834_s29, %s1139_s22 [#allocation3]   ;;  %p1108_p2 = scmp.le.s32.totalorder %s1946_s24, 0 }
  0x4a   : > { %s2189_s7 = smov (!%p1108_p2), %s1954_s25  ;;  %s2190_s9 = smov (!%p1108_p2), %s1950_s0 }
  0x4b   : > { %1001 = sbr.rel (%p1108_p2) target bundleno = 92 (0x5c), region = 178  ;;  %s1680_s11 = smov (!%p1108_p2), 0  }
  0x4c   : > { %s1684_s23 = smov (!%p1108_p2), 0  }
  0x52 LB: >> { %v284_v32 = vld [vmem:[%s1678_s9] sm:$0xff]  ;;  %v286_v33 = vld [vmem:[%s1678_s9 + $0x8] sm:$0xff]  ;;  %v288_v34 = vld [vmem:[%s1678_s9 + $0x10] sm:$0xff]  ;;  %s292_s22 = sadd.s32 1, %s1682_s11  ;;  %s278_s23 = sadd.s32 1, %s1686_s23   ;;  %s1686_s23 = sphi %s1684_s23, %s278_s23   ;;  %s1682_s11 = sphi %s1680_s11, %s1681_s11   ;;  %s1678_s9 = sphi %s2190_s9, %s297_s9   ;;  %s1674_s7 = sphi %s2189_s7, %s298_s7  }
  0x53   : >> { %285 = vst [vmem:[%s1674_s7] sm:$0xff] %v284_v32  ;;  %287 = vst [vmem:[%s1674_s7 + $0x8] sm:$0xff] %v286_v33  ;;  %v290_v35 = vld [vmem:[%s1678_s9 + $0x18] sm:$0xff]  ;;  %p293_p3 = scmp.ge.s32.totalorder %s292_s22, %s1946_s24  ;;  %p277_p4 = scmp.ge.s32.totalorder %s278_s23, %s1946_s24 }
  0x54   : >> { %289 = vst [vmem:[%s1674_s7 + $0x10] sm:$0xff] %v288_v34  ;;  %291 = vst [vmem:[%s1674_s7 + $0x18] sm:$0xff] %v290_v35 }
  0x55   : >> { %s2214_s22 = smov (%p293_p3, %s292_s22), 0  ;;  %280 = sbr.rel (!%p277_p4) target bundleno = 82 (0x52), region = 184 }
  0x56   : >> { %s1109_s10 = sshll.u32 %s2214_s22, 6  ;;  %s1110_s28 = sshll.u32 %s2214_s22, 5 }
  0x57   : >> { %s297_s9 = scalar_lea.vmem %s1950_s0, %s1109_s10   ;;  %s298_s7 = scalar_lea.vmem %s1954_s25, %s1110_s28 [#allocation3]  }
  0x58   : >> { %s1681_s11 = smov %s2214_s22  }
  0x5c PF: > { %p1111_p5 = scmp.ge.s32.totalorder %s1654_s20, 1  ;;  %p315_p6 = scmp.lt.s32.totalorder %s1654_s20, 5 }
  0x5e   : > { %p316_p7 = pnand %p1111_p5, %p315_p6 }
  0x5f   : > { %s322_s29 = sand.u32 (!%p316_p7), 1, %s1630_s14   ;;  %s352_s6 = sand.u32 (!%p316_p7), 1, %s1622_s12  }
  0x60   : > { %319 = sbr.rel (%p316_p7) target bundleno = 461 (0x1cd), region = 58  ;;  %s1112_s8 = sshll.u32 (!%p316_p7), %s322_s29, 8 }
  0x61   : > { %s1113_s27 = sshll.u32 (!%p316_p7), %s352_s6, 6  ;;  %s1114_s26 = sshll.u32 (!%p316_p7), %s1638_s16, 6 }
  0x62   : > { %p363_p8 = scmp.lt.s32.totalorder (!%p316_p7), %s1114_s26, 127  ;;  %s1983_s9 = scalar_lea.vmem (!%p316_p7), [#allocation3], %s1112_s8 }
  0x63   : > { %s1985_s11 = scalar_lea.vmem (!%p316_p7), [#allocation4], %s1113_s27   ;;  %p1116_p10 = scmp.ne.s32.totalorder (!%p316_p7), %s1638_s16, 0 }
  0x67   : > { %s2216_s26 = smov (!%p363_p8, %s1114_s26), 127  ;;  %382 = sbr.rel (%p1116_p10) target bundleno = 110 (0x6e), region = 66 }
  0x68   : > { %s1115_s0 = sshll.u32 %s2216_s26, 3  ;;  %v1720_v36 = vmov (!%p1116_p10), 0.0  }
  0x69   : > { %s1981_s7 = scalar_lea.vmem %s2175_s1, %s1115_s0  ;;  %383 = vst [vmem:[#allocation2] sm:$0xff] (!%p1116_p10), %v1720_v36  ;;  %384 = vst [vmem:[#allocation2 + $0x8] sm:$0xff] (!%p1116_p10), %v1720_v36 }
  0x6a   : > { %385 = vst [vmem:[#allocation2 + $0x10] sm:$0xff] (!%p1116_p10), %v1720_v36  ;;  %386 = vst [vmem:[#allocation2 + $0x18] sm:$0xff] (!%p1116_p10), %v1720_v36 }
  0x6b   : > { %387 = vst [vmem:[#allocation2 + $0x20] sm:$0xff] (!%p1116_p10), %v1720_v36  ;;  %388 = vst [vmem:[#allocation2 + $0x28] sm:$0xff] (!%p1116_p10), %v1720_v36 }
  0x6c   : > { %389 = vst [vmem:[#allocation2 + $0x30] sm:$0xff] (!%p1116_p10), %v1720_v36  ;;  %390 = vst [vmem:[#allocation2 + $0x38] sm:$0xff] (!%p1116_p10), %v1720_v36 }
  0x6e PF: > { %v447_v37 = vld [vmem:[%s1981_s7 + $0x80] sm:$0xff]  ;;  %v448_v38 = vld [vmem:[%s1981_s7 + $0x88] sm:$0xff]  ;;  %v449_v48 = vld [vmem:[%s1981_s7 + $0x90] sm:$0xff]  ;;  %p1117_p11 = scmp.ne.s32.totalorder %s1638_s16, 1 }
  0x6f   : > { %v479_v39 = vld [vmem:[%s1981_s7 + $0x180] sm:$0xff]  ;;  %v1255_v40 = vpack.c.bf16 %v448_v38, %v447_v37  ;;  %v480_v41 = vld [vmem:[%s1981_s7 + $0x188] sm:$0xff]  ;;  %v450_v50 = vld [vmem:[%s1981_s7 + $0x98] sm:$0xff] }
  0x70   : > { %v431_v42 = vld [vmem:[%s1981_s7] sm:$0xff]  ;;  %v432_v43 = vld [vmem:[%s1981_s7 + $0x8] sm:$0xff]  ;;  %v1287_v44 = vpack.c.bf16 %v480_v41, %v479_v39  ;;  %v481_v51 = vld [vmem:[%s1981_s7 + $0x190] sm:$0xff]  ;;  %v1259_v53 = vpack.c.bf16 %v450_v50, %v449_v48 }
  0x71   : > { %v1257_v45 = vpack.c.bf16 %v432_v43, %v431_v42  ;;  %v463_v46 = vld [vmem:[%s1981_s7 + $0x100] sm:$0xff]  ;;  %v464_v47 = vld [vmem:[%s1981_s7 + $0x108] sm:$0xff]  ;;  %1256 = vmatprep.subr.bf16.mxu0 %v1255_v40  ;;  %v482_v52 = vld [vmem:[%s1981_s7 + $0x198] sm:$0xff] }
  0x72   : > { %v1289_v49 = vpack.c.bf16 %v464_v47, %v463_v46  ;;  %1288 = vmatprep.subr.bf16.mxu1 %v1287_v44  ;;  %v1291_v54 = vpack.c.bf16 %v482_v52, %v481_v51  ;;  %v433_v55 = vld [vmem:[%s1981_s7 + $0x10] sm:$0xff]  ;;  %v434_v56 = vld [vmem:[%s1981_s7 + $0x18] sm:$0xff]  ;;  %v451_v60 = vld [vmem:[%s1981_s7 + $0xa0] sm:$0xff] }
  0x73   : > { %1258 = vmatpush3.bf16.msra.mxu0 %v1257_v45  ;;  %v465_v57 = vld [vmem:[%s1981_s7 + $0x110] sm:$0xff]  ;;  %v1261_v58 = vpack.c.bf16 %v434_v56, %v433_v55  ;;  %v466_v59 = vld [vmem:[%s1981_s7 + $0x118] sm:$0xff]  ;;  %v452_v61 = vld [vmem:[%s1981_s7 + $0xa8] sm:$0xff] }
  0x74   : > { %1290 = vmatpush3.bf16.msra.mxu1 %v1289_v49  ;;  %1260 = vmatprep.subr.bf16.mxu0 %v1259_v53  ;;  %v1293_v62 = vpack.c.bf16 %v466_v59, %v465_v57  ;;  %v1263_v63 = vpack.c.bf16 %v452_v61, %v451_v60  ;;  %v483_v0 = vld [vmem:[%s1981_s7 + $0x1a0] sm:$0xff]  ;;  %v484_v1 = vld [vmem:[%s1981_s7 + $0x1a8] sm:$0xff]  ;;  %v453_v8 = vld [vmem:[%s1981_s7 + $0xb0] sm:$0xff] }
  0x75   : > { %1292 = vmatprep.subr.bf16.mxu1 %v1291_v54  ;;  %v435_v2 = vld [vmem:[%s1981_s7 + $0x20] sm:$0xff]  ;;  %v1295_v3 = vpack.c.bf16 %v484_v1, %v483_v0  ;;  %v436_v4 = vld [vmem:[%s1981_s7 + $0x28] sm:$0xff]  ;;  %v454_v9 = vld [vmem:[%s1981_s7 + $0xb8] sm:$0xff] }
  0x76   : > { %v467_v5 = vld [vmem:[%s1981_s7 + $0x120] sm:$0xff]  ;;  %v468_v6 = vld [vmem:[%s1981_s7 + $0x128] sm:$0xff]  ;;  %v1265_v7 = vpack.c.bf16 %v436_v4, %v435_v2  ;;  %v485_v10 = vld [vmem:[%s1981_s7 + $0x1b0] sm:$0xff]  ;;  %v1267_v12 = vpack.c.bf16 %v454_v9, %v453_v8 }
  0x77   : > { %1262 = vmatpush3.bf16.msra.mxu0 %v1261_v58  ;;  %v1297_v11 = vpack.c.bf16 %v468_v6, %v467_v5  ;;  %v486_v13 = vld [vmem:[%s1981_s7 + $0x1b8] sm:$0xff]  ;;  %v437_v14 = vld [vmem:[%s1981_s7 + $0x30] sm:$0xff]  ;;  %v455_v19 = vld [vmem:[%s1981_s7 + $0xc0] sm:$0xff] }
  0x78   : > { %1294 = vmatpush3.bf16.msra.mxu1 %v1293_v62  ;;  %1264 = vmatprep.subr.bf16.mxu0 %v1263_v63  ;;  %v438_v15 = vld [vmem:[%s1981_s7 + $0x38] sm:$0xff]  ;;  %v1299_v16 = vpack.c.bf16 %v486_v13, %v485_v10  ;;  %v469_v17 = vld [vmem:[%s1981_s7 + $0x130] sm:$0xff]  ;;  %v456_v20 = vld [vmem:[%s1981_s7 + $0xc8] sm:$0xff] }
  0x79   : > { %1296 = vmatprep.subr.bf16.mxu1 %v1295_v3  ;;  %v470_v18 = vld [vmem:[%s1981_s7 + $0x138] sm:$0xff]  ;;  %v487_v21 = vld [vmem:[%s1981_s7 + $0x1c0] sm:$0xff]  ;;  %v488_v22 = vld [vmem:[%s1981_s7 + $0x1c8] sm:$0xff]  ;;  %v1269_v23 = vpack.c.bf16 %v438_v15, %v437_v14  ;;  %v1271_v25 = vpack.c.bf16 %v456_v20, %v455_v19 }
  0x7a   : > { %v1301_v24 = vpack.c.bf16 %v470_v18, %v469_v17  ;;  %v439_v26 = vld [vmem:[%s1981_s7 + $0x40] sm:$0xff]  ;;  %v440_v27 = vld [vmem:[%s1981_s7 + $0x48] sm:$0xff]  ;;  %v1303_v29 = vpack.c.bf16 %v488_v22, %v487_v21  ;;  %v457_v31 = vld [vmem:[%s1981_s7 + $0xd0] sm:$0xff] }
  0x7b   : > { %1266 = vmatpush3.bf16.msra.mxu0 %v1265_v7  ;;  %v471_v28 = vld [vmem:[%s1981_s7 + $0x140] sm:$0xff]  ;;  %v472_v30 = vld [vmem:[%s1981_s7 + $0x148] sm:$0xff]  ;;  %v458_v32 = vld [vmem:[%s1981_s7 + $0xd8] sm:$0xff]  ;;  %v1273_v35 = vpack.c.bf16 %v440_v27, %v439_v26 }
  0x7c   : > { %1298 = vmatpush3.bf16.msra.mxu1 %v1297_v11  ;;  %1268 = vmatprep.subr.bf16.mxu0 %v1267_v12  ;;  %v489_v33 = vld [vmem:[%s1981_s7 + $0x1d0] sm:$0xff]  ;;  %v490_v34 = vld [vmem:[%s1981_s7 + $0x1d8] sm:$0xff]  ;;  %v1305_v36 = vpack.c.bf16 %v472_v30, %v471_v28  ;;  %v1275_v37 = vpack.c.bf16 %v458_v32, %v457_v31  ;;  %v459_v43 = vld [vmem:[%s1981_s7 + $0xe0] sm:$0xff] }
  0x7d   : > { %1300 = vmatprep.subr.bf16.mxu1 %v1299_v16  ;;  %v441_v38 = vld [vmem:[%s1981_s7 + $0x50] sm:$0xff]  ;;  %v442_v39 = vld [vmem:[%s1981_s7 + $0x58] sm:$0xff]  ;;  %v1307_v41 = vpack.c.bf16 %v490_v34, %v489_v33  ;;  %v460_v44 = vld [vmem:[%s1981_s7 + $0xe8] sm:$0xff] }
  0x7e   : > { %v473_v40 = vld [vmem:[%s1981_s7 + $0x150] sm:$0xff]  ;;  %v474_v42 = vld [vmem:[%s1981_s7 + $0x158] sm:$0xff]  ;;  %v491_v45 = vld [vmem:[%s1981_s7 + $0x1e0] sm:$0xff]  ;;  %v1277_v47 = vpack.c.bf16 %v442_v39, %v441_v38  ;;  %v1279_v51 = vpack.c.bf16 %v460_v44, %v459_v43 }
  0x7f   : > { %1270 = vmatpush3.bf16.msra.mxu0 %v1269_v23  ;;  %v492_v46 = vld [vmem:[%s1981_s7 + $0x1e8] sm:$0xff]  ;;  %v443_v48 = vld [vmem:[%s1981_s7 + $0x60] sm:$0xff]  ;;  %v1309_v50 = vpack.c.bf16 %v474_v42, %v473_v40  ;;  %v402_v54 = vld [vmem:[%s1983_s9 + $0x18] sm:$0xff] }
  0x80   : > { %1302 = vmatpush3.bf16.msra.mxu1 %v1301_v24  ;;  %1272 = vmatprep.subr.bf16.mxu0 %v1271_v25  ;;  %v444_v49 = vld [vmem:[%s1981_s7 + $0x68] sm:$0xff]  ;;  %v475_v52 = vld [vmem:[%s1981_s7 + $0x160] sm:$0xff]  ;;  %v1311_v55 = vpack.c.bf16 %v492_v46, %v491_v45  ;;  %v461_v57 = vld [vmem:[%s1981_s7 + $0xf0] sm:$0xff] }
  0x81   : > { %1304 = vmatprep.subr.bf16.mxu1 %v1303_v29  ;;  %v400_v53 = vld [vmem:[%s1983_s9 + $0x8] sm:$0xff]  ;;  %v462_v58 = vld [vmem:[%s1981_s7 + $0xf8] sm:$0xff]  ;;  %v493_v59 = vld [vmem:[%s1981_s7 + $0x1f0] sm:$0xff]  ;;  %664 = vmatprep.mubr.f32.mxu1 %v402_v54  ;;  %v1281_v61 = vpack.c.bf16 %v444_v49, %v443_v48 }
  0x82   : > { %v476_v56 = vld [vmem:[%s1981_s7 + $0x168] sm:$0xff]  ;;  %559 = vmatprep.mubr.f32.mxu0 %v400_v53  ;;  %v494_v60 = vld [vmem:[%s1981_s7 + $0x1f8] sm:$0xff]  ;;  %v1283_v63 = vpack.c.bf16 %v462_v58, %v461_v57  ;;  %v445_v0 = vld [vmem:[%s1981_s7 + $0x70] sm:$0xff] }
  0x83   : > { %1274 = vmatpush3.bf16.msra.mxu0 %v1273_v35  ;;  %v1313_v62 = vpack.c.bf16 %v476_v56, %v475_v52  ;;  %v446_v1 = vld [vmem:[%s1981_s7 + $0x78] sm:$0xff]  ;;  %v1315_v2 = vpack.c.bf16 %v494_v60, %v493_v59  ;;  %v477_v3 = vld [vmem:[%s1981_s7 + $0x170] sm:$0xff]  ;;  %v399_v7 = vld [vmem:[%s1983_s9] sm:$0xff] }
  0x84   : > { %1306 = vmatpush3.bf16.msra.mxu1 %v1305_v36  ;;  %1276 = vmatprep.subr.bf16.mxu0 %v1275_v37  ;;  %v478_v4 = vld [vmem:[%s1981_s7 + $0x178] sm:$0xff]  ;;  %v1285_v5 = vpack.c.bf16 %v446_v1, %v445_v0  ;;  %v401_v8 = vld [vmem:[%s1983_s9 + $0x10] sm:$0xff]  ;;  %v404_v9 = vld [vmem:[%s1983_s9 + $0x28] sm:$0xff] }
  0x85   : > { %1308 = vmatprep.subr.bf16.mxu1 %v1307_v41  ;;  %v1317_v6 = vpack.c.bf16 %v478_v4, %v477_v3  ;;  %v406_v10 = vld [vmem:[%s1983_s9 + $0x38] sm:$0xff]  ;;  %v403_v11 = vld [vmem:[%s1983_s9 + $0x20] sm:$0xff]  ;;  %v405_v12 = vld [vmem:[%s1983_s9 + $0x30] sm:$0xff] }
  0x86   : > { %v408_v13 = vld [vmem:[%s1983_s9 + $0x48] sm:$0xff]  ;;  %v410_v14 = vld [vmem:[%s1983_s9 + $0x58] sm:$0xff]  ;;  %v407_v15 = vld [vmem:[%s1983_s9 + $0x40] sm:$0xff] }
  0x87   : > { %1278 = vmatpush3.bf16.msra.mxu0 %v1277_v47  ;;  %v409_v16 = vld [vmem:[%s1983_s9 + $0x50] sm:$0xff]  ;;  %v412_v17 = vld [vmem:[%s1983_s9 + $0x68] sm:$0xff]  ;;  %v414_v18 = vld [vmem:[%s1983_s9 + $0x78] sm:$0xff] }
  0x88   : > { %1310 = vmatpush3.bf16.msra.mxu1 %v1309_v50  ;;  %1280 = vmatprep.subr.bf16.mxu0 %v1279_v51  ;;  %v411_v19 = vld [vmem:[%s1983_s9 + $0x60] sm:$0xff]  ;;  %v413_v20 = vld [vmem:[%s1983_s9 + $0x70] sm:$0xff]  ;;  %v416_v21 = vld [vmem:[%s1983_s9 + $0x88] sm:$0xff] }
  0x89   : > { %1312 = vmatprep.subr.bf16.mxu1 %v1311_v55  ;;  %v418_v22 = vld [vmem:[%s1983_s9 + $0x98] sm:$0xff]  ;;  %v415_v23 = vld [vmem:[%s1983_s9 + $0x80] sm:$0xff]  ;;  %v417_v24 = vld [vmem:[%s1983_s9 + $0x90] sm:$0xff] }
  0x8a   : > { %v420_v25 = vld [vmem:[%s1983_s9 + $0xa8] sm:$0xff]  ;;  %v422_v26 = vld [vmem:[%s1983_s9 + $0xb8] sm:$0xff]  ;;  %v419_v27 = vld [vmem:[%s1983_s9 + $0xa0] sm:$0xff] }
  0x8b   : > { %1282 = vmatpush3.bf16.msra.mxu0 %v1281_v61  ;;  %v421_v28 = vld [vmem:[%s1983_s9 + $0xb0] sm:$0xff]  ;;  %v424_v29 = vld [vmem:[%s1983_s9 + $0xc8] sm:$0xff]  ;;  %v426_v30 = vld [vmem:[%s1983_s9 + $0xd8] sm:$0xff] }
  0x8c   : > { %1314 = vmatpush3.bf16.msra.mxu1 %v1313_v62  ;;  %1284 = vmatprep.subr.bf16.mxu0 %v1283_v63  ;;  %v423_v31 = vld [vmem:[%s1983_s9 + $0xc0] sm:$0xff]  ;;  %v425_v32 = vld [vmem:[%s1983_s9 + $0xd0] sm:$0xff]  ;;  %v428_v33 = vld [vmem:[%s1983_s9 + $0xe8] sm:$0xff] }
  0x8d   : > { %1316 = vmatprep.subr.bf16.mxu1 %v1315_v2  ;;  %v430_v34 = vld [vmem:[%s1983_s9 + $0xf8] sm:$0xff]  ;;  %v427_v35 = vld [vmem:[%s1983_s9 + $0xe0] sm:$0xff]  ;;  %v429_v36 = vld [vmem:[%s1983_s9 + $0xf0] sm:$0xff] }
  0x8e   : > { %v391_v43 = vld [vmem:[#allocation2] sm:$0xff]  ;;  %v392_v52 = vld [vmem:[#allocation2 + $0x8] sm:$0xff]  ;;  %v393_v61 = vld [vmem:[#allocation2 + $0x10] sm:$0xff] }
  0x8f   : > { %1286 = vmatpush3.bf16.msra.mxu0 %v1285_v5 }
  0x90   : > { %1318 = vmatpush3.bf16.msra.mxu1 %v1317_v6  ;;  %v394_v6 = vld [vmem:[#allocation2 + $0x18] sm:$0xff] }
  0x92   : > { %560 = vmatmul.mubr.f32.vlgmr.msra.gmra.mrb[0].mxu0 %v399_v7 }
  0x93   : > { %665 = vmatmul.mubr.f32.vlgmr.msra.gmra.mrb[0].mxu1 %v401_v8  ;;  %564 = vmatprep.mubr.f32.mxu0 %v404_v9 }
  0x94   : > { %669 = vmatprep.mubr.f32.mxu1 %v406_v10 }
  0x96   : > { %565 = vmatmul.mubr.f32.gmra.mrb[2].mxu0 %v403_v11 }
  0x97   : > { %670 = vmatmul.mubr.f32.gmra.mrb[2].mxu1 %v405_v12  ;;  %569 = vmatprep.mubr.f32.mxu0 %v408_v13 }
  0x98   : > { %674 = vmatprep.mubr.f32.mxu1 %v410_v14 }
  0x9a   : > { %570 = vmatmul.mubr.f32.gmra.mrb[4].mxu0 %v407_v15  ;;  %v395_v15 = vld [vmem:[#allocation2 + $0x20] sm:$0xff] }
  0x9b   : > { %675 = vmatmul.mubr.f32.gmra.mrb[4].mxu1 %v409_v16  ;;  %574 = vmatprep.mubr.f32.mxu0 %v412_v17 }
  0x9c   : > { %679 = vmatprep.mubr.f32.mxu1 %v414_v18 }
  0x9e   : > { %575 = vmatmul.mubr.f32.gmra.mrb[6].mxu0 %v411_v19 }
  0x9f   : > { %680 = vmatmul.mubr.f32.gmra.mrb[6].mxu1 %v413_v20  ;;  %579 = vmatprep.mubr.f32.mxu0 %v416_v21 }
  0xa0   : > { %684 = vmatprep.mubr.f32.mxu1 %v418_v22 }
  0xa2   : > { %580 = vmatmul.mubr.f32.gmra.mrb[8].mxu0 %v415_v23 }
  0xa3   : > { %685 = vmatmul.mubr.f32.gmra.mrb[8].mxu1 %v417_v24  ;;  %584 = vmatprep.mubr.f32.mxu0 %v420_v25  ;;  %v396_v24 = vld [vmem:[#allocation2 + $0x28] sm:$0xff] }
  0xa4   : > { %689 = vmatprep.mubr.f32.mxu1 %v422_v26 }
  0xa6   : > { %585 = vmatmul.mubr.f32.gmra.mrb[10].mxu0 %v419_v27 }
  0xa7   : > { %690 = vmatmul.mubr.f32.gmra.mrb[10].mxu1 %v421_v28  ;;  %589 = vmatprep.mubr.f32.mxu0 %v424_v29 }
  0xa8   : > { %694 = vmatprep.mubr.f32.mxu1 %v426_v30 }
  0xaa   : > { %590 = vmatmul.mubr.f32.gmra.mrb[12].mxu0 %v423_v31 }
  0xab   : > { %695 = vmatmul.mubr.f32.gmra.mrb[12].mxu1 %v425_v32  ;;  %594 = vmatprep.mubr.f32.mxu0 %v428_v33  ;;  %v397_v33 = vld [vmem:[#allocation2 + $0x30] sm:$0xff] }
  0xac   : > { %699 = vmatprep.mubr.f32.mxu1 %v430_v34 }
  0xae   : > { %595 = vmatmul.mubr.f32.gmra.mrb[14].mxu0 %v427_v35 }
  0xaf   : > { %700 = vmatmul.mubr.f32.gmra.mrb[14].mxu1 %v429_v36 }
 0x165   : > { %v1175_v37 = vpop.f32.mrb[0].mxu0 }
 0x166   : > { %v1231_v38 = vpop.f32.mrb[0].mxu1  ;;  %v1176_v39 = vpop.f32.mrb[1].mxu0 }
 0x167   : > { %v1177_v40 = vadd.f32 %v1176_v39, %v1175_v37  ;;  %v1232_v41 = vpop.f32.mrb[1].mxu1 }
 0x168   : > { %v1233_v42 = vadd.f32 %v1232_v41, %v1231_v38 }
 0x169   : > { %v1178_v44 = vpop.f32.mrb[2].mxu0 }
 0x16a   : > { %v667_v45 = vadd.f32 %v1233_v42, %v1177_v40  ;;  %v1234_v46 = vpop.f32.mrb[2].mxu1  ;;  %v1179_v47 = vpop.f32.mrb[3].mxu0  ;;  %v398_v42 = vld [vmem:[#allocation2 + $0x38] sm:$0xff] }
 0x16b   : > { %v1180_v48 = vadd.f32 %v1179_v47, %v1178_v44  ;;  %v1235_v49 = vpop.f32.mrb[3].mxu1 }
 0x16c   : > { %v705_v50 = vadd.f32 %v667_v45, %v391_v43  ;;  %v1236_v51 = vadd.f32 %v1235_v49, %v1234_v46  ;;  %v1118_v46 = vld [vmem:[%s2176_s2] ss:$0 sm:$0xff] (!%p1117_p11) }
 0x16d   : > { %v1181_v53 = vpop.f32.mrb[4].mxu0 }
 0x16e   : > { %713 = vst [vmem:[#allocation2] sm:$0xff] %v705_v50  ;;  %v672_v54 = vadd.f32 %v1236_v51, %v1180_v48  ;;  %v1237_v55 = vpop.f32.mrb[4].mxu1  ;;  %v1182_v56 = vpop.f32.mrb[5].mxu0 }
 0x16f   : > { %v1183_v57 = vadd.f32 %v1182_v56, %v1181_v53  ;;  %v1238_v58 = vpop.f32.mrb[5].mxu1 }
 0x170   : > { %v706_v59 = vadd.f32 %v672_v54, %v392_v52  ;;  %v1239_v60 = vadd.f32 %v1238_v58, %v1237_v55 }
 0x171   : > { %v1184_v62 = vpop.f32.mrb[6].mxu0 }
 0x172   : > { %714 = vst [vmem:[#allocation2 + $0x8] sm:$0xff] %v706_v59  ;;  %v677_v63 = vadd.f32 %v1239_v60, %v1183_v57  ;;  %v1240_v0 = vpop.f32.mrb[6].mxu1  ;;  %v1185_v1 = vpop.f32.mrb[7].mxu0 }
 0x173   : > { %v1186_v2 = vadd.f32 %v1185_v1, %v1184_v62  ;;  %v1241_v3 = vpop.f32.mrb[7].mxu1 }
 0x174   : > { %v707_v4 = vadd.f32 %v677_v63, %v393_v61  ;;  %v1242_v5 = vadd.f32 %v1241_v3, %v1240_v0 }
 0x175   : > { %v1187_v7 = vpop.f32.mrb[8].mxu0  ;;  %v725_v45 = vld [vmem:[#allocation2] sm:$0xff] (!%p1117_p11) }
 0x176   : > { %715 = vst [vmem:[#allocation2 + $0x10] sm:$0xff] %v707_v4  ;;  %v682_v8 = vadd.f32 %v1242_v5, %v1186_v2  ;;  %v1243_v9 = vpop.f32.mrb[8].mxu1  ;;  %v1188_v10 = vpop.f32.mrb[9].mxu0  ;;  %v740_v48 = vadd.f32 (!%p1117_p11), %v1118_v46, %v725_v45 }
 0x177   : > { %v1189_v11 = vadd.f32 %v1188_v10, %v1187_v7  ;;  %v1244_v12 = vpop.f32.mrb[9].mxu1 }
 0x178   : > { %v708_v13 = vadd.f32 %v682_v8, %v394_v6  ;;  %v1245_v14 = vadd.f32 %v1244_v12, %v1243_v9  ;;  %748 = vst [vmem:[%s1985_s11] sm:$0xff] (!%p1117_p11), %v740_v48 }
 0x179   : > { %v1190_v16 = vpop.f32.mrb[10].mxu0  ;;  %v726_v47 = vld [vmem:[#allocation2 + $0x8] sm:$0xff] (!%p1117_p11) }
 0x17a   : > { %716 = vst [vmem:[#allocation2 + $0x18] sm:$0xff] %v708_v13  ;;  %v687_v17 = vadd.f32 %v1245_v14, %v1189_v11  ;;  %v1246_v18 = vpop.f32.mrb[10].mxu1  ;;  %v1191_v19 = vpop.f32.mrb[11].mxu0  ;;  %v741_v49 = vadd.f32 (!%p1117_p11), %v1118_v46, %v726_v47 }
 0x17b   : > { %v1192_v20 = vadd.f32 %v1191_v19, %v1190_v16  ;;  %v1247_v21 = vpop.f32.mrb[11].mxu1 }
 0x17c   : > { %v709_v22 = vadd.f32 %v687_v17, %v395_v15  ;;  %v1248_v23 = vadd.f32 %v1247_v21, %v1246_v18  ;;  %749 = vst [vmem:[%s1985_s11 + $0x8] sm:$0xff] (!%p1117_p11), %v741_v49 }
 0x17d   : > { %v1193_v25 = vpop.f32.mrb[12].mxu0  ;;  %v727_v50 = vld [vmem:[#allocation2 + $0x10] sm:$0xff] (!%p1117_p11) }
 0x17e   : > { %717 = vst [vmem:[#allocation2 + $0x20] sm:$0xff] %v709_v22  ;;  %v692_v26 = vadd.f32 %v1248_v23, %v1192_v20  ;;  %v1249_v27 = vpop.f32.mrb[12].mxu1  ;;  %v1194_v28 = vpop.f32.mrb[13].mxu0  ;;  %v742_v53 = vadd.f32 (!%p1117_p11), %v1118_v46, %v727_v50 }
 0x17f   : > { %v1195_v29 = vadd.f32 %v1194_v28, %v1193_v25  ;;  %v1250_v30 = vpop.f32.mrb[13].mxu1 }
 0x180   : > { %v710_v31 = vadd.f32 %v692_v26, %v396_v24  ;;  %v1251_v32 = vadd.f32 %v1250_v30, %v1249_v27  ;;  %750 = vst [vmem:[%s1985_s11 + $0x10] sm:$0xff] (!%p1117_p11), %v742_v53 }
 0x181   : > { %v1196_v34 = vpop.f32.mrb[14].mxu0  ;;  %v728_v51 = vld [vmem:[#allocation2 + $0x18] sm:$0xff] (!%p1117_p11) }
 0x182   : > { %718 = vst [vmem:[#allocation2 + $0x28] sm:$0xff] %v710_v31  ;;  %v697_v35 = vadd.f32 %v1251_v32, %v1195_v29  ;;  %v1252_v36 = vpop.f32.mrb[14].mxu1  ;;  %v1197_v37 = vpop.f32.mrb[15].mxu0  ;;  %v743_v54 = vadd.f32 (!%p1117_p11), %v1118_v46, %v728_v51 }
 0x183   : > { %v1198_v38 = vadd.f32 %v1197_v37, %v1196_v34  ;;  %v1253_v39 = vpop.f32.mrb[15].mxu1 }
 0x184   : > { %v711_v40 = vadd.f32 %v697_v35, %v397_v33  ;;  %v1254_v41 = vadd.f32 %v1253_v39, %v1252_v36  ;;  %724 = sbr.rel (%p1117_p11) target bundleno = 405 (0x195), region = 70  ;;  %751 = vst [vmem:[%s1985_s11 + $0x18] sm:$0xff] (!%p1117_p11), %v743_v54 }
 0x185   : > { %v729_v52 = vld [vmem:[#allocation2 + $0x20] sm:$0xff] (!%p1117_p11) }
 0x186   : > { %719 = vst [vmem:[#allocation2 + $0x30] sm:$0xff] %v711_v40  ;;  %v702_v43 = vadd.f32 %v1254_v41, %v1198_v38  ;;  %v744_v55 = vadd.f32 (!%p1117_p11), %v1118_v46, %v729_v52 }
 0x188   : > { %v712_v44 = vadd.f32 %v702_v43, %v398_v42  ;;  %752 = vst [vmem:[%s1985_s11 + $0x20] sm:$0xff] (!%p1117_p11), %v744_v55 }
 0x189   : > { %v730_v56 = vld [vmem:[#allocation2 + $0x28] sm:$0xff] (!%p1117_p11) }
 0x18a   : > { %720 = vst [vmem:[#allocation2 + $0x38] sm:$0xff] %v712_v44  ;;  %v745_v59 = vadd.f32 (!%p1117_p11), %v1118_v46, %v730_v56 }
 0x18c   : > { %753 = vst [vmem:[%s1985_s11 + $0x28] sm:$0xff] %v745_v59 }
 0x18d   : > { %v731_v57 = vld [vmem:[#allocation2 + $0x30] sm:$0xff] }
 0x18e   : > { %v746_v60 = vadd.f32 %v1118_v46, %v731_v57 }
 0x190   : > { %754 = vst [vmem:[%s1985_s11 + $0x30] sm:$0xff] %v746_v60 }
 0x191   : > { %v732_v58 = vld [vmem:[#allocation2 + $0x38] sm:$0xff] }
 0x192   : > { %v747_v61 = vadd.f32 %v1118_v46, %v732_v58 }
 0x194   : > { %755 = vst [vmem:[%s1985_s11 + $0x38] sm:$0xff] %v747_v61 }
 0x195 PF: > { %762 = sbr.rel (!%p1809_p9) target bundleno = 461 (0x1cd), region = 74  ;;  %s1120_s16 = sshll.u32 (%p1809_p9), %s1642_s17, 3 }
 0x196   : > { %s1140_s23 = sshll.u32 (%p1809_p9), %s1642_s17, 6  ;;  %s764_s22 = ssub.s32 (%p1809_p9), 9, %s1120_s16 }
 0x197   : > { %s2103_s29 = scalar_lea.vmem (%p1809_p9), %s2177_s3, %s1140_s23   ;;  %p765_p12 = scmp.lt.s32.totalorder (%p1809_p9), %s764_s22, 8 }
 0x19c   : > { %s2218_s22 = smov (!%p765_p12, %s764_s22), 8 }
 0x19d   : > { %s1121_s6 = sshll.u32 %s2218_s22, 7 }
 0x19e   : > { %p1124_p13 = scmp.eq.s32.totalorder %s1121_s6, 0 }
 0x19f   : > { %s2109_s30 = sshrl.u32 (!%p1124_p13), %s2218_s22, 3 }
 0x1a0   : > { %774 = sbr.rel (%p1124_p13) target bundleno = 461 (0x1cd), region = 78  ;;  %p1125_p9 = scmp.le.s32.totalorder (!%p1124_p13), %s2109_s30, 0 }
 0x1a7   : > { %1015 = sbr.rel (%p1125_p9) target bundleno = 440 (0x1b8), region = 189  ;;  %s2191_s17 = smov (!%p1125_p9), %s2103_s29 }
 0x1a8   : > { %s2192_s8 = smov (!%p1125_p9), %s1985_s11  ;;  %s2118_s27 = smov (!%p1125_p9), 0  }
 0x1a9   : > { %s2120_s26 = smov (!%p1125_p9), 0  }
 0x1ae LB: >> { %v850_v62 = vld [vmem:[%s1694_s8] sm:$0xff]  ;;  %v852_v63 = vld [vmem:[%s1694_s8 + $0x8] sm:$0xff]  ;;  %v854_v0 = vld [vmem:[%s1694_s8 + $0x10] sm:$0xff]  ;;  %s866_s0 = sadd.s32 1, %s1698_s27  ;;  %s844_s26 = sadd.s32 1, %s1702_s26   ;;  %s1702_s26 = sphi %s2120_s26, %s844_s26   ;;  %s1698_s27 = sphi %s2118_s27, %s2193_s27   ;;  %s1694_s8 = sphi %s2192_s8, %s871_s8   ;;  %s1690_s17 = sphi %s2191_s17, %s872_s17  }
 0x1af   : >> { %851 = vst [vmem:[%s1690_s17] sm:$0xff] %v850_v62  ;;  %853 = vst [vmem:[%s1690_s17 + $0x8] sm:$0xff] %v852_v63  ;;  %v856_v1 = vld [vmem:[%s1694_s8 + $0x18] sm:$0xff]  ;;  %v858_v2 = vld [vmem:[%s1694_s8 + $0x20] sm:$0xff]  ;;  %p867_p0 = scmp.ge.s32.totalorder %s866_s0, %s2109_s30  ;;  %p843_p1 = scmp.ge.s32.totalorder %s844_s26, %s2109_s30 }
 0x1b0   : >> { %855 = vst [vmem:[%s1690_s17 + $0x10] sm:$0xff] %v854_v0  ;;  %v860_v3 = vld [vmem:[%s1694_s8 + $0x28] sm:$0xff]  ;;  %857 = vst [vmem:[%s1690_s17 + $0x18] sm:$0xff] %v856_v1  ;;  %v862_v4 = vld [vmem:[%s1694_s8 + $0x30] sm:$0xff] }
 0x1b1   : >> { %859 = vst [vmem:[%s1690_s17 + $0x20] sm:$0xff] %v858_v2  ;;  %861 = vst [vmem:[%s1690_s17 + $0x28] sm:$0xff] %v860_v3  ;;  %v864_v5 = vld [vmem:[%s1694_s8 + $0x38] sm:$0xff]  ;;  %s2220_s0 = smov (%p867_p0, %s866_s0), 0  ;;  %846 = sbr.rel (!%p843_p1) target bundleno = 430 (0x1ae), region = 195 }
 0x1b2   : >> { %863 = vst [vmem:[%s1690_s17 + $0x30] sm:$0xff] %v862_v4  ;;  %865 = vst [vmem:[%s1690_s17 + $0x38] sm:$0xff] %v864_v5  ;;  %s1126_s24 = sshll.u32 %s2220_s0, 6  ;;  %s2193_s27 = smov %s2220_s0 }
 0x1b3   : >> { %s871_s8 = scalar_lea.vmem %s1985_s11, %s1126_s24 [#allocation4]   ;;  %s872_s17 = scalar_lea.vmem %s2103_s29, %s1126_s24  }
 0x1b8 PF: > { %s2139_s25 = sand.u32 7, %s2218_s22   ;;  %s1141_s7 = sshll.u32 %s2109_s30, 6 }
 0x1b9   : > { %s877_s9 = scalar_lea.vmem %s1985_s11, %s1141_s7 [#allocation4]   ;;  %s879_s12 = scalar_lea.vmem %s2103_s29, %s1141_s7  }
 0x1ba   : > { %p1131_p2 = scmp.le.s32.totalorder %s2139_s25, 0 }
 0x1bb   : > { %s1704_s14 = smov (!%p1131_p2), %s879_s12   ;;  %s1708_s16 = smov (!%p1131_p2), %s877_s9  }
 0x1bc   : > { %1029 = sbr.rel (%p1131_p2) target bundleno = 461 (0x1cd), region = 200  ;;  %s1712_s23 = smov (!%p1131_p2), 0  }
 0x1bd   : > { %s1716_s10 = smov (!%p1131_p2), 0  }
 0x1c3 LB: >> { %v889_v6 = vld [vmem:[%s1710_s16] sm:$0xff]  ;;  %s891_s22 = sadd.s32 1, %s1714_s23  ;;  %s883_s10 = sadd.s32 1, %s1718_s10   ;;  %s1718_s10 = sphi %s1716_s10, %s883_s10   ;;  %s1714_s23 = sphi %s1712_s23, %s1713_s23   ;;  %s1710_s16 = sphi %s1708_s16, %s896_s16   ;;  %s1706_s14 = sphi %s1704_s14, %s897_s14  }
 0x1c4   : >> { %890 = vst [vmem:[%s1706_s14] sm:$0xff] %v889_v6  ;;  %p892_p3 = scmp.ge.s32.totalorder %s891_s22, %s2139_s25  ;;  %p882_p4 = scmp.ge.s32.totalorder %s883_s10, %s2139_s25 }
 0x1c6   : >> { %s2222_s22 = smov (%p892_p3, %s891_s22), 0  ;;  %885 = sbr.rel (!%p882_p4) target bundleno = 451 (0x1c3), region = 206 }
 0x1c7   : >> { %s1132_s11 = sshll.u32 %s2222_s22, 3  ;;  %s1713_s23 = smov %s2222_s22  }
 0x1c8   : >> { %s896_s16 = scalar_lea.vmem %s877_s9, %s1132_s11 [#allocation4]   ;;  %s897_s14 = scalar_lea.vmem %s879_s12, %s1132_s11  }
 0x1cd PF: > { %s13_s20 = sadd.s32 1, %s1654_s20   ;;  %s2194_s28 = sld [smem:[#allocation5_spill]] }
 0x1ce   : > { %p10_p5 = scmp.ge.s32.totalorder %s13_s20, 6   ;;  %s2195_s12 = smov %s1626_s13 }
 0x1cf   : > { %s2196_s13 = smov %s1814_s4  ;;  %s2197_s14 = smov %s1634_s15 }
 0x1d0   : > { %s2198_s15 = smov %s1817_s5  ;;  %s2199_s16 = smov %s1646_s18 }
 0x1d1   : > { %s2200_s17 = smov %s1650_s19  ;;  %s2201_s18 = smov %s2204_s21 }
 0x1d2   :  { %12 = sbr.rel (!%p10_p5) target bundleno = 7 (0x7), region = 217 }
 0x1d3   : > { %s2202_s19 = smov %s2194_s28 }

// kernel: multiscale_discriminator_forward.31
= control target key start
LH: loop header
LB: loop body
LE: loop exit
PB: predicated region body
PF: predicated region fallthrough
CT: control target
= control target key end

     0   :  { %s1696_s0 = inlined_call_operand.vmem [shape: f32[98,2048], index: 0, kind: input, shape index: {}]   ;;  %s1697_s1 = inlined_call_operand.vmem [shape: f32[1,2048], index: 1, kind: input, shape index: {}]   ;;  %s1698_s2 = inlined_call_operand.vmem [shape: f32[98,1], index: 2, kind: output, shape index: {}]  }
   0x1   :  { %1699 = sst [smem:[#allocation5_spill]] %s1696_s0 }
   0x2   :  { %s1276_s9 = smov 0   ;;  %s1278_s10 = smov 0  }
   0x3   :  { %s1280_s11 = smov 0   ;;  %s1282_s12 = smov 0  }
   0x4   :  { %s1284_s13 = smov 0   ;;  %s1286_s14 = smov 0  }
   0x5   :  { %s1288_s15 = smov 0   ;;  %s1290_s16 = smov 0  }
   0x6   :  { %s1292_s17 = smov 0  }
   0x7 LB: > { %s21_s18 = sadd.s32 1, %s1186_s15  ;;  %s24_s19 = sadd.s32 1, %s1190_s16  ;;  %s1194_s17 = sphi %s1292_s17, %s12_s17   ;;  %s1190_s16 = sphi %s1290_s16, %s1720_s16   ;;  %s1186_s15 = sphi %s1288_s15, %s1719_s15   ;;  %s1182_s14 = sphi %s1286_s14, %s1718_s14   ;;  %s1178_s13 = sphi %s1284_s13, %s1717_s13   ;;  %s1174_s12 = sphi %s1282_s12, %s1716_s12   ;;  %s1170_s11 = sphi %s1280_s11, %s1715_s11   ;;  %s1166_s10 = sphi %s1278_s10, %s1714_s10   ;;  %s1162_s9 = sphi %s1276_s9, %s1713_s9  }
   0x8   : > { %p22_p0 = scmp.ge.s32.totalorder %s21_s18, 4  ;;  %p40_p1 = scmp.ne.s32.totalorder %s1174_s12, %s1170_s11 }
   0x9   : > { %s807_s20 = sadd.s32 4294967295, %s1194_s17   ;;  %p41_p2 = scmp.eq.s32.totalorder %s1194_s17, 0 }
   0xa   : > { %s1722_s18 = smov (%p22_p0, %s21_s18), 0  ;;  %s1724_s19 = smov (!%p22_p0, %s24_s19), %s1190_s16 }
   0xb   : > { %p26_p3 = scmp.ge.s32.totalorder %s1724_s19, 2  ;;  %s29_s21 = ssub.s32 %s1186_s15, %s1722_s18 }
   0xc   : > { %p1332_p4 = por %p41_p2, %p40_p1  ;;  %p95_p5 = scmp.ne.s32.totalorder %s1166_s10, %s1162_s9 }
   0xd   : > { %s1726_s19 = smov (%p26_p3, %s1724_s19), 0  ;;  %s33_s23 = sadd.s32 1, %s1174_s12 }
   0xe   : > { %p96_p6 = scmp.eq.s32.totalorder %s807_s20, 7  ;;  %s28_s24 = ssub.s32 %s1190_s16, %s1726_s19 }
   0xf   : > { %s85_s25 = sadd.s32 1, %s1166_s10  ;;  %s30_s26 = sor.u32 %s29_s21, %s28_s24 }
  0x10   : > { %p83_p7 = scmp.eq.s32.totalorder %s28_s24, 0  ;;  %p31_p8 = scmp.eq.s32.totalorder %s30_s26, 0 }
  0x11   : > { %p1344_p9 = por %p96_p6, %p95_p5  ;;  %p810_p10 = scmp.ge.s32.totalorder %s1194_s17, 8 }
  0x12   : > { %s1349_s28 = scalar_select %p83_p7, %s1166_s10, %s85_s25  }
  0x13   : > { %s1352_s29 = scalar_select %p31_p8, %s1174_s12, %s33_s23  }
  0x14   : > { %118 = sbr.rel (%p810_p10) target bundleno = 90 (0x5a), region = 16 }
  0x1b   : > { %121 = sbr.rel (!%p1332_p4) target bundleno = 90 (0x5a), region = 20  ;;  %s123_s30 = sand.u32 (%p1332_p4), 1, %s1174_s12  }
  0x1c   : > { %s812_s3 = sshll.u32 (%p1332_p4), %s1190_s16, 3  ;;  %s811_s4 = sshll.u32 (%p1332_p4), %s123_s30, 8 }
  0x1d   : > { %s813_s5 = sshll.u32 (%p1332_p4), %s1186_s15, 2  ;;  %s128_s6 = ssub.s32 (%p1332_p4), 13, %s812_s3 }
  0x1e   : > { %p129_p11 = scmp.lt.s32.totalorder (%p1332_p4), %s128_s6, 8  ;;  %s853_s7 = sshll.u32 (%p1332_p4), %s1190_s16, 7 }
  0x1f   : > { %s135_s8 = sadd.s32 (%p1332_p4), %s853_s7, %s813_s5  ;;  %s1702_s0 = sld [smem:[#allocation5_spill]] (%p1332_p4) }
  0x20   : > { %s818_s20 = sshll.u32 (%p1332_p4), %s135_s8, 3  ;;  %s1369_s25 = scalar_lea.vmem (%p1332_p4), [#allocation3], %s811_s4  }
  0x22   : > { %s1728_s6 = smov (!%p129_p11, %s128_s6), 8 }
  0x23   : > { %s852_s21 = sshll.u32 %s1728_s6, 9 }
  0x24   : > { %p819_p12 = scmp.eq.s32.totalorder %s852_s21, 0 }
  0x25   : > { %s1367_s24 = scalar_lea.vmem %s1702_s0, %s818_s20   ;;  %s1372_s26 = sshrl.u32 (!%p819_p12), %s1728_s6, 3 }
  0x26   : > { %140 = sbr.rel (%p819_p12) target bundleno = 90 (0x5a), region = 24  ;;  %p820_p13 = scmp.le.s32.totalorder (!%p819_p12), %s1372_s26, 0 }
  0x2d   : > { %718 = sbr.rel (%p820_p13) target bundleno = 69 (0x45), region = 160  ;;  %s1703_s30 = smov (!%p820_p13), %s1369_s25 }
  0x2e   : > { %s1704_s3 = smov (!%p820_p13), %s1367_s24  ;;  %s1381_s5 = smov (!%p820_p13), 0  }
  0x2f   : > { %s1383_s7 = smov (!%p820_p13), 0  }
  0x34 LB: >> { %v153_v0 = vld [vmem:[%s1202_s3] sm:$0xff]  ;;  %s217_s4 = sadd.s32 1, %s1206_s5  ;;  %v169_v8 = vld [vmem:[%s1202_s3 + $0x8] sm:$0xff]  ;;  %v185_v16 = vld [vmem:[%s1202_s3 + $0x10] sm:$0xff]  ;;  %s147_s7 = sadd.s32 1, %s1210_s7   ;;  %s1210_s7 = sphi %s1383_s7, %s147_s7   ;;  %s1206_s5 = sphi %s1381_s5, %s1707_s5   ;;  %s1202_s3 = sphi %s1704_s3, %s1706_s3   ;;  %s1198_s30 = sphi %s1703_s30, %s1705_s30  }
  0x35   : >> { %v155_v1 = vld [vmem:[%s1202_s3 + $0x80] sm:$0xff]  ;;  %154 = vst [vmem:[%s1198_s30] sm:$0xff] %v153_v0  ;;  %p218_p0 = scmp.ge.s32.totalorder %s217_s4, %s1372_s26  ;;  %170 = vst [vmem:[%s1198_s30 + $0x8] sm:$0xff] %v169_v8  ;;  %v171_v9 = vld [vmem:[%s1202_s3 + $0x88] sm:$0xff]  ;;  %p146_p1 = scmp.ge.s32.totalorder %s147_s7, %s1372_s26 }
  0x36   : >> { %v157_v2 = vld [vmem:[%s1202_s3 + $0x100] sm:$0xff]  ;;  %156 = vst [vmem:[%s1198_s30 + $0x20] sm:$0xff] %v155_v1  ;;  %v173_v10 = vld [vmem:[%s1202_s3 + $0x108] sm:$0xff]  ;;  %172 = vst [vmem:[%s1198_s30 + $0x28] sm:$0xff] %v171_v9 }
  0x37   : >> { %158 = vst [vmem:[%s1198_s30 + $0x40] sm:$0xff] %v157_v2  ;;  %v159_v3 = vld [vmem:[%s1202_s3 + $0x180] sm:$0xff]  ;;  %v175_v11 = vld [vmem:[%s1202_s3 + $0x188] sm:$0xff]  ;;  %s1730_s4 = smov (%p218_p0, %s217_s4), 0  ;;  %174 = vst [vmem:[%s1198_s30 + $0x48] sm:$0xff] %v173_v10 }
  0x38   : >> { %v161_v4 = vld [vmem:[%s1202_s3 + $0x200] sm:$0xff]  ;;  %160 = vst [vmem:[%s1198_s30 + $0x60] sm:$0xff] %v159_v3  ;;  %176 = vst [vmem:[%s1198_s30 + $0x68] sm:$0xff] %v175_v11  ;;  %v177_v12 = vld [vmem:[%s1202_s3 + $0x208] sm:$0xff]  ;;  %s821_s8 = sshll.u32 %s1730_s4, 10  ;;  %s822_s20 = sshll.u32 %s1730_s4, 8 }
  0x39   : >> { %v163_v5 = vld [vmem:[%s1202_s3 + $0x280] sm:$0xff]  ;;  %162 = vst [vmem:[%s1198_s30 + $0x80] sm:$0xff] %v161_v4  ;;  %v179_v13 = vld [vmem:[%s1202_s3 + $0x288] sm:$0xff]  ;;  %178 = vst [vmem:[%s1198_s30 + $0x88] sm:$0xff] %v177_v12  ;;  %s1440_s21 = scalar_lea.vmem %s1367_s24, %s821_s8   ;;  %s223_s23 = scalar_lea.vmem %s1369_s25, %s822_s20 [#allocation3]  }
  0x3a   : >> { %164 = vst [vmem:[%s1198_s30 + $0xa0] sm:$0xff] %v163_v5  ;;  %v165_v6 = vld [vmem:[%s1202_s3 + $0x300] sm:$0xff]  ;;  %v181_v14 = vld [vmem:[%s1202_s3 + $0x308] sm:$0xff]  ;;  %180 = vst [vmem:[%s1198_s30 + $0xa8] sm:$0xff] %v179_v13  ;;  %s1707_s5 = smov %s1730_s4 }
  0x3b   : >> { %v167_v7 = vld [vmem:[%s1202_s3 + $0x380] sm:$0xff]  ;;  %166 = vst [vmem:[%s1198_s30 + $0xc0] sm:$0xff] %v165_v6  ;;  %182 = vst [vmem:[%s1198_s30 + $0xc8] sm:$0xff] %v181_v14  ;;  %v183_v15 = vld [vmem:[%s1202_s3 + $0x388] sm:$0xff] }
  0x3c   : >> { %168 = vst [vmem:[%s1198_s30 + $0xe0] sm:$0xff] %v167_v7  ;;  %v187_v17 = vld [vmem:[%s1202_s3 + $0x90] sm:$0xff]  ;;  %184 = vst [vmem:[%s1198_s30 + $0xe8] sm:$0xff] %v183_v15  ;;  %v201_v24 = vld [vmem:[%s1202_s3 + $0x18] sm:$0xff] }
  0x3d   : >> { %186 = vst [vmem:[%s1198_s30 + $0x10] sm:$0xff] %v185_v16  ;;  %188 = vst [vmem:[%s1198_s30 + $0x30] sm:$0xff] %v187_v17  ;;  %v189_v18 = vld [vmem:[%s1202_s3 + $0x110] sm:$0xff]  ;;  %v203_v25 = vld [vmem:[%s1202_s3 + $0x98] sm:$0xff] }
  0x3e   : >> { %v191_v19 = vld [vmem:[%s1202_s3 + $0x190] sm:$0xff]  ;;  %190 = vst [vmem:[%s1198_s30 + $0x50] sm:$0xff] %v189_v18  ;;  %v205_v26 = vld [vmem:[%s1202_s3 + $0x118] sm:$0xff]  ;;  %202 = vst [vmem:[%s1198_s30 + $0x18] sm:$0xff] %v201_v24  ;;  %149 = sbr.rel (!%p146_p1) target bundleno = 52 (0x34), region = 166 }
  0x3f   : >> { %v193_v20 = vld [vmem:[%s1202_s3 + $0x210] sm:$0xff]  ;;  %192 = vst [vmem:[%s1198_s30 + $0x70] sm:$0xff] %v191_v19  ;;  %204 = vst [vmem:[%s1198_s30 + $0x38] sm:$0xff] %v203_v25  ;;  %v207_v27 = vld [vmem:[%s1202_s3 + $0x198] sm:$0xff] }
  0x40   : >> { %194 = vst [vmem:[%s1198_s30 + $0x90] sm:$0xff] %v193_v20  ;;  %v195_v21 = vld [vmem:[%s1202_s3 + $0x290] sm:$0xff]  ;;  %206 = vst [vmem:[%s1198_s30 + $0x58] sm:$0xff] %v205_v26  ;;  %v209_v28 = vld [vmem:[%s1202_s3 + $0x218] sm:$0xff] }
  0x41   : >> { %v197_v22 = vld [vmem:[%s1202_s3 + $0x310] sm:$0xff]  ;;  %196 = vst [vmem:[%s1198_s30 + $0xb0] sm:$0xff] %v195_v21  ;;  %v211_v29 = vld [vmem:[%s1202_s3 + $0x298] sm:$0xff]  ;;  %208 = vst [vmem:[%s1198_s30 + $0x78] sm:$0xff] %v207_v27 }
  0x42   : >> { %v199_v23 = vld [vmem:[%s1202_s3 + $0x390] sm:$0xff]  ;;  %198 = vst [vmem:[%s1198_s30 + $0xd0] sm:$0xff] %v197_v22  ;;  %210 = vst [vmem:[%s1198_s30 + $0x98] sm:$0xff] %v209_v28  ;;  %v213_v30 = vld [vmem:[%s1202_s3 + $0x318] sm:$0xff] }
  0x43   : >> { %200 = vst [vmem:[%s1198_s30 + $0xf0] sm:$0xff] %v199_v23  ;;  %212 = vst [vmem:[%s1198_s30 + $0xb8] sm:$0xff] %v211_v29  ;;  %v215_v31 = vld [vmem:[%s1202_s3 + $0x398] sm:$0xff]  ;;  %s1706_s3 = smov %s1440_s21 }
  0x44   : >> { %214 = vst [vmem:[%s1198_s30 + $0xd8] sm:$0xff] %v213_v30  ;;  %216 = vst [vmem:[%s1198_s30 + $0xf8] sm:$0xff] %v215_v31  ;;  %s1705_s30 = smov %s223_s23 }
  0x45 PF: > { %s1481_s22 = sand.u32 7, %s1728_s6   ;;  %s854_s8 = sshll.u32 %s1372_s26, 10 }
  0x46   : > { %s1485_s20 = scalar_lea.vmem %s1367_s24, %s854_s8   ;;  %s855_s0 = sshll.u32 %s1372_s26, 8 }
  0x47   : > { %s1489_s23 = scalar_lea.vmem %s1369_s25, %s855_s0 [#allocation3]   ;;  %p826_p2 = scmp.le.s32.totalorder %s1481_s22, 0 }
  0x48   : > { %s1708_s30 = smov (!%p826_p2), %s1489_s23  ;;  %s1709_s3 = smov (!%p826_p2), %s1485_s20 }
  0x49   : > { %732 = sbr.rel (%p826_p2) target bundleno = 90 (0x5a), region = 171  ;;  %s1220_s5 = smov (!%p826_p2), 0  }
  0x4a   : > { %s1224_s7 = smov (!%p826_p2), 0  }
  0x50 LB: >> { %v240_v32 = vld [vmem:[%s1218_s3] sm:$0xff]  ;;  %v242_v33 = vld [vmem:[%s1218_s3 + $0x8] sm:$0xff]  ;;  %v244_v34 = vld [vmem:[%s1218_s3 + $0x10] sm:$0xff]  ;;  %s248_s0 = sadd.s32 1, %s1222_s5  ;;  %s234_s7 = sadd.s32 1, %s1226_s7   ;;  %s1226_s7 = sphi %s1224_s7, %s234_s7   ;;  %s1222_s5 = sphi %s1220_s5, %s1221_s5   ;;  %s1218_s3 = sphi %s1709_s3, %s253_s3   ;;  %s1214_s30 = sphi %s1708_s30, %s254_s30  }
  0x51   : >> { %241 = vst [vmem:[%s1214_s30] sm:$0xff] %v240_v32  ;;  %243 = vst [vmem:[%s1214_s30 + $0x8] sm:$0xff] %v242_v33  ;;  %v246_v35 = vld [vmem:[%s1218_s3 + $0x18] sm:$0xff]  ;;  %p249_p3 = scmp.ge.s32.totalorder %s248_s0, %s1481_s22  ;;  %p233_p4 = scmp.ge.s32.totalorder %s234_s7, %s1481_s22 }
  0x52   : >> { %245 = vst [vmem:[%s1214_s30 + $0x10] sm:$0xff] %v244_v34  ;;  %247 = vst [vmem:[%s1214_s30 + $0x18] sm:$0xff] %v246_v35 }
  0x53   : >> { %s1732_s0 = smov (%p249_p3, %s248_s0), 0  ;;  %236 = sbr.rel (!%p233_p4) target bundleno = 80 (0x50), region = 177 }
  0x54   : >> { %s827_s6 = sshll.u32 %s1732_s0, 7  ;;  %s828_s24 = sshll.u32 %s1732_s0, 5 }
  0x55   : >> { %s253_s3 = scalar_lea.vmem %s1485_s20, %s827_s6   ;;  %s254_s30 = scalar_lea.vmem %s1489_s23, %s828_s24 [#allocation3]  }
  0x56   : >> { %s1221_s5 = smov %s1732_s0  }
  0x5a PF: > { %p829_p5 = scmp.ge.s32.totalorder %s1194_s17, 1  ;;  %p267_p6 = scmp.lt.s32.totalorder %s1194_s17, 9 }
  0x5c   : > { %p268_p7 = pnand %p829_p5, %p267_p6 }
  0x5d   : > { %s274_s25 = sand.u32 (!%p268_p7), 1, %s1170_s11   ;;  %s295_s26 = sand.u32 (!%p268_p7), 1, %s1162_s9  }
  0x5e   : > { %271 = sbr.rel (%p268_p7) target bundleno = 346 (0x15a), region = 54  ;;  %s830_s4 = sshll.u32 (!%p268_p7), %s274_s25, 8 }
  0x5f   : > { %s831_s21 = sshll.u32 (!%p268_p7), %s295_s26, 6  ;;  %s832_s8 = sshll.u32 (!%p268_p7), %s1178_s13, 2 }
  0x60   : > { %p306_p8 = scmp.lt.s32.totalorder (!%p268_p7), %s832_s8, 15  ;;  %s1516_s30 = scalar_lea.vmem (!%p268_p7), [#allocation3], %s830_s4 }
  0x61   : > { %s1518_s3 = scalar_lea.vmem (!%p268_p7), [#allocation4], %s831_s21   ;;  %p833_p10 = scmp.ne.s32.totalorder (!%p268_p7), %s1178_s13, 0 }
  0x65   : > { %s1734_s8 = smov (!%p306_p8, %s832_s8), 15  ;;  %318 = sbr.rel (%p833_p10) target bundleno = 108 (0x6c), region = 62 }
  0x66   : > { %s308_s23 = scalar_lea.vmem %s1697_s1, %s1734_s8  ;;  %vm319_vm0 = vcmask (!%p833_p10), 7168   ;;  %v1260_v36 = vmov (!%p833_p10), 0.0  }
  0x67   : > { %320 = vst.msk [vmem:[#allocation2] sm:$0xff] (!%p833_p10), %vm319_vm0, %v1260_v36  ;;  %321 = vst.msk [vmem:[#allocation2 + $0x8] sm:$0xff] (!%p833_p10), %vm319_vm0, %v1260_v36 }
  0x68   : > { %322 = vst.msk [vmem:[#allocation2 + $0x10] sm:$0xff] (!%p833_p10), %vm319_vm0, %v1260_v36  ;;  %323 = vst.msk [vmem:[#allocation2 + $0x18] sm:$0xff] (!%p833_p10), %vm319_vm0, %v1260_v36 }
  0x69   : > { %324 = vst.msk [vmem:[#allocation2 + $0x20] sm:$0xff] (!%p833_p10), %vm319_vm0, %v1260_v36  ;;  %325 = vst.msk [vmem:[#allocation2 + $0x28] sm:$0xff] (!%p833_p10), %vm319_vm0, %v1260_v36 }
  0x6a   : > { %326 = vst.msk [vmem:[#allocation2 + $0x30] sm:$0xff] (!%p833_p10), %vm319_vm0, %v1260_v36  ;;  %327 = vst.msk [vmem:[#allocation2 + $0x38] sm:$0xff] (!%p833_p10), %vm319_vm0, %v1260_v36 }
  0x6c PF: > { %v362_v37 = vlaneseq  ;;  %v360_v39 = vld [vmem:[%s308_s23] sm:$0xf]  ;;  %v337_v41 = vld [vmem:[%s1516_s30 + $0x48] sm:$0xff]  ;;  %v338_v46 = vld [vmem:[%s1516_s30 + $0x50] sm:$0xff]  ;;  %vm470_vm1 = vcmask 7168   ;;  %p834_p11 = scmp.ne.s32.totalorder %s1178_s13, 3 }
  0x6d   : > { %v336_v40 = vld [vmem:[%s1516_s30 + $0x40] sm:$0xff]  ;;  %v339_v47 = vld [vmem:[%s1516_s30 + $0x58] sm:$0xff]  ;;  %v329_v53 = vld [vmem:[%s1516_s30 + $0x8] sm:$0xff] }
  0x6e   : > { %v363_v38 = vshrl.u32 %v362_v37, 7  ;;  %v328_v48 = vld [vmem:[%s1516_s30] sm:$0xff]  ;;  %v330_v54 = vld [vmem:[%s1516_s30 + $0x10] sm:$0xff]  ;;  %v331_v55 = vld [vmem:[%s1516_s30 + $0x18] sm:$0xff] }
  0x6f   : > { %v340_v56 = vld [vmem:[%s1516_s30 + $0x60] sm:$0xff]  ;;  %v341_v57 = vld [vmem:[%s1516_s30 + $0x68] sm:$0xff]  ;;  %v342_v58 = vld [vmem:[%s1516_s30 + $0x70] sm:$0xff] }
  0x70   : > { %v364_v42 = vsub.s32 0, %v363_v38  ;;  %v368_v43 = vsub.s32 1, %v363_v38  ;;  %v372_v44 = vsub.s32 2, %v363_v38  ;;  %v376_v45 = vsub.s32 3, %v363_v38  ;;  %v343_v63 = vld [vmem:[%s1516_s30 + $0x78] sm:$0xff]  ;;  %v332_v0 = vld [vmem:[%s1516_s30 + $0x20] sm:$0xff] }
  0x71   : > { %v333_v1 = vld [vmem:[%s1516_s30 + $0x28] sm:$0xff]  ;;  %v334_v6 = vld [vmem:[%s1516_s30 + $0x30] sm:$0xff]  ;;  %v335_v7 = vld [vmem:[%s1516_s30 + $0x38] sm:$0xff] }
  0x72   : > { %v1526_v49 = vrot.slane %v360_v39, %v364_v42  ;;  %v1528_v50 = vrot.slane %v360_v39, %v368_v43  ;;  %v1530_v51 = vrot.slane %v360_v39, %v372_v44  ;;  %v1532_v52 = vrot.slane %v360_v39, %v376_v45  ;;  %v348_v12 = vld [vmem:[%s1516_s30 + $0xa0] sm:$0xff]  ;;  %v349_v13 = vld [vmem:[%s1516_s30 + $0xa8] sm:$0xff]  ;;  %v350_v18 = vld [vmem:[%s1516_s30 + $0xb0] sm:$0xff] }
  0x73   : > { %v344_v23 = vld [vmem:[%s1516_s30 + $0x80] sm:$0xff]  ;;  %v351_v26 = vld [vmem:[%s1516_s30 + $0xb8] sm:$0xff]  ;;  %v345_v29 = vld [vmem:[%s1516_s30 + $0x88] sm:$0xff] }
  0x74   : > { %v390_v59 = vmul.f32 %v1526_v49, %v336_v40  ;;  %v391_v60 = vmul.f32 %v1528_v50, %v337_v41  ;;  %v392_v61 = vmul.f32 %v1530_v51, %v338_v46  ;;  %v393_v62 = vmul.f32 %v1532_v52, %v339_v47  ;;  %v346_v30 = vld [vmem:[%s1516_s30 + $0x90] sm:$0xff]  ;;  %v356_v34 = vld [vmem:[%s1516_s30 + $0xe0] sm:$0xff]  ;;  %v357_v35 = vld [vmem:[%s1516_s30 + $0xe8] sm:$0xff] }
  0x75   : > { %v382_v2 = vmul.f32 %v1526_v49, %v328_v48  ;;  %v383_v3 = vmul.f32 %v1528_v50, %v329_v53  ;;  %v384_v4 = vmul.f32 %v1530_v51, %v330_v54  ;;  %v385_v5 = vmul.f32 %v1532_v52, %v331_v55  ;;  %v347_v39 = vld [vmem:[%s1516_s30 + $0x98] sm:$0xff]  ;;  %v358_v41 = vld [vmem:[%s1516_s30 + $0xf0] sm:$0xff]  ;;  %v352_v42 = vld [vmem:[%s1516_s30 + $0xc0] sm:$0xff] }
  0x76   : > { %v432_v8 = vadd.f32 %v391_v60, %v390_v59  ;;  %v394_v9 = vmul.f32 %v1526_v49, %v340_v56  ;;  %v395_v10 = vmul.f32 %v1528_v50, %v341_v57  ;;  %v396_v11 = vmul.f32 %v1530_v51, %v342_v58  ;;  %v353_v47 = vld [vmem:[%s1516_s30 + $0xc8] sm:$0xff]  ;;  %v354_v48 = vld [vmem:[%s1516_s30 + $0xd0] sm:$0xff]  ;;  %v359_v55 = vld [vmem:[%s1516_s30 + $0xf8] sm:$0xff] }
  0x77   : > { %v422_v14 = vadd.f32 %v383_v3, %v382_v2  ;;  %v397_v15 = vmul.f32 %v1532_v52, %v343_v63  ;;  %v386_v16 = vmul.f32 %v1526_v49, %v332_v0  ;;  %v387_v17 = vmul.f32 %v1528_v50, %v333_v1 }
  0x78   : > { %v433_v19 = vadd.f32 %v432_v8, %v392_v61  ;;  %v437_v20 = vadd.f32 %v395_v10, %v394_v9  ;;  %v388_v21 = vmul.f32 %v1530_v51, %v334_v6  ;;  %v389_v22 = vmul.f32 %v1532_v52, %v335_v7  ;;  %v355_v61 = vld [vmem:[%s1516_s30 + $0xd8] sm:$0xff] }
  0x79   : > { %v423_v24 = vadd.f32 %v422_v14, %v384_v4  ;;  %v427_v25 = vadd.f32 %v387_v17, %v386_v16  ;;  %v402_v27 = vmul.f32 %v1526_v49, %v348_v12  ;;  %v403_v28 = vmul.f32 %v1528_v50, %v349_v13 }
  0x7a   : > { %v434_v31 = vadd.f32 %v433_v19, %v393_v62  ;;  %v438_v32 = vadd.f32 %v437_v20, %v396_v11  ;;  %v404_v33 = vmul.f32 %v1530_v51, %v350_v18  ;;  %v398_v40 = vmul.f32 %v1526_v49, %v344_v23  ;;  %v419_v20 = vld [vmem:[#allocation2 + $0x28] sm:$0xff] }
  0x7b   : > { %v424_v36 = vadd.f32 %v423_v24, %v385_v5  ;;  %v428_v37 = vadd.f32 %v427_v25, %v388_v21  ;;  %v447_v38 = vadd.f32 %v403_v28, %v402_v27  ;;  %v405_v44 = vmul.f32 %v1532_v52, %v351_v26  ;;  %v418_v21 = vld [vmem:[#allocation2 + $0x20] sm:$0xff]  ;;  %v421_v26 = vld [vmem:[#allocation2 + $0x38] sm:$0xff]  ;;  %v420_v27 = vld [vmem:[#allocation2 + $0x30] sm:$0xff] }
  0x7c   : > { %435 = vadd.xlane.f32.xlu1 %v434_v31  ;;  %v439_v43 = vadd.f32 %v438_v32, %v397_v15  ;;  %v399_v45 = vmul.f32 %v1528_v50, %v345_v29  ;;  %v400_v46 = vmul.f32 %v1530_v51, %v346_v30  ;;  %v410_v56 = vmul.f32 %v1526_v49, %v356_v34  ;;  %v417_v15 = vld [vmem:[#allocation2 + $0x18] sm:$0xff] }
  0x7d   : > { %425 = vadd.xlane.f32.xlu0 %v424_v36  ;;  %v429_v53 = vadd.f32 %v428_v37, %v389_v22  ;;  %v448_v54 = vadd.f32 %v447_v38, %v404_v33  ;;  %v411_v57 = vmul.f32 %v1528_v50, %v357_v35  ;;  %v401_v58 = vmul.f32 %v1532_v52, %v347_v39 }
  0x7e   : > { %v442_v59 = vadd.f32 %v399_v45, %v398_v40  ;;  %v412_v60 = vmul.f32 %v1530_v51, %v358_v41  ;;  %v406_v62 = vmul.f32 %v1526_v49, %v352_v42  ;;  %v407_v0 = vmul.f32 %v1528_v50, %v353_v47  ;;  %v416_v50 = vld [vmem:[#allocation2 + $0x10] sm:$0xff] }
  0x7f   : > { %v457_v63 = vadd.f32 %v411_v57, %v410_v56  ;;  %v408_v1 = vmul.f32 %v1530_v51, %v354_v48  ;;  %v449_v2 = vadd.f32 %v448_v54, %v405_v44  ;;  %v413_v4 = vmul.f32 %v1532_v52, %v359_v55  ;;  %v414_v51 = vld [vmem:[#allocation2] sm:$0xff] }
  0x80   : > { %440 = vadd.xlane.f32.xlu1 %v439_v43  ;;  %v443_v3 = vadd.f32 %v442_v59, %v400_v46  ;;  %v409_v6 = vmul.f32 %v1532_v52, %v355_v61  ;;  %v452_v7 = vadd.f32 %v407_v0, %v406_v62  ;;  %v415_v52 = vld [vmem:[#allocation2 + $0x8] sm:$0xff] }
  0x81   : > { %430 = vadd.xlane.f32.xlu0 %v429_v53  ;;  %v458_v5 = vadd.f32 %v457_v63, %v412_v60 }
  0x82   : > { %v444_v8 = vadd.f32 %v443_v3, %v401_v58  ;;  %v453_v9 = vadd.f32 %v452_v7, %v408_v1 }
  0x83   : > { %v459_v10 = vadd.f32 %v458_v5, %v413_v4 }
  0x84   : > { %450 = vadd.xlane.f32.xlu1 %v449_v2  ;;  %v454_v49 = vadd.f32 %v453_v9, %v409_v6 }
  0x85   : > { %445 = vadd.xlane.f32.xlu0 %v444_v8 }
  0x88   : > { %460 = vadd.xlane.f32.xlu1 %v459_v10 }
  0x89   : > { %455 = vadd.xlane.f32.xlu0 %v454_v49 }
 0x109   : > { %v436_v11 = vpop.xlane.xlu1 %435 }
 0x10a   : > { %v464_v12 = vadd.f32 %v436_v11, %v416_v50  ;;  %v426_v13 = vpop.xlane.xlu0 %425 }
 0x10b   : > { %v462_v14 = vadd.f32 %v426_v13, %v414_v51 }
 0x10c   : > { %473 = vst.msk [vmem:[#allocation2 + $0x10] sm:$0xff] %vm470_vm1, %v464_v12 }
 0x10d   : > { %471 = vst.msk [vmem:[#allocation2] sm:$0xff] %vm470_vm1, %v462_v14  ;;  %v441_v16 = vpop.xlane.xlu1 %440 }
 0x10e   : > { %v465_v17 = vadd.f32 %v441_v16, %v417_v15  ;;  %v431_v18 = vpop.xlane.xlu0 %430 }
 0x10f   : > { %v463_v19 = vadd.f32 %v431_v18, %v415_v52 }
 0x110   : > { %474 = vst.msk [vmem:[#allocation2 + $0x18] sm:$0xff] %vm470_vm1, %v465_v17 }
 0x111   : > { %472 = vst.msk [vmem:[#allocation2 + $0x8] sm:$0xff] %vm470_vm1, %v463_v19  ;;  %v451_v22 = vpop.xlane.xlu1 %450 }
 0x112   : > { %v467_v23 = vadd.f32 %v451_v22, %v419_v20  ;;  %v446_v24 = vpop.xlane.xlu0 %445 }
 0x113   : > { %v466_v25 = vadd.f32 %v446_v24, %v418_v21  ;;  %482 = sbr.rel (%p834_p11) target bundleno = 290 (0x122), region = 66  ;;  %v485_v34 = vld [vmem:[#allocation2 + $0x10] sm:$0xff] (!%p834_p11) }
 0x114   : > { %476 = vst.msk [vmem:[#allocation2 + $0x28] sm:$0xff] %vm470_vm1, %v467_v23  ;;  %v483_v32 = vld [vmem:[#allocation2] sm:$0xff] (!%p834_p11)  ;;  %493 = vst.msk [vmem:[%s1518_s3 + $0x10] sm:$0xff] (!%p834_p11), %vm470_vm1, %v485_v34 }
 0x115   : > { %475 = vst.msk [vmem:[#allocation2 + $0x20] sm:$0xff] %vm470_vm1, %v466_v25  ;;  %v461_v28 = vpop.xlane.xlu1 %460  ;;  %491 = vst.msk [vmem:[%s1518_s3] sm:$0xff] (!%p834_p11), %vm470_vm1, %v483_v32 }
 0x116   : > { %v469_v29 = vadd.f32 %v461_v28, %v421_v26  ;;  %v456_v30 = vpop.xlane.xlu0 %455 }
 0x117   : > { %v468_v31 = vadd.f32 %v456_v30, %v420_v27  ;;  %v486_v35 = vld [vmem:[#allocation2 + $0x18] sm:$0xff] (!%p834_p11) }
 0x118   : > { %478 = vst.msk [vmem:[#allocation2 + $0x38] sm:$0xff] %vm470_vm1, %v469_v29  ;;  %v484_v33 = vld [vmem:[#allocation2 + $0x8] sm:$0xff] (!%p834_p11)  ;;  %494 = vst.msk [vmem:[%s1518_s3 + $0x18] sm:$0xff] (!%p834_p11), %vm470_vm1, %v486_v35 }
 0x119   : > { %477 = vst.msk [vmem:[#allocation2 + $0x30] sm:$0xff] %vm470_vm1, %v468_v31  ;;  %492 = vst.msk [vmem:[%s1518_s3 + $0x8] sm:$0xff] (!%p834_p11), %vm470_vm1, %v484_v33 }
 0x11b   : > { %v488_v37 = vld [vmem:[#allocation2 + $0x28] sm:$0xff] }
 0x11c   : > { %v487_v36 = vld [vmem:[#allocation2 + $0x20] sm:$0xff]  ;;  %496 = vst.msk [vmem:[%s1518_s3 + $0x28] sm:$0xff] %vm470_vm1, %v488_v37 }
 0x11d   : > { %495 = vst.msk [vmem:[%s1518_s3 + $0x20] sm:$0xff] %vm470_vm1, %v487_v36 }
 0x11f   : > { %v490_v39 = vld [vmem:[#allocation2 + $0x38] sm:$0xff] }
 0x120   : > { %v489_v38 = vld [vmem:[#allocation2 + $0x30] sm:$0xff]  ;;  %498 = vst.msk [vmem:[%s1518_s3 + $0x38] sm:$0xff] %vm470_vm1, %v490_v39 }
 0x121   : > { %497 = vst.msk [vmem:[%s1518_s3 + $0x30] sm:$0xff] %vm470_vm1, %v489_v38 }
 0x122 PF: > { %505 = sbr.rel (!%p1344_p9) target bundleno = 346 (0x15a), region = 70  ;;  %s836_s9 = sshll.u32 (%p1344_p9), %s1182_s14, 3 }
 0x123   : > { %s856_s11 = sshll.u32 (%p1344_p9), %s1182_s14, 6  ;;  %s507_s13 = ssub.s32 (%p1344_p9), 13, %s836_s9 }
 0x124   : > { %s1625_s0 = scalar_lea.vmem (%p1344_p9), %s1698_s2, %s856_s11   ;;  %p508_p12 = scmp.lt.s32.totalorder (%p1344_p9), %s507_s13, 8 }
 0x129   : > { %s1736_s13 = smov (!%p508_p12, %s507_s13), 8 }
 0x12a   : > { %s837_s6 = sshll.u32 %s1736_s13, 7 }
 0x12b   : > { %p840_p13 = scmp.eq.s32.totalorder %s837_s6, 0 }
 0x12c   : > { %s1631_s27 = sshrl.u32 (!%p840_p13), %s1736_s13, 3 }
 0x12d   : > { %516 = sbr.rel (%p840_p13) target bundleno = 346 (0x15a), region = 74  ;;  %p841_p9 = scmp.le.s32.totalorder (!%p840_p13), %s1631_s27, 0 }
 0x134   : > { %746 = sbr.rel (%p841_p9) target bundleno = 325 (0x145), region = 182  ;;  %s1710_s14 = smov (!%p841_p9), %s1625_s0 }
 0x135   : > { %s1711_s24 = smov (!%p841_p9), %s1518_s3  ;;  %s1640_s25 = smov (!%p841_p9), 0  }
 0x136   : > { %s1642_s26 = smov (!%p841_p9), 0  }
 0x13b LB: >> { %v592_v40 = vld [vmem:[%s1234_s24] sm:$0xff]  ;;  %v594_v41 = vld [vmem:[%s1234_s24 + $0x8] sm:$0xff]  ;;  %v596_v42 = vld [vmem:[%s1234_s24 + $0x10] sm:$0xff]  ;;  %s608_s4 = sadd.s32 1, %s1238_s25  ;;  %s586_s26 = sadd.s32 1, %s1242_s26   ;;  %s1242_s26 = sphi %s1642_s26, %s586_s26   ;;  %s1238_s25 = sphi %s1640_s25, %s1712_s25   ;;  %s1234_s24 = sphi %s1711_s24, %s613_s24   ;;  %s1230_s14 = sphi %s1710_s14, %s614_s14  }
 0x13c   : >> { %593 = vst [vmem:[%s1230_s14] sm:$0xff] %v592_v40  ;;  %595 = vst [vmem:[%s1230_s14 + $0x8] sm:$0xff] %v594_v41  ;;  %v598_v43 = vld [vmem:[%s1234_s24 + $0x18] sm:$0xff]  ;;  %v600_v44 = vld [vmem:[%s1234_s24 + $0x20] sm:$0xff]  ;;  %p609_p0 = scmp.ge.s32.totalorder %s608_s4, %s1631_s27  ;;  %p585_p1 = scmp.ge.s32.totalorder %s586_s26, %s1631_s27 }
 0x13d   : >> { %597 = vst [vmem:[%s1230_s14 + $0x10] sm:$0xff] %v596_v42  ;;  %v602_v45 = vld [vmem:[%s1234_s24 + $0x28] sm:$0xff]  ;;  %599 = vst [vmem:[%s1230_s14 + $0x18] sm:$0xff] %v598_v43  ;;  %v604_v46 = vld [vmem:[%s1234_s24 + $0x30] sm:$0xff] }
 0x13e   : >> { %601 = vst [vmem:[%s1230_s14 + $0x20] sm:$0xff] %v600_v44  ;;  %603 = vst [vmem:[%s1230_s14 + $0x28] sm:$0xff] %v602_v45  ;;  %v606_v47 = vld [vmem:[%s1234_s24 + $0x38] sm:$0xff]  ;;  %s1738_s4 = smov (%p609_p0, %s608_s4), 0  ;;  %588 = sbr.rel (!%p585_p1) target bundleno = 315 (0x13b), region = 188 }
 0x13f   : >> { %605 = vst [vmem:[%s1230_s14 + $0x30] sm:$0xff] %v604_v46  ;;  %607 = vst [vmem:[%s1230_s14 + $0x38] sm:$0xff] %v606_v47  ;;  %s842_s21 = sshll.u32 %s1738_s4, 6  ;;  %s1712_s25 = smov %s1738_s4 }
 0x140   : >> { %s613_s24 = scalar_lea.vmem %s1518_s3, %s842_s21 [#allocation4]   ;;  %s614_s14 = scalar_lea.vmem %s1625_s0, %s842_s21  }
 0x145 PF: > { %s1661_s8 = sand.u32 7, %s1736_s13   ;;  %s857_s22 = sshll.u32 %s1631_s27, 6 }
 0x146   : > { %s619_s20 = scalar_lea.vmem %s1518_s3, %s857_s22 [#allocation4]   ;;  %s621_s23 = scalar_lea.vmem %s1625_s0, %s857_s22  }
 0x147   : > { %p847_p2 = scmp.le.s32.totalorder %s1661_s8, 0 }
 0x148   : > { %s1244_s30 = smov (!%p847_p2), %s621_s23   ;;  %s1248_s9 = smov (!%p847_p2), %s619_s20  }
 0x149   : > { %760 = sbr.rel (%p847_p2) target bundleno = 346 (0x15a), region = 193  ;;  %s1252_s11 = smov (!%p847_p2), 0  }
 0x14a   : > { %s1256_s5 = smov (!%p847_p2), 0  }
 0x150 LB: >> { %v631_v48 = vld [vmem:[%s1250_s9] sm:$0xff]  ;;  %s633_s13 = sadd.s32 1, %s1254_s11  ;;  %s625_s5 = sadd.s32 1, %s1258_s5   ;;  %s1258_s5 = sphi %s1256_s5, %s625_s5   ;;  %s1254_s11 = sphi %s1252_s11, %s1253_s11   ;;  %s1250_s9 = sphi %s1248_s9, %s638_s9   ;;  %s1246_s30 = sphi %s1244_s30, %s639_s30  }
 0x151   : >> { %632 = vst [vmem:[%s1246_s30] sm:$0xff] %v631_v48  ;;  %p634_p3 = scmp.ge.s32.totalorder %s633_s13, %s1661_s8  ;;  %p624_p4 = scmp.ge.s32.totalorder %s625_s5, %s1661_s8 }
 0x153   : >> { %s1740_s13 = smov (%p634_p3, %s633_s13), 0  ;;  %627 = sbr.rel (!%p624_p4) target bundleno = 336 (0x150), region = 199 }
 0x154   : >> { %s848_s3 = sshll.u32 %s1740_s13, 3  ;;  %s1253_s11 = smov %s1740_s13  }
 0x155   : >> { %s638_s9 = scalar_lea.vmem %s619_s20, %s848_s3 [#allocation4]   ;;  %s639_s30 = scalar_lea.vmem %s621_s23, %s848_s3  }
 0x15a PF: > { %s12_s17 = sadd.s32 1, %s1194_s17   ;;  %s1713_s9 = smov %s1166_s10 }
 0x15b   : > { %p9_p5 = scmp.ge.s32.totalorder %s12_s17, 10   ;;  %s1714_s10 = smov %s1349_s28 }
 0x15c   : > { %s1715_s11 = smov %s1174_s12  ;;  %s1716_s12 = smov %s1352_s29 }
 0x15d   : > { %s1717_s13 = smov %s1186_s15  ;;  %s1718_s14 = smov %s1190_s16 }
 0x15e   : > { %s1719_s15 = smov %s1722_s18  ;;  %s1720_s16 = smov %s1726_s19 }
 0x15f   :  { %11 = sbr.rel (!%p9_p5) target bundleno = 7 (0x7), region = 210 }

// kernel: multiscale_discriminator_forward.32
= control target key start
LH: loop header
LB: loop body
LE: loop exit
PB: predicated region body
PF: predicated region fallthrough
CT: control target
= control target key end

     0   :  { %s1334_s12 = smov 0   ;;  %s1336_s13 = smov 0   ;;  %s1582_s0 = inlined_call_operand.vmem [shape: f32[162,48], index: 0, kind: input, shape index: {}]   ;;  %s1583_s1 = inlined_call_operand.vmem [shape: f32[48,128], index: 1, kind: input, shape index: {}]   ;;  %s1584_s2 = inlined_call_operand.vmem [shape: f32[1,128], index: 2, kind: input, shape index: {}]   ;;  %s1585_s3 = inlined_call_operand.vmem [shape: f32[162,128], index: 3, kind: output, shape index: {}]  }
   0x1   :  { %s1338_s14 = smov 0   ;;  %s1340_s15 = smov 0  }
   0x2   :  { %s1342_s16 = smov 0  }
   0x3 LB: > { %s983_s17 = sadd.s32 4294967295, %s1280_s16   ;;  %s32_s18 = sadd.s32 1, %s1276_s15  ;;  %s1280_s16 = sphi %s1342_s16, %s13_s16   ;;  %s1276_s15 = sphi %s1340_s15, %s1593_s15   ;;  %s1272_s14 = sphi %s1338_s14, %s1592_s14   ;;  %s1268_s13 = sphi %s1336_s13, %s1591_s13   ;;  %s1264_s12 = sphi %s1334_s12, %s1590_s12  }
   0x4   : > { %p34_p0 = scmp.ge.s32.totalorder %s32_s18, 2  ;;  %s123_s19 = sadd.s32 1, %s1268_s13 }
   0x5   : > { %p133_p1 = scmp.ne.s32.totalorder %s1268_s13, %s1264_s12  ;;  %p134_p2 = scmp.eq.s32.totalorder %s983_s17, 1 }
   0x6   : > { %s1595_s18 = smov (%p34_p0, %s32_s18), 0  ;;  %p989_p4 = scmp.ge.s32.totalorder %s1280_s16, 1 }
   0x7   : > { %p1366_p3 = por %p134_p2, %p133_p1  ;;  %s118_s21 = ssub.s32 %s1276_s15, %s1595_s18 }
   0x8   : > { %p196_p5 = scmp.lt.s32.totalorder %s1280_s16, 3  ;;  %p121_p6 = scmp.eq.s32.totalorder %s118_s21, 0 }
   0xa   : > { %p197_p7 = pnand %p989_p4, %p196_p5 }
   0xb   : > { %s1375_s22 = scalar_select %p121_p6, %s1268_s13, %s123_s19  }
   0xc   : > { %200 = sbr.rel (%p197_p7) target bundleno = 309 (0x135), region = 32  ;;  %v323_v0 = vld [vmem:[%s1583_s1] sm:$0xff] (!%p197_p7)  ;;  %v324_v1 = vld [vmem:[%s1583_s1 + $0x8] sm:$0xff] (!%p197_p7)  ;;  %v325_v2 = vld [vmem:[%s1583_s1 + $0x10] sm:$0xff] (!%p197_p7)  ;;  %s1387_s29 = sshll.u32 (!%p197_p7), %s1272_s14, 4  ;;  %vm329_vm0 = vcmask (!%p197_p7), 392192  }
   0xd   : > { %v1088_v3 = vpack.c.bf16 (!%p197_p7), %v324_v1, %v323_v0  ;;  %v326_v4 = vld [vmem:[%s1583_s1 + $0x18] sm:$0xff] (!%p197_p7)  ;;  %p242_p8 = scmp.lt.s32.totalorder (!%p197_p7), %s1387_s29, 20  ;;  %v327_v6 = vld [vmem:[%s1583_s1 + $0x20] sm:$0xff] (!%p197_p7)  ;;  %v328_v7 = vld [vmem:[%s1583_s1 + $0x28] sm:$0xff] (!%p197_p7)  ;;  %s234_s21 = sand.u32 (!%p197_p7), 1, %s1264_s12  }
   0xe   : > { %v1092_v5 = vpack.c.bf16 (!%p197_p7), %v326_v4, %v325_v2  ;;  %v1096_v8 = vpack.c.bf16 (!%p197_p7), %v328_v7, %v327_v6  ;;  %v1441_v25 = vld [vmem:[%s1584_s2] ss:$0 sm:$0xff] (!%p197_p7)  ;;  %s990_s25 = sshll.u32 (!%p197_p7), %s234_s21, 7 }
   0xf   : > { %1089 = vmatprep.subr.bf16.mxu0 (!%p197_p7), %v1088_v3  ;;  %1100 = vmatprep.subr.bf16.mxu1 (!%p197_p7), %v1088_v3  ;;  %s1447_s12 = scalar_lea.vmem (!%p197_p7), [#allocation3], %s990_s25  }
  0x10   : > { %1091 = vmatpush3.bf16.msra.mxu0 (!%p197_p7), %v1088_v3  ;;  %1103 = vmatpush3.bf16.msra.mxu1 (!%p197_p7), %v1088_v3 }
  0x11   : > { %1093 = vmatprep.subr.bf16.mxu0 (!%p197_p7), %v1092_v5  ;;  %1101 = vmatprep.subr.bf16.mxu1 (!%p197_p7), %v1092_v5 }
  0x13   : > { %s243_s9 = scalar_select %p242_p8, %s1387_s29, 20 }
  0x14   : > { %1095 = vmatpush3.bf16.msra.mxu0 %v1092_v5  ;;  %1104 = vmatpush3.bf16.msra.mxu1 %v1092_v5  ;;  %s669_s26 = ssub.s32 (%p1366_p3), 21, %s1387_s29  ;;  %s1027_s27 = sshll.u32 (%p1366_p3), %s1272_s14, 7 }
  0x15   : > { %s992_s10 = sshll.u32 %s243_s9, 3  ;;  %1097 = vmatprep.subr.bf16.mxu0 %v1096_v8  ;;  %1102 = vmatprep.subr.bf16.mxu1 %v1096_v8  ;;  %p670_p9 = scmp.lt.s32.totalorder (%p1366_p3), %s669_s26, 16 }
  0x16   : > { %s1403_s19 = scalar_lea.vmem %s1582_s0, %s992_s10  ;;  %s1484_s4 = scalar_lea.vmem (%p1366_p3), %s1585_s3, %s1027_s27  }
  0x17   : > { %v307_v9 = vld [vmem:[%s1403_s19] sm:$0xff]  ;;  %v308_v11 = vld [vmem:[%s1403_s19 + $0x8] sm:$0xff]  ;;  %v309_v13 = vld [vmem:[%s1403_s19 + $0x10] sm:$0xff] }
  0x18   : > { %v315_v10 = vld [vmem:[%s1403_s19 + $0x40] sm:$0xff]  ;;  %1064 = vmatprep.mubr.msk.f32.mxu0 %vm329_vm0, %v307_v9  ;;  %1099 = vmatpush3.bf16.msra.mxu0 %v1096_v8  ;;  %v316_v12 = vld [vmem:[%s1403_s19 + $0x48] sm:$0xff]  ;;  %v317_v14 = vld [vmem:[%s1403_s19 + $0x50] sm:$0xff] }
  0x19   : > { %1076 = vmatprep.mubr.msk.f32.mxu1 %vm329_vm0, %v315_v10  ;;  %1105 = vmatpush3.bf16.msra.mxu1 %v1096_v8  ;;  %v310_v15 = vld [vmem:[%s1403_s19 + $0x18] sm:$0xff]  ;;  %v311_v17 = vld [vmem:[%s1403_s19 + $0x20] sm:$0xff]  ;;  %v312_v19 = vld [vmem:[%s1403_s19 + $0x28] sm:$0xff] }
  0x1a   : > { %v318_v16 = vld [vmem:[%s1403_s19 + $0x58] sm:$0xff]  ;;  %v319_v18 = vld [vmem:[%s1403_s19 + $0x60] sm:$0xff]  ;;  %v320_v20 = vld [vmem:[%s1403_s19 + $0x68] sm:$0xff] }
  0x1b   : > { %1065 = vmatmul.mubr.msk.f32.vlgmr.msra.gmra.mrb[0].mxu0 %vm329_vm0, %v308_v11  ;;  %v313_v21 = vld [vmem:[%s1403_s19 + $0x30] sm:$0xff]  ;;  %v314_v23 = vld [vmem:[%s1403_s19 + $0x38] sm:$0xff] }
  0x1c   : > { %1077 = vmatmul.mubr.msk.f32.vlgmr.msra.gmra.mrb[0].mxu1 %vm329_vm0, %v316_v12  ;;  %1067 = vmatprep.mubr.msk.f32.mxu0 %vm329_vm0, %v309_v13  ;;  %v321_v22 = vld [vmem:[%s1403_s19 + $0x70] sm:$0xff]  ;;  %v322_v24 = vld [vmem:[%s1403_s19 + $0x78] sm:$0xff] }
  0x1d   : > { %1079 = vmatprep.mubr.msk.f32.mxu1 %vm329_vm0, %v317_v14 }
  0x1f   : > { %1068 = vmatmul.mubr.msk.f32.gmra.mrb[2].mxu0 %vm329_vm0, %v310_v15 }
  0x20   : > { %1080 = vmatmul.mubr.msk.f32.gmra.mrb[2].mxu1 %vm329_vm0, %v318_v16  ;;  %1070 = vmatprep.mubr.msk.f32.mxu0 %vm329_vm0, %v311_v17 }
  0x21   : > { %1082 = vmatprep.mubr.msk.f32.mxu1 %vm329_vm0, %v319_v18 }
  0x23   : > { %1071 = vmatmul.mubr.msk.f32.gmra.mrb[4].mxu0 %vm329_vm0, %v312_v19 }
  0x24   : > { %1083 = vmatmul.mubr.msk.f32.gmra.mrb[4].mxu1 %vm329_vm0, %v320_v20  ;;  %1073 = vmatprep.mubr.msk.f32.mxu0 %vm329_vm0, %v313_v21 }
  0x25   : > { %1085 = vmatprep.mubr.msk.f32.mxu1 %vm329_vm0, %v321_v22 }
  0x27   : > { %1074 = vmatmul.mubr.msk.f32.gmra.mrb[6].mxu0 %vm329_vm0, %v314_v23 }
  0x28   : > { %1086 = vmatmul.mubr.msk.f32.gmra.mrb[6].mxu1 %vm329_vm0, %v322_v24 }
  0xee   : > { %v1066_v26 = vpop.f32.mrb[0].mxu0 }
  0xef   : > { %v1078_v27 = vpop.f32.mrb[0].mxu1  ;;  %v582_v28 = vadd.f32 %v1066_v26, %v1441_v25  ;;  %v444_v30 = vpop.f32.mrb[1].mxu0 }
  0xf0   : > { %v590_v29 = vadd.f32 %v1078_v27, %v1441_v25  ;;  %v484_v31 = vpop.f32.mrb[1].mxu1  ;;  %v581_v32 = vadd.f32 %v1441_v25, %v444_v30 }
  0xf1   : > { %v589_v33 = vadd.f32 %v1441_v25, %v484_v31  ;;  %vm598_vm1 = vcmp.ge.f32.partialorder %v582_v28, 0.0  ;;  %v614_v34 = vmul.f32 0.2, %v582_v28 }
  0xf2   : > { %vm606_vm2 = vcmp.ge.f32.partialorder %v590_v29, 0.0  ;;  %v622_v35 = vmul.f32 0.2, %v590_v29  ;;  %vm597_vm3 = vcmp.ge.f32.partialorder %v581_v32, 0.0  ;;  %v613_v36 = vmul.f32 0.2, %v581_v32 }
  0xf3   : > { %vm605_vm4 = vcmp.ge.f32.partialorder %v589_v33, 0.0  ;;  %v621_v37 = vmul.f32 0.2, %v589_v33  ;;  %v630_v38 = vsel %vm598_vm1, %v582_v28, %v614_v34  ;;  %v1069_v40 = vpop.f32.mrb[2].mxu0  ;;  %v1081_v41 = vpop.f32.mrb[2].mxu1 }
  0xf4   : > { %v638_v39 = vsel %vm606_vm2, %v590_v29, %v622_v35  ;;  %646 = vst [vmem:[%s1447_s12 + $0x8] sm:$0xff] %v630_v38  ;;  %v629_v42 = vsel %vm597_vm3, %v581_v32, %v613_v36  ;;  %v584_v44 = vadd.f32 %v1069_v40, %v1441_v25  ;;  %v592_v45 = vadd.f32 %v1081_v41, %v1441_v25  ;;  %v454_v46 = vpop.f32.mrb[3].mxu0  ;;  %v494_v47 = vpop.f32.mrb[3].mxu1 }
  0xf5   : > { %654 = vst [vmem:[%s1447_s12 + $0x48] sm:$0xff] %v638_v39  ;;  %v637_v43 = vsel %vm605_vm4, %v589_v33, %v621_v37  ;;  %645 = vst [vmem:[%s1447_s12] sm:$0xff] %v629_v42  ;;  %v583_v48 = vadd.f32 %v1441_v25, %v454_v46  ;;  %v591_v49 = vadd.f32 %v1441_v25, %v494_v47 }
  0xf6   : > { %653 = vst [vmem:[%s1447_s12 + $0x40] sm:$0xff] %v637_v43  ;;  %vm600_vm5 = vcmp.ge.f32.partialorder %v584_v44, 0.0  ;;  %v616_v50 = vmul.f32 0.2, %v584_v44  ;;  %vm608_vm6 = vcmp.ge.f32.partialorder %v592_v45, 0.0  ;;  %v1072_v56 = vpop.f32.mrb[4].mxu0 }
  0xf7   : > { %v624_v51 = vmul.f32 0.2, %v592_v45  ;;  %vm599_vm7 = vcmp.ge.f32.partialorder %v583_v48, 0.0  ;;  %v615_v52 = vmul.f32 0.2, %v583_v48  ;;  %vm607_vm8 = vcmp.ge.f32.partialorder %v591_v49, 0.0 }
  0xf8   : > { %v623_v53 = vmul.f32 0.2, %v591_v49  ;;  %v632_v54 = vsel %vm600_vm5, %v584_v44, %v616_v50  ;;  %v1084_v57 = vpop.f32.mrb[4].mxu1  ;;  %v586_v60 = vadd.f32 %v1072_v56, %v1441_v25  ;;  %v464_v62 = vpop.f32.mrb[5].mxu0 }
  0xf9   : > { %v640_v55 = vsel %vm608_vm6, %v592_v45, %v624_v51  ;;  %648 = vst [vmem:[%s1447_s12 + $0x18] sm:$0xff] %v632_v54  ;;  %v631_v58 = vsel %vm599_vm7, %v583_v48, %v615_v52  ;;  %v594_v61 = vadd.f32 %v1084_v57, %v1441_v25  ;;  %v504_v63 = vpop.f32.mrb[5].mxu1  ;;  %v585_v0 = vadd.f32 %v1441_v25, %v464_v62 }
  0xfa   : > { %656 = vst [vmem:[%s1447_s12 + $0x58] sm:$0xff] %v640_v55  ;;  %v639_v59 = vsel %vm607_vm8, %v591_v49, %v623_v53  ;;  %647 = vst [vmem:[%s1447_s12 + $0x10] sm:$0xff] %v631_v58  ;;  %v593_v1 = vadd.f32 %v1441_v25, %v504_v63  ;;  %v1075_v2 = vpop.f32.mrb[6].mxu0  ;;  %vm602_vm9 = vcmp.ge.f32.partialorder %v586_v60, 0.0  ;;  %v618_v4 = vmul.f32 0.2, %v586_v60 }
  0xfb   : > { %655 = vst [vmem:[%s1447_s12 + $0x50] sm:$0xff] %v639_v59  ;;  %v1087_v3 = vpop.f32.mrb[6].mxu1  ;;  %vm610_vm10 = vcmp.ge.f32.partialorder %v594_v61, 0.0  ;;  %v626_v5 = vmul.f32 0.2, %v594_v61  ;;  %vm601_vm11 = vcmp.ge.f32.partialorder %v585_v0, 0.0  ;;  %v588_v10 = vadd.f32 %v1075_v2, %v1441_v25 }
  0xfc   : > { %v617_v6 = vmul.f32 0.2, %v585_v0  ;;  %vm609_vm12 = vcmp.ge.f32.partialorder %v593_v1, 0.0  ;;  %v625_v7 = vmul.f32 0.2, %v593_v1  ;;  %v634_v8 = vsel %vm602_vm9, %v586_v60, %v618_v4  ;;  %v474_v12 = vpop.f32.mrb[7].mxu0 }
  0xfd   : > { %v642_v9 = vsel %vm610_vm10, %v594_v61, %v626_v5  ;;  %v596_v11 = vadd.f32 %v1087_v3, %v1441_v25  ;;  %v514_v13 = vpop.f32.mrb[7].mxu1  ;;  %650 = vst [vmem:[%s1447_s12 + $0x28] sm:$0xff] %v634_v8  ;;  %v587_v16 = vadd.f32 %v1441_v25, %v474_v12  ;;  %vm604_vm13 = vcmp.ge.f32.partialorder %v588_v10, 0.0  ;;  %667 = sbr.rel (!%p1366_p3) target bundleno = 309 (0x135), region = 44 }
  0xfe   : > { %658 = vst [vmem:[%s1447_s12 + $0x68] sm:$0xff] %v642_v9  ;;  %v633_v14 = vsel %vm601_vm11, %v585_v0, %v617_v6  ;;  %v641_v15 = vsel %vm609_vm12, %v593_v1, %v625_v7  ;;  %v595_v17 = vadd.f32 %v1441_v25, %v514_v13  ;;  %v620_v18 = vmul.f32 0.2, %v588_v10 }
  0xff   : > { %649 = vst [vmem:[%s1447_s12 + $0x20] sm:$0xff] %v633_v14  ;;  %657 = vst [vmem:[%s1447_s12 + $0x60] sm:$0xff] %v641_v15  ;;  %vm612_vm14 = vcmp.ge.f32.partialorder %v596_v11, 0.0  ;;  %v628_v19 = vmul.f32 0.2, %v596_v11  ;;  %vm603_vm15 = vcmp.ge.f32.partialorder %v587_v16, 0.0 }
 0x100   : > { %v619_v20 = vmul.f32 0.2, %v587_v16  ;;  %vm611_vm0 = vcmp.ge.f32.partialorder %v595_v17, 0.0  ;;  %v627_v21 = vmul.f32 0.2, %v595_v17  ;;  %v636_v22 = vsel %vm604_vm13, %v588_v10, %v620_v18 }
 0x101   : > { %v644_v23 = vsel %vm612_vm14, %v596_v11, %v628_v19  ;;  %652 = vst [vmem:[%s1447_s12 + $0x38] sm:$0xff] %v636_v22 }
 0x102   : > { %660 = vst [vmem:[%s1447_s12 + $0x78] sm:$0xff] %v644_v23  ;;  %v635_v24 = vsel %vm603_vm15, %v587_v16, %v619_v20  ;;  %v643_v26 = vsel %vm611_vm0, %v595_v17, %v627_v21 }
 0x103   : > { %651 = vst [vmem:[%s1447_s12 + $0x30] sm:$0xff] %v635_v24  ;;  %659 = vst [vmem:[%s1447_s12 + $0x70] sm:$0xff] %v643_v26 }
 0x104   : > { %s1597_s26 = smov (!%p670_p9, %s669_s26), 16 }
 0x105   : > { %s1012_s5 = sshll.u32 %s1597_s26, 7 }
 0x106   : > { %p1015_p10 = scmp.eq.s32.totalorder %s1012_s5, 0 }
 0x107   : > { %s1490_s6 = sshrl.u32 (!%p1015_p10), %s1597_s26, 4 }
 0x108   : > { %679 = sbr.rel (%p1015_p10) target bundleno = 309 (0x135), region = 48  ;;  %p1016_p11 = scmp.le.s32.totalorder (!%p1015_p10), %s1490_s6, 0 }
 0x10f   : > { %910 = sbr.rel (%p1016_p11) target bundleno = 288 (0x120), region = 130  ;;  %s1587_s14 = smov (!%p1016_p11), %s1484_s4 }
 0x110   : > { %s1588_s20 = smov (!%p1016_p11), %s1447_s12  ;;  %s1499_s29 = smov (!%p1016_p11), 0  }
 0x111   : > { %s1501_s7 = smov (!%p1016_p11), 0  }
 0x116 LB: >> { %v771_v25 = vld [vmem:[%s1288_s20] sm:$0xff]  ;;  %v773_v27 = vld [vmem:[%s1288_s20 + $0x8] sm:$0xff]  ;;  %v775_v28 = vld [vmem:[%s1288_s20 + $0x10] sm:$0xff]  ;;  %s803_s8 = sadd.s32 1, %s1292_s29  ;;  %s765_s7 = sadd.s32 1, %s1296_s7   ;;  %s1296_s7 = sphi %s1501_s7, %s765_s7   ;;  %s1292_s29 = sphi %s1499_s29, %s1589_s29   ;;  %s1288_s20 = sphi %s1588_s20, %s808_s20   ;;  %s1284_s14 = sphi %s1587_s14, %s809_s14  }
 0x117   : >> { %772 = vst [vmem:[%s1284_s14] sm:$0xff] %v771_v25  ;;  %774 = vst [vmem:[%s1284_s14 + $0x8] sm:$0xff] %v773_v27  ;;  %v777_v29 = vld [vmem:[%s1288_s20 + $0x18] sm:$0xff]  ;;  %v779_v30 = vld [vmem:[%s1288_s20 + $0x20] sm:$0xff]  ;;  %p804_p12 = scmp.ge.s32.totalorder %s803_s8, %s1490_s6  ;;  %p764_p13 = scmp.ge.s32.totalorder %s765_s7, %s1490_s6 }
 0x118   : >> { %776 = vst [vmem:[%s1284_s14 + $0x10] sm:$0xff] %v775_v28  ;;  %v781_v31 = vld [vmem:[%s1288_s20 + $0x28] sm:$0xff]  ;;  %778 = vst [vmem:[%s1284_s14 + $0x18] sm:$0xff] %v777_v29  ;;  %v783_v32 = vld [vmem:[%s1288_s20 + $0x30] sm:$0xff] }
 0x119   : >> { %780 = vst [vmem:[%s1284_s14 + $0x20] sm:$0xff] %v779_v30  ;;  %782 = vst [vmem:[%s1284_s14 + $0x28] sm:$0xff] %v781_v31  ;;  %v785_v33 = vld [vmem:[%s1288_s20 + $0x38] sm:$0xff]  ;;  %v787_v34 = vld [vmem:[%s1288_s20 + $0x40] sm:$0xff]  ;;  %s1599_s8 = smov (%p804_p12, %s803_s8), 0  ;;  %767 = sbr.rel (!%p764_p13) target bundleno = 278 (0x116), region = 136 }
 0x11a   : >> { %784 = vst [vmem:[%s1284_s14 + $0x30] sm:$0xff] %v783_v32  ;;  %786 = vst [vmem:[%s1284_s14 + $0x38] sm:$0xff] %v785_v33  ;;  %v789_v35 = vld [vmem:[%s1288_s20 + $0x48] sm:$0xff]  ;;  %v791_v36 = vld [vmem:[%s1288_s20 + $0x50] sm:$0xff]  ;;  %s1017_s9 = sshll.u32 %s1599_s8, 7  ;;  %s1589_s29 = smov %s1599_s8 }
 0x11b   : >> { %788 = vst [vmem:[%s1284_s14 + $0x40] sm:$0xff] %v787_v34  ;;  %v793_v37 = vld [vmem:[%s1288_s20 + $0x58] sm:$0xff]  ;;  %790 = vst [vmem:[%s1284_s14 + $0x48] sm:$0xff] %v789_v35  ;;  %v795_v38 = vld [vmem:[%s1288_s20 + $0x60] sm:$0xff] }
 0x11c   : >> { %792 = vst [vmem:[%s1284_s14 + $0x50] sm:$0xff] %v791_v36  ;;  %794 = vst [vmem:[%s1284_s14 + $0x58] sm:$0xff] %v793_v37  ;;  %v797_v39 = vld [vmem:[%s1288_s20 + $0x68] sm:$0xff]  ;;  %v799_v40 = vld [vmem:[%s1288_s20 + $0x70] sm:$0xff] }
 0x11d   : >> { %796 = vst [vmem:[%s1284_s14 + $0x60] sm:$0xff] %v795_v38  ;;  %798 = vst [vmem:[%s1284_s14 + $0x68] sm:$0xff] %v797_v39  ;;  %v801_v41 = vld [vmem:[%s1288_s20 + $0x78] sm:$0xff]  ;;  %s808_s20 = scalar_lea.vmem %s1447_s12, %s1017_s9 [#allocation3]  }
 0x11e   : >> { %800 = vst [vmem:[%s1284_s14 + $0x70] sm:$0xff] %v799_v40  ;;  %802 = vst [vmem:[%s1284_s14 + $0x78] sm:$0xff] %v801_v41  ;;  %s809_s14 = scalar_lea.vmem %s1484_s4, %s1017_s9  }
 0x120 PF: > { %s1559_s10 = sand.u32 15, %s1597_s26   ;;  %s1028_s11 = sshll.u32 %s1490_s6, 7 }
 0x121   : > { %s814_s17 = scalar_lea.vmem %s1447_s12, %s1028_s11 [#allocation3]   ;;  %s816_s19 = scalar_lea.vmem %s1484_s4, %s1028_s11  }
 0x122   : > { %p1022_p0 = scmp.le.s32.totalorder %s1559_s10, 0 }
 0x123   : > { %s1298_s21 = smov (!%p1022_p0), %s816_s19   ;;  %s1302_s23 = smov (!%p1022_p0), %s814_s17  }
 0x124   : > { %924 = sbr.rel (%p1022_p0) target bundleno = 309 (0x135), region = 141  ;;  %s1306_s24 = smov (!%p1022_p0), 0  }
 0x125   : > { %s1310_s25 = smov (!%p1022_p0), 0  }
 0x12b LB: >> { %v826_v42 = vld [vmem:[%s1304_s23] sm:$0xff]  ;;  %s828_s26 = sadd.s32 1, %s1308_s24  ;;  %s820_s25 = sadd.s32 1, %s1312_s25   ;;  %s1312_s25 = sphi %s1310_s25, %s820_s25   ;;  %s1308_s24 = sphi %s1306_s24, %s1307_s24   ;;  %s1304_s23 = sphi %s1302_s23, %s833_s23   ;;  %s1300_s21 = sphi %s1298_s21, %s834_s21  }
 0x12c   : >> { %827 = vst [vmem:[%s1300_s21] sm:$0xff] %v826_v42  ;;  %p829_p1 = scmp.ge.s32.totalorder %s828_s26, %s1559_s10  ;;  %p819_p2 = scmp.ge.s32.totalorder %s820_s25, %s1559_s10 }
 0x12e   : >> { %s1601_s26 = smov (%p829_p1, %s828_s26), 0  ;;  %822 = sbr.rel (!%p819_p2) target bundleno = 299 (0x12b), region = 147 }
 0x12f   : >> { %s1023_s12 = sshll.u32 %s1601_s26, 3  ;;  %s1307_s24 = smov %s1601_s26  }
 0x130   : >> { %s833_s23 = scalar_lea.vmem %s814_s17, %s1023_s12 [#allocation3]   ;;  %s834_s21 = scalar_lea.vmem %s816_s19, %s1023_s12  }
 0x135 PF: > { %s13_s16 = sadd.s32 1, %s1280_s16   ;;  %s1590_s12 = smov %s1268_s13 }
 0x136   : > { %p10_p3 = scmp.ge.s32.totalorder %s13_s16, 4   ;;  %s1591_s13 = smov %s1375_s22 }
 0x137   : > { %s1592_s14 = smov %s1276_s15  ;;  %s1593_s15 = smov %s1595_s18 }
 0x138   :  { %12 = sbr.rel (!%p10_p3) target bundleno = 3 (0x3), region = 158 }

// kernel: multiscale_discriminator_forward.34
= control target key start
LH: loop header
LB: loop body
LE: loop exit
PB: predicated region body
PF: predicated region fallthrough
CT: control target
= control target key end

     0   :  { %s368_s6 = smov 0   ;;  %s370_s7 = smov 0   ;;  %s420_s0 = inlined_call_operand.vmem [shape: f32[2,25,32], index: 0, kind: input, shape index: {}]   ;;  %s421_s1 = inlined_call_operand.vmem [shape: f32[2,25,32], index: 1, kind: output, shape index: {}]  }
   0x1   :  { %s372_s8 = smov 0  }
   0x2 LB: > { %s23_s9 = sadd.s32 1, %s352_s7  ;;  %p299_p0 = scmp.ge.s32.totalorder %s356_s8, 1  ;;  %s356_s8 = sphi %s372_s8, %s11_s8   ;;  %s352_s7 = sphi %s370_s7, %s423_s7   ;;  %s348_s6 = sphi %s368_s6, %s422_s6  }
   0x3   : > { %p25_p1 = scmp.ge.s32.totalorder %s23_s9, 2  ;;  %p106_p2 = scmp.lt.s32.totalorder %s356_s8, 3 }
   0x5   : > { %s425_s9 = smov (%p25_p1, %s23_s9), 0  ;;  %p107_p3 = pnand %p299_p0, %p106_p2 }
   0x6   : > { %p132_p4 = scmp.lt.s32.totalorder (!%p107_p3), %s348_s6, 1  ;;  %vm152_vm0 = vcmask (!%p107_p3), 261120   ;;  %vm158_vm1 = vcmask (!%p107_p3), 253952  }
   0x7   : > { %110 = sbr.rel (%p107_p3) target bundleno = 85 (0x55), region = 24 }
   0xe   : > { %s427_s6 = smov (!%p132_p4, %s348_s6), 1 }
   0xf   : > { %s306_s10 = sshll.u32 %s427_s6, 5 }
  0x10   : > { %s139_s13 = scalar_lea.vmem %s420_s0, %s306_s10  ;;  %s147_s16 = scalar_lea.vmem %s421_s1, %s306_s10 }
  0x11   : > { %v148_v0 = vld [vmem:[%s139_s13] sm:$0xff]  ;;  %v149_v1 = vld [vmem:[%s139_s13 + $0x8] sm:$0xff]  ;;  %v150_v2 = vld [vmem:[%s139_s13 + $0x10] sm:$0xff] }
  0x12   : > { %v151_v3 = vld [vmem:[%s139_s13 + $0x18] sm:$0x1]  ;;  %v153_v4 = vsel %vm152_vm0, %v148_v0, 0.0  ;;  %v154_v5 = vsel %vm152_vm0, %v149_v1, 0.0  ;;  %v156_v6 = vsel %vm152_vm0, %v150_v2, 0.0 }
  0x13   : > { %v155_v7 = vadd.f32 %v154_v5, %v153_v4  ;;  %v159_v8 = vsel %vm158_vm1, %v151_v3, 0.0 }
  0x15   : > { %v157_v9 = vadd.f32 %v156_v6, %v155_v7 }
  0x17   : > { %v160_v10 = vadd.f32 %v159_v8, %v157_v9 }
  0x19   : > { %v161_v11 = vrot.slane %v160_v10, 4 }
  0x1b   : > { %v162_v12 = vadd.f32 %v161_v11, %v160_v10 }
  0x1d   : > { %v163_v13 = vrot.slane %v162_v12, 2 }
  0x1f   : > { %v164_v14 = vadd.f32 %v163_v13, %v162_v12 }
  0x21   : > { %v165_v15 = vrot.slane %v164_v14, 1 }
  0x23   : > { %v166_v16 = vadd.f32 %v165_v15, %v164_v14 }
  0x25   : > { %v167_v17 = vmul.f32 0.04, %v166_v16 }
  0x27   : > { %v168_v18 = vsub.f32 %v148_v0, %v167_v17  ;;  %v169_v19 = vsub.f32 %v149_v1, %v167_v17  ;;  %v170_v20 = vsub.f32 %v150_v2, %v167_v17  ;;  %v171_v21 = vsub.f32 %v151_v3, %v167_v17 }
  0x29   : > { %v172_v22 = vmul.f32 %v168_v18, %v168_v18  ;;  %v173_v23 = vmul.f32 %v169_v19, %v169_v19  ;;  %v174_v24 = vmul.f32 %v170_v20, %v170_v20  ;;  %v175_v25 = vmul.f32 %v171_v21, %v171_v21 }
  0x2b   : > { %v176_v26 = vsel %vm152_vm0, %v172_v22, 0.0  ;;  %v177_v27 = vsel %vm152_vm0, %v173_v23, 0.0  ;;  %v179_v28 = vsel %vm152_vm0, %v174_v24, 0.0  ;;  %v181_v30 = vsel %vm158_vm1, %v175_v25, 0.0 }
  0x2c   : > { %v178_v29 = vadd.f32 %v177_v27, %v176_v26 }
  0x2e   : > { %v180_v31 = vadd.f32 %v179_v28, %v178_v29 }
  0x30   : > { %v182_v32 = vadd.f32 %v181_v30, %v180_v31 }
  0x32   : > { %v183_v33 = vrot.slane %v182_v32, 4 }
  0x34   : > { %v184_v34 = vadd.f32 %v183_v33, %v182_v32 }
  0x36   : > { %v185_v35 = vrot.slane %v184_v34, 2 }
  0x38   : > { %v186_v36 = vadd.f32 %v185_v35, %v184_v34 }
  0x3a   : > { %v187_v37 = vrot.slane %v186_v36, 1 }
  0x3c   : > { %v188_v38 = vadd.f32 %v187_v37, %v186_v36 }
  0x3e   : > { %v189_v39 = vmul.f32 0.04, %v188_v38 }
  0x40   : > { %v190_v40 = vadd.f32 1e-05, %v189_v39 }
  0x42   : > { %332 = vrsqrt.f32 %v190_v40 }
  0x4c   : > { %v333_v41 = vpop.eup %332 }
  0x4d   : > { %v192_v42 = vmul.f32 %v333_v41, %v168_v18  ;;  %v193_v43 = vmul.f32 %v333_v41, %v169_v19  ;;  %v194_v44 = vmul.f32 %v333_v41, %v170_v20  ;;  %v195_v45 = vmul.f32 %v333_v41, %v171_v21 }
  0x4f   : > { %vm196_vm2 = vcmp.ge.f32.partialorder %v192_v42, 0.0  ;;  %v200_v46 = vmul.f32 0.2, %v192_v42  ;;  %vm197_vm3 = vcmp.ge.f32.partialorder %v193_v43, 0.0  ;;  %v201_v47 = vmul.f32 0.2, %v193_v43 }
  0x50   : > { %vm198_vm4 = vcmp.ge.f32.partialorder %v194_v44, 0.0  ;;  %v202_v48 = vmul.f32 0.2, %v194_v44  ;;  %vm199_vm5 = vcmp.ge.f32.partialorder %v195_v45, 0.0  ;;  %v203_v49 = vmul.f32 0.2, %v195_v45 }
  0x51   : > { %v204_v50 = vsel %vm196_vm2, %v192_v42, %v200_v46  ;;  %v205_v51 = vsel %vm197_vm3, %v193_v43, %v201_v47 }
  0x52   : > { %208 = vst.msk [vmem:[%s147_s16] sm:$0xff] %vm152_vm0, %v204_v50  ;;  %209 = vst.msk [vmem:[%s147_s16 + $0x8] sm:$0xff] %vm152_vm0, %v205_v51  ;;  %v206_v52 = vsel %vm198_vm4, %v194_v44, %v202_v48  ;;  %v207_v53 = vsel %vm199_vm5, %v195_v45, %v203_v49 }
  0x53   : > { %210 = vst.msk [vmem:[%s147_s16 + $0x10] sm:$0xff] %vm152_vm0, %v206_v52 }
  0x54   : > { %211 = vst.msk [vmem:[%s147_s16 + $0x18] sm:$0x1] %vm158_vm1, %v207_v53 }
  0x55 PF: > { %s11_s8 = sadd.s32 1, %s356_s8   ;;  %s422_s6 = smov %s352_s7 }
  0x56   : > { %p8_p5 = scmp.ge.s32.totalorder %s11_s8, 4   ;;  %s423_s7 = smov %s425_s9 }
  0x58   :  { %10 = sbr.rel (!%p8_p5) target bundleno = 2 (0x2), region = 54 }

// kernel: multiscale_discriminator_forward.33
= control target key start
LH: loop header
LB: loop body
LE: loop exit
PB: predicated region body
PF: predicated region fallthrough
CT: control target
= control target key end

     0   :  { %s1081_s12 = smov 0   ;;  %s1083_s13 = smov 0   ;;  %s1309_s0 = inlined_call_operand.vmem [shape: f32[50,256], index: 0, kind: input, shape index: {}]   ;;  %s1310_s1 = inlined_call_operand.vmem [shape: f32[256,128], index: 1, kind: input, shape index: {}]   ;;  %s1311_s2 = inlined_call_operand.vmem [shape: f32[1,128], index: 2, kind: input, shape index: {}]   ;;  %s1312_s3 = inlined_call_operand.vmem [shape: f32[50,128], index: 3, kind: output, shape index: {}]  }
   0x1   :  { %s1085_s14 = smov 0   ;;  %s1087_s15 = smov 0  }
   0x2   :  { %s1089_s16 = smov 0  }
   0x3 LB: > { %s728_s17 = sadd.s32 4294967295, %s1027_s16   ;;  %s32_s18 = sadd.s32 1, %s1023_s15  ;;  %s1027_s16 = sphi %s1089_s16, %s13_s16   ;;  %s1023_s15 = sphi %s1087_s15, %s1320_s15   ;;  %s1019_s14 = sphi %s1085_s14, %s1319_s14   ;;  %s1015_s13 = sphi %s1083_s13, %s1318_s13   ;;  %s1011_s12 = sphi %s1081_s12, %s1317_s12  }
   0x4   : > { %p34_p0 = scmp.ge.s32.totalorder %s32_s18, 2  ;;  %s123_s19 = sadd.s32 1, %s1015_s13 }
   0x5   : > { %p133_p1 = scmp.ne.s32.totalorder %s1015_s13, %s1011_s12  ;;  %p134_p2 = scmp.eq.s32.totalorder %s728_s17, 1 }
   0x6   : > { %s1322_s18 = smov (%p34_p0, %s32_s18), 0  ;;  %p734_p4 = scmp.ge.s32.totalorder %s1027_s16, 1 }
   0x7   : > { %p1113_p3 = por %p134_p2, %p133_p1  ;;  %s118_s21 = ssub.s32 %s1023_s15, %s1322_s18 }
   0x8   : > { %p201_p5 = scmp.lt.s32.totalorder %s1027_s16, 3  ;;  %p121_p6 = scmp.eq.s32.totalorder %s118_s21, 0 }
   0xa   : > { %p202_p7 = pnand %p734_p4, %p201_p5 }
   0xb   : > { %s1122_s22 = scalar_select %p121_p6, %s1015_s13, %s123_s19  }
   0xc   : > { %205 = sbr.rel (%p202_p7) target bundleno = 319 (0x13f), region = 32  ;;  %v320_v0 = vld [vmem:[%s1310_s1 + $0x80] sm:$0xff] (!%p202_p7)  ;;  %v321_v1 = vld [vmem:[%s1310_s1 + $0x88] sm:$0xff] (!%p202_p7)  ;;  %s1134_s29 = sshll.u32 (!%p202_p7), %s1019_s14, 2  ;;  %v322_v5 = vld [vmem:[%s1310_s1 + $0x90] sm:$0xff] (!%p202_p7) }
   0xd   : > { %v304_v2 = vld [vmem:[%s1310_s1] sm:$0xff] (!%p202_p7)  ;;  %v805_v3 = vpack.c.bf16 (!%p202_p7), %v321_v1, %v320_v0  ;;  %v305_v4 = vld [vmem:[%s1310_s1 + $0x8] sm:$0xff] (!%p202_p7)  ;;  %v323_v6 = vld [vmem:[%s1310_s1 + $0x98] sm:$0xff] (!%p202_p7)  ;;  %p252_p8 = scmp.lt.s32.totalorder (!%p202_p7), %s1134_s29, 6  ;;  %s242_s21 = sand.u32 (!%p202_p7), 1, %s1011_s12  }
   0xe   : > { %v807_v7 = vpack.c.bf16 (!%p202_p7), %v305_v4, %v304_v2  ;;  %v809_v8 = vpack.c.bf16 (!%p202_p7), %v323_v6, %v322_v5  ;;  %v306_v9 = vld [vmem:[%s1310_s1 + $0x10] sm:$0xff] (!%p202_p7)  ;;  %v307_v10 = vld [vmem:[%s1310_s1 + $0x18] sm:$0xff] (!%p202_p7)  ;;  %v324_v11 = vld [vmem:[%s1310_s1 + $0xa0] sm:$0xff] (!%p202_p7)  ;;  %s735_s23 = sshll.u32 (!%p202_p7), %s242_s21, 5 }
   0xf   : > { %806 = vmatprep.subr.bf16.mxu0 (!%p202_p7), %v805_v3  ;;  %837 = vmatprep.subr.bf16.mxu1 (!%p202_p7), %v805_v3  ;;  %v325_v12 = vld [vmem:[%s1310_s1 + $0xa8] sm:$0xff] (!%p202_p7)  ;;  %v811_v13 = vpack.c.bf16 (!%p202_p7), %v307_v10, %v306_v9  ;;  %v308_v15 = vld [vmem:[%s1310_s1 + $0x20] sm:$0xff] (!%p202_p7)  ;;  %v326_v17 = vld [vmem:[%s1310_s1 + $0xb0] sm:$0xff] (!%p202_p7) }
  0x10   : > { %808 = vmatpush3.bf16.msra.mxu0 (!%p202_p7), %v807_v7  ;;  %845 = vmatpush3.bf16.msra.mxu1 (!%p202_p7), %v807_v7  ;;  %v813_v14 = vpack.c.bf16 (!%p202_p7), %v325_v12, %v324_v11  ;;  %v309_v16 = vld [vmem:[%s1310_s1 + $0x28] sm:$0xff] (!%p202_p7)  ;;  %v327_v18 = vld [vmem:[%s1310_s1 + $0xb8] sm:$0xff] (!%p202_p7)  ;;  %v310_v21 = vld [vmem:[%s1310_s1 + $0x30] sm:$0xff] (!%p202_p7) }
  0x11   : > { %810 = vmatprep.subr.bf16.mxu0 (!%p202_p7), %v809_v8  ;;  %838 = vmatprep.subr.bf16.mxu1 (!%p202_p7), %v809_v8  ;;  %v815_v19 = vpack.c.bf16 (!%p202_p7), %v309_v16, %v308_v15  ;;  %v817_v20 = vpack.c.bf16 (!%p202_p7), %v327_v18, %v326_v17  ;;  %v311_v22 = vld [vmem:[%s1310_s1 + $0x38] sm:$0xff] (!%p202_p7)  ;;  %v328_v23 = vld [vmem:[%s1310_s1 + $0xc0] sm:$0xff] (!%p202_p7)  ;;  %v329_v24 = vld [vmem:[%s1310_s1 + $0xc8] sm:$0xff] (!%p202_p7) }
  0x12   : > { %v819_v27 = vpack.c.bf16 (!%p202_p7), %v311_v22, %v310_v21  ;;  %v821_v28 = vpack.c.bf16 (!%p202_p7), %v329_v24, %v328_v23  ;;  %v312_v29 = vld [vmem:[%s1310_s1 + $0x40] sm:$0xff] (!%p202_p7)  ;;  %v313_v30 = vld [vmem:[%s1310_s1 + $0x48] sm:$0xff] (!%p202_p7)  ;;  %v330_v31 = vld [vmem:[%s1310_s1 + $0xd0] sm:$0xff] (!%p202_p7) }
  0x13   : > { %s253_s25 = scalar_select %p252_p8, %s1134_s29, 6  ;;  %v331_v32 = vld [vmem:[%s1310_s1 + $0xd8] sm:$0xff]  ;;  %v823_v33 = vpack.c.bf16 %v313_v30, %v312_v29  ;;  %v314_v35 = vld [vmem:[%s1310_s1 + $0x50] sm:$0xff]  ;;  %v332_v37 = vld [vmem:[%s1310_s1 + $0xe0] sm:$0xff] }
  0x14   : > { %812 = vmatpush3.bf16.msra.mxu0 %v811_v13  ;;  %846 = vmatpush3.bf16.msra.mxu1 %v811_v13  ;;  %v825_v34 = vpack.c.bf16 %v331_v32, %v330_v31  ;;  %v315_v36 = vld [vmem:[%s1310_s1 + $0x58] sm:$0xff]  ;;  %v333_v38 = vld [vmem:[%s1310_s1 + $0xe8] sm:$0xff]  ;;  %v316_v41 = vld [vmem:[%s1310_s1 + $0x60] sm:$0xff]  ;;  %s459_s12 = ssub.s32 (%p1113_p3), 7, %s1134_s29  ;;  %s758_s26 = sshll.u32 (%p1113_p3), %s1019_s14, 5 }
  0x15   : > { %s757_s4 = sshll.u32 %s253_s25, 4  ;;  %814 = vmatprep.subr.bf16.mxu0 %v813_v14  ;;  %839 = vmatprep.subr.bf16.mxu1 %v813_v14  ;;  %v827_v39 = vpack.c.bf16 %v315_v36, %v314_v35  ;;  %v829_v40 = vpack.c.bf16 %v333_v38, %v332_v37  ;;  %v317_v42 = vld [vmem:[%s1310_s1 + $0x68] sm:$0xff]  ;;  %v334_v43 = vld [vmem:[%s1310_s1 + $0xf0] sm:$0xff]  ;;  %v335_v44 = vld [vmem:[%s1310_s1 + $0xf8] sm:$0xff]  ;;  %p460_p9 = scmp.lt.s32.totalorder (%p1113_p3), %s459_s12, 4 }
  0x16   : > { %s1174_s11 = scalar_lea.vmem %s1309_s0, %s757_s4  ;;  %v831_v45 = vpack.c.bf16 %v317_v42, %v316_v41  ;;  %v833_v46 = vpack.c.bf16 %v335_v44, %v334_v43  ;;  %v318_v47 = vld [vmem:[%s1310_s1 + $0x70] sm:$0xff]  ;;  %v319_v48 = vld [vmem:[%s1310_s1 + $0x78] sm:$0xff]  ;;  %v739_v59 = vld [vmem:[%s1311_s2] ss:$0 sm:$0xff]  ;;  %s1255_s30 = scalar_lea.vmem (%p1113_p3), %s1312_s3, %s758_s26  }
  0x17   : > { %v297_v25 = vld [vmem:[%s1174_s11 + $0x8] sm:$0xff]  ;;  %v835_v49 = vpack.c.bf16 %v319_v48, %v318_v47  ;;  %v296_v50 = vld [vmem:[%s1174_s11] sm:$0xff]  ;;  %v299_v52 = vld [vmem:[%s1174_s11 + $0x18] sm:$0xff] }
  0x18   : > { %400 = vmatprep.mubr.f32.mxu0 %v297_v25  ;;  %v301_v26 = vld [vmem:[%s1174_s11 + $0x28] sm:$0xff]  ;;  %816 = vmatpush3.bf16.msra.mxu0 %v815_v19  ;;  %v300_v51 = vld [vmem:[%s1174_s11 + $0x20] sm:$0xff]  ;;  %v303_v53 = vld [vmem:[%s1174_s11 + $0x38] sm:$0xff] }
  0x19   : > { %847 = vmatpush3.bf16.msra.mxu1 %v815_v19  ;;  %818 = vmatprep.subr.bf16.mxu0 %v817_v20  ;;  %v298_v54 = vld [vmem:[%s1174_s11 + $0x10] sm:$0xff] }
  0x1a   : > { %840 = vmatprep.subr.bf16.mxu1 %v817_v20  ;;  %410 = vmatprep.mubr.f32.mxu1 %v301_v26  ;;  %v302_v55 = vld [vmem:[%s1174_s11 + $0x30] sm:$0xff]  ;;  %s1242_s11 = scalar_lea.vmem [#allocation3], %s735_s23  }
  0x1c   : > { %820 = vmatpush3.bf16.msra.mxu0 %v819_v27 }
  0x1d   : > { %848 = vmatpush3.bf16.msra.mxu1 %v819_v27  ;;  %822 = vmatprep.subr.bf16.mxu0 %v821_v28 }
  0x1e   : > { %841 = vmatprep.subr.bf16.mxu1 %v821_v28 }
  0x20   : > { %824 = vmatpush3.bf16.msra.mxu0 %v823_v33 }
  0x21   : > { %849 = vmatpush3.bf16.msra.mxu1 %v823_v33  ;;  %826 = vmatprep.subr.bf16.mxu0 %v825_v34 }
  0x22   : > { %842 = vmatprep.subr.bf16.mxu1 %v825_v34 }
  0x24   : > { %828 = vmatpush3.bf16.msra.mxu0 %v827_v39 }
  0x25   : > { %850 = vmatpush3.bf16.msra.mxu1 %v827_v39  ;;  %830 = vmatprep.subr.bf16.mxu0 %v829_v40 }
  0x26   : > { %843 = vmatprep.subr.bf16.mxu1 %v829_v40 }
  0x28   : > { %832 = vmatpush3.bf16.msra.mxu0 %v831_v45 }
  0x29   : > { %851 = vmatpush3.bf16.msra.mxu1 %v831_v45  ;;  %834 = vmatprep.subr.bf16.mxu0 %v833_v46 }
  0x2a   : > { %844 = vmatprep.subr.bf16.mxu1 %v833_v46 }
  0x2c   : > { %836 = vmatpush3.bf16.msra.mxu0 %v835_v49 }
  0x2d   : > { %852 = vmatpush3.bf16.msra.mxu1 %v835_v49 }
  0x2f   : > { %401 = vmatmul.mubr.f32.vlgmr.msra.gmra.mrb[0].mxu0 %v296_v50 }
  0x30   : > { %411 = vmatmul.mubr.f32.vlgmr.msra.gmra.mrb[0].mxu1 %v300_v51  ;;  %405 = vmatprep.mubr.f32.mxu0 %v299_v52 }
  0x31   : > { %415 = vmatprep.mubr.f32.mxu1 %v303_v53 }
  0x33   : > { %406 = vmatmul.mubr.f32.gmra.mrb[2].mxu0 %v298_v54 }
  0x34   : > { %416 = vmatmul.mubr.f32.gmra.mrb[2].mxu1 %v302_v55 }
 0x102   : > { %v793_v56 = vpop.f32.mrb[0].mxu0 }
 0x103   : > { %v799_v57 = vpop.f32.mrb[0].mxu1  ;;  %v794_v58 = vpop.f32.mrb[1].mxu0 }
 0x104   : > { %v800_v60 = vpop.f32.mrb[1].mxu1  ;;  %v795_v61 = vadd.f32 %v794_v58, %v793_v56 }
 0x105   : > { %v801_v62 = vadd.f32 %v800_v60, %v799_v57 }
 0x106   : > { %v443_v63 = vadd.f32 %v795_v61, %v739_v59  ;;  %v796_v1 = vpop.f32.mrb[2].mxu0 }
 0x107   : > { %v445_v0 = vadd.f32 %v801_v62, %v739_v59  ;;  %v802_v2 = vpop.f32.mrb[2].mxu1  ;;  %v797_v3 = vpop.f32.mrb[3].mxu0  ;;  %457 = sbr.rel (!%p1113_p3) target bundleno = 319 (0x13f), region = 44 }
 0x108   : > { %v803_v4 = vpop.f32.mrb[3].mxu1  ;;  %447 = vst [vmem:[%s1242_s11] sm:$0xff] %v443_v63  ;;  %v798_v5 = vadd.f32 %v797_v3, %v796_v1 }
 0x109   : > { %449 = vst [vmem:[%s1242_s11 + $0x10] sm:$0xff] %v445_v0  ;;  %v804_v6 = vadd.f32 %v803_v4, %v802_v2 }
 0x10a   : > { %v444_v7 = vadd.f32 %v798_v5, %v739_v59 }
 0x10b   : > { %v446_v8 = vadd.f32 %v804_v6, %v739_v59 }
 0x10c   : > { %448 = vst [vmem:[%s1242_s11 + $0x8] sm:$0xff] %v444_v7 }
 0x10d   : > { %450 = vst [vmem:[%s1242_s11 + $0x18] sm:$0xff] %v446_v8 }
 0x10e   : > { %s1324_s12 = smov (!%p460_p9, %s459_s12), 4 }
 0x10f   : > { %s742_s4 = sshll.u32 %s1324_s12, 7 }
 0x110   : > { %p745_p10 = scmp.eq.s32.totalorder %s742_s4, 0 }
 0x111   : > { %s1261_s5 = sshrl.u32 (!%p745_p10), %s1324_s12, 2 }
 0x112   : > { %469 = sbr.rel (%p745_p10) target bundleno = 319 (0x13f), region = 48  ;;  %p746_p11 = scmp.le.s32.totalorder (!%p745_p10), %s1261_s5, 0 }
 0x119   : > { %655 = sbr.rel (%p746_p11) target bundleno = 298 (0x12a), region = 130  ;;  %s1314_s14 = smov (!%p746_p11), %s1255_s30 }
 0x11a   : > { %s1315_s20 = smov (!%p746_p11), %s1242_s11  ;;  %s1270_s29 = smov (!%p746_p11), 0  }
 0x11b   : > { %s1041_s6 = smov (!%p746_p11), 0  }
 0x120 LB: >> { %v537_v9 = vld [vmem:[%s1035_s20] sm:$0xff]  ;;  %v539_v10 = vld [vmem:[%s1035_s20 + $0x8] sm:$0xff]  ;;  %v541_v11 = vld [vmem:[%s1035_s20 + $0x10] sm:$0xff]  ;;  %s545_s7 = sadd.s32 1, %s1039_s29  ;;  %s531_s6 = sadd.s32 1, %s1043_s6   ;;  %s1043_s6 = sphi %s1041_s6, %s531_s6   ;;  %s1039_s29 = sphi %s1270_s29, %s1316_s29   ;;  %s1035_s20 = sphi %s1315_s20, %s550_s20   ;;  %s1031_s14 = sphi %s1314_s14, %s551_s14  }
 0x121   : >> { %538 = vst [vmem:[%s1031_s14] sm:$0xff] %v537_v9  ;;  %540 = vst [vmem:[%s1031_s14 + $0x8] sm:$0xff] %v539_v10  ;;  %v543_v12 = vld [vmem:[%s1035_s20 + $0x18] sm:$0xff]  ;;  %p546_p12 = scmp.ge.s32.totalorder %s545_s7, %s1261_s5  ;;  %p530_p13 = scmp.ge.s32.totalorder %s531_s6, %s1261_s5 }
 0x122   : >> { %542 = vst [vmem:[%s1031_s14 + $0x10] sm:$0xff] %v541_v11  ;;  %544 = vst [vmem:[%s1031_s14 + $0x18] sm:$0xff] %v543_v12 }
 0x123   : >> { %s1326_s7 = smov (%p546_p12, %s545_s7), 0  ;;  %533 = sbr.rel (!%p530_p13) target bundleno = 288 (0x120), region = 136 }
 0x124   : >> { %s747_s8 = sshll.u32 %s1326_s7, 5  ;;  %s1316_s29 = smov %s1326_s7 }
 0x125   : >> { %s550_s20 = scalar_lea.vmem %s1242_s11, %s747_s8 [#allocation3]   ;;  %s551_s14 = scalar_lea.vmem %s1255_s30, %s747_s8  }
 0x12a PF: > { %s1286_s9 = sand.u32 3, %s1324_s12   ;;  %s759_s10 = sshll.u32 %s1261_s5, 5 }
 0x12b   : > { %s556_s17 = scalar_lea.vmem %s1242_s11, %s759_s10 [#allocation3]   ;;  %s558_s19 = scalar_lea.vmem %s1255_s30, %s759_s10  }
 0x12c   : > { %p752_p0 = scmp.le.s32.totalorder %s1286_s9, 0 }
 0x12d   : > { %s1045_s21 = smov (!%p752_p0), %s558_s19   ;;  %s1049_s23 = smov (!%p752_p0), %s556_s17  }
 0x12e   : > { %669 = sbr.rel (%p752_p0) target bundleno = 319 (0x13f), region = 141  ;;  %s1053_s24 = smov (!%p752_p0), 0  }
 0x12f   : > { %s1057_s25 = smov (!%p752_p0), 0  }
 0x135 LB: >> { %v568_v13 = vld [vmem:[%s1051_s23] sm:$0xff]  ;;  %s570_s12 = sadd.s32 1, %s1055_s24  ;;  %s562_s25 = sadd.s32 1, %s1059_s25   ;;  %s1059_s25 = sphi %s1057_s25, %s562_s25   ;;  %s1055_s24 = sphi %s1053_s24, %s1054_s24   ;;  %s1051_s23 = sphi %s1049_s23, %s575_s23   ;;  %s1047_s21 = sphi %s1045_s21, %s576_s21  }
 0x136   : >> { %569 = vst [vmem:[%s1047_s21] sm:$0xff] %v568_v13  ;;  %p571_p1 = scmp.ge.s32.totalorder %s570_s12, %s1286_s9  ;;  %p561_p2 = scmp.ge.s32.totalorder %s562_s25, %s1286_s9 }
 0x138   : >> { %s1328_s12 = smov (%p571_p1, %s570_s12), 0  ;;  %564 = sbr.rel (!%p561_p2) target bundleno = 309 (0x135), region = 147 }
 0x139   : >> { %s753_s11 = sshll.u32 %s1328_s12, 3  ;;  %s1054_s24 = smov %s1328_s12  }
 0x13a   : >> { %s575_s23 = scalar_lea.vmem %s556_s17, %s753_s11 [#allocation3]   ;;  %s576_s21 = scalar_lea.vmem %s558_s19, %s753_s11  }
 0x13f PF: > { %s13_s16 = sadd.s32 1, %s1027_s16   ;;  %s1317_s12 = smov %s1015_s13 }
 0x140   : > { %p10_p3 = scmp.ge.s32.totalorder %s13_s16, 4   ;;  %s1318_s13 = smov %s1122_s22 }
 0x141   : > { %s1319_s14 = smov %s1023_s15  ;;  %s1320_s15 = smov %s1322_s18 }
 0x142   :  { %12 = sbr.rel (!%p10_p3) target bundleno = 3 (0x3), region = 158 }

// kernel: multiscale_discriminator_forward.35
= control target key start
LH: loop header
LB: loop body
LE: loop exit
PB: predicated region body
PF: predicated region fallthrough
CT: control target
= control target key end

     0   :  { %s1204_s12 = smov 0   ;;  %s1206_s13 = smov 0   ;;  %s1516_s0 = inlined_call_operand.vmem [shape: f32[18,512], index: 0, kind: input, shape index: {}]   ;;  %s1517_s1 = inlined_call_operand.vmem [shape: f32[512,128], index: 1, kind: input, shape index: {}]   ;;  %s1518_s2 = inlined_call_operand.vmem [shape: f32[1,128], index: 2, kind: input, shape index: {}]   ;;  %s1519_s3 = inlined_call_operand.vmem [shape: f32[18,128], index: 3, kind: output, shape index: {}]  }
   0x1   :  { %s1208_s14 = smov 0   ;;  %s1210_s15 = smov 0  }
   0x2   :  { %s1212_s16 = smov 0  }
   0x3 LB: > { %s803_s17 = sadd.s32 4294967295, %s1150_s16   ;;  %s32_s18 = sadd.s32 1, %s1146_s15  ;;  %s1150_s16 = sphi %s1212_s16, %s13_s16   ;;  %s1146_s15 = sphi %s1210_s15, %s1524_s15   ;;  %s1142_s14 = sphi %s1208_s14, %s1523_s14   ;;  %s1138_s13 = sphi %s1206_s13, %s1522_s13   ;;  %s1134_s12 = sphi %s1204_s12, %s1521_s12  }
   0x4   : > { %p34_p0 = scmp.ge.s32.totalorder %s32_s18, 2  ;;  %s123_s19 = sadd.s32 1, %s1138_s13 }
   0x5   : > { %p133_p1 = scmp.ne.s32.totalorder %s1138_s13, %s1134_s12  ;;  %p134_p2 = scmp.eq.s32.totalorder %s803_s17, 1 }
   0x6   : > { %s1526_s18 = smov (%p34_p0, %s32_s18), 0  ;;  %p809_p4 = scmp.ge.s32.totalorder %s1150_s16, 1 }
   0x7   : > { %p1236_p3 = por %p134_p2, %p133_p1  ;;  %s118_s21 = ssub.s32 %s1146_s15, %s1526_s18 }
   0x8   : > { %p201_p5 = scmp.lt.s32.totalorder %s1150_s16, 3  ;;  %p121_p6 = scmp.eq.s32.totalorder %s118_s21, 0 }
   0xa   : > { %p202_p7 = pnand %p809_p4, %p201_p5 }
   0xb   : > { %s1245_s22 = scalar_select %p121_p6, %s1138_s13, %s123_s19  }
   0xc   : > { %205 = sbr.rel (%p202_p7) target bundleno = 322 (0x142), region = 32  ;;  %v316_v0 = vld [vmem:[%s1517_s1 + $0x80] sm:$0xff] (!%p202_p7)  ;;  %v317_v1 = vld [vmem:[%s1517_s1 + $0x88] sm:$0xff] (!%p202_p7)  ;;  %v318_v11 = vld [vmem:[%s1517_s1 + $0x90] sm:$0xff] (!%p202_p7)  ;;  %s1293_s7 = sshll.u32 (!%p202_p7), %s1142_s14, 1 }
   0xd   : > { %v348_v2 = vld [vmem:[%s1517_s1 + $0x180] sm:$0xff] (!%p202_p7)  ;;  %v912_v3 = vpack.c.bf16 (!%p202_p7), %v317_v1, %v316_v0  ;;  %v349_v4 = vld [vmem:[%s1517_s1 + $0x188] sm:$0xff] (!%p202_p7)  ;;  %v319_v13 = vld [vmem:[%s1517_s1 + $0x98] sm:$0xff] (!%p202_p7)  ;;  %p252_p8 = scmp.lt.s32.totalorder (!%p202_p7), %s1293_s7, 2  ;;  %s242_s30 = sand.u32 (!%p202_p7), 1, %s1134_s12  }
   0xe   : > { %v300_v5 = vld [vmem:[%s1517_s1] sm:$0xff] (!%p202_p7)  ;;  %v301_v6 = vld [vmem:[%s1517_s1 + $0x8] sm:$0xff] (!%p202_p7)  ;;  %v944_v7 = vpack.c.bf16 (!%p202_p7), %v349_v4, %v348_v2  ;;  %v350_v14 = vld [vmem:[%s1517_s1 + $0x190] sm:$0xff] (!%p202_p7)  ;;  %v916_v16 = vpack.c.bf16 (!%p202_p7), %v319_v13, %v318_v11  ;;  %s810_s4 = sshll.u32 (!%p202_p7), %s242_s30, 4 }
   0xf   : > { %v914_v8 = vpack.c.bf16 (!%p202_p7), %v301_v6, %v300_v5  ;;  %v332_v9 = vld [vmem:[%s1517_s1 + $0x100] sm:$0xff] (!%p202_p7)  ;;  %v333_v10 = vld [vmem:[%s1517_s1 + $0x108] sm:$0xff] (!%p202_p7)  ;;  %913 = vmatprep.subr.bf16.mxu0 (!%p202_p7), %v912_v3  ;;  %v351_v15 = vld [vmem:[%s1517_s1 + $0x198] sm:$0xff] (!%p202_p7) }
  0x10   : > { %v946_v12 = vpack.c.bf16 (!%p202_p7), %v333_v10, %v332_v9  ;;  %945 = vmatprep.subr.bf16.mxu1 (!%p202_p7), %v944_v7  ;;  %v948_v17 = vpack.c.bf16 (!%p202_p7), %v351_v15, %v350_v14  ;;  %v302_v18 = vld [vmem:[%s1517_s1 + $0x10] sm:$0xff] (!%p202_p7)  ;;  %v303_v19 = vld [vmem:[%s1517_s1 + $0x18] sm:$0xff] (!%p202_p7)  ;;  %v320_v23 = vld [vmem:[%s1517_s1 + $0xa0] sm:$0xff] (!%p202_p7) }
  0x11   : > { %915 = vmatpush3.bf16.msra.mxu0 (!%p202_p7), %v914_v8  ;;  %v334_v20 = vld [vmem:[%s1517_s1 + $0x110] sm:$0xff] (!%p202_p7)  ;;  %v918_v21 = vpack.c.bf16 (!%p202_p7), %v303_v19, %v302_v18  ;;  %v335_v22 = vld [vmem:[%s1517_s1 + $0x118] sm:$0xff] (!%p202_p7)  ;;  %v321_v24 = vld [vmem:[%s1517_s1 + $0xa8] sm:$0xff] (!%p202_p7) }
  0x12   : > { %947 = vmatpush3.bf16.msra.mxu1 (!%p202_p7), %v946_v12  ;;  %917 = vmatprep.subr.bf16.mxu0 (!%p202_p7), %v916_v16  ;;  %v950_v25 = vpack.c.bf16 (!%p202_p7), %v335_v22, %v334_v20  ;;  %v920_v26 = vpack.c.bf16 (!%p202_p7), %v321_v24, %v320_v23  ;;  %v352_v27 = vld [vmem:[%s1517_s1 + $0x1a0] sm:$0xff] (!%p202_p7)  ;;  %v353_v28 = vld [vmem:[%s1517_s1 + $0x1a8] sm:$0xff] (!%p202_p7)  ;;  %v322_v35 = vld [vmem:[%s1517_s1 + $0xb0] sm:$0xff] (!%p202_p7) }
  0x13   : > { %949 = vmatprep.subr.bf16.mxu1 %v948_v17  ;;  %v304_v29 = vld [vmem:[%s1517_s1 + $0x20] sm:$0xff]  ;;  %v952_v30 = vpack.c.bf16 %v353_v28, %v352_v27  ;;  %v305_v31 = vld [vmem:[%s1517_s1 + $0x28] sm:$0xff]  ;;  %v323_v36 = vld [vmem:[%s1517_s1 + $0xb8] sm:$0xff]  ;;  %s1362_s21 = scalar_select %p252_p8, %s1293_s7, 2 }
  0x14   : > { %v336_v32 = vld [vmem:[%s1517_s1 + $0x120] sm:$0xff]  ;;  %v337_v33 = vld [vmem:[%s1517_s1 + $0x128] sm:$0xff]  ;;  %v922_v34 = vpack.c.bf16 %v305_v31, %v304_v29  ;;  %v354_v37 = vld [vmem:[%s1517_s1 + $0x1b0] sm:$0xff]  ;;  %v924_v39 = vpack.c.bf16 %v323_v36, %v322_v35  ;;  %s542_s12 = ssub.s32 (%p1236_p3), 3, %s1293_s7  ;;  %s833_s8 = sshll.u32 (%p1236_p3), %s1142_s14, 4 }
  0x15   : > { %919 = vmatpush3.bf16.msra.mxu0 %v918_v21  ;;  %v954_v38 = vpack.c.bf16 %v337_v33, %v336_v32  ;;  %v355_v40 = vld [vmem:[%s1517_s1 + $0x1b8] sm:$0xff]  ;;  %v306_v41 = vld [vmem:[%s1517_s1 + $0x30] sm:$0xff]  ;;  %v324_v46 = vld [vmem:[%s1517_s1 + $0xc0] sm:$0xff]  ;;  %s832_s19 = sshll.u32 %s1362_s21, 5  ;;  %p543_p9 = scmp.lt.s32.totalorder (%p1236_p3), %s542_s12, 2 }
  0x16   : > { %951 = vmatpush3.bf16.msra.mxu1 %v950_v25  ;;  %921 = vmatprep.subr.bf16.mxu0 %v920_v26  ;;  %v307_v42 = vld [vmem:[%s1517_s1 + $0x38] sm:$0xff]  ;;  %v956_v43 = vpack.c.bf16 %v355_v40, %v354_v37  ;;  %v338_v44 = vld [vmem:[%s1517_s1 + $0x130] sm:$0xff]  ;;  %v325_v47 = vld [vmem:[%s1517_s1 + $0xc8] sm:$0xff]  ;;  %s1410_s10 = scalar_lea.vmem %s1516_s0, %s832_s19  ;;  %s1477_s17 = scalar_lea.vmem (%p1236_p3), %s1519_s3, %s833_s8  }
  0x17   : > { %953 = vmatprep.subr.bf16.mxu1 %v952_v30  ;;  %v339_v45 = vld [vmem:[%s1517_s1 + $0x138] sm:$0xff]  ;;  %v356_v48 = vld [vmem:[%s1517_s1 + $0x1c0] sm:$0xff]  ;;  %v357_v49 = vld [vmem:[%s1517_s1 + $0x1c8] sm:$0xff]  ;;  %v926_v50 = vpack.c.bf16 %v307_v42, %v306_v41  ;;  %v928_v52 = vpack.c.bf16 %v325_v47, %v324_v46 }
  0x18   : > { %v958_v51 = vpack.c.bf16 %v339_v45, %v338_v44  ;;  %v308_v53 = vld [vmem:[%s1517_s1 + $0x40] sm:$0xff]  ;;  %v309_v54 = vld [vmem:[%s1517_s1 + $0x48] sm:$0xff]  ;;  %v960_v56 = vpack.c.bf16 %v357_v49, %v356_v48  ;;  %v326_v58 = vld [vmem:[%s1517_s1 + $0xd0] sm:$0xff] }
  0x19   : > { %923 = vmatpush3.bf16.msra.mxu0 %v922_v34  ;;  %v340_v55 = vld [vmem:[%s1517_s1 + $0x140] sm:$0xff]  ;;  %v341_v57 = vld [vmem:[%s1517_s1 + $0x148] sm:$0xff]  ;;  %v327_v59 = vld [vmem:[%s1517_s1 + $0xd8] sm:$0xff]  ;;  %v930_v62 = vpack.c.bf16 %v309_v54, %v308_v53 }
  0x1a   : > { %955 = vmatpush3.bf16.msra.mxu1 %v954_v38  ;;  %925 = vmatprep.subr.bf16.mxu0 %v924_v39  ;;  %v358_v60 = vld [vmem:[%s1517_s1 + $0x1d0] sm:$0xff]  ;;  %v359_v61 = vld [vmem:[%s1517_s1 + $0x1d8] sm:$0xff]  ;;  %v962_v63 = vpack.c.bf16 %v341_v57, %v340_v55  ;;  %v932_v0 = vpack.c.bf16 %v327_v59, %v326_v58  ;;  %v328_v6 = vld [vmem:[%s1517_s1 + $0xe0] sm:$0xff] }
  0x1b   : > { %957 = vmatprep.subr.bf16.mxu1 %v956_v43  ;;  %v310_v1 = vld [vmem:[%s1517_s1 + $0x50] sm:$0xff]  ;;  %v311_v2 = vld [vmem:[%s1517_s1 + $0x58] sm:$0xff]  ;;  %v964_v4 = vpack.c.bf16 %v359_v61, %v358_v60  ;;  %v329_v7 = vld [vmem:[%s1517_s1 + $0xe8] sm:$0xff] }
  0x1c   : > { %v342_v3 = vld [vmem:[%s1517_s1 + $0x150] sm:$0xff]  ;;  %v343_v5 = vld [vmem:[%s1517_s1 + $0x158] sm:$0xff]  ;;  %v360_v8 = vld [vmem:[%s1517_s1 + $0x1e0] sm:$0xff]  ;;  %v934_v10 = vpack.c.bf16 %v311_v2, %v310_v1  ;;  %v936_v14 = vpack.c.bf16 %v329_v7, %v328_v6 }
  0x1d   : > { %927 = vmatpush3.bf16.msra.mxu0 %v926_v50  ;;  %v361_v9 = vld [vmem:[%s1517_s1 + $0x1e8] sm:$0xff]  ;;  %v312_v11 = vld [vmem:[%s1517_s1 + $0x60] sm:$0xff]  ;;  %v966_v13 = vpack.c.bf16 %v343_v5, %v342_v3  ;;  %v295_v17 = vld [vmem:[%s1410_s10 + $0x18] sm:$0xff] }
  0x1e   : > { %959 = vmatpush3.bf16.msra.mxu1 %v958_v51  ;;  %929 = vmatprep.subr.bf16.mxu0 %v928_v52  ;;  %v313_v12 = vld [vmem:[%s1517_s1 + $0x68] sm:$0xff]  ;;  %v344_v15 = vld [vmem:[%s1517_s1 + $0x160] sm:$0xff]  ;;  %v968_v18 = vpack.c.bf16 %v361_v9, %v360_v8  ;;  %v330_v20 = vld [vmem:[%s1517_s1 + $0xf0] sm:$0xff] }
  0x1f   : > { %961 = vmatprep.subr.bf16.mxu1 %v960_v56  ;;  %v293_v16 = vld [vmem:[%s1410_s10 + $0x8] sm:$0xff]  ;;  %v331_v21 = vld [vmem:[%s1517_s1 + $0xf8] sm:$0xff]  ;;  %v362_v22 = vld [vmem:[%s1517_s1 + $0x1f0] sm:$0xff]  ;;  %503 = vmatprep.mubr.f32.mxu1 %v295_v17  ;;  %v938_v24 = vpack.c.bf16 %v313_v12, %v312_v11 }
  0x20   : > { %v345_v19 = vld [vmem:[%s1517_s1 + $0x168] sm:$0xff]  ;;  %428 = vmatprep.mubr.f32.mxu0 %v293_v16  ;;  %v363_v23 = vld [vmem:[%s1517_s1 + $0x1f8] sm:$0xff]  ;;  %v940_v26 = vpack.c.bf16 %v331_v21, %v330_v20  ;;  %v314_v27 = vld [vmem:[%s1517_s1 + $0x70] sm:$0xff] }
  0x21   : > { %931 = vmatpush3.bf16.msra.mxu0 %v930_v62  ;;  %v970_v25 = vpack.c.bf16 %v345_v19, %v344_v15  ;;  %v315_v28 = vld [vmem:[%s1517_s1 + $0x78] sm:$0xff]  ;;  %v972_v29 = vpack.c.bf16 %v363_v23, %v362_v22  ;;  %v346_v30 = vld [vmem:[%s1517_s1 + $0x170] sm:$0xff]  ;;  %v292_v34 = vld [vmem:[%s1410_s10] sm:$0xff] }
  0x22   : > { %963 = vmatpush3.bf16.msra.mxu1 %v962_v63  ;;  %933 = vmatprep.subr.bf16.mxu0 %v932_v0  ;;  %v347_v31 = vld [vmem:[%s1517_s1 + $0x178] sm:$0xff]  ;;  %v942_v32 = vpack.c.bf16 %v315_v28, %v314_v27  ;;  %v294_v35 = vld [vmem:[%s1410_s10 + $0x10] sm:$0xff]  ;;  %v297_v36 = vld [vmem:[%s1410_s10 + $0x28] sm:$0xff] }
  0x23   : > { %965 = vmatprep.subr.bf16.mxu1 %v964_v4  ;;  %v974_v33 = vpack.c.bf16 %v347_v31, %v346_v30  ;;  %v299_v37 = vld [vmem:[%s1410_s10 + $0x38] sm:$0xff]  ;;  %v296_v38 = vld [vmem:[%s1410_s10 + $0x20] sm:$0xff]  ;;  %v298_v39 = vld [vmem:[%s1410_s10 + $0x30] sm:$0xff]  ;;  %s1466_s10 = scalar_lea.vmem [#allocation3], %s810_s4  }
  0x24   : > { %v814_v46 = vld [vmem:[%s1518_s2] ss:$0 sm:$0xff] }
  0x25   : > { %935 = vmatpush3.bf16.msra.mxu0 %v934_v10 }
  0x26   : > { %967 = vmatpush3.bf16.msra.mxu1 %v966_v13  ;;  %937 = vmatprep.subr.bf16.mxu0 %v936_v14 }
  0x27   : > { %969 = vmatprep.subr.bf16.mxu1 %v968_v18 }
  0x29   : > { %939 = vmatpush3.bf16.msra.mxu0 %v938_v24 }
  0x2a   : > { %971 = vmatpush3.bf16.msra.mxu1 %v970_v25  ;;  %941 = vmatprep.subr.bf16.mxu0 %v940_v26 }
  0x2b   : > { %973 = vmatprep.subr.bf16.mxu1 %v972_v29 }
  0x2d   : > { %943 = vmatpush3.bf16.msra.mxu0 %v942_v32 }
  0x2e   : > { %975 = vmatpush3.bf16.msra.mxu1 %v974_v33 }
  0x30   : > { %429 = vmatmul.mubr.f32.vlgmr.msra.gmra.mrb[0].mxu0 %v292_v34 }
  0x31   : > { %504 = vmatmul.mubr.f32.vlgmr.msra.gmra.mrb[0].mxu1 %v294_v35  ;;  %433 = vmatprep.mubr.f32.mxu0 %v297_v36 }
  0x32   : > { %508 = vmatprep.mubr.f32.mxu1 %v299_v37 }
  0x34   : > { %434 = vmatmul.mubr.f32.gmra.mrb[2].mxu0 %v296_v38 }
  0x35   : > { %509 = vmatmul.mubr.f32.gmra.mrb[2].mxu1 %v298_v39 }
 0x103   : > { %v868_v40 = vpop.f32.mrb[0].mxu0 }
 0x104   : > { %v906_v41 = vpop.f32.mrb[0].mxu1  ;;  %v869_v42 = vpop.f32.mrb[1].mxu0 }
 0x105   : > { %v870_v43 = vadd.f32 %v869_v42, %v868_v40  ;;  %v907_v44 = vpop.f32.mrb[1].mxu1 }
 0x106   : > { %v908_v45 = vadd.f32 %v907_v44, %v906_v41 }
 0x107   : > { %v871_v47 = vpop.f32.mrb[2].mxu0 }
 0x108   : > { %v506_v48 = vadd.f32 %v908_v45, %v870_v43  ;;  %v909_v49 = vpop.f32.mrb[2].mxu1  ;;  %v872_v50 = vpop.f32.mrb[3].mxu0 }
 0x109   : > { %v873_v51 = vadd.f32 %v872_v50, %v871_v47  ;;  %v910_v52 = vpop.f32.mrb[3].mxu1 }
 0x10a   : > { %v530_v53 = vadd.f32 %v814_v46, %v506_v48  ;;  %v911_v54 = vadd.f32 %v910_v52, %v909_v49  ;;  %540 = sbr.rel (!%p1236_p3) target bundleno = 322 (0x142), region = 44 }
 0x10c   : > { %532 = vst [vmem:[%s1466_s10] sm:$0xff] %v530_v53  ;;  %v511_v55 = vadd.f32 %v911_v54, %v873_v51 }
 0x10e   : > { %v531_v56 = vadd.f32 %v814_v46, %v511_v55 }
 0x110   : > { %533 = vst [vmem:[%s1466_s10 + $0x8] sm:$0xff] %v531_v56 }
 0x111   : > { %s1528_s12 = smov (!%p543_p9, %s542_s12), 2 }
 0x112   : > { %s817_s23 = sshll.u32 %s1528_s12, 7 }
 0x113   : > { %p820_p10 = scmp.eq.s32.totalorder %s817_s23, 0 }
 0x114   : > { %s1483_s24 = sshrl.u32 (!%p820_p10), %s1528_s12, 1 }
 0x115   : > { %552 = sbr.rel (%p820_p10) target bundleno = 322 (0x142), region = 48  ;;  %p821_p11 = scmp.le.s32.totalorder (!%p820_p10), %s1483_s24, 0 }
 0x11c   : > { %730 = sbr.rel (%p821_p11) target bundleno = 301 (0x12d), region = 130  ;;  %s1152_s14 = smov (!%p821_p11), %s1477_s17  }
 0x11d   : > { %s1156_s20 = smov (!%p821_p11), %s1466_s10   ;;  %s1160_s7 = smov (!%p821_p11), 0  }
 0x11e   : > { %s1164_s25 = smov (!%p821_p11), 0  }
 0x123 LB: >> { %v616_v57 = vld [vmem:[%s1158_s20] sm:$0xff]  ;;  %v618_v58 = vld [vmem:[%s1158_s20 + $0x8] sm:$0xff]  ;;  %s620_s26 = sadd.s32 1, %s1162_s7  ;;  %s610_s25 = sadd.s32 1, %s1166_s25   ;;  %s1166_s25 = sphi %s1164_s25, %s610_s25   ;;  %s1162_s7 = sphi %s1160_s7, %s1161_s7   ;;  %s1158_s20 = sphi %s1156_s20, %s625_s20   ;;  %s1154_s14 = sphi %s1152_s14, %s626_s14  }
 0x124   : >> { %617 = vst [vmem:[%s1154_s14] sm:$0xff] %v616_v57  ;;  %619 = vst [vmem:[%s1154_s14 + $0x8] sm:$0xff] %v618_v58  ;;  %p621_p12 = scmp.ge.s32.totalorder %s620_s26, %s1483_s24  ;;  %p609_p13 = scmp.ge.s32.totalorder %s610_s25, %s1483_s24 }
 0x126   : >> { %s1530_s26 = smov (%p621_p12, %s620_s26), 0  ;;  %612 = sbr.rel (!%p609_p13) target bundleno = 291 (0x123), region = 136 }
 0x127   : >> { %s822_s27 = sshll.u32 %s1530_s26, 4  ;;  %s1161_s7 = smov %s1530_s26  }
 0x128   : >> { %s625_s20 = scalar_lea.vmem %s1466_s10, %s822_s27 [#allocation3]   ;;  %s626_s14 = scalar_lea.vmem %s1477_s17, %s822_s27  }
 0x12d PF: > { %s1493_s28 = sand.u32 1, %s1528_s12   ;;  %s834_s19 = sshll.u32 %s1483_s24, 4 }
 0x12e   : > { %s631_s21 = scalar_lea.vmem %s1466_s10, %s834_s19 [#allocation3]   ;;  %s633_s29 = scalar_lea.vmem %s1477_s17, %s834_s19  }
 0x12f   : > { %p827_p0 = scmp.le.s32.totalorder %s1493_s28, 0 }
 0x130   : > { %s1168_s30 = smov (!%p827_p0), %s633_s29   ;;  %s1172_s4 = smov (!%p827_p0), %s631_s21  }
 0x131   : > { %744 = sbr.rel (%p827_p0) target bundleno = 322 (0x142), region = 141  ;;  %s1176_s5 = smov (!%p827_p0), 0  }
 0x132   : > { %s1180_s6 = smov (!%p827_p0), 0  }
 0x138 LB: >> { %v643_v59 = vld [vmem:[%s1174_s4] sm:$0xff]  ;;  %s645_s12 = sadd.s32 1, %s1178_s5  ;;  %s637_s6 = sadd.s32 1, %s1182_s6   ;;  %s1182_s6 = sphi %s1180_s6, %s637_s6   ;;  %s1178_s5 = sphi %s1176_s5, %s1177_s5   ;;  %s1174_s4 = sphi %s1172_s4, %s650_s4   ;;  %s1170_s30 = sphi %s1168_s30, %s651_s30  }
 0x139   : >> { %644 = vst [vmem:[%s1170_s30] sm:$0xff] %v643_v59  ;;  %p646_p1 = scmp.ge.s32.totalorder %s645_s12, %s1493_s28  ;;  %p636_p2 = scmp.ge.s32.totalorder %s637_s6, %s1493_s28 }
 0x13b   : >> { %s1532_s12 = smov (%p646_p1, %s645_s12), 0  ;;  %639 = sbr.rel (!%p636_p2) target bundleno = 312 (0x138), region = 147 }
 0x13c   : >> { %s828_s10 = sshll.u32 %s1532_s12, 3  ;;  %s1177_s5 = smov %s1532_s12  }
 0x13d   : >> { %s650_s4 = scalar_lea.vmem %s631_s21, %s828_s10 [#allocation3]   ;;  %s651_s30 = scalar_lea.vmem %s633_s29, %s828_s10  }
 0x142 PF: > { %s13_s16 = sadd.s32 1, %s1150_s16   ;;  %s1521_s12 = smov %s1138_s13 }
 0x143   : > { %p10_p3 = scmp.ge.s32.totalorder %s13_s16, 4   ;;  %s1522_s13 = smov %s1245_s22 }
 0x144   : > { %s1523_s14 = smov %s1146_s15  ;;  %s1524_s15 = smov %s1526_s18 }
 0x145   :  { %12 = sbr.rel (!%p10_p3) target bundleno = 3 (0x3), region = 158 }

// kernel: multiscale_discriminator_forward.36
= control target key start
LH: loop header
LB: loop body
LE: loop exit
PB: predicated region body
PF: predicated region fallthrough
CT: control target
= control target key end

     0   :  { %s344_s6 = smov 0   ;;  %s346_s7 = smov 0   ;;  %s390_s0 = inlined_call_operand.vmem [shape: f32[2,9,64], index: 0, kind: input, shape index: {}]   ;;  %s391_s1 = inlined_call_operand.vmem [shape: f32[2,9,64], index: 1, kind: output, shape index: {}]  }
   0x1   :  { %s348_s8 = smov 0  }
   0x2 LB: > { %s23_s9 = sadd.s32 1, %s328_s7  ;;  %p275_p0 = scmp.ge.s32.totalorder %s332_s8, 1  ;;  %s332_s8 = sphi %s348_s8, %s11_s8   ;;  %s328_s7 = sphi %s346_s7, %s393_s7   ;;  %s324_s6 = sphi %s344_s6, %s392_s6  }
   0x3   : > { %p25_p1 = scmp.ge.s32.totalorder %s23_s9, 2  ;;  %p106_p2 = scmp.lt.s32.totalorder %s332_s8, 3 }
   0x5   : > { %s395_s9 = smov (%p25_p1, %s23_s9), 0  ;;  %p107_p3 = pnand %p275_p0, %p106_p2 }
   0x6   : > { %p132_p4 = scmp.lt.s32.totalorder (!%p107_p3), %s324_s6, 1  ;;  %vm150_vm0 = vcmask (!%p107_p3), 523264   ;;  %vm152_vm1 = vcmask (!%p107_p3), 516096  }
   0x7   : > { %110 = sbr.rel (%p107_p3) target bundleno = 76 (0x4c), region = 24 }
   0xe   : > { %s397_s6 = smov (!%p132_p4, %s324_s6), 1 }
   0xf   : > { %s282_s10 = sshll.u32 %s397_s6, 4 }
  0x10   : > { %s139_s13 = scalar_lea.vmem %s390_s0, %s282_s10  ;;  %s147_s16 = scalar_lea.vmem %s391_s1, %s282_s10 }
  0x11   : > { %v148_v0 = vld [vmem:[%s139_s13] sm:$0xff]  ;;  %v149_v1 = vld [vmem:[%s139_s13 + $0x8] sm:$0x1] }
  0x12   : > { %v151_v2 = vsel %vm150_vm0, %v148_v0, 0.0  ;;  %v153_v3 = vsel %vm152_vm1, %v149_v1, 0.0 }
  0x13   : > { %v154_v4 = vadd.f32 %v153_v3, %v151_v2 }
  0x15   : > { %v155_v5 = vrot.slane %v154_v4, 4 }
  0x17   : > { %v156_v6 = vadd.f32 %v155_v5, %v154_v4 }
  0x19   : > { %v157_v7 = vrot.slane %v156_v6, 2 }
  0x1b   : > { %v158_v8 = vadd.f32 %v157_v7, %v156_v6 }
  0x1d   : > { %v159_v9 = vrot.slane %v158_v8, 1 }
  0x1f   : > { %v160_v10 = vadd.f32 %v159_v9, %v158_v8 }
  0x21   : > { %v161_v11 = vmul.f32 0.11111111, %v160_v10 }
  0x23   : > { %v162_v12 = vsub.f32 %v148_v0, %v161_v11  ;;  %v163_v13 = vsub.f32 %v149_v1, %v161_v11 }
  0x25   : > { %v164_v14 = vmul.f32 %v162_v12, %v162_v12  ;;  %v165_v15 = vmul.f32 %v163_v13, %v163_v13 }
  0x27   : > { %v166_v16 = vsel %vm150_vm0, %v164_v14, 0.0  ;;  %v167_v17 = vsel %vm152_vm1, %v165_v15, 0.0 }
  0x28   : > { %v168_v18 = vadd.f32 %v167_v17, %v166_v16 }
  0x2a   : > { %v169_v19 = vrot.slane %v168_v18, 4 }
  0x2c   : > { %v170_v20 = vadd.f32 %v169_v19, %v168_v18 }
  0x2e   : > { %v171_v21 = vrot.slane %v170_v20, 2 }
  0x30   : > { %v172_v22 = vadd.f32 %v171_v21, %v170_v20 }
  0x32   : > { %v173_v23 = vrot.slane %v172_v22, 1 }
  0x34   : > { %v174_v24 = vadd.f32 %v173_v23, %v172_v22 }
  0x36   : > { %v175_v25 = vmul.f32 0.11111111, %v174_v24 }
  0x38   : > { %v176_v26 = vadd.f32 1e-05, %v175_v25 }
  0x3a   : > { %308 = vrsqrt.f32 %v176_v26 }
  0x44   : > { %v309_v27 = vpop.eup %308 }
  0x45   : > { %v178_v28 = vmul.f32 %v309_v27, %v162_v12  ;;  %v179_v29 = vmul.f32 %v309_v27, %v163_v13 }
  0x47   : > { %vm180_vm2 = vcmp.ge.f32.partialorder %v178_v28, 0.0  ;;  %v182_v30 = vmul.f32 0.2, %v178_v28  ;;  %vm181_vm3 = vcmp.ge.f32.partialorder %v179_v29, 0.0  ;;  %v183_v31 = vmul.f32 0.2, %v179_v29 }
  0x49   : > { %v184_v32 = vsel %vm180_vm2, %v178_v28, %v182_v30  ;;  %v185_v33 = vsel %vm181_vm3, %v179_v29, %v183_v31 }
  0x4a   : > { %186 = vst.msk [vmem:[%s147_s16] sm:$0xff] %vm150_vm0, %v184_v32 }
  0x4b   : > { %187 = vst.msk [vmem:[%s147_s16 + $0x8] sm:$0x1] %vm152_vm1, %v185_v33 }
  0x4c PF: > { %s11_s8 = sadd.s32 1, %s332_s8   ;;  %s392_s6 = smov %s328_s7 }
  0x4d   : > { %p8_p5 = scmp.ge.s32.totalorder %s11_s8, 4   ;;  %s393_s7 = smov %s395_s9 }
  0x4f   :  { %10 = sbr.rel (!%p8_p5) target bundleno = 2 (0x2), region = 54 }

// kernel: multiscale_discriminator_forward.38
= control target key start
LH: loop header
LB: loop body
LE: loop exit
PB: predicated region body
PF: predicated region fallthrough
CT: control target
= control target key end

     0   :  { %s338_s6 = smov 0   ;;  %s340_s7 = smov 0   ;;  %s378_s0 = inlined_call_operand.vmem [shape: f32[2,16,128], index: 0, kind: input, shape index: {}]   ;;  %s379_s1 = inlined_call_operand.vmem [shape: f32[2,16,128], index: 1, kind: output, shape index: {}]  }
   0x1   :  { %s342_s8 = smov 0  }
   0x2 LB: > { %s23_s9 = sadd.s32 1, %s322_s7  ;;  %p269_p0 = scmp.ge.s32.totalorder %s326_s8, 1  ;;  %s326_s8 = sphi %s342_s8, %s11_s8   ;;  %s322_s7 = sphi %s340_s7, %s381_s7   ;;  %s318_s6 = sphi %s338_s6, %s380_s6  }
   0x3   : > { %p25_p1 = scmp.ge.s32.totalorder %s23_s9, 2  ;;  %p106_p2 = scmp.lt.s32.totalorder %s326_s8, 3 }
   0x5   : > { %s383_s9 = smov (%p25_p1, %s23_s9), 0  ;;  %p107_p3 = pnand %p269_p0, %p106_p2 }
   0x6   : > { %p132_p4 = scmp.lt.s32.totalorder (!%p107_p3), %s318_s6, 1 }
   0x7   : > { %110 = sbr.rel (%p107_p3) target bundleno = 73 (0x49), region = 24 }
   0xe   : > { %s385_s6 = smov (!%p132_p4, %s318_s6), 1 }
   0xf   : > { %s276_s10 = sshll.u32 %s385_s6, 4 }
  0x10   : > { %s139_s13 = scalar_lea.vmem %s378_s0, %s276_s10  ;;  %s147_s16 = scalar_lea.vmem %s379_s1, %s276_s10 }
  0x11   : > { %v148_v0 = vld [vmem:[%s139_s13] sm:$0xff]  ;;  %v149_v1 = vld [vmem:[%s139_s13 + $0x8] sm:$0xff] }
  0x12   : > { %v150_v2 = vadd.f32 %v149_v1, %v148_v0 }
  0x14   : > { %v151_v3 = vrot.slane %v150_v2, 4 }
  0x16   : > { %v152_v4 = vadd.f32 %v151_v3, %v150_v2 }
  0x18   : > { %v153_v5 = vrot.slane %v152_v4, 2 }
  0x1a   : > { %v154_v6 = vadd.f32 %v153_v5, %v152_v4 }
  0x1c   : > { %v155_v7 = vrot.slane %v154_v6, 1 }
  0x1e   : > { %v156_v8 = vadd.f32 %v155_v7, %v154_v6 }
  0x20   : > { %v157_v9 = vmul.f32 0.0625, %v156_v8 }
  0x22   : > { %v158_v10 = vsub.f32 %v148_v0, %v157_v9  ;;  %v159_v11 = vsub.f32 %v149_v1, %v157_v9 }
  0x24   : > { %v160_v12 = vmul.f32 %v158_v10, %v158_v10  ;;  %v161_v13 = vmul.f32 %v159_v11, %v159_v11 }
  0x26   : > { %v162_v14 = vadd.f32 %v161_v13, %v160_v12 }
  0x28   : > { %v163_v15 = vrot.slane %v162_v14, 4 }
  0x2a   : > { %v164_v16 = vadd.f32 %v163_v15, %v162_v14 }
  0x2c   : > { %v165_v17 = vrot.slane %v164_v16, 2 }
  0x2e   : > { %v166_v18 = vadd.f32 %v165_v17, %v164_v16 }
  0x30   : > { %v167_v19 = vrot.slane %v166_v18, 1 }
  0x32   : > { %v168_v20 = vadd.f32 %v167_v19, %v166_v18 }
  0x34   : > { %v169_v21 = vmul.f32 0.0625, %v168_v20 }
  0x36   : > { %v170_v22 = vadd.f32 1e-05, %v169_v21 }
  0x38   : > { %302 = vrsqrt.f32 %v170_v22 }
  0x42   : > { %v303_v23 = vpop.eup %302 }
  0x43   : > { %v172_v24 = vmul.f32 %v303_v23, %v158_v10  ;;  %v173_v25 = vmul.f32 %v303_v23, %v159_v11 }
  0x45   : > { %vm174_vm0 = vcmp.ge.f32.partialorder %v172_v24, 0.0  ;;  %v176_v26 = vmul.f32 0.2, %v172_v24  ;;  %vm175_vm1 = vcmp.ge.f32.partialorder %v173_v25, 0.0  ;;  %v177_v27 = vmul.f32 0.2, %v173_v25 }
  0x47   : > { %v178_v28 = vsel %vm174_vm0, %v172_v24, %v176_v26  ;;  %v179_v29 = vsel %vm175_vm1, %v173_v25, %v177_v27 }
  0x48   : > { %180 = vst [vmem:[%s147_s16] sm:$0xff] %v178_v28  ;;  %181 = vst [vmem:[%s147_s16 + $0x8] sm:$0xff] %v179_v29 }
  0x49 PF: > { %s11_s8 = sadd.s32 1, %s326_s8   ;;  %s380_s6 = smov %s322_s7 }
  0x4a   : > { %p8_p5 = scmp.ge.s32.totalorder %s11_s8, 4   ;;  %s381_s7 = smov %s383_s9 }
  0x4c   :  { %10 = sbr.rel (!%p8_p5) target bundleno = 2 (0x2), region = 54 }

// kernel: multiscale_discriminator_forward.37
= control target key start
LH: loop header
LB: loop body
LE: loop exit
PB: predicated region body
PF: predicated region fallthrough
CT: control target
= control target key end

     0   :  { %s951_s12 = smov 0   ;;  %s953_s13 = smov 0   ;;  %s1128_s0 = inlined_call_operand.vmem [shape: f32[32,1024], index: 0, kind: input, shape index: {}]   ;;  %s1129_s1 = inlined_call_operand.vmem [shape: f32[1024,128], index: 1, kind: input, shape index: {}]   ;;  %s1130_s2 = inlined_call_operand.vmem [shape: f32[1,128], index: 2, kind: input, shape index: {}]   ;;  %s1131_s3 = inlined_call_operand.vmem [shape: f32[32,128], index: 3, kind: output, shape index: {}]  }
   0x1   :  { %s955_s14 = smov 0   ;;  %s957_s15 = smov 0  }
   0x2   :  { %s959_s16 = smov 0   ;;  %s961_s17 = smov 0  }
   0x3   :  { %s963_s18 = smov 0  }
   0x4 LB: > { %s25_s19 = sadd.s32 1, %s920_s16  ;;  %s32_s20 = sadd.s32 1, %s924_s17  ;;  %s928_s18 = sphi %s963_s18, %s13_s18   ;;  %s924_s17 = sphi %s961_s17, %s1137_s17   ;;  %s920_s16 = sphi %s959_s16, %s1136_s16   ;;  %s916_s15 = sphi %s957_s15, %s1135_s15   ;;  %s912_s14 = sphi %s955_s14, %s1134_s14   ;;  %s908_s13 = sphi %s953_s13, %s1133_s13   ;;  %s904_s12 = sphi %s951_s12, %s1132_s12  }
   0x5   : > { %p26_p0 = scmp.ge.s32.totalorder %s25_s19, 2  ;;  %p48_p1 = scmp.ne.s32.totalorder %s908_s13, %s904_s12 }
   0x6   : > { %p49_p2 = scmp.eq.s32.totalorder %s928_s18, 0  ;;  %s41_s24 = sadd.s32 1, %s908_s13 }
   0x7   : > { %s1139_s19 = smov (%p26_p0, %s25_s19), 0  ;;  %s1141_s20 = smov (!%p26_p0, %s32_s20), %s924_s17 }
   0x8   : > { %p50_p3 = por %p49_p2, %p48_p1  ;;  %p34_p4 = scmp.ge.s32.totalorder %s1141_s20, 2 }
   0x9   : > { %s37_s21 = ssub.s32 %s920_s16, %s1139_s19  ;;  %p659_p6 = scmp.ge.s32.totalorder %s928_s18, 4 }
   0xa   : > { %s1143_s20 = smov (%p34_p4, %s1141_s20), 0 }
   0xb   : > { %s36_s22 = ssub.s32 %s924_s17, %s1143_s20  ;;  %162 = sbr.rel (%p659_p6) target bundleno = 29 (0x1d), region = 20 }
   0xc   : > { %s38_s23 = sor.u32 %s37_s21, %s36_s22 }
   0xd   : > { %p39_p5 = scmp.eq.s32.totalorder %s38_s23, 0 }
   0xf   : > { %s1002_s25 = scalar_select %p39_p5, %s908_s13, %s41_s24  }
  0x12   : > { %165 = sbr.rel (!%p50_p3) target bundleno = 29 (0x1d), region = 24  ;;  %s167_s26 = sand.u32 (%p50_p3), 1, %s908_s13  }
  0x13   : > { %s662_s27 = sshll.u32 (%p50_p3), %s920_s16, 2  ;;  %s660_s28 = sshll.u32 (%p50_p3), %s167_s26, 6 }
  0x14   : > { %s676_s29 = sshll.u32 (%p50_p3), %s924_s17, 4  ;;  %s169_s8 = scalar_lea.vmem (%p50_p3), [#allocation3], %s660_s28 }
  0x15   : > { %s173_s30 = sadd.s32 (%p50_p3), %s676_s29, %s662_s27 }
  0x16   : > { %s664_s4 = sshll.u32 (%p50_p3), %s173_s30, 3 }
  0x17   : > { %s175_s7 = scalar_lea.vmem (%p50_p3), %s1128_s0, %s664_s4 }
  0x18   : > { %v188_v0 = vld [vmem:[%s175_s7] sm:$0xff] (%p50_p3)  ;;  %v190_v1 = vld [vmem:[%s175_s7 + $0x8] sm:$0xff] (%p50_p3)  ;;  %v192_v2 = vld [vmem:[%s175_s7 + $0x10] sm:$0xff] (%p50_p3) }
  0x19   : > { %189 = vst [vmem:[%s169_s8] sm:$0xff] %v188_v0  ;;  %191 = vst [vmem:[%s169_s8 + $0x8] sm:$0xff] %v190_v1  ;;  %v194_v3 = vld [vmem:[%s175_s7 + $0x18] sm:$0xff]  ;;  %v196_v4 = vld [vmem:[%s175_s7 + $0x40] sm:$0xff] }
  0x1a   : > { %193 = vst [vmem:[%s169_s8 + $0x10] sm:$0xff] %v192_v2  ;;  %v198_v5 = vld [vmem:[%s175_s7 + $0x48] sm:$0xff]  ;;  %195 = vst [vmem:[%s169_s8 + $0x18] sm:$0xff] %v194_v3  ;;  %v200_v6 = vld [vmem:[%s175_s7 + $0x50] sm:$0xff] }
  0x1b   : > { %197 = vst [vmem:[%s169_s8 + $0x20] sm:$0xff] %v196_v4  ;;  %199 = vst [vmem:[%s169_s8 + $0x28] sm:$0xff] %v198_v5  ;;  %v202_v7 = vld [vmem:[%s175_s7 + $0x58] sm:$0xff] }
  0x1c   : > { %201 = vst [vmem:[%s169_s8 + $0x30] sm:$0xff] %v200_v6  ;;  %203 = vst [vmem:[%s169_s8 + $0x38] sm:$0xff] %v202_v7 }
  0x1d PF: > { %p665_p7 = scmp.ge.s32.totalorder %s928_s18, 1  ;;  %p220_p8 = scmp.lt.s32.totalorder %s928_s18, 5 }
  0x1f   : > { %p221_p9 = pnand %p665_p7, %p220_p8 }
  0x20   : > { %s227_s9 = sand.u32 (!%p221_p9), 1, %s904_s12   ;;  %s667_s10 = sshll.u32 (!%p221_p9), %s912_s14, 6 }
  0x21   : > { %224 = sbr.rel (%p221_p9) target bundleno = 321 (0x141), region = 51  ;;  %s666_s11 = sshll.u32 (!%p221_p9), %s227_s9, 6 }
  0x22   : > { %p267_p10 = scmp.lt.s32.totalorder (!%p221_p9), %s667_s10, 127  ;;  %s669_s21 = sshll.u32 (!%p221_p9), %s916_s15, 1 }
  0x23   : > { %p279_p11 = scmp.lt.s32.totalorder (!%p221_p9), %s669_s21, 3  ;;  %s1026_s12 = scalar_lea.vmem (!%p221_p9), [#allocation3], %s666_s11 }
  0x24   : > { %p671_p12 = scmp.ne.s32.totalorder (!%p221_p9), %s912_s14, 0 }
  0x28   : > { %s1145_s10 = smov (!%p267_p10, %s667_s10), 127  ;;  %s1147_s21 = smov (!%p279_p11, %s669_s21), 3 }
  0x29   : > { %s668_s22 = sshll.u32 %s1145_s10, 3  ;;  %s670_s27 = sshll.u32 %s1147_s21, 3  ;;  %v930_v8 = vmov (!%p671_p12), 0.0  }
  0x2a   : > { %s1019_s26 = scalar_lea.vmem %s1129_s1, %s668_s22  ;;  %s1024_s30 = scalar_lea.vmem %s1131_s3, %s670_s27  ;;  %291 = vst [vmem:[#allocation2] sm:$0xff] (!%p671_p12), %v930_v8  ;;  %292 = vst [vmem:[#allocation2 + $0x8] sm:$0xff] (!%p671_p12), %v930_v8 }
  0x2b   : > { %290 = sbr.rel (%p671_p12) target bundleno = 50 (0x32), region = 59 }
  0x32 PF: > { %v319_v9 = vld [vmem:[%s1019_s26 + $0x80] sm:$0xff]  ;;  %v320_v10 = vld [vmem:[%s1019_s26 + $0x88] sm:$0xff]  ;;  %v321_v20 = vld [vmem:[%s1019_s26 + $0x90] sm:$0xff]  ;;  %p672_p13 = scmp.ne.s32.totalorder %s912_s14, 1 }
  0x33   : > { %v351_v11 = vld [vmem:[%s1019_s26 + $0x180] sm:$0xff]  ;;  %v753_v12 = vpack.c.bf16 %v320_v10, %v319_v9  ;;  %v352_v13 = vld [vmem:[%s1019_s26 + $0x188] sm:$0xff]  ;;  %v322_v22 = vld [vmem:[%s1019_s26 + $0x98] sm:$0xff] }
  0x34   : > { %v303_v14 = vld [vmem:[%s1019_s26] sm:$0xff]  ;;  %v304_v15 = vld [vmem:[%s1019_s26 + $0x8] sm:$0xff]  ;;  %v785_v16 = vpack.c.bf16 %v352_v13, %v351_v11  ;;  %v353_v23 = vld [vmem:[%s1019_s26 + $0x190] sm:$0xff]  ;;  %v757_v25 = vpack.c.bf16 %v322_v22, %v321_v20 }
  0x35   : > { %v755_v17 = vpack.c.bf16 %v304_v15, %v303_v14  ;;  %v335_v18 = vld [vmem:[%s1019_s26 + $0x100] sm:$0xff]  ;;  %v336_v19 = vld [vmem:[%s1019_s26 + $0x108] sm:$0xff]  ;;  %754 = vmatprep.subr.bf16.mxu0 %v753_v12  ;;  %v354_v24 = vld [vmem:[%s1019_s26 + $0x198] sm:$0xff] }
  0x36   : > { %v787_v21 = vpack.c.bf16 %v336_v19, %v335_v18  ;;  %786 = vmatprep.subr.bf16.mxu1 %v785_v16  ;;  %v789_v26 = vpack.c.bf16 %v354_v24, %v353_v23  ;;  %v305_v27 = vld [vmem:[%s1019_s26 + $0x10] sm:$0xff]  ;;  %v306_v28 = vld [vmem:[%s1019_s26 + $0x18] sm:$0xff]  ;;  %v323_v32 = vld [vmem:[%s1019_s26 + $0xa0] sm:$0xff] }
  0x37   : > { %756 = vmatpush3.bf16.msra.mxu0 %v755_v17  ;;  %v337_v29 = vld [vmem:[%s1019_s26 + $0x110] sm:$0xff]  ;;  %v759_v30 = vpack.c.bf16 %v306_v28, %v305_v27  ;;  %v338_v31 = vld [vmem:[%s1019_s26 + $0x118] sm:$0xff]  ;;  %v324_v33 = vld [vmem:[%s1019_s26 + $0xa8] sm:$0xff] }
  0x38   : > { %788 = vmatpush3.bf16.msra.mxu1 %v787_v21  ;;  %758 = vmatprep.subr.bf16.mxu0 %v757_v25  ;;  %v791_v34 = vpack.c.bf16 %v338_v31, %v337_v29  ;;  %v761_v35 = vpack.c.bf16 %v324_v33, %v323_v32  ;;  %v355_v36 = vld [vmem:[%s1019_s26 + $0x1a0] sm:$0xff]  ;;  %v356_v37 = vld [vmem:[%s1019_s26 + $0x1a8] sm:$0xff]  ;;  %v325_v44 = vld [vmem:[%s1019_s26 + $0xb0] sm:$0xff] }
  0x39   : > { %790 = vmatprep.subr.bf16.mxu1 %v789_v26  ;;  %v307_v38 = vld [vmem:[%s1019_s26 + $0x20] sm:$0xff]  ;;  %v793_v39 = vpack.c.bf16 %v356_v37, %v355_v36  ;;  %v308_v40 = vld [vmem:[%s1019_s26 + $0x28] sm:$0xff]  ;;  %v326_v45 = vld [vmem:[%s1019_s26 + $0xb8] sm:$0xff] }
  0x3a   : > { %v339_v41 = vld [vmem:[%s1019_s26 + $0x120] sm:$0xff]  ;;  %v340_v42 = vld [vmem:[%s1019_s26 + $0x128] sm:$0xff]  ;;  %v763_v43 = vpack.c.bf16 %v308_v40, %v307_v38  ;;  %v357_v46 = vld [vmem:[%s1019_s26 + $0x1b0] sm:$0xff]  ;;  %v765_v48 = vpack.c.bf16 %v326_v45, %v325_v44 }
  0x3b   : > { %760 = vmatpush3.bf16.msra.mxu0 %v759_v30  ;;  %v795_v47 = vpack.c.bf16 %v340_v42, %v339_v41  ;;  %v358_v49 = vld [vmem:[%s1019_s26 + $0x1b8] sm:$0xff]  ;;  %v309_v50 = vld [vmem:[%s1019_s26 + $0x30] sm:$0xff]  ;;  %v327_v55 = vld [vmem:[%s1019_s26 + $0xc0] sm:$0xff] }
  0x3c   : > { %792 = vmatpush3.bf16.msra.mxu1 %v791_v34  ;;  %762 = vmatprep.subr.bf16.mxu0 %v761_v35  ;;  %v310_v51 = vld [vmem:[%s1019_s26 + $0x38] sm:$0xff]  ;;  %v797_v52 = vpack.c.bf16 %v358_v49, %v357_v46  ;;  %v341_v53 = vld [vmem:[%s1019_s26 + $0x130] sm:$0xff]  ;;  %v328_v56 = vld [vmem:[%s1019_s26 + $0xc8] sm:$0xff] }
  0x3d   : > { %794 = vmatprep.subr.bf16.mxu1 %v793_v39  ;;  %v342_v54 = vld [vmem:[%s1019_s26 + $0x138] sm:$0xff]  ;;  %v359_v57 = vld [vmem:[%s1019_s26 + $0x1c0] sm:$0xff]  ;;  %v360_v58 = vld [vmem:[%s1019_s26 + $0x1c8] sm:$0xff]  ;;  %v767_v59 = vpack.c.bf16 %v310_v51, %v309_v50  ;;  %v769_v61 = vpack.c.bf16 %v328_v56, %v327_v55 }
  0x3e   : > { %v799_v60 = vpack.c.bf16 %v342_v54, %v341_v53  ;;  %v311_v62 = vld [vmem:[%s1019_s26 + $0x40] sm:$0xff]  ;;  %v312_v63 = vld [vmem:[%s1019_s26 + $0x48] sm:$0xff]  ;;  %v801_v1 = vpack.c.bf16 %v360_v58, %v359_v57  ;;  %v329_v3 = vld [vmem:[%s1019_s26 + $0xd0] sm:$0xff] }
  0x3f   : > { %764 = vmatpush3.bf16.msra.mxu0 %v763_v43  ;;  %v343_v0 = vld [vmem:[%s1019_s26 + $0x140] sm:$0xff]  ;;  %v344_v2 = vld [vmem:[%s1019_s26 + $0x148] sm:$0xff]  ;;  %v330_v4 = vld [vmem:[%s1019_s26 + $0xd8] sm:$0xff]  ;;  %v771_v7 = vpack.c.bf16 %v312_v63, %v311_v62 }
  0x40   : > { %796 = vmatpush3.bf16.msra.mxu1 %v795_v47  ;;  %766 = vmatprep.subr.bf16.mxu0 %v765_v48  ;;  %v361_v5 = vld [vmem:[%s1019_s26 + $0x1d0] sm:$0xff]  ;;  %v362_v6 = vld [vmem:[%s1019_s26 + $0x1d8] sm:$0xff]  ;;  %v803_v8 = vpack.c.bf16 %v344_v2, %v343_v0  ;;  %v773_v9 = vpack.c.bf16 %v330_v4, %v329_v3  ;;  %v331_v15 = vld [vmem:[%s1019_s26 + $0xe0] sm:$0xff] }
  0x41   : > { %798 = vmatprep.subr.bf16.mxu1 %v797_v52  ;;  %v313_v10 = vld [vmem:[%s1019_s26 + $0x50] sm:$0xff]  ;;  %v314_v11 = vld [vmem:[%s1019_s26 + $0x58] sm:$0xff]  ;;  %v805_v13 = vpack.c.bf16 %v362_v6, %v361_v5  ;;  %v332_v16 = vld [vmem:[%s1019_s26 + $0xe8] sm:$0xff] }
  0x42   : > { %v345_v12 = vld [vmem:[%s1019_s26 + $0x150] sm:$0xff]  ;;  %v346_v14 = vld [vmem:[%s1019_s26 + $0x158] sm:$0xff]  ;;  %v363_v17 = vld [vmem:[%s1019_s26 + $0x1e0] sm:$0xff]  ;;  %v775_v19 = vpack.c.bf16 %v314_v11, %v313_v10  ;;  %v777_v23 = vpack.c.bf16 %v332_v16, %v331_v15 }
  0x43   : > { %768 = vmatpush3.bf16.msra.mxu0 %v767_v59  ;;  %v364_v18 = vld [vmem:[%s1019_s26 + $0x1e8] sm:$0xff]  ;;  %v315_v20 = vld [vmem:[%s1019_s26 + $0x60] sm:$0xff]  ;;  %v807_v22 = vpack.c.bf16 %v346_v14, %v345_v12  ;;  %v296_v25 = vld [vmem:[%s1026_s12 + $0x8] sm:$0xff] }
  0x44   : > { %800 = vmatpush3.bf16.msra.mxu1 %v799_v60  ;;  %770 = vmatprep.subr.bf16.mxu0 %v769_v61  ;;  %v316_v21 = vld [vmem:[%s1019_s26 + $0x68] sm:$0xff]  ;;  %v347_v24 = vld [vmem:[%s1019_s26 + $0x160] sm:$0xff]  ;;  %v809_v27 = vpack.c.bf16 %v364_v18, %v363_v17  ;;  %v333_v29 = vld [vmem:[%s1019_s26 + $0xf0] sm:$0xff] }
  0x45   : > { %802 = vmatprep.subr.bf16.mxu1 %v801_v1  ;;  %v298_v26 = vld [vmem:[%s1026_s12 + $0x18] sm:$0xff]  ;;  %v334_v30 = vld [vmem:[%s1019_s26 + $0xf8] sm:$0xff]  ;;  %431 = vmatprep.mubr.f32.mxu0 %v296_v25  ;;  %v365_v31 = vld [vmem:[%s1019_s26 + $0x1f0] sm:$0xff]  ;;  %v779_v33 = vpack.c.bf16 %v316_v21, %v315_v20 }
  0x46   : > { %v348_v28 = vld [vmem:[%s1019_s26 + $0x168] sm:$0xff]  ;;  %v366_v32 = vld [vmem:[%s1019_s26 + $0x1f8] sm:$0xff]  ;;  %506 = vmatprep.mubr.f32.mxu1 %v298_v26  ;;  %v781_v35 = vpack.c.bf16 %v334_v30, %v333_v29  ;;  %v317_v36 = vld [vmem:[%s1019_s26 + $0x70] sm:$0xff] }
  0x47   : > { %772 = vmatpush3.bf16.msra.mxu0 %v771_v7  ;;  %v811_v34 = vpack.c.bf16 %v348_v28, %v347_v24  ;;  %v318_v37 = vld [vmem:[%s1019_s26 + $0x78] sm:$0xff]  ;;  %v813_v38 = vpack.c.bf16 %v366_v32, %v365_v31  ;;  %v349_v39 = vld [vmem:[%s1019_s26 + $0x170] sm:$0xff]  ;;  %v297_v44 = vld [vmem:[%s1026_s12 + $0x10] sm:$0xff] }
  0x48   : > { %804 = vmatpush3.bf16.msra.mxu1 %v803_v8  ;;  %774 = vmatprep.subr.bf16.mxu0 %v773_v9  ;;  %v350_v40 = vld [vmem:[%s1019_s26 + $0x178] sm:$0xff]  ;;  %v783_v41 = vpack.c.bf16 %v318_v37, %v317_v36  ;;  %v295_v43 = vld [vmem:[%s1026_s12] sm:$0xff]  ;;  %v302_v46 = vld [vmem:[%s1026_s12 + $0x38] sm:$0xff] }
  0x49   : > { %806 = vmatprep.subr.bf16.mxu1 %v805_v13  ;;  %v815_v42 = vpack.c.bf16 %v350_v40, %v349_v39  ;;  %v300_v45 = vld [vmem:[%s1026_s12 + $0x28] sm:$0xff]  ;;  %v299_v47 = vld [vmem:[%s1026_s12 + $0x20] sm:$0xff]  ;;  %v301_v48 = vld [vmem:[%s1026_s12 + $0x30] sm:$0xff] }
  0x4a   : > { %v293_v55 = vld [vmem:[#allocation2] sm:$0xff]  ;;  %v294_v0 = vld [vmem:[#allocation2 + $0x8] sm:$0xff] }
  0x4b   : > { %776 = vmatpush3.bf16.msra.mxu0 %v775_v19  ;;  %v673_v4 = vld [vmem:[%s1130_s2] ss:$0 sm:$0xff] (!%p672_p13) }
  0x4c   : > { %808 = vmatpush3.bf16.msra.mxu1 %v807_v22  ;;  %778 = vmatprep.subr.bf16.mxu0 %v777_v23 }
  0x4d   : > { %810 = vmatprep.subr.bf16.mxu1 %v809_v27 }
  0x4f   : > { %780 = vmatpush3.bf16.msra.mxu0 %v779_v33 }
  0x50   : > { %812 = vmatpush3.bf16.msra.mxu1 %v811_v34  ;;  %782 = vmatprep.subr.bf16.mxu0 %v781_v35 }
  0x51   : > { %814 = vmatprep.subr.bf16.mxu1 %v813_v38 }
  0x53   : > { %784 = vmatpush3.bf16.msra.mxu0 %v783_v41 }
  0x54   : > { %816 = vmatpush3.bf16.msra.mxu1 %v815_v42 }
  0x56   : > { %432 = vmatmul.mubr.f32.vlgmr.msra.gmra.mrb[0].mxu0 %v295_v43 }
  0x57   : > { %507 = vmatmul.mubr.f32.vlgmr.msra.gmra.mrb[0].mxu1 %v297_v44  ;;  %436 = vmatprep.mubr.f32.mxu0 %v300_v45 }
  0x58   : > { %511 = vmatprep.mubr.f32.mxu1 %v302_v46 }
  0x5a   : > { %437 = vmatmul.mubr.f32.gmra.mrb[2].mxu0 %v299_v47 }
  0x5b   : > { %512 = vmatmul.mubr.f32.gmra.mrb[2].mxu1 %v301_v48 }
 0x129   : > { %v709_v49 = vpop.f32.mrb[0].mxu0 }
 0x12a   : > { %v747_v50 = vpop.f32.mrb[0].mxu1  ;;  %v710_v51 = vpop.f32.mrb[1].mxu0 }
 0x12b   : > { %v711_v52 = vadd.f32 %v710_v51, %v709_v49  ;;  %v748_v53 = vpop.f32.mrb[1].mxu1 }
 0x12c   : > { %v749_v54 = vadd.f32 %v748_v53, %v747_v50 }
 0x12d   : > { %v712_v56 = vpop.f32.mrb[2].mxu0 }
 0x12e   : > { %v509_v57 = vadd.f32 %v749_v54, %v711_v52  ;;  %v750_v58 = vpop.f32.mrb[2].mxu1  ;;  %v713_v59 = vpop.f32.mrb[3].mxu0 }
 0x12f   : > { %v714_v60 = vadd.f32 %v713_v59, %v712_v56  ;;  %v751_v61 = vpop.f32.mrb[3].mxu1 }
 0x130   : > { %v517_v62 = vadd.f32 %v509_v57, %v293_v55  ;;  %v752_v63 = vadd.f32 %v751_v61, %v750_v58  ;;  %524 = sbr.rel (%p672_p13) target bundleno = 321 (0x141), region = 63 }
 0x132   : > { %519 = vst [vmem:[#allocation2] sm:$0xff] %v517_v62  ;;  %v514_v1 = vadd.f32 %v752_v63, %v714_v60 }
 0x134   : > { %v518_v2 = vadd.f32 %v514_v1, %v294_v0 }
 0x136   : > { %520 = vst [vmem:[#allocation2 + $0x8] sm:$0xff] %v518_v2 }
 0x139   : > { %v525_v3 = vld [vmem:[#allocation2] sm:$0xff] }
 0x13a   : > { %v534_v6 = vadd.f32 %v673_v4, %v525_v3 }
 0x13c   : > { %536 = vst [vmem:[%s1024_s30] sm:$0xff] %v534_v6 }
 0x13d   : > { %v526_v5 = vld [vmem:[#allocation2 + $0x8] sm:$0xff] }
 0x13e   : > { %v535_v7 = vadd.f32 %v673_v4, %v526_v5 }
 0x140   : > { %537 = vst [vmem:[%s1024_s30 + $0x8] sm:$0xff] %v535_v7 }
 0x141 PF: > { %s13_s18 = sadd.s32 1, %s928_s18   ;;  %s1132_s12 = smov %s908_s13 }
 0x142   : > { %p10_p0 = scmp.ge.s32.totalorder %s13_s18, 6   ;;  %s1133_s13 = smov %s1002_s25 }
 0x143   : > { %s1134_s14 = smov %s920_s16  ;;  %s1135_s15 = smov %s924_s17 }
 0x144   : > { %s1136_s16 = smov %s1139_s19  ;;  %s1137_s17 = smov %s1143_s20 }
 0x145   :  { %12 = sbr.rel (!%p10_p0) target bundleno = 4 (0x4), region = 104 }

// kernel: multiscale_discriminator_forward.39
= control target key start
LH: loop header
LB: loop body
LE: loop exit
PB: predicated region body
PF: predicated region fallthrough
CT: control target
= control target key end

     0   :  { %s1152_s9 = smov 0   ;;  %s1154_s10 = smov 0   ;;  %s1459_s0 = inlined_call_operand.vmem [shape: f32[50,2048], index: 0, kind: input, shape index: {}]   ;;  %s1460_s1 = inlined_call_operand.vmem [shape: f32[1,2048], index: 1, kind: input, shape index: {}]   ;;  %s1461_s2 = inlined_call_operand.vmem [shape: f32[50,1], index: 2, kind: output, shape index: {}]  }
   0x1   :  { %s1156_s11 = smov 0   ;;  %s1158_s12 = smov 0  }
   0x2   :  { %s1160_s13 = smov 0   ;;  %s1162_s14 = smov 0  }
   0x3   :  { %s1164_s15 = smov 0   ;;  %s1166_s16 = smov 0  }
   0x4   :  { %s1168_s17 = smov 0  }
   0x5 LB: > { %s21_s18 = sadd.s32 1, %s1062_s15  ;;  %s24_s19 = sadd.s32 1, %s1066_s16  ;;  %s1070_s17 = sphi %s1168_s17, %s12_s17   ;;  %s1066_s16 = sphi %s1166_s16, %s1479_s16   ;;  %s1062_s15 = sphi %s1164_s15, %s1478_s15   ;;  %s1058_s14 = sphi %s1162_s14, %s1477_s14   ;;  %s1054_s13 = sphi %s1160_s13, %s1476_s13   ;;  %s1050_s12 = sphi %s1158_s12, %s1475_s12   ;;  %s1046_s11 = sphi %s1156_s11, %s1474_s11   ;;  %s1042_s10 = sphi %s1154_s10, %s1473_s10   ;;  %s1038_s9 = sphi %s1152_s9, %s1472_s9  }
   0x6   : > { %p22_p0 = scmp.ge.s32.totalorder %s21_s18, 4  ;;  %p40_p1 = scmp.ne.s32.totalorder %s1050_s12, %s1046_s11 }
   0x7   : > { %s683_s20 = sadd.s32 4294967295, %s1070_s17   ;;  %p41_p2 = scmp.eq.s32.totalorder %s1070_s17, 0 }
   0x8   : > { %s1481_s18 = smov (%p22_p0, %s21_s18), 0  ;;  %s1483_s19 = smov (!%p22_p0, %s24_s19), %s1066_s16 }
   0x9   : > { %p26_p3 = scmp.ge.s32.totalorder %s1483_s19, 2  ;;  %s29_s21 = ssub.s32 %s1062_s15, %s1481_s18 }
   0xa   : > { %p1208_p4 = por %p41_p2, %p40_p1  ;;  %p95_p5 = scmp.ne.s32.totalorder %s1042_s10, %s1038_s9 }
   0xb   : > { %s1485_s19 = smov (%p26_p3, %s1483_s19), 0  ;;  %s33_s23 = sadd.s32 1, %s1050_s12 }
   0xc   : > { %p96_p6 = scmp.eq.s32.totalorder %s683_s20, 7  ;;  %s28_s24 = ssub.s32 %s1066_s16, %s1485_s19 }
   0xd   : > { %s85_s25 = sadd.s32 1, %s1042_s10  ;;  %s30_s26 = sor.u32 %s29_s21, %s28_s24 }
   0xe   : > { %p83_p7 = scmp.eq.s32.totalorder %s28_s24, 0  ;;  %p31_p8 = scmp.eq.s32.totalorder %s30_s26, 0 }
   0xf   : > { %p1220_p9 = por %p96_p6, %p95_p5  ;;  %p686_p10 = scmp.ge.s32.totalorder %s1070_s17, 8 }
  0x10   : > { %s1225_s28 = scalar_select %p83_p7, %s1042_s10, %s85_s25  }
  0x11   : > { %s1228_s29 = scalar_select %p31_p8, %s1050_s12, %s33_s23  }
  0x12   : > { %118 = sbr.rel (%p686_p10) target bundleno = 81 (0x51), region = 16 }
  0x19   : > { %121 = sbr.rel (!%p1208_p4) target bundleno = 81 (0x51), region = 20  ;;  %s123_s30 = sand.u32 (%p1208_p4), 1, %s1050_s12  }
  0x1a   : > { %s688_s3 = sshll.u32 (%p1208_p4), %s1066_s16, 2  ;;  %s687_s4 = sshll.u32 (%p1208_p4), %s123_s30, 7 }
  0x1b   : > { %s689_s5 = sshll.u32 (%p1208_p4), %s1062_s15, 2  ;;  %s128_s6 = ssub.s32 (%p1208_p4), 7, %s688_s3 }
  0x1c   : > { %p129_p11 = scmp.lt.s32.totalorder (%p1208_p4), %s128_s6, 4  ;;  %s729_s7 = sshll.u32 (%p1208_p4), %s1066_s16, 6 }
  0x1d   : > { %s135_s8 = sadd.s32 (%p1208_p4), %s729_s7, %s689_s5  ;;  %s1245_s25 = scalar_lea.vmem (%p1208_p4), [#allocation3], %s687_s4  }
  0x1e   : > { %s694_s20 = sshll.u32 (%p1208_p4), %s135_s8, 3 }
  0x1f   : > { %s1243_s24 = scalar_lea.vmem (%p1208_p4), %s1459_s0, %s694_s20  }
  0x20   : > { %s1487_s6 = smov (!%p129_p11, %s128_s6), 4 }
  0x21   : > { %s728_s21 = sshll.u32 %s1487_s6, 9 }
  0x22   : > { %p695_p12 = scmp.eq.s32.totalorder %s728_s21, 0 }
  0x23   : > { %s1248_s26 = sshrl.u32 (!%p695_p12), %s1487_s6, 2 }
  0x24   : > { %140 = sbr.rel (%p695_p12) target bundleno = 81 (0x51), region = 24  ;;  %p696_p13 = scmp.le.s32.totalorder (!%p695_p12), %s1248_s26, 0 }
  0x2b   : > { %594 = sbr.rel (%p696_p13) target bundleno = 60 (0x3c), region = 160  ;;  %s1464_s30 = smov (!%p696_p13), %s1245_s25 }
  0x2c   : > { %s1465_s3 = smov (!%p696_p13), %s1243_s24  ;;  %s1257_s5 = smov (!%p696_p13), 0  }
  0x2d   : > { %s1259_s7 = smov (!%p696_p13), 0  }
  0x32 LB: >> { %v153_v0 = vld [vmem:[%s1078_s3] sm:$0xff]  ;;  %s185_s4 = sadd.s32 1, %s1082_s5  ;;  %v161_v4 = vld [vmem:[%s1078_s3 + $0x8] sm:$0xff]  ;;  %v169_v8 = vld [vmem:[%s1078_s3 + $0x10] sm:$0xff]  ;;  %s147_s7 = sadd.s32 1, %s1086_s7   ;;  %s1086_s7 = sphi %s1259_s7, %s147_s7   ;;  %s1082_s5 = sphi %s1257_s5, %s1466_s5   ;;  %s1078_s3 = sphi %s1465_s3, %s190_s3   ;;  %s1074_s30 = sphi %s1464_s30, %s191_s30  }
  0x33   : >> { %v155_v1 = vld [vmem:[%s1078_s3 + $0x80] sm:$0xff]  ;;  %154 = vst [vmem:[%s1074_s30] sm:$0xff] %v153_v0  ;;  %v163_v5 = vld [vmem:[%s1078_s3 + $0x88] sm:$0xff]  ;;  %p186_p0 = scmp.ge.s32.totalorder %s185_s4, %s1248_s26  ;;  %162 = vst [vmem:[%s1074_s30 + $0x8] sm:$0xff] %v161_v4  ;;  %p146_p1 = scmp.ge.s32.totalorder %s147_s7, %s1248_s26 }
  0x34   : >> { %v157_v2 = vld [vmem:[%s1078_s3 + $0x100] sm:$0xff]  ;;  %156 = vst [vmem:[%s1074_s30 + $0x20] sm:$0xff] %v155_v1  ;;  %164 = vst [vmem:[%s1074_s30 + $0x28] sm:$0xff] %v163_v5  ;;  %v165_v6 = vld [vmem:[%s1078_s3 + $0x108] sm:$0xff] }
  0x35   : >> { %158 = vst [vmem:[%s1074_s30 + $0x40] sm:$0xff] %v157_v2  ;;  %v159_v3 = vld [vmem:[%s1078_s3 + $0x180] sm:$0xff]  ;;  %v167_v7 = vld [vmem:[%s1078_s3 + $0x188] sm:$0xff]  ;;  %166 = vst [vmem:[%s1074_s30 + $0x48] sm:$0xff] %v165_v6  ;;  %s1489_s4 = smov (%p186_p0, %s185_s4), 0  ;;  %149 = sbr.rel (!%p146_p1) target bundleno = 50 (0x32), region = 166 }
  0x36   : >> { %160 = vst [vmem:[%s1074_s30 + $0x60] sm:$0xff] %v159_v3  ;;  %168 = vst [vmem:[%s1074_s30 + $0x68] sm:$0xff] %v167_v7  ;;  %v171_v9 = vld [vmem:[%s1078_s3 + $0x90] sm:$0xff]  ;;  %v177_v12 = vld [vmem:[%s1078_s3 + $0x18] sm:$0xff]  ;;  %s697_s8 = sshll.u32 %s1489_s4, 9  ;;  %s698_s20 = sshll.u32 %s1489_s4, 7 }
  0x37   : >> { %170 = vst [vmem:[%s1074_s30 + $0x10] sm:$0xff] %v169_v8  ;;  %v173_v10 = vld [vmem:[%s1078_s3 + $0x110] sm:$0xff]  ;;  %172 = vst [vmem:[%s1074_s30 + $0x30] sm:$0xff] %v171_v9  ;;  %v179_v13 = vld [vmem:[%s1078_s3 + $0x98] sm:$0xff]  ;;  %s1466_s5 = smov %s1489_s4 }
  0x38   : >> { %v175_v11 = vld [vmem:[%s1078_s3 + $0x190] sm:$0xff]  ;;  %174 = vst [vmem:[%s1074_s30 + $0x50] sm:$0xff] %v173_v10  ;;  %v181_v14 = vld [vmem:[%s1078_s3 + $0x118] sm:$0xff]  ;;  %178 = vst [vmem:[%s1074_s30 + $0x18] sm:$0xff] %v177_v12 }
  0x39   : >> { %176 = vst [vmem:[%s1074_s30 + $0x70] sm:$0xff] %v175_v11  ;;  %180 = vst [vmem:[%s1074_s30 + $0x38] sm:$0xff] %v179_v13  ;;  %v183_v15 = vld [vmem:[%s1078_s3 + $0x198] sm:$0xff]  ;;  %s190_s3 = scalar_lea.vmem %s1243_s24, %s697_s8  }
  0x3a   : >> { %182 = vst [vmem:[%s1074_s30 + $0x58] sm:$0xff] %v181_v14  ;;  %184 = vst [vmem:[%s1074_s30 + $0x78] sm:$0xff] %v183_v15  ;;  %s191_s30 = scalar_lea.vmem %s1245_s25, %s698_s20 [#allocation3]  }
  0x3c PF: > { %s1317_s21 = sand.u32 3, %s1487_s6   ;;  %s730_s23 = sshll.u32 %s1248_s26, 9 }
  0x3d   : > { %s1321_s22 = scalar_lea.vmem %s1243_s24, %s730_s23   ;;  %s731_s8 = sshll.u32 %s1248_s26, 7 }
  0x3e   : > { %s1325_s20 = scalar_lea.vmem %s1245_s25, %s731_s8 [#allocation3]   ;;  %p702_p2 = scmp.le.s32.totalorder %s1317_s21, 0 }
  0x3f   : > { %s1467_s30 = smov (!%p702_p2), %s1325_s20  ;;  %s1468_s3 = smov (!%p702_p2), %s1321_s22 }
  0x40   : > { %608 = sbr.rel (%p702_p2) target bundleno = 81 (0x51), region = 171  ;;  %s1096_s5 = smov (!%p702_p2), 0  }
  0x41   : > { %s1100_s7 = smov (!%p702_p2), 0  }
  0x47 LB: >> { %v208_v16 = vld [vmem:[%s1094_s3] sm:$0xff]  ;;  %v210_v17 = vld [vmem:[%s1094_s3 + $0x8] sm:$0xff]  ;;  %v212_v18 = vld [vmem:[%s1094_s3 + $0x10] sm:$0xff]  ;;  %s216_s6 = sadd.s32 1, %s1098_s5  ;;  %s202_s7 = sadd.s32 1, %s1102_s7   ;;  %s1102_s7 = sphi %s1100_s7, %s202_s7   ;;  %s1098_s5 = sphi %s1096_s5, %s1097_s5   ;;  %s1094_s3 = sphi %s1468_s3, %s221_s3   ;;  %s1090_s30 = sphi %s1467_s30, %s222_s30  }
  0x48   : >> { %209 = vst [vmem:[%s1090_s30] sm:$0xff] %v208_v16  ;;  %211 = vst [vmem:[%s1090_s30 + $0x8] sm:$0xff] %v210_v17  ;;  %v214_v19 = vld [vmem:[%s1094_s3 + $0x18] sm:$0xff]  ;;  %p217_p3 = scmp.ge.s32.totalorder %s216_s6, %s1317_s21  ;;  %p201_p4 = scmp.ge.s32.totalorder %s202_s7, %s1317_s21 }
  0x49   : >> { %213 = vst [vmem:[%s1090_s30 + $0x10] sm:$0xff] %v212_v18  ;;  %215 = vst [vmem:[%s1090_s30 + $0x18] sm:$0xff] %v214_v19 }
  0x4a   : >> { %s1491_s6 = smov (%p217_p3, %s216_s6), 0  ;;  %204 = sbr.rel (!%p201_p4) target bundleno = 71 (0x47), region = 177 }
  0x4b   : >> { %s703_s24 = sshll.u32 %s1491_s6, 7  ;;  %s704_s25 = sshll.u32 %s1491_s6, 5 }
  0x4c   : >> { %s221_s3 = scalar_lea.vmem %s1321_s22, %s703_s24   ;;  %s222_s30 = scalar_lea.vmem %s1325_s20, %s704_s25 [#allocation3]  }
  0x4d   : >> { %s1097_s5 = smov %s1491_s6  }
  0x51 PF: > { %p705_p5 = scmp.ge.s32.totalorder %s1070_s17, 1  ;;  %p235_p6 = scmp.lt.s32.totalorder %s1070_s17, 9 }
  0x53   : > { %p236_p7 = pnand %p705_p5, %p235_p6 }
  0x54   : > { %s242_s26 = sand.u32 (!%p236_p7), 1, %s1046_s11   ;;  %s263_s4 = sand.u32 (!%p236_p7), 1, %s1038_s9  }
  0x55   : > { %239 = sbr.rel (%p236_p7) target bundleno = 329 (0x149), region = 54  ;;  %s706_s23 = sshll.u32 (!%p236_p7), %s242_s26, 7 }
  0x56   : > { %s707_s8 = sshll.u32 (!%p236_p7), %s263_s4, 5  ;;  %s708_s3 = sshll.u32 (!%p236_p7), %s1054_s13, 2 }
  0x57   : > { %p274_p8 = scmp.lt.s32.totalorder (!%p236_p7), %s708_s3, 15  ;;  %s1352_s30 = scalar_lea.vmem (!%p236_p7), [#allocation3], %s706_s23 }
  0x58   : > { %s1354_s5 = scalar_lea.vmem (!%p236_p7), [#allocation4], %s707_s8   ;;  %p709_p10 = scmp.ne.s32.totalorder (!%p236_p7), %s1054_s13, 0 }
  0x5c   : > { %s1493_s3 = smov (!%p274_p8, %s708_s3), 15  ;;  %286 = sbr.rel (%p709_p10) target bundleno = 99 (0x63), region = 62 }
  0x5d   : > { %s276_s20 = scalar_lea.vmem %s1460_s1, %s1493_s3  ;;  %vm287_vm0 = vcmask (!%p709_p10), 7168   ;;  %v1136_v20 = vmov (!%p709_p10), 0.0  }
  0x5e   : > { %288 = vst.msk [vmem:[#allocation2] sm:$0xff] (!%p709_p10), %vm287_vm0, %v1136_v20  ;;  %289 = vst.msk [vmem:[#allocation2 + $0x8] sm:$0xff] (!%p709_p10), %vm287_vm0, %v1136_v20 }
  0x5f   : > { %290 = vst.msk [vmem:[#allocation2 + $0x10] sm:$0xff] (!%p709_p10), %vm287_vm0, %v1136_v20  ;;  %291 = vst.msk [vmem:[#allocation2 + $0x18] sm:$0xff] (!%p709_p10), %vm287_vm0, %v1136_v20 }
  0x63 PF: > { %v310_v21 = vlaneseq  ;;  %v308_v23 = vld [vmem:[%s276_s20] sm:$0xf]  ;;  %v301_v29 = vld [vmem:[%s1352_s30 + $0x48] sm:$0xff]  ;;  %v302_v30 = vld [vmem:[%s1352_s30 + $0x50] sm:$0xff]  ;;  %vm374_vm1 = vcmask 7168   ;;  %p710_p11 = scmp.ne.s32.totalorder %s1054_s13, 3 }
  0x64   : > { %v300_v24 = vld [vmem:[%s1352_s30 + $0x40] sm:$0xff]  ;;  %v303_v31 = vld [vmem:[%s1352_s30 + $0x58] sm:$0xff]  ;;  %v293_v37 = vld [vmem:[%s1352_s30 + $0x8] sm:$0xff] }
  0x65   : > { %v311_v22 = vshrl.u32 %v310_v21, 7  ;;  %v292_v36 = vld [vmem:[%s1352_s30] sm:$0xff]  ;;  %v294_v38 = vld [vmem:[%s1352_s30 + $0x10] sm:$0xff]  ;;  %v305_v40 = vld [vmem:[%s1352_s30 + $0x68] sm:$0xff] }
  0x66   : > { %v304_v39 = vld [vmem:[%s1352_s30 + $0x60] sm:$0xff]  ;;  %v306_v41 = vld [vmem:[%s1352_s30 + $0x70] sm:$0xff]  ;;  %v295_v45 = vld [vmem:[%s1352_s30 + $0x18] sm:$0xff] }
  0x67   : > { %v312_v25 = vsub.s32 0, %v311_v22  ;;  %v316_v26 = vsub.s32 1, %v311_v22  ;;  %v320_v27 = vsub.s32 2, %v311_v22  ;;  %v324_v28 = vsub.s32 3, %v311_v22  ;;  %v296_v46 = vld [vmem:[%s1352_s30 + $0x20] sm:$0xff]  ;;  %v297_v47 = vld [vmem:[%s1352_s30 + $0x28] sm:$0xff] }
  0x68   : > { %v307_v52 = vld [vmem:[%s1352_s30 + $0x78] sm:$0xff]  ;;  %v298_v53 = vld [vmem:[%s1352_s30 + $0x30] sm:$0xff]  ;;  %v346_v13 = vld [vmem:[#allocation2] sm:$0xff] }
  0x69   : > { %v313_v32 = vrot.slane %v308_v23, %v312_v25  ;;  %v317_v33 = vrot.slane %v308_v23, %v316_v26  ;;  %v321_v34 = vrot.slane %v308_v23, %v320_v27  ;;  %v325_v35 = vrot.slane %v308_v23, %v324_v28  ;;  %v299_v58 = vld [vmem:[%s1352_s30 + $0x38] sm:$0xff]  ;;  %v348_v12 = vld [vmem:[#allocation2 + $0x10] sm:$0xff]  ;;  %v347_v19 = vld [vmem:[#allocation2 + $0x8] sm:$0xff] }
  0x6a   : > { %v349_v18 = vld [vmem:[#allocation2 + $0x18] sm:$0xff] }
  0x6b   : > { %v338_v42 = vmul.f32 %v313_v32, %v300_v24  ;;  %v339_v43 = vmul.f32 %v317_v33, %v301_v29  ;;  %v340_v44 = vmul.f32 %v321_v34, %v302_v30  ;;  %v341_v48 = vmul.f32 %v325_v35, %v303_v31 }
  0x6c   : > { %v330_v49 = vmul.f32 %v313_v32, %v292_v36  ;;  %v331_v50 = vmul.f32 %v317_v33, %v293_v37  ;;  %v332_v51 = vmul.f32 %v321_v34, %v294_v38  ;;  %v342_v55 = vmul.f32 %v313_v32, %v304_v39 }
  0x6d   : > { %v360_v54 = vadd.f32 %v339_v43, %v338_v42  ;;  %v343_v56 = vmul.f32 %v317_v33, %v305_v40  ;;  %v344_v57 = vmul.f32 %v321_v34, %v306_v41  ;;  %v333_v59 = vmul.f32 %v325_v35, %v295_v45 }
  0x6e   : > { %v350_v60 = vadd.f32 %v331_v50, %v330_v49  ;;  %v334_v61 = vmul.f32 %v313_v32, %v296_v46  ;;  %v335_v62 = vmul.f32 %v317_v33, %v297_v47  ;;  %v345_v0 = vmul.f32 %v325_v35, %v307_v52 }
  0x6f   : > { %v361_v63 = vadd.f32 %v360_v54, %v340_v44  ;;  %v365_v1 = vadd.f32 %v343_v56, %v342_v55  ;;  %v336_v2 = vmul.f32 %v321_v34, %v298_v53  ;;  %v337_v4 = vmul.f32 %v325_v35, %v299_v58 }
  0x70   : > { %v351_v3 = vadd.f32 %v350_v60, %v332_v51  ;;  %v355_v5 = vadd.f32 %v335_v62, %v334_v61 }
  0x71   : > { %v362_v6 = vadd.f32 %v361_v63, %v341_v48  ;;  %v366_v7 = vadd.f32 %v365_v1, %v344_v57 }
  0x72   : > { %v352_v8 = vadd.f32 %v351_v3, %v333_v59  ;;  %v356_v9 = vadd.f32 %v355_v5, %v336_v2 }
  0x73   : > { %363 = vadd.xlane.f32.xlu1 %v362_v6  ;;  %v367_v10 = vadd.f32 %v366_v7, %v345_v0 }
  0x74   : > { %353 = vadd.xlane.f32.xlu0 %v352_v8  ;;  %v357_v11 = vadd.f32 %v356_v9, %v337_v4 }
  0x77   : > { %368 = vadd.xlane.f32.xlu1 %v367_v10 }
  0x78   : > { %358 = vadd.xlane.f32.xlu0 %v357_v11 }
 0x100   : > { %v364_v14 = vpop.xlane.xlu1 %363 }
 0x101   : > { %v372_v15 = vadd.f32 %v364_v14, %v348_v12  ;;  %v354_v16 = vpop.xlane.xlu0 %353 }
 0x102   : > { %v370_v17 = vadd.f32 %v354_v16, %v346_v13  ;;  %382 = sbr.rel (%p710_p11) target bundleno = 273 (0x111), region = 66 }
 0x103   : > { %377 = vst.msk [vmem:[#allocation2 + $0x10] sm:$0xff] %vm374_vm1, %v372_v15 }
 0x104   : > { %375 = vst.msk [vmem:[#allocation2] sm:$0xff] %vm374_vm1, %v370_v17  ;;  %v369_v20 = vpop.xlane.xlu1 %368 }
 0x105   : > { %v373_v21 = vadd.f32 %v369_v20, %v349_v18  ;;  %v359_v22 = vpop.xlane.xlu0 %358 }
 0x106   : > { %v371_v23 = vadd.f32 %v359_v22, %v347_v19 }
 0x107   : > { %378 = vst.msk [vmem:[#allocation2 + $0x18] sm:$0xff] %vm374_vm1, %v373_v21 }
 0x108   : > { %376 = vst.msk [vmem:[#allocation2 + $0x8] sm:$0xff] %vm374_vm1, %v371_v23 }
 0x10a   : > { %v385_v26 = vld [vmem:[#allocation2 + $0x10] sm:$0xff] }
 0x10b   : > { %v383_v24 = vld [vmem:[#allocation2] sm:$0xff]  ;;  %389 = vst.msk [vmem:[%s1354_s5 + $0x10] sm:$0xff] %vm374_vm1, %v385_v26 }
 0x10c   : > { %387 = vst.msk [vmem:[%s1354_s5] sm:$0xff] %vm374_vm1, %v383_v24 }
 0x10e   : > { %v386_v27 = vld [vmem:[#allocation2 + $0x18] sm:$0xff] }
 0x10f   : > { %v384_v25 = vld [vmem:[#allocation2 + $0x8] sm:$0xff]  ;;  %390 = vst.msk [vmem:[%s1354_s5 + $0x18] sm:$0xff] %vm374_vm1, %v386_v27 }
 0x110   : > { %388 = vst.msk [vmem:[%s1354_s5 + $0x8] sm:$0xff] %vm374_vm1, %v384_v25 }
 0x111 PF: > { %397 = sbr.rel (!%p1220_p9) target bundleno = 329 (0x149), region = 70  ;;  %s712_s9 = sshll.u32 (%p1220_p9), %s1058_s14, 2 }
 0x112   : > { %s732_s11 = sshll.u32 (%p1220_p9), %s1058_s14, 5  ;;  %s399_s13 = ssub.s32 (%p1220_p9), 7, %s712_s9 }
 0x113   : > { %s1393_s24 = scalar_lea.vmem (%p1220_p9), %s1461_s2, %s732_s11   ;;  %p400_p12 = scmp.lt.s32.totalorder (%p1220_p9), %s399_s13, 4 }
 0x118   : > { %s1495_s13 = smov (!%p400_p12, %s399_s13), 4 }
 0x119   : > { %s713_s25 = sshll.u32 %s1495_s13, 7 }
 0x11a   : > { %p716_p13 = scmp.eq.s32.totalorder %s713_s25, 0 }
 0x11b   : > { %s1399_s27 = sshrl.u32 (!%p716_p13), %s1495_s13, 2 }
 0x11c   : > { %408 = sbr.rel (%p716_p13) target bundleno = 329 (0x149), region = 74  ;;  %p717_p9 = scmp.le.s32.totalorder (!%p716_p13), %s1399_s27, 0 }
 0x123   : > { %622 = sbr.rel (%p717_p9) target bundleno = 308 (0x134), region = 182  ;;  %s1469_s14 = smov (!%p717_p9), %s1393_s24 }
 0x124   : > { %s1470_s26 = smov (!%p717_p9), %s1354_s5  ;;  %s1408_s4 = smov (!%p717_p9), 0  }
 0x125   : > { %s1116_s23 = smov (!%p717_p9), 0  }
 0x12a LB: >> { %v476_v28 = vld [vmem:[%s1110_s26] sm:$0xff]  ;;  %v478_v29 = vld [vmem:[%s1110_s26 + $0x8] sm:$0xff]  ;;  %v480_v30 = vld [vmem:[%s1110_s26 + $0x10] sm:$0xff]  ;;  %s484_s8 = sadd.s32 1, %s1114_s4  ;;  %s470_s23 = sadd.s32 1, %s1118_s23   ;;  %s1118_s23 = sphi %s1116_s23, %s470_s23   ;;  %s1114_s4 = sphi %s1408_s4, %s1471_s4   ;;  %s1110_s26 = sphi %s1470_s26, %s489_s26   ;;  %s1106_s14 = sphi %s1469_s14, %s490_s14  }
 0x12b   : >> { %477 = vst [vmem:[%s1106_s14] sm:$0xff] %v476_v28  ;;  %479 = vst [vmem:[%s1106_s14 + $0x8] sm:$0xff] %v478_v29  ;;  %v482_v31 = vld [vmem:[%s1110_s26 + $0x18] sm:$0xff]  ;;  %p485_p0 = scmp.ge.s32.totalorder %s484_s8, %s1399_s27  ;;  %p469_p1 = scmp.ge.s32.totalorder %s470_s23, %s1399_s27 }
 0x12c   : >> { %481 = vst [vmem:[%s1106_s14 + $0x10] sm:$0xff] %v480_v30  ;;  %483 = vst [vmem:[%s1106_s14 + $0x18] sm:$0xff] %v482_v31 }
 0x12d   : >> { %s1497_s8 = smov (%p485_p0, %s484_s8), 0  ;;  %472 = sbr.rel (!%p469_p1) target bundleno = 298 (0x12a), region = 188 }
 0x12e   : >> { %s718_s3 = sshll.u32 %s1497_s8, 5  ;;  %s1471_s4 = smov %s1497_s8 }
 0x12f   : >> { %s489_s26 = scalar_lea.vmem %s1354_s5, %s718_s3 [#allocation4]   ;;  %s490_s14 = scalar_lea.vmem %s1393_s24, %s718_s3  }
 0x134 PF: > { %s1424_s21 = sand.u32 3, %s1495_s13   ;;  %s733_s22 = sshll.u32 %s1399_s27, 5 }
 0x135   : > { %s495_s20 = scalar_lea.vmem %s1354_s5, %s733_s22 [#allocation4]   ;;  %s497_s30 = scalar_lea.vmem %s1393_s24, %s733_s22  }
 0x136   : > { %p723_p2 = scmp.le.s32.totalorder %s1424_s21, 0 }
 0x137   : > { %s1120_s9 = smov (!%p723_p2), %s497_s30   ;;  %s1124_s11 = smov (!%p723_p2), %s495_s20  }
 0x138   : > { %636 = sbr.rel (%p723_p2) target bundleno = 329 (0x149), region = 193  ;;  %s1128_s7 = smov (!%p723_p2), 0  }
 0x139   : > { %s1132_s6 = smov (!%p723_p2), 0  }
 0x13f LB: >> { %v507_v32 = vld [vmem:[%s1126_s11] sm:$0xff]  ;;  %s509_s13 = sadd.s32 1, %s1130_s7  ;;  %s501_s6 = sadd.s32 1, %s1134_s6   ;;  %s1134_s6 = sphi %s1132_s6, %s501_s6   ;;  %s1130_s7 = sphi %s1128_s7, %s1129_s7   ;;  %s1126_s11 = sphi %s1124_s11, %s514_s11   ;;  %s1122_s9 = sphi %s1120_s9, %s515_s9  }
 0x140   : >> { %508 = vst [vmem:[%s1122_s9] sm:$0xff] %v507_v32  ;;  %p510_p3 = scmp.ge.s32.totalorder %s509_s13, %s1424_s21  ;;  %p500_p4 = scmp.ge.s32.totalorder %s501_s6, %s1424_s21 }
 0x142   : >> { %s1499_s13 = smov (%p510_p3, %s509_s13), 0  ;;  %503 = sbr.rel (!%p500_p4) target bundleno = 319 (0x13f), region = 199 }
 0x143   : >> { %s724_s5 = sshll.u32 %s1499_s13, 3  ;;  %s1129_s7 = smov %s1499_s13  }
 0x144   : >> { %s514_s11 = scalar_lea.vmem %s495_s20, %s724_s5 [#allocation4]   ;;  %s515_s9 = scalar_lea.vmem %s497_s30, %s724_s5  }
 0x149 PF: > { %s12_s17 = sadd.s32 1, %s1070_s17   ;;  %s1472_s9 = smov %s1042_s10 }
 0x14a   : > { %p9_p5 = scmp.ge.s32.totalorder %s12_s17, 10   ;;  %s1473_s10 = smov %s1225_s28 }
 0x14b   : > { %s1474_s11 = smov %s1050_s12  ;;  %s1475_s12 = smov %s1228_s29 }
 0x14c   : > { %s1476_s13 = smov %s1062_s15  ;;  %s1477_s14 = smov %s1066_s16 }
 0x14d   : > { %s1478_s15 = smov %s1481_s18  ;;  %s1479_s16 = smov %s1485_s19 }
 0x14e   :  { %11 = sbr.rel (!%p9_p5) target bundleno = 5 (0x5), region = 210 }

// kernel: multiscale_discriminator_forward.40
= control target key start
LH: loop header
LB: loop body
LE: loop exit
PB: predicated region body
PF: predicated region fallthrough
CT: control target
= control target key end

     0   :  { %s1016_s12 = smov 0   ;;  %s1018_s13 = smov 0   ;;  %s1156_s0 = inlined_call_operand.vmem [shape: f32[50,48], index: 0, kind: input, shape index: {}]   ;;  %s1157_s1 = inlined_call_operand.vmem [shape: f32[48,128], index: 1, kind: input, shape index: {}]   ;;  %s1158_s2 = inlined_call_operand.vmem [shape: f32[1,128], index: 2, kind: input, shape index: {}]   ;;  %s1159_s3 = inlined_call_operand.vmem [shape: f32[50,128], index: 3, kind: output, shape index: {}]  }
   0x1   :  { %s1020_s14 = smov 0   ;;  %s1022_s15 = smov 0  }
   0x2   :  { %s1024_s16 = smov 0  }
   0x3 LB: > { %s707_s17 = sadd.s32 4294967295, %s962_s16   ;;  %s32_s18 = sadd.s32 1, %s958_s15  ;;  %s962_s16 = sphi %s1024_s16, %s13_s16   ;;  %s958_s15 = sphi %s1022_s15, %s1167_s15   ;;  %s954_s14 = sphi %s1020_s14, %s1166_s14   ;;  %s950_s13 = sphi %s1018_s13, %s1165_s13   ;;  %s946_s12 = sphi %s1016_s12, %s1164_s12  }
   0x4   : > { %p34_p0 = scmp.ge.s32.totalorder %s32_s18, 2  ;;  %s123_s19 = sadd.s32 1, %s950_s13 }
   0x5   : > { %p133_p1 = scmp.ne.s32.totalorder %s950_s13, %s946_s12  ;;  %p134_p2 = scmp.eq.s32.totalorder %s707_s17, 1 }
   0x6   : > { %s1169_s18 = smov (%p34_p0, %s32_s18), 0  ;;  %p713_p4 = scmp.ge.s32.totalorder %s962_s16, 1 }
   0x7   : > { %p1048_p3 = por %p134_p2, %p133_p1  ;;  %s118_s21 = ssub.s32 %s958_s15, %s1169_s18 }
   0x8   : > { %p196_p5 = scmp.lt.s32.totalorder %s962_s16, 3  ;;  %p121_p6 = scmp.eq.s32.totalorder %s118_s21, 0 }
   0xa   : > { %p197_p7 = pnand %p713_p4, %p196_p5 }
   0xb   : > { %s1057_s22 = scalar_select %p121_p6, %s950_s13, %s123_s19  }
   0xc   : > { %200 = sbr.rel (%p197_p7) target bundleno = 296 (0x128), region = 32  ;;  %v287_v0 = vld [vmem:[%s1157_s1] sm:$0xff] (!%p197_p7)  ;;  %v288_v1 = vld [vmem:[%s1157_s1 + $0x8] sm:$0xff] (!%p197_p7)  ;;  %v289_v2 = vld [vmem:[%s1157_s1 + $0x10] sm:$0xff] (!%p197_p7)  ;;  %s1069_s29 = sshll.u32 (!%p197_p7), %s954_s14, 2  ;;  %vm293_vm0 = vcmask (!%p197_p7), 392192  }
   0xd   : > { %v770_v3 = vpack.c.bf16 (!%p197_p7), %v288_v1, %v287_v0  ;;  %v290_v4 = vld [vmem:[%s1157_s1 + $0x18] sm:$0xff] (!%p197_p7)  ;;  %p242_p8 = scmp.lt.s32.totalorder (!%p197_p7), %s1069_s29, 6  ;;  %v291_v6 = vld [vmem:[%s1157_s1 + $0x20] sm:$0xff] (!%p197_p7)  ;;  %v292_v7 = vld [vmem:[%s1157_s1 + $0x28] sm:$0xff] (!%p197_p7)  ;;  %s234_s21 = sand.u32 (!%p197_p7), 1, %s946_s12  }
   0xe   : > { %v774_v5 = vpack.c.bf16 (!%p197_p7), %v290_v4, %v289_v2  ;;  %v778_v8 = vpack.c.bf16 (!%p197_p7), %v292_v7, %v291_v6  ;;  %v721_v13 = vld [vmem:[%s1158_s2] ss:$0 sm:$0xff] (!%p197_p7)  ;;  %s714_s25 = sshll.u32 (!%p197_p7), %s234_s21, 5 }
   0xf   : > { %771 = vmatprep.subr.bf16.mxu0 (!%p197_p7), %v770_v3  ;;  %782 = vmatprep.subr.bf16.mxu1 (!%p197_p7), %v770_v3  ;;  %s1089_s12 = scalar_lea.vmem (!%p197_p7), [#allocation3], %s714_s25  }
  0x10   : > { %773 = vmatpush3.bf16.msra.mxu0 (!%p197_p7), %v770_v3  ;;  %785 = vmatpush3.bf16.msra.mxu1 (!%p197_p7), %v770_v3 }
  0x11   : > { %775 = vmatprep.subr.bf16.mxu0 (!%p197_p7), %v774_v5  ;;  %783 = vmatprep.subr.bf16.mxu1 (!%p197_p7), %v774_v5 }
  0x13   : > { %s243_s9 = scalar_select %p242_p8, %s1069_s29, 6 }
  0x14   : > { %777 = vmatpush3.bf16.msra.mxu0 %v774_v5  ;;  %786 = vmatpush3.bf16.msra.mxu1 %v774_v5  ;;  %s441_s26 = ssub.s32 (%p1048_p3), 7, %s1069_s29  ;;  %s739_s27 = sshll.u32 (%p1048_p3), %s954_s14, 5 }
  0x15   : > { %s716_s10 = sshll.u32 %s243_s9, 3  ;;  %779 = vmatprep.subr.bf16.mxu0 %v778_v8  ;;  %784 = vmatprep.subr.bf16.mxu1 %v778_v8  ;;  %p442_p9 = scmp.lt.s32.totalorder (%p1048_p3), %s441_s26, 4 }
  0x16   : > { %s248_s19 = scalar_lea.vmem %s1156_s0, %s716_s10  ;;  %s1102_s4 = scalar_lea.vmem (%p1048_p3), %s1159_s3, %s739_s27  }
  0x17   : > { %v283_v9 = vld [vmem:[%s248_s19] sm:$0xff]  ;;  %v285_v10 = vld [vmem:[%s248_s19 + $0x10] sm:$0xff]  ;;  %v284_v11 = vld [vmem:[%s248_s19 + $0x8] sm:$0xff] }
  0x18   : > { %764 = vmatprep.mubr.msk.f32.mxu0 %vm293_vm0, %v283_v9  ;;  %767 = vmatprep.mubr.msk.f32.mxu1 %vm293_vm0, %v285_v10  ;;  %v286_v12 = vld [vmem:[%s248_s19 + $0x18] sm:$0xff] }
  0x19   : > { %781 = vmatpush3.bf16.msra.mxu0 %v778_v8  ;;  %787 = vmatpush3.bf16.msra.mxu1 %v778_v8 }
  0x1c   : > { %765 = vmatmul.mubr.msk.f32.vlgmr.msra.gmra.mrb[0].mxu0 %vm293_vm0, %v284_v11  ;;  %768 = vmatmul.mubr.msk.f32.vlgmr.msra.gmra.mrb[0].mxu1 %vm293_vm0, %v286_v12 }
  0xef   : > { %v766_v14 = vpop.f32.mrb[0].mxu0  ;;  %v769_v15 = vpop.f32.mrb[0].mxu1 }
  0xf0   : > { %v414_v16 = vadd.f32 %v766_v14, %v721_v13  ;;  %v416_v17 = vadd.f32 %v769_v15, %v721_v13  ;;  %v372_v18 = vpop.f32.mrb[1].mxu0  ;;  %v382_v19 = vpop.f32.mrb[1].mxu1  ;;  %439 = sbr.rel (!%p1048_p3) target bundleno = 296 (0x128), region = 44 }
  0xf1   : > { %v413_v20 = vadd.f32 %v721_v13, %v372_v18  ;;  %v415_v21 = vadd.f32 %v721_v13, %v382_v19 }
  0xf2   : > { %vm418_vm1 = vcmp.ge.f32.partialorder %v414_v16, 0.0  ;;  %v422_v22 = vmul.f32 0.2, %v414_v16  ;;  %vm420_vm2 = vcmp.ge.f32.partialorder %v416_v17, 0.0  ;;  %v424_v23 = vmul.f32 0.2, %v416_v17 }
  0xf3   : > { %vm417_vm3 = vcmp.ge.f32.partialorder %v413_v20, 0.0  ;;  %v421_v24 = vmul.f32 0.2, %v413_v20  ;;  %vm419_vm4 = vcmp.ge.f32.partialorder %v415_v21, 0.0  ;;  %v423_v25 = vmul.f32 0.2, %v415_v21 }
  0xf4   : > { %v426_v26 = vsel %vm418_vm1, %v414_v16, %v422_v22  ;;  %v428_v27 = vsel %vm420_vm2, %v416_v17, %v424_v23 }
  0xf5   : > { %430 = vst [vmem:[%s1089_s12 + $0x8] sm:$0xff] %v426_v26  ;;  %432 = vst [vmem:[%s1089_s12 + $0x18] sm:$0xff] %v428_v27  ;;  %v425_v28 = vsel %vm417_vm3, %v413_v20, %v421_v24  ;;  %v427_v29 = vsel %vm419_vm4, %v415_v21, %v423_v25 }
  0xf6   : > { %429 = vst [vmem:[%s1089_s12] sm:$0xff] %v425_v28  ;;  %431 = vst [vmem:[%s1089_s12 + $0x10] sm:$0xff] %v427_v29 }
  0xf7   : > { %s1171_s26 = smov (!%p442_p9, %s441_s26), 4 }
  0xf8   : > { %s724_s5 = sshll.u32 %s1171_s26, 7 }
  0xf9   : > { %p727_p10 = scmp.eq.s32.totalorder %s724_s5, 0 }
  0xfa   : > { %s1108_s6 = sshrl.u32 (!%p727_p10), %s1171_s26, 2 }
  0xfb   : > { %451 = sbr.rel (%p727_p10) target bundleno = 296 (0x128), region = 48  ;;  %p728_p11 = scmp.le.s32.totalorder (!%p727_p10), %s1108_s6, 0 }
 0x102   : > { %634 = sbr.rel (%p728_p11) target bundleno = 275 (0x113), region = 130  ;;  %s1161_s14 = smov (!%p728_p11), %s1102_s4 }
 0x103   : > { %s1162_s20 = smov (!%p728_p11), %s1089_s12  ;;  %s1117_s29 = smov (!%p728_p11), 0  }
 0x104   : > { %s976_s7 = smov (!%p728_p11), 0  }
 0x109 LB: >> { %v519_v30 = vld [vmem:[%s970_s20] sm:$0xff]  ;;  %v521_v31 = vld [vmem:[%s970_s20 + $0x8] sm:$0xff]  ;;  %v523_v32 = vld [vmem:[%s970_s20 + $0x10] sm:$0xff]  ;;  %s527_s8 = sadd.s32 1, %s974_s29  ;;  %s513_s7 = sadd.s32 1, %s978_s7   ;;  %s978_s7 = sphi %s976_s7, %s513_s7   ;;  %s974_s29 = sphi %s1117_s29, %s1163_s29   ;;  %s970_s20 = sphi %s1162_s20, %s532_s20   ;;  %s966_s14 = sphi %s1161_s14, %s533_s14  }
 0x10a   : >> { %520 = vst [vmem:[%s966_s14] sm:$0xff] %v519_v30  ;;  %522 = vst [vmem:[%s966_s14 + $0x8] sm:$0xff] %v521_v31  ;;  %v525_v33 = vld [vmem:[%s970_s20 + $0x18] sm:$0xff]  ;;  %p528_p12 = scmp.ge.s32.totalorder %s527_s8, %s1108_s6  ;;  %p512_p13 = scmp.ge.s32.totalorder %s513_s7, %s1108_s6 }
 0x10b   : >> { %524 = vst [vmem:[%s966_s14 + $0x10] sm:$0xff] %v523_v32  ;;  %526 = vst [vmem:[%s966_s14 + $0x18] sm:$0xff] %v525_v33 }
 0x10c   : >> { %s1173_s8 = smov (%p528_p12, %s527_s8), 0  ;;  %515 = sbr.rel (!%p512_p13) target bundleno = 265 (0x109), region = 136 }
 0x10d   : >> { %s729_s9 = sshll.u32 %s1173_s8, 5  ;;  %s1163_s29 = smov %s1173_s8 }
 0x10e   : >> { %s532_s20 = scalar_lea.vmem %s1089_s12, %s729_s9 [#allocation3]   ;;  %s533_s14 = scalar_lea.vmem %s1102_s4, %s729_s9  }
 0x113 PF: > { %s1133_s10 = sand.u32 3, %s1171_s26   ;;  %s740_s11 = sshll.u32 %s1108_s6, 5 }
 0x114   : > { %s538_s17 = scalar_lea.vmem %s1089_s12, %s740_s11 [#allocation3]   ;;  %s540_s19 = scalar_lea.vmem %s1102_s4, %s740_s11  }
 0x115   : > { %p734_p0 = scmp.le.s32.totalorder %s1133_s10, 0 }
 0x116   : > { %s980_s21 = smov (!%p734_p0), %s540_s19   ;;  %s984_s23 = smov (!%p734_p0), %s538_s17  }
 0x117   : > { %648 = sbr.rel (%p734_p0) target bundleno = 296 (0x128), region = 141  ;;  %s988_s24 = smov (!%p734_p0), 0  }
 0x118   : > { %s992_s25 = smov (!%p734_p0), 0  }
 0x11e LB: >> { %v550_v34 = vld [vmem:[%s986_s23] sm:$0xff]  ;;  %s552_s26 = sadd.s32 1, %s990_s24  ;;  %s544_s25 = sadd.s32 1, %s994_s25   ;;  %s994_s25 = sphi %s992_s25, %s544_s25   ;;  %s990_s24 = sphi %s988_s24, %s989_s24   ;;  %s986_s23 = sphi %s984_s23, %s557_s23   ;;  %s982_s21 = sphi %s980_s21, %s558_s21  }
 0x11f   : >> { %551 = vst [vmem:[%s982_s21] sm:$0xff] %v550_v34  ;;  %p553_p1 = scmp.ge.s32.totalorder %s552_s26, %s1133_s10  ;;  %p543_p2 = scmp.ge.s32.totalorder %s544_s25, %s1133_s10 }
 0x121   : >> { %s1175_s26 = smov (%p553_p1, %s552_s26), 0  ;;  %546 = sbr.rel (!%p543_p2) target bundleno = 286 (0x11e), region = 147 }
 0x122   : >> { %s735_s12 = sshll.u32 %s1175_s26, 3  ;;  %s989_s24 = smov %s1175_s26  }
 0x123   : >> { %s557_s23 = scalar_lea.vmem %s538_s17, %s735_s12 [#allocation3]   ;;  %s558_s21 = scalar_lea.vmem %s540_s19, %s735_s12  }
 0x128 PF: > { %s13_s16 = sadd.s32 1, %s962_s16   ;;  %s1164_s12 = smov %s950_s13 }
 0x129   : > { %p10_p3 = scmp.ge.s32.totalorder %s13_s16, 4   ;;  %s1165_s13 = smov %s1057_s22 }
 0x12a   : > { %s1166_s14 = smov %s958_s15  ;;  %s1167_s15 = smov %s1169_s18 }
 0x12b   :  { %12 = sbr.rel (!%p10_p3) target bundleno = 3 (0x3), region = 158 }

// kernel: multiscale_discriminator_forward.41
= control target key start
LH: loop header
LB: loop body
LE: loop exit
PB: predicated region body
PF: predicated region fallthrough
CT: control target
= control target key end

     0   :  { %s1039_s12 = smov 0   ;;  %s1041_s13 = smov 0   ;;  %s1246_s0 = inlined_call_operand.vmem [shape: f32[18,256], index: 0, kind: input, shape index: {}]   ;;  %s1247_s1 = inlined_call_operand.vmem [shape: f32[256,128], index: 1, kind: input, shape index: {}]   ;;  %s1248_s2 = inlined_call_operand.vmem [shape: f32[1,128], index: 2, kind: input, shape index: {}]   ;;  %s1249_s3 = inlined_call_operand.vmem [shape: f32[18,128], index: 3, kind: output, shape index: {}]  }
   0x1   :  { %s1043_s14 = smov 0   ;;  %s1045_s15 = smov 0  }
   0x2   :  { %s1047_s16 = smov 0  }
   0x3 LB: > { %s692_s17 = sadd.s32 4294967295, %s985_s16   ;;  %s32_s18 = sadd.s32 1, %s981_s15  ;;  %s985_s16 = sphi %s1047_s16, %s13_s16   ;;  %s981_s15 = sphi %s1045_s15, %s1254_s15   ;;  %s977_s14 = sphi %s1043_s14, %s1253_s14   ;;  %s973_s13 = sphi %s1041_s13, %s1252_s13   ;;  %s969_s12 = sphi %s1039_s12, %s1251_s12  }
   0x4   : > { %p34_p0 = scmp.ge.s32.totalorder %s32_s18, 2  ;;  %s123_s19 = sadd.s32 1, %s973_s13 }
   0x5   : > { %p133_p1 = scmp.ne.s32.totalorder %s973_s13, %s969_s12  ;;  %p134_p2 = scmp.eq.s32.totalorder %s692_s17, 1 }
   0x6   : > { %s1256_s18 = smov (%p34_p0, %s32_s18), 0  ;;  %p698_p4 = scmp.ge.s32.totalorder %s985_s16, 1 }
   0x7   : > { %p1071_p3 = por %p134_p2, %p133_p1  ;;  %s118_s21 = ssub.s32 %s981_s15, %s1256_s18 }
   0x8   : > { %p201_p5 = scmp.lt.s32.totalorder %s985_s16, 3  ;;  %p121_p6 = scmp.eq.s32.totalorder %s118_s21, 0 }
   0xa   : > { %p202_p7 = pnand %p698_p4, %p201_p5 }
   0xb   : > { %s1080_s22 = scalar_select %p121_p6, %s973_s13, %s123_s19  }
   0xc   : > { %205 = sbr.rel (%p202_p7) target bundleno = 315 (0x13b), region = 32  ;;  %v312_v0 = vld [vmem:[%s1247_s1 + $0x80] sm:$0xff] (!%p202_p7)  ;;  %v313_v1 = vld [vmem:[%s1247_s1 + $0x88] sm:$0xff] (!%p202_p7)  ;;  %s1092_s29 = sshll.u32 (!%p202_p7), %s977_s14, 1  ;;  %v314_v5 = vld [vmem:[%s1247_s1 + $0x90] sm:$0xff] (!%p202_p7) }
   0xd   : > { %v296_v2 = vld [vmem:[%s1247_s1] sm:$0xff] (!%p202_p7)  ;;  %v763_v3 = vpack.c.bf16 (!%p202_p7), %v313_v1, %v312_v0  ;;  %v297_v4 = vld [vmem:[%s1247_s1 + $0x8] sm:$0xff] (!%p202_p7)  ;;  %v315_v6 = vld [vmem:[%s1247_s1 + $0x98] sm:$0xff] (!%p202_p7)  ;;  %p252_p8 = scmp.lt.s32.totalorder (!%p202_p7), %s1092_s29, 2  ;;  %s242_s21 = sand.u32 (!%p202_p7), 1, %s969_s12  }
   0xe   : > { %v765_v7 = vpack.c.bf16 (!%p202_p7), %v297_v4, %v296_v2  ;;  %v767_v8 = vpack.c.bf16 (!%p202_p7), %v315_v6, %v314_v5  ;;  %v298_v9 = vld [vmem:[%s1247_s1 + $0x10] sm:$0xff] (!%p202_p7)  ;;  %v299_v10 = vld [vmem:[%s1247_s1 + $0x18] sm:$0xff] (!%p202_p7)  ;;  %v316_v11 = vld [vmem:[%s1247_s1 + $0xa0] sm:$0xff] (!%p202_p7)  ;;  %s699_s23 = sshll.u32 (!%p202_p7), %s242_s21, 4 }
   0xf   : > { %764 = vmatprep.subr.bf16.mxu0 (!%p202_p7), %v763_v3  ;;  %795 = vmatprep.subr.bf16.mxu1 (!%p202_p7), %v763_v3  ;;  %v317_v12 = vld [vmem:[%s1247_s1 + $0xa8] sm:$0xff] (!%p202_p7)  ;;  %v769_v13 = vpack.c.bf16 (!%p202_p7), %v299_v10, %v298_v9  ;;  %v300_v15 = vld [vmem:[%s1247_s1 + $0x20] sm:$0xff] (!%p202_p7)  ;;  %v318_v17 = vld [vmem:[%s1247_s1 + $0xb0] sm:$0xff] (!%p202_p7)  ;;  %s1196_s26 = scalar_lea.vmem (!%p202_p7), [#allocation3], %s699_s23  }
  0x10   : > { %766 = vmatpush3.bf16.msra.mxu0 (!%p202_p7), %v765_v7  ;;  %803 = vmatpush3.bf16.msra.mxu1 (!%p202_p7), %v765_v7  ;;  %v771_v14 = vpack.c.bf16 (!%p202_p7), %v317_v12, %v316_v11  ;;  %v301_v16 = vld [vmem:[%s1247_s1 + $0x28] sm:$0xff] (!%p202_p7)  ;;  %v319_v18 = vld [vmem:[%s1247_s1 + $0xb8] sm:$0xff] (!%p202_p7)  ;;  %v302_v21 = vld [vmem:[%s1247_s1 + $0x30] sm:$0xff] (!%p202_p7) }
  0x11   : > { %768 = vmatprep.subr.bf16.mxu0 (!%p202_p7), %v767_v8  ;;  %796 = vmatprep.subr.bf16.mxu1 (!%p202_p7), %v767_v8  ;;  %v773_v19 = vpack.c.bf16 (!%p202_p7), %v301_v16, %v300_v15  ;;  %v775_v20 = vpack.c.bf16 (!%p202_p7), %v319_v18, %v318_v17  ;;  %v303_v22 = vld [vmem:[%s1247_s1 + $0x38] sm:$0xff] (!%p202_p7)  ;;  %v320_v23 = vld [vmem:[%s1247_s1 + $0xc0] sm:$0xff] (!%p202_p7)  ;;  %v321_v24 = vld [vmem:[%s1247_s1 + $0xc8] sm:$0xff] (!%p202_p7) }
  0x12   : > { %v777_v27 = vpack.c.bf16 (!%p202_p7), %v303_v22, %v302_v21  ;;  %v779_v28 = vpack.c.bf16 (!%p202_p7), %v321_v24, %v320_v23  ;;  %v304_v29 = vld [vmem:[%s1247_s1 + $0x40] sm:$0xff] (!%p202_p7)  ;;  %v305_v30 = vld [vmem:[%s1247_s1 + $0x48] sm:$0xff] (!%p202_p7)  ;;  %v322_v31 = vld [vmem:[%s1247_s1 + $0xd0] sm:$0xff] (!%p202_p7) }
  0x13   : > { %s253_s25 = scalar_select %p252_p8, %s1092_s29, 2  ;;  %v323_v32 = vld [vmem:[%s1247_s1 + $0xd8] sm:$0xff]  ;;  %v781_v33 = vpack.c.bf16 %v305_v30, %v304_v29  ;;  %v306_v35 = vld [vmem:[%s1247_s1 + $0x50] sm:$0xff]  ;;  %v324_v37 = vld [vmem:[%s1247_s1 + $0xe0] sm:$0xff] }
  0x14   : > { %770 = vmatpush3.bf16.msra.mxu0 %v769_v13  ;;  %804 = vmatpush3.bf16.msra.mxu1 %v769_v13  ;;  %v783_v34 = vpack.c.bf16 %v323_v32, %v322_v31  ;;  %v307_v36 = vld [vmem:[%s1247_s1 + $0x58] sm:$0xff]  ;;  %v325_v38 = vld [vmem:[%s1247_s1 + $0xe8] sm:$0xff]  ;;  %v308_v41 = vld [vmem:[%s1247_s1 + $0x60] sm:$0xff]  ;;  %s431_s12 = ssub.s32 (%p1071_p3), 3, %s1092_s29 }
  0x15   : > { %s721_s4 = sshll.u32 %s253_s25, 4  ;;  %772 = vmatprep.subr.bf16.mxu0 %v771_v14  ;;  %797 = vmatprep.subr.bf16.mxu1 %v771_v14  ;;  %v785_v39 = vpack.c.bf16 %v307_v36, %v306_v35  ;;  %v787_v40 = vpack.c.bf16 %v325_v38, %v324_v37  ;;  %v309_v42 = vld [vmem:[%s1247_s1 + $0x68] sm:$0xff]  ;;  %v326_v43 = vld [vmem:[%s1247_s1 + $0xf0] sm:$0xff]  ;;  %v327_v44 = vld [vmem:[%s1247_s1 + $0xf8] sm:$0xff]  ;;  %p432_p9 = scmp.lt.s32.totalorder (%p1071_p3), %s431_s12, 2 }
  0x16   : > { %s1132_s11 = scalar_lea.vmem %s1246_s0, %s721_s4  ;;  %v789_v45 = vpack.c.bf16 %v309_v42, %v308_v41  ;;  %v791_v46 = vpack.c.bf16 %v327_v44, %v326_v43  ;;  %v310_v47 = vld [vmem:[%s1247_s1 + $0x70] sm:$0xff]  ;;  %v311_v48 = vld [vmem:[%s1247_s1 + $0x78] sm:$0xff]  ;;  %v703_v55 = vld [vmem:[%s1248_s2] ss:$0 sm:$0xff] }
  0x17   : > { %v293_v25 = vld [vmem:[%s1132_s11 + $0x8] sm:$0xff]  ;;  %v295_v26 = vld [vmem:[%s1132_s11 + $0x18] sm:$0xff]  ;;  %v793_v49 = vpack.c.bf16 %v311_v48, %v310_v47  ;;  %v292_v50 = vld [vmem:[%s1132_s11] sm:$0xff] }
  0x18   : > { %392 = vmatprep.mubr.f32.mxu0 %v293_v25  ;;  %774 = vmatpush3.bf16.msra.mxu0 %v773_v19  ;;  %v294_v51 = vld [vmem:[%s1132_s11 + $0x10] sm:$0xff]  ;;  %s722_s11 = sshll.u32 (%p1071_p3), %s977_s14, 4 }
  0x19   : > { %805 = vmatpush3.bf16.msra.mxu1 %v773_v19  ;;  %776 = vmatprep.subr.bf16.mxu0 %v775_v20  ;;  %s1207_s30 = scalar_lea.vmem (%p1071_p3), %s1249_s3, %s722_s11  }
  0x1a   : > { %798 = vmatprep.subr.bf16.mxu1 %v775_v20  ;;  %397 = vmatprep.mubr.f32.mxu1 %v295_v26 }
  0x1c   : > { %778 = vmatpush3.bf16.msra.mxu0 %v777_v27 }
  0x1d   : > { %806 = vmatpush3.bf16.msra.mxu1 %v777_v27  ;;  %780 = vmatprep.subr.bf16.mxu0 %v779_v28 }
  0x1e   : > { %799 = vmatprep.subr.bf16.mxu1 %v779_v28 }
  0x20   : > { %782 = vmatpush3.bf16.msra.mxu0 %v781_v33 }
  0x21   : > { %807 = vmatpush3.bf16.msra.mxu1 %v781_v33  ;;  %784 = vmatprep.subr.bf16.mxu0 %v783_v34 }
  0x22   : > { %800 = vmatprep.subr.bf16.mxu1 %v783_v34 }
  0x24   : > { %786 = vmatpush3.bf16.msra.mxu0 %v785_v39 }
  0x25   : > { %808 = vmatpush3.bf16.msra.mxu1 %v785_v39  ;;  %788 = vmatprep.subr.bf16.mxu0 %v787_v40 }
  0x26   : > { %801 = vmatprep.subr.bf16.mxu1 %v787_v40 }
  0x28   : > { %790 = vmatpush3.bf16.msra.mxu0 %v789_v45 }
  0x29   : > { %809 = vmatpush3.bf16.msra.mxu1 %v789_v45  ;;  %792 = vmatprep.subr.bf16.mxu0 %v791_v46 }
  0x2a   : > { %802 = vmatprep.subr.bf16.mxu1 %v791_v46 }
  0x2c   : > { %794 = vmatpush3.bf16.msra.mxu0 %v793_v49 }
  0x2d   : > { %810 = vmatpush3.bf16.msra.mxu1 %v793_v49 }
  0x2f   : > { %393 = vmatmul.mubr.f32.vlgmr.msra.gmra.mrb[0].mxu0 %v292_v50 }
  0x30   : > { %398 = vmatmul.mubr.f32.vlgmr.msra.gmra.mrb[0].mxu1 %v294_v51 }
 0x102   : > { %v757_v52 = vpop.f32.mrb[0].mxu0 }
 0x103   : > { %v760_v53 = vpop.f32.mrb[0].mxu1  ;;  %v758_v54 = vpop.f32.mrb[1].mxu0  ;;  %429 = sbr.rel (!%p1071_p3) target bundleno = 315 (0x13b), region = 44 }
 0x104   : > { %v761_v56 = vpop.f32.mrb[1].mxu1  ;;  %v759_v57 = vadd.f32 %v758_v54, %v757_v52 }
 0x105   : > { %v762_v58 = vadd.f32 %v761_v56, %v760_v53 }
 0x106   : > { %v419_v59 = vadd.f32 %v759_v57, %v703_v55 }
 0x107   : > { %v420_v60 = vadd.f32 %v762_v58, %v703_v55 }
 0x108   : > { %421 = vst [vmem:[%s1196_s26] sm:$0xff] %v419_v59 }
 0x109   : > { %422 = vst [vmem:[%s1196_s26 + $0x8] sm:$0xff] %v420_v60 }
 0x10a   : > { %s1258_s12 = smov (!%p432_p9, %s431_s12), 2 }
 0x10b   : > { %s706_s4 = sshll.u32 %s1258_s12, 7 }
 0x10c   : > { %p709_p10 = scmp.eq.s32.totalorder %s706_s4, 0 }
 0x10d   : > { %s1213_s5 = sshrl.u32 (!%p709_p10), %s1258_s12, 1 }
 0x10e   : > { %441 = sbr.rel (%p709_p10) target bundleno = 315 (0x13b), region = 48  ;;  %p710_p11 = scmp.le.s32.totalorder (!%p709_p10), %s1213_s5, 0 }
 0x115   : > { %619 = sbr.rel (%p710_p11) target bundleno = 294 (0x126), region = 130  ;;  %s987_s14 = smov (!%p710_p11), %s1207_s30  }
 0x116   : > { %s991_s20 = smov (!%p710_p11), %s1196_s26   ;;  %s995_s29 = smov (!%p710_p11), 0  }
 0x117   : > { %s999_s6 = smov (!%p710_p11), 0  }
 0x11c LB: >> { %v505_v61 = vld [vmem:[%s993_s20] sm:$0xff]  ;;  %v507_v62 = vld [vmem:[%s993_s20 + $0x8] sm:$0xff]  ;;  %s509_s7 = sadd.s32 1, %s997_s29  ;;  %s499_s6 = sadd.s32 1, %s1001_s6   ;;  %s1001_s6 = sphi %s999_s6, %s499_s6   ;;  %s997_s29 = sphi %s995_s29, %s996_s29   ;;  %s993_s20 = sphi %s991_s20, %s514_s20   ;;  %s989_s14 = sphi %s987_s14, %s515_s14  }
 0x11d   : >> { %506 = vst [vmem:[%s989_s14] sm:$0xff] %v505_v61  ;;  %508 = vst [vmem:[%s989_s14 + $0x8] sm:$0xff] %v507_v62  ;;  %p510_p12 = scmp.ge.s32.totalorder %s509_s7, %s1213_s5  ;;  %p498_p13 = scmp.ge.s32.totalorder %s499_s6, %s1213_s5 }
 0x11f   : >> { %s1260_s7 = smov (%p510_p12, %s509_s7), 0  ;;  %501 = sbr.rel (!%p498_p13) target bundleno = 284 (0x11c), region = 136 }
 0x120   : >> { %s711_s8 = sshll.u32 %s1260_s7, 4  ;;  %s996_s29 = smov %s1260_s7  }
 0x121   : >> { %s514_s20 = scalar_lea.vmem %s1196_s26, %s711_s8 [#allocation3]   ;;  %s515_s14 = scalar_lea.vmem %s1207_s30, %s711_s8  }
 0x126 PF: > { %s1223_s9 = sand.u32 1, %s1258_s12   ;;  %s723_s10 = sshll.u32 %s1213_s5, 4 }
 0x127   : > { %s520_s17 = scalar_lea.vmem %s1196_s26, %s723_s10 [#allocation3]   ;;  %s522_s19 = scalar_lea.vmem %s1207_s30, %s723_s10  }
 0x128   : > { %p716_p0 = scmp.le.s32.totalorder %s1223_s9, 0 }
 0x129   : > { %s1003_s21 = smov (!%p716_p0), %s522_s19   ;;  %s1007_s23 = smov (!%p716_p0), %s520_s17  }
 0x12a   : > { %633 = sbr.rel (%p716_p0) target bundleno = 315 (0x13b), region = 141  ;;  %s1011_s24 = smov (!%p716_p0), 0  }
 0x12b   : > { %s1015_s25 = smov (!%p716_p0), 0  }
 0x131 LB: >> { %v532_v63 = vld [vmem:[%s1009_s23] sm:$0xff]  ;;  %s534_s12 = sadd.s32 1, %s1013_s24  ;;  %s526_s25 = sadd.s32 1, %s1017_s25   ;;  %s1017_s25 = sphi %s1015_s25, %s526_s25   ;;  %s1013_s24 = sphi %s1011_s24, %s1012_s24   ;;  %s1009_s23 = sphi %s1007_s23, %s539_s23   ;;  %s1005_s21 = sphi %s1003_s21, %s540_s21  }
 0x132   : >> { %533 = vst [vmem:[%s1005_s21] sm:$0xff] %v532_v63  ;;  %p535_p1 = scmp.ge.s32.totalorder %s534_s12, %s1223_s9  ;;  %p525_p2 = scmp.ge.s32.totalorder %s526_s25, %s1223_s9 }
 0x134   : >> { %s1262_s12 = smov (%p535_p1, %s534_s12), 0  ;;  %528 = sbr.rel (!%p525_p2) target bundleno = 305 (0x131), region = 147 }
 0x135   : >> { %s717_s26 = sshll.u32 %s1262_s12, 3  ;;  %s1012_s24 = smov %s1262_s12  }
 0x136   : >> { %s539_s23 = scalar_lea.vmem %s520_s17, %s717_s26 [#allocation3]   ;;  %s540_s21 = scalar_lea.vmem %s522_s19, %s717_s26  }
 0x13b PF: > { %s13_s16 = sadd.s32 1, %s985_s16   ;;  %s1251_s12 = smov %s973_s13 }
 0x13c   : > { %p10_p3 = scmp.ge.s32.totalorder %s13_s16, 4   ;;  %s1252_s13 = smov %s1080_s22 }
 0x13d   : > { %s1253_s14 = smov %s981_s15  ;;  %s1254_s15 = smov %s1256_s18 }
 0x13e   :  { %12 = sbr.rel (!%p10_p3) target bundleno = 3 (0x3), region = 158 }

// kernel: multiscale_discriminator_forward.42
= control target key start
LH: loop header
LB: loop body
LE: loop exit
PB: predicated region body
PF: predicated region fallthrough
CT: control target
= control target key end

     0   :  { %s344_s6 = smov 0   ;;  %s346_s7 = smov 0   ;;  %s390_s0 = inlined_call_operand.vmem [shape: f32[2,9,32], index: 0, kind: input, shape index: {}]   ;;  %s391_s1 = inlined_call_operand.vmem [shape: f32[2,9,32], index: 1, kind: output, shape index: {}]  }
   0x1   :  { %s348_s8 = smov 0  }
   0x2 LB: > { %s23_s9 = sadd.s32 1, %s328_s7  ;;  %p275_p0 = scmp.ge.s32.totalorder %s332_s8, 1  ;;  %s332_s8 = sphi %s348_s8, %s11_s8   ;;  %s328_s7 = sphi %s346_s7, %s393_s7   ;;  %s324_s6 = sphi %s344_s6, %s392_s6  }
   0x3   : > { %p25_p1 = scmp.ge.s32.totalorder %s23_s9, 2  ;;  %p106_p2 = scmp.lt.s32.totalorder %s332_s8, 3 }
   0x5   : > { %s395_s9 = smov (%p25_p1, %s23_s9), 0  ;;  %p107_p3 = pnand %p275_p0, %p106_p2 }
   0x6   : > { %p132_p4 = scmp.lt.s32.totalorder (!%p107_p3), %s324_s6, 1  ;;  %vm150_vm0 = vcmask (!%p107_p3), 261120   ;;  %vm152_vm1 = vcmask (!%p107_p3), 253952  }
   0x7   : > { %110 = sbr.rel (%p107_p3) target bundleno = 76 (0x4c), region = 24 }
   0xe   : > { %s397_s6 = smov (!%p132_p4, %s324_s6), 1 }
   0xf   : > { %s282_s10 = sshll.u32 %s397_s6, 4 }
  0x10   : > { %s139_s13 = scalar_lea.vmem %s390_s0, %s282_s10  ;;  %s147_s16 = scalar_lea.vmem %s391_s1, %s282_s10 }
  0x11   : > { %v148_v0 = vld [vmem:[%s139_s13] sm:$0xff]  ;;  %v149_v1 = vld [vmem:[%s139_s13 + $0x8] sm:$0x1] }
  0x12   : > { %v151_v2 = vsel %vm150_vm0, %v148_v0, 0.0  ;;  %v153_v3 = vsel %vm152_vm1, %v149_v1, 0.0 }
  0x13   : > { %v154_v4 = vadd.f32 %v153_v3, %v151_v2 }
  0x15   : > { %v155_v5 = vrot.slane %v154_v4, 4 }
  0x17   : > { %v156_v6 = vadd.f32 %v155_v5, %v154_v4 }
  0x19   : > { %v157_v7 = vrot.slane %v156_v6, 2 }
  0x1b   : > { %v158_v8 = vadd.f32 %v157_v7, %v156_v6 }
  0x1d   : > { %v159_v9 = vrot.slane %v158_v8, 1 }
  0x1f   : > { %v160_v10 = vadd.f32 %v159_v9, %v158_v8 }
  0x21   : > { %v161_v11 = vmul.f32 0.11111111, %v160_v10 }
  0x23   : > { %v162_v12 = vsub.f32 %v148_v0, %v161_v11  ;;  %v163_v13 = vsub.f32 %v149_v1, %v161_v11 }
  0x25   : > { %v164_v14 = vmul.f32 %v162_v12, %v162_v12  ;;  %v165_v15 = vmul.f32 %v163_v13, %v163_v13 }
  0x27   : > { %v166_v16 = vsel %vm150_vm0, %v164_v14, 0.0  ;;  %v167_v17 = vsel %vm152_vm1, %v165_v15, 0.0 }
  0x28   : > { %v168_v18 = vadd.f32 %v167_v17, %v166_v16 }
  0x2a   : > { %v169_v19 = vrot.slane %v168_v18, 4 }
  0x2c   : > { %v170_v20 = vadd.f32 %v169_v19, %v168_v18 }
  0x2e   : > { %v171_v21 = vrot.slane %v170_v20, 2 }
  0x30   : > { %v172_v22 = vadd.f32 %v171_v21, %v170_v20 }
  0x32   : > { %v173_v23 = vrot.slane %v172_v22, 1 }
  0x34   : > { %v174_v24 = vadd.f32 %v173_v23, %v172_v22 }
  0x36   : > { %v175_v25 = vmul.f32 0.11111111, %v174_v24 }
  0x38   : > { %v176_v26 = vadd.f32 1e-05, %v175_v25 }
  0x3a   : > { %308 = vrsqrt.f32 %v176_v26 }
  0x44   : > { %v309_v27 = vpop.eup %308 }
  0x45   : > { %v178_v28 = vmul.f32 %v309_v27, %v162_v12  ;;  %v179_v29 = vmul.f32 %v309_v27, %v163_v13 }
  0x47   : > { %vm180_vm2 = vcmp.ge.f32.partialorder %v178_v28, 0.0  ;;  %v182_v30 = vmul.f32 0.2, %v178_v28  ;;  %vm181_vm3 = vcmp.ge.f32.partialorder %v179_v29, 0.0  ;;  %v183_v31 = vmul.f32 0.2, %v179_v29 }
  0x49   : > { %v184_v32 = vsel %vm180_vm2, %v178_v28, %v182_v30  ;;  %v185_v33 = vsel %vm181_vm3, %v179_v29, %v183_v31 }
  0x4a   : > { %186 = vst.msk [vmem:[%s147_s16] sm:$0xff] %vm150_vm0, %v184_v32 }
  0x4b   : > { %187 = vst.msk [vmem:[%s147_s16 + $0x8] sm:$0x1] %vm152_vm1, %v185_v33 }
  0x4c PF: > { %s11_s8 = sadd.s32 1, %s332_s8   ;;  %s392_s6 = smov %s328_s7 }
  0x4d   : > { %p8_p5 = scmp.ge.s32.totalorder %s11_s8, 4   ;;  %s393_s7 = smov %s395_s9 }
  0x4f   :  { %10 = sbr.rel (!%p8_p5) target bundleno = 2 (0x2), region = 54 }

// kernel: multiscale_discriminator_forward.43
= control target key start
LH: loop header
LB: loop body
LE: loop exit
PB: predicated region body
PF: predicated region fallthrough
CT: control target
= control target key end

     0   :  { %s612_s1 = inlined_call_operand.vmem [shape: f32[512,128], index: 1, kind: input, shape index: {}]   ;;  %s613_s0 = inlined_call_operand.vmem [shape: f32[8,512], index: 0, kind: input, shape index: {}]   ;;  %s614_s2 = inlined_call_operand.vmem [shape: f32[1,128], index: 2, kind: input, shape index: {}]   ;;  %s615_s3 = inlined_call_operand.vmem [shape: f32[8,128], index: 3, kind: output, shape index: {}]  }
   0x1   :  { %v40_v0 = vld [vmem:[%s612_s1 + $0x80] sm:$0xff]  ;;  %v41_v1 = vld [vmem:[%s612_s1 + $0x88] sm:$0xff]  ;;  %v42_v11 = vld [vmem:[%s612_s1 + $0x90] sm:$0xff] }
   0x2   :  { %v72_v2 = vld [vmem:[%s612_s1 + $0x180] sm:$0xff]  ;;  %v318_v3 = vpack.c.bf16 %v41_v1, %v40_v0  ;;  %v73_v4 = vld [vmem:[%s612_s1 + $0x188] sm:$0xff]  ;;  %v43_v13 = vld [vmem:[%s612_s1 + $0x98] sm:$0xff] }
   0x3   :  { %v24_v5 = vld [vmem:[%s612_s1] sm:$0xff]  ;;  %v25_v6 = vld [vmem:[%s612_s1 + $0x8] sm:$0xff]  ;;  %v350_v7 = vpack.c.bf16 %v73_v4, %v72_v2  ;;  %v74_v14 = vld [vmem:[%s612_s1 + $0x190] sm:$0xff]  ;;  %v322_v16 = vpack.c.bf16 %v43_v13, %v42_v11 }
   0x4   :  { %v320_v8 = vpack.c.bf16 %v25_v6, %v24_v5  ;;  %v56_v9 = vld [vmem:[%s612_s1 + $0x100] sm:$0xff]  ;;  %v57_v10 = vld [vmem:[%s612_s1 + $0x108] sm:$0xff]  ;;  %319 = vmatprep.subr.bf16.mxu0 %v318_v3  ;;  %v75_v15 = vld [vmem:[%s612_s1 + $0x198] sm:$0xff] }
   0x5   :  { %v352_v12 = vpack.c.bf16 %v57_v10, %v56_v9  ;;  %351 = vmatprep.subr.bf16.mxu1 %v350_v7  ;;  %v354_v17 = vpack.c.bf16 %v75_v15, %v74_v14  ;;  %v26_v18 = vld [vmem:[%s612_s1 + $0x10] sm:$0xff]  ;;  %v27_v19 = vld [vmem:[%s612_s1 + $0x18] sm:$0xff]  ;;  %v44_v23 = vld [vmem:[%s612_s1 + $0xa0] sm:$0xff] }
   0x6   :  { %321 = vmatpush3.bf16.msra.mxu0 %v320_v8  ;;  %v58_v20 = vld [vmem:[%s612_s1 + $0x110] sm:$0xff]  ;;  %v324_v21 = vpack.c.bf16 %v27_v19, %v26_v18  ;;  %v59_v22 = vld [vmem:[%s612_s1 + $0x118] sm:$0xff]  ;;  %v45_v24 = vld [vmem:[%s612_s1 + $0xa8] sm:$0xff] }
   0x7   :  { %353 = vmatpush3.bf16.msra.mxu1 %v352_v12  ;;  %323 = vmatprep.subr.bf16.mxu0 %v322_v16  ;;  %v356_v25 = vpack.c.bf16 %v59_v22, %v58_v20  ;;  %v326_v26 = vpack.c.bf16 %v45_v24, %v44_v23  ;;  %v76_v27 = vld [vmem:[%s612_s1 + $0x1a0] sm:$0xff]  ;;  %v77_v28 = vld [vmem:[%s612_s1 + $0x1a8] sm:$0xff]  ;;  %v46_v35 = vld [vmem:[%s612_s1 + $0xb0] sm:$0xff] }
   0x8   :  { %355 = vmatprep.subr.bf16.mxu1 %v354_v17  ;;  %v28_v29 = vld [vmem:[%s612_s1 + $0x20] sm:$0xff]  ;;  %v358_v30 = vpack.c.bf16 %v77_v28, %v76_v27  ;;  %v29_v31 = vld [vmem:[%s612_s1 + $0x28] sm:$0xff]  ;;  %v47_v36 = vld [vmem:[%s612_s1 + $0xb8] sm:$0xff] }
   0x9   :  { %v60_v32 = vld [vmem:[%s612_s1 + $0x120] sm:$0xff]  ;;  %v61_v33 = vld [vmem:[%s612_s1 + $0x128] sm:$0xff]  ;;  %v328_v34 = vpack.c.bf16 %v29_v31, %v28_v29  ;;  %v78_v37 = vld [vmem:[%s612_s1 + $0x1b0] sm:$0xff]  ;;  %v330_v39 = vpack.c.bf16 %v47_v36, %v46_v35 }
   0xa   :  { %325 = vmatpush3.bf16.msra.mxu0 %v324_v21  ;;  %v360_v38 = vpack.c.bf16 %v61_v33, %v60_v32  ;;  %v79_v40 = vld [vmem:[%s612_s1 + $0x1b8] sm:$0xff]  ;;  %v30_v41 = vld [vmem:[%s612_s1 + $0x30] sm:$0xff]  ;;  %v48_v46 = vld [vmem:[%s612_s1 + $0xc0] sm:$0xff] }
   0xb   :  { %357 = vmatpush3.bf16.msra.mxu1 %v356_v25  ;;  %327 = vmatprep.subr.bf16.mxu0 %v326_v26  ;;  %v31_v42 = vld [vmem:[%s612_s1 + $0x38] sm:$0xff]  ;;  %v362_v43 = vpack.c.bf16 %v79_v40, %v78_v37  ;;  %v62_v44 = vld [vmem:[%s612_s1 + $0x130] sm:$0xff]  ;;  %v49_v47 = vld [vmem:[%s612_s1 + $0xc8] sm:$0xff] }
   0xc   :  { %359 = vmatprep.subr.bf16.mxu1 %v358_v30  ;;  %v63_v45 = vld [vmem:[%s612_s1 + $0x138] sm:$0xff]  ;;  %v80_v48 = vld [vmem:[%s612_s1 + $0x1c0] sm:$0xff]  ;;  %v81_v49 = vld [vmem:[%s612_s1 + $0x1c8] sm:$0xff]  ;;  %v332_v50 = vpack.c.bf16 %v31_v42, %v30_v41  ;;  %v334_v52 = vpack.c.bf16 %v49_v47, %v48_v46 }
   0xd   :  { %v364_v51 = vpack.c.bf16 %v63_v45, %v62_v44  ;;  %v32_v53 = vld [vmem:[%s612_s1 + $0x40] sm:$0xff]  ;;  %v33_v54 = vld [vmem:[%s612_s1 + $0x48] sm:$0xff]  ;;  %v366_v56 = vpack.c.bf16 %v81_v49, %v80_v48  ;;  %v50_v58 = vld [vmem:[%s612_s1 + $0xd0] sm:$0xff] }
   0xe   :  { %329 = vmatpush3.bf16.msra.mxu0 %v328_v34  ;;  %v64_v55 = vld [vmem:[%s612_s1 + $0x140] sm:$0xff]  ;;  %v65_v57 = vld [vmem:[%s612_s1 + $0x148] sm:$0xff]  ;;  %v51_v59 = vld [vmem:[%s612_s1 + $0xd8] sm:$0xff]  ;;  %v336_v62 = vpack.c.bf16 %v33_v54, %v32_v53 }
   0xf   :  { %361 = vmatpush3.bf16.msra.mxu1 %v360_v38  ;;  %331 = vmatprep.subr.bf16.mxu0 %v330_v39  ;;  %v82_v60 = vld [vmem:[%s612_s1 + $0x1d0] sm:$0xff]  ;;  %v83_v61 = vld [vmem:[%s612_s1 + $0x1d8] sm:$0xff]  ;;  %v368_v63 = vpack.c.bf16 %v65_v57, %v64_v55  ;;  %v338_v0 = vpack.c.bf16 %v51_v59, %v50_v58  ;;  %v52_v6 = vld [vmem:[%s612_s1 + $0xe0] sm:$0xff] }
  0x10   :  { %363 = vmatprep.subr.bf16.mxu1 %v362_v43  ;;  %v34_v1 = vld [vmem:[%s612_s1 + $0x50] sm:$0xff]  ;;  %v35_v2 = vld [vmem:[%s612_s1 + $0x58] sm:$0xff]  ;;  %v370_v4 = vpack.c.bf16 %v83_v61, %v82_v60  ;;  %v53_v7 = vld [vmem:[%s612_s1 + $0xe8] sm:$0xff] }
  0x11   :  { %v66_v3 = vld [vmem:[%s612_s1 + $0x150] sm:$0xff]  ;;  %v67_v5 = vld [vmem:[%s612_s1 + $0x158] sm:$0xff]  ;;  %v84_v8 = vld [vmem:[%s612_s1 + $0x1e0] sm:$0xff]  ;;  %v340_v10 = vpack.c.bf16 %v35_v2, %v34_v1  ;;  %v342_v14 = vpack.c.bf16 %v53_v7, %v52_v6 }
  0x12   :  { %333 = vmatpush3.bf16.msra.mxu0 %v332_v50  ;;  %v85_v9 = vld [vmem:[%s612_s1 + $0x1e8] sm:$0xff]  ;;  %v36_v11 = vld [vmem:[%s612_s1 + $0x60] sm:$0xff]  ;;  %v372_v13 = vpack.c.bf16 %v67_v5, %v66_v3  ;;  %v23_v17 = vld [vmem:[%s613_s0 + $0x18] sm:$0xff] }
  0x13   :  { %365 = vmatpush3.bf16.msra.mxu1 %v364_v51  ;;  %335 = vmatprep.subr.bf16.mxu0 %v334_v52  ;;  %v37_v12 = vld [vmem:[%s612_s1 + $0x68] sm:$0xff]  ;;  %v68_v15 = vld [vmem:[%s612_s1 + $0x160] sm:$0xff]  ;;  %v374_v18 = vpack.c.bf16 %v85_v9, %v84_v8  ;;  %v54_v20 = vld [vmem:[%s612_s1 + $0xf0] sm:$0xff] }
  0x14   :  { %367 = vmatprep.subr.bf16.mxu1 %v366_v56  ;;  %v21_v16 = vld [vmem:[%s613_s0 + $0x8] sm:$0xff]  ;;  %v55_v21 = vld [vmem:[%s612_s1 + $0xf8] sm:$0xff]  ;;  %v86_v22 = vld [vmem:[%s612_s1 + $0x1f0] sm:$0xff]  ;;  %222 = vmatprep.mubr.f32.mxu1 %v23_v17  ;;  %v344_v24 = vpack.c.bf16 %v37_v12, %v36_v11 }
  0x15   :  { %v69_v19 = vld [vmem:[%s612_s1 + $0x168] sm:$0xff]  ;;  %152 = vmatprep.mubr.f32.mxu0 %v21_v16  ;;  %v87_v23 = vld [vmem:[%s612_s1 + $0x1f8] sm:$0xff]  ;;  %v346_v26 = vpack.c.bf16 %v55_v21, %v54_v20  ;;  %v38_v27 = vld [vmem:[%s612_s1 + $0x70] sm:$0xff] }
  0x16   :  { %337 = vmatpush3.bf16.msra.mxu0 %v336_v62  ;;  %v376_v25 = vpack.c.bf16 %v69_v19, %v68_v15  ;;  %v39_v28 = vld [vmem:[%s612_s1 + $0x78] sm:$0xff]  ;;  %v378_v29 = vpack.c.bf16 %v87_v23, %v86_v22  ;;  %v70_v30 = vld [vmem:[%s612_s1 + $0x170] sm:$0xff]  ;;  %v20_v34 = vld [vmem:[%s613_s0] sm:$0xff] }
  0x17   :  { %369 = vmatpush3.bf16.msra.mxu1 %v368_v63  ;;  %339 = vmatprep.subr.bf16.mxu0 %v338_v0  ;;  %v71_v31 = vld [vmem:[%s612_s1 + $0x178] sm:$0xff]  ;;  %v348_v32 = vpack.c.bf16 %v39_v28, %v38_v27  ;;  %v22_v35 = vld [vmem:[%s613_s0 + $0x10] sm:$0xff]  ;;  %v247_v42 = vld [vmem:[%s614_s2] ss:$0 sm:$0xff] }
  0x18   :  { %371 = vmatprep.subr.bf16.mxu1 %v370_v4  ;;  %v380_v33 = vpack.c.bf16 %v71_v31, %v70_v30 }
  0x1a   :  { %341 = vmatpush3.bf16.msra.mxu0 %v340_v10 }
  0x1b   :  { %373 = vmatpush3.bf16.msra.mxu1 %v372_v13  ;;  %343 = vmatprep.subr.bf16.mxu0 %v342_v14 }
  0x1c   :  { %375 = vmatprep.subr.bf16.mxu1 %v374_v18 }
  0x1e   :  { %345 = vmatpush3.bf16.msra.mxu0 %v344_v24 }
  0x1f   :  { %377 = vmatpush3.bf16.msra.mxu1 %v376_v25  ;;  %347 = vmatprep.subr.bf16.mxu0 %v346_v26 }
  0x20   :  { %379 = vmatprep.subr.bf16.mxu1 %v378_v29 }
  0x22   :  { %349 = vmatpush3.bf16.msra.mxu0 %v348_v32 }
  0x23   :  { %381 = vmatpush3.bf16.msra.mxu1 %v380_v33 }
  0x25   :  { %153 = vmatmul.mubr.f32.vlgmr.msra.gmra.mrb[0].mxu0 %v20_v34 }
  0x26   :  { %223 = vmatmul.mubr.f32.vlgmr.msra.gmra.mrb[0].mxu1 %v22_v35 }
  0xf8   :  { %v280_v36 = vpop.f32.mrb[0].mxu0 }
  0xf9   :  { %v315_v37 = vpop.f32.mrb[0].mxu1  ;;  %v281_v38 = vpop.f32.mrb[1].mxu0 }
  0xfa   :  { %v282_v39 = vadd.f32 %v281_v38, %v280_v36  ;;  %v316_v40 = vpop.f32.mrb[1].mxu1 }
  0xfb   :  { %v317_v41 = vadd.f32 %v316_v40, %v315_v37 }
  0xfd   :  { %v225_v43 = vadd.f32 %v317_v41, %v282_v39 }
  0xff   :  { %v241_v44 = vadd.f32 %v247_v42, %v225_v43 }
 0x101   :  { %242 = vst [vmem:[%s615_s3] sm:$0xff] %v241_v44 }

// kernel: multiscale_discriminator_forward.44
= control target key start
LH: loop header
LB: loop body
LE: loop exit
PB: predicated region body
PF: predicated region fallthrough
CT: control target
= control target key end

     0   :  { %s313_s6 = smov 0   ;;  %s315_s7 = smov 0   ;;  %s349_s0 = inlined_call_operand.vmem [shape: f32[2,4,64], index: 0, kind: input, shape index: {}]   ;;  %s350_s1 = inlined_call_operand.vmem [shape: f32[2,4,64], index: 1, kind: output, shape index: {}]  }
   0x1   :  { %s317_s8 = smov 0  }
   0x2 LB: > { %s23_s9 = sadd.s32 1, %s297_s7  ;;  %p248_p0 = scmp.ge.s32.totalorder %s301_s8, 1  ;;  %s301_s8 = sphi %s317_s8, %s11_s8   ;;  %s297_s7 = sphi %s315_s7, %s352_s7   ;;  %s293_s6 = sphi %s313_s6, %s351_s6  }
   0x3   : > { %p25_p1 = scmp.ge.s32.totalorder %s23_s9, 2  ;;  %p105_p2 = scmp.lt.s32.totalorder %s301_s8, 3 }
   0x5   : > { %s354_s9 = smov (%p25_p1, %s23_s9), 0  ;;  %p106_p3 = pnand %p248_p0, %p105_p2 }
   0x6   : > { %p129_p4 = scmp.lt.s32.totalorder (!%p106_p3), %s293_s6, 1  ;;  %vm144_vm0 = vcmask (!%p106_p3), 519168  }
   0x7   : > { %109 = sbr.rel (%p106_p3) target bundleno = 71 (0x47), region = 24 }
   0xe   : > { %s356_s6 = smov (!%p129_p4, %s293_s6), 1 }
   0xf   : > { %s249_s10 = sshll.u32 %s356_s6, 2 }
  0x10   : > { %s135_s13 = scalar_lea.vmem %s349_s0, %s249_s10  ;;  %s142_s16 = scalar_lea.vmem %s350_s1, %s249_s10 }
  0x11   : > { %v143_v0 = vld [vmem:[%s135_s13] sm:$0xf] }
  0x12   : > { %v145_v1 = vsel %vm144_vm0, %v143_v0, 0.0 }
  0x13   : > { %v146_v2 = vrot.slane %v145_v1, 4 }
  0x15   : > { %v147_v3 = vadd.f32 %v146_v2, %v145_v1 }
  0x17   : > { %v148_v4 = vrot.slane %v147_v3, 2 }
  0x19   : > { %v149_v5 = vadd.f32 %v148_v4, %v147_v3 }
  0x1b   : > { %v150_v6 = vrot.slane %v149_v5, 1 }
  0x1d   : > { %v151_v7 = vadd.f32 %v150_v6, %v149_v5 }
  0x1f   : > { %v152_v8 = vmul.f32 0.25, %v151_v7 }
  0x21   : > { %v153_v9 = vsub.f32 %v143_v0, %v152_v8 }
  0x23   : > { %v154_v10 = vmul.f32 %v153_v9, %v153_v9 }
  0x25   : > { %v155_v11 = vsel %vm144_vm0, %v154_v10, 0.0 }
  0x26   : > { %v156_v12 = vrot.slane %v155_v11, 4 }
  0x28   : > { %v157_v13 = vadd.f32 %v156_v12, %v155_v11 }
  0x2a   : > { %v158_v14 = vrot.slane %v157_v13, 2 }
  0x2c   : > { %v159_v15 = vadd.f32 %v158_v14, %v157_v13 }
  0x2e   : > { %v160_v16 = vrot.slane %v159_v15, 1 }
  0x30   : > { %v161_v17 = vadd.f32 %v160_v16, %v159_v15 }
  0x32   : > { %v162_v18 = vmul.f32 0.25, %v161_v17 }
  0x34   : > { %v163_v19 = vadd.f32 1e-05, %v162_v18 }
  0x36   : > { %277 = vrsqrt.f32 %v163_v19 }
  0x40   : > { %v278_v20 = vpop.eup %277 }
  0x41   : > { %v165_v21 = vmul.f32 %v278_v20, %v153_v9 }
  0x43   : > { %vm166_vm1 = vcmp.ge.f32.partialorder %v165_v21, 0.0  ;;  %v167_v22 = vmul.f32 0.2, %v165_v21 }
  0x45   : > { %v168_v23 = vsel %vm166_vm1, %v165_v21, %v167_v22 }
  0x46   : > { %169 = vst.msk [vmem:[%s142_s16] sm:$0xf] %vm144_vm0, %v168_v23 }
  0x47 PF: > { %s11_s8 = sadd.s32 1, %s301_s8   ;;  %s351_s6 = smov %s297_s7 }
  0x48   : > { %p8_p5 = scmp.ge.s32.totalorder %s11_s8, 4   ;;  %s352_s7 = smov %s354_s9 }
  0x4a   :  { %10 = sbr.rel (!%p8_p5) target bundleno = 2 (0x2), region = 54 }

// kernel: multiscale_discriminator_forward.46
= control target key start
LH: loop header
LB: loop body
LE: loop exit
PB: predicated region body
PF: predicated region fallthrough
CT: control target
= control target key end

     0   :  { %s341_s6 = smov 0   ;;  %s343_s7 = smov 0   ;;  %s383_s0 = inlined_call_operand.vmem [shape: f32[2,9,128], index: 0, kind: input, shape index: {}]   ;;  %s384_s1 = inlined_call_operand.vmem [shape: f32[2,9,128], index: 1, kind: output, shape index: {}]  }
   0x1   :  { %s345_s8 = smov 0  }
   0x2 LB: > { %s23_s9 = sadd.s32 1, %s325_s7  ;;  %p272_p0 = scmp.ge.s32.totalorder %s329_s8, 1  ;;  %s329_s8 = sphi %s345_s8, %s11_s8   ;;  %s325_s7 = sphi %s343_s7, %s386_s7   ;;  %s321_s6 = sphi %s341_s6, %s385_s6  }
   0x3   : > { %p25_p1 = scmp.ge.s32.totalorder %s23_s9, 2  ;;  %p106_p2 = scmp.lt.s32.totalorder %s329_s8, 3 }
   0x5   : > { %s388_s9 = smov (%p25_p1, %s23_s9), 0  ;;  %p107_p3 = pnand %p272_p0, %p106_p2 }
   0x6   : > { %p132_p4 = scmp.lt.s32.totalorder (!%p107_p3), %s321_s6, 1  ;;  %vm150_vm0 = vcmask (!%p107_p3), 1040384  }
   0x7   : > { %110 = sbr.rel (%p107_p3) target bundleno = 75 (0x4b), region = 24 }
   0xe   : > { %s390_s6 = smov (!%p132_p4, %s321_s6), 1 }
   0xf   : > { %s279_s10 = sshll.u32 %s390_s6, 4 }
  0x10   : > { %s139_s13 = scalar_lea.vmem %s383_s0, %s279_s10  ;;  %s147_s16 = scalar_lea.vmem %s384_s1, %s279_s10 }
  0x11   : > { %v148_v0 = vld [vmem:[%s139_s13] sm:$0xff]  ;;  %v149_v1 = vld [vmem:[%s139_s13 + $0x8] sm:$0x1] }
  0x12   : > { %v151_v2 = vsel %vm150_vm0, %v149_v1, 0.0 }
  0x13   : > { %v152_v3 = vadd.f32 %v151_v2, %v148_v0 }
  0x15   : > { %v153_v4 = vrot.slane %v152_v3, 4 }
  0x17   : > { %v154_v5 = vadd.f32 %v153_v4, %v152_v3 }
  0x19   : > { %v155_v6 = vrot.slane %v154_v5, 2 }
  0x1b   : > { %v156_v7 = vadd.f32 %v155_v6, %v154_v5 }
  0x1d   : > { %v157_v8 = vrot.slane %v156_v7, 1 }
  0x1f   : > { %v158_v9 = vadd.f32 %v157_v8, %v156_v7 }
  0x21   : > { %v159_v10 = vmul.f32 0.11111111, %v158_v9 }
  0x23   : > { %v160_v11 = vsub.f32 %v148_v0, %v159_v10  ;;  %v161_v12 = vsub.f32 %v149_v1, %v159_v10 }
  0x25   : > { %v162_v13 = vmul.f32 %v160_v11, %v160_v11  ;;  %v163_v14 = vmul.f32 %v161_v12, %v161_v12 }
  0x27   : > { %v164_v15 = vsel %vm150_vm0, %v163_v14, 0.0 }
  0x28   : > { %v165_v16 = vadd.f32 %v164_v15, %v162_v13 }
  0x2a   : > { %v166_v17 = vrot.slane %v165_v16, 4 }
  0x2c   : > { %v167_v18 = vadd.f32 %v166_v17, %v165_v16 }
  0x2e   : > { %v168_v19 = vrot.slane %v167_v18, 2 }
  0x30   : > { %v169_v20 = vadd.f32 %v168_v19, %v167_v18 }
  0x32   : > { %v170_v21 = vrot.slane %v169_v20, 1 }
  0x34   : > { %v171_v22 = vadd.f32 %v170_v21, %v169_v20 }
  0x36   : > { %v172_v23 = vmul.f32 0.11111111, %v171_v22 }
  0x38   : > { %v173_v24 = vadd.f32 1e-05, %v172_v23 }
  0x3a   : > { %305 = vrsqrt.f32 %v173_v24 }
  0x44   : > { %v306_v25 = vpop.eup %305 }
  0x45   : > { %v175_v26 = vmul.f32 %v306_v25, %v160_v11  ;;  %v176_v27 = vmul.f32 %v306_v25, %v161_v12 }
  0x47   : > { %vm177_vm1 = vcmp.ge.f32.partialorder %v175_v26, 0.0  ;;  %v179_v28 = vmul.f32 0.2, %v175_v26  ;;  %vm178_vm2 = vcmp.ge.f32.partialorder %v176_v27, 0.0  ;;  %v180_v29 = vmul.f32 0.2, %v176_v27 }
  0x49   : > { %v181_v30 = vsel %vm177_vm1, %v175_v26, %v179_v28  ;;  %v182_v31 = vsel %vm178_vm2, %v176_v27, %v180_v29 }
  0x4a   : > { %183 = vst [vmem:[%s147_s16] sm:$0xff] %v181_v30  ;;  %184 = vst [vmem:[%s147_s16 + $0x8] sm:$0x1] %v182_v31 }
  0x4b PF: > { %s11_s8 = sadd.s32 1, %s329_s8   ;;  %s385_s6 = smov %s325_s7 }
  0x4c   : > { %p8_p5 = scmp.ge.s32.totalorder %s11_s8, 4   ;;  %s386_s7 = smov %s388_s9 }
  0x4e   :  { %10 = sbr.rel (!%p8_p5) target bundleno = 2 (0x2), region = 54 }

// kernel: multiscale_discriminator_forward.45
= control target key start
LH: loop header
LB: loop body
LE: loop exit
PB: predicated region body
PF: predicated region fallthrough
CT: control target
= control target key end

     0   :  { %s1814_s0 = inlined_call_operand.vmem [shape: f32[18,1024], index: 0, kind: input, shape index: {}]   ;;  %s1815_s1 = inlined_call_operand.vmem [shape: f32[1024,128], index: 1, kind: input, shape index: {}]   ;;  %s1816_s2 = inlined_call_operand.vmem [shape: f32[1,128], index: 2, kind: input, shape index: {}]   ;;  %s1817_s3 = inlined_call_operand.vmem [shape: f32[18,128], index: 3, kind: output, shape index: {}]  }
   0x1   :  { %1818 = sst [smem:[#allocation5_spill]] %s1814_s0 }
   0x2   :  { %s1507_s12 = smov 0   ;;  %s1509_s13 = smov 0  }
   0x3   :  { %s1511_s14 = smov 0   ;;  %s1513_s15 = smov 0  }
   0x4   :  { %s1515_s16 = smov 0   ;;  %s1517_s17 = smov 0  }
   0x5   :  { %s1519_s18 = smov 0   ;;  %s1521_s19 = smov 0  }
   0x6   :  { %s1523_s20 = smov 0  }
   0x7 LB: > { %s25_s21 = sadd.s32 1, %s1412_s18  ;;  %s32_s22 = sadd.s32 1, %s1416_s19  ;;  %s1420_s20 = sphi %s1523_s20, %s13_s20   ;;  %s1416_s19 = sphi %s1521_s19, %s1834_s19   ;;  %s1412_s18 = sphi %s1519_s18, %s1833_s18   ;;  %s1408_s17 = sphi %s1517_s17, %s1832_s17   ;;  %s1404_s16 = sphi %s1515_s16, %s1831_s16   ;;  %s1400_s15 = sphi %s1513_s15, %s1830_s15   ;;  %s1396_s14 = sphi %s1511_s14, %s1829_s14   ;;  %s1392_s13 = sphi %s1509_s13, %s1828_s13   ;;  %s1388_s12 = sphi %s1507_s12, %s1827_s12  }
   0x8   : > { %p26_p0 = scmp.ge.s32.totalorder %s25_s21, 2  ;;  %p48_p1 = scmp.ne.s32.totalorder %s1400_s15, %s1396_s14 }
   0x9   : > { %s890_s23 = sadd.s32 4294967295, %s1420_s20   ;;  %p49_p2 = scmp.eq.s32.totalorder %s1420_s20, 0 }
   0xa   : > { %s1836_s21 = smov (%p26_p0, %s25_s21), 0  ;;  %s1838_s22 = smov (!%p26_p0, %s32_s22), %s1416_s19 }
   0xb   : > { %p34_p3 = scmp.ge.s32.totalorder %s1838_s22, 2  ;;  %s37_s24 = ssub.s32 %s1412_s18, %s1836_s21 }
   0xc   : > { %p1563_p4 = por %p49_p2, %p48_p1  ;;  %p133_p5 = scmp.ne.s32.totalorder %s1392_s13, %s1388_s12 }
   0xd   : > { %s1840_s22 = smov (%p34_p3, %s1838_s22), 0  ;;  %s41_s26 = sadd.s32 1, %s1400_s15 }
   0xe   : > { %p134_p6 = scmp.eq.s32.totalorder %s890_s23, 3  ;;  %s36_s27 = ssub.s32 %s1416_s19, %s1840_s22 }
   0xf   : > { %s123_s28 = sadd.s32 1, %s1392_s13  ;;  %s38_s29 = sor.u32 %s37_s24, %s36_s27 }
  0x10   : > { %p121_p7 = scmp.eq.s32.totalorder %s36_s27, 0  ;;  %p39_p8 = scmp.eq.s32.totalorder %s38_s29, 0 }
  0x11   : > { %p1575_p9 = por %p134_p6, %p133_p5  ;;  %p894_p10 = scmp.ge.s32.totalorder %s1420_s20, 4 }
  0x12   : > { %s1580_s4 = scalar_select %p121_p7, %s1392_s13, %s123_s28  }
  0x13   : > { %s1583_s5 = scalar_select %p39_p8, %s1400_s15, %s41_s26  }
  0x14   : > { %162 = sbr.rel (%p894_p10) target bundleno = 83 (0x53), region = 20 }
  0x1b   : > { %165 = sbr.rel (!%p1563_p4) target bundleno = 83 (0x53), region = 24  ;;  %s167_s6 = sand.u32 (%p1563_p4), 1, %s1400_s15  }
  0x1c   : > { %s896_s7 = sshll.u32 (%p1563_p4), %s1416_s19, 1  ;;  %s895_s8 = sshll.u32 (%p1563_p4), %s167_s6, 6 }
  0x1d   : > { %s897_s9 = sshll.u32 (%p1563_p4), %s1412_s18, 2  ;;  %s172_s10 = ssub.s32 (%p1563_p4), 3, %s896_s7 }
  0x1e   : > { %p173_p11 = scmp.lt.s32.totalorder (%p1563_p4), %s172_s10, 2  ;;  %s939_s11 = sshll.u32 (%p1563_p4), %s1416_s19, 4 }
  0x1f   : > { %s179_s23 = sadd.s32 (%p1563_p4), %s939_s11, %s897_s9  ;;  %s1821_s0 = sld [smem:[#allocation5_spill]] (%p1563_p4) }
  0x20   : > { %s902_s24 = sshll.u32 (%p1563_p4), %s179_s23, 3  ;;  %s1600_s29 = scalar_lea.vmem (%p1563_p4), [#allocation3], %s895_s8  }
  0x22   : > { %s1842_s10 = smov (!%p173_p11, %s172_s10), 2 }
  0x23   : > { %s938_s26 = sshll.u32 %s1842_s10, 9 }
  0x24   : > { %p903_p12 = scmp.eq.s32.totalorder %s938_s26, 0 }
  0x25   : > { %s1598_s28 = scalar_lea.vmem %s1821_s0, %s902_s24   ;;  %s1603_s6 = sshrl.u32 (!%p903_p12), %s1842_s10, 1 }
  0x26   : > { %184 = sbr.rel (%p903_p12) target bundleno = 83 (0x53), region = 28  ;;  %p904_p13 = scmp.le.s32.totalorder (!%p903_p12), %s1603_s6, 0 }
  0x2d   : > { %789 = sbr.rel (%p904_p13) target bundleno = 62 (0x3e), region = 167  ;;  %s1822_s7 = smov (!%p904_p13), %s1600_s29 }
  0x2e   : > { %s1823_s9 = smov (!%p904_p13), %s1598_s28  ;;  %s1612_s11 = smov (!%p904_p13), 0  }
  0x2f   : > { %s1614_s23 = smov (!%p904_p13), 0  }
  0x34 LB: >> { %v197_v0 = vld [vmem:[%s1428_s9] sm:$0xff]  ;;  %v201_v2 = vld [vmem:[%s1428_s9 + $0x8] sm:$0xff]  ;;  %s213_s8 = sadd.s32 1, %s1432_s11  ;;  %v205_v4 = vld [vmem:[%s1428_s9 + $0x10] sm:$0xff]  ;;  %s191_s23 = sadd.s32 1, %s1436_s23   ;;  %s1436_s23 = sphi %s1614_s23, %s191_s23   ;;  %s1432_s11 = sphi %s1612_s11, %s1824_s11   ;;  %s1428_s9 = sphi %s1823_s9, %s218_s9   ;;  %s1424_s7 = sphi %s1822_s7, %s219_s7  }
  0x35   : >> { %v199_v1 = vld [vmem:[%s1428_s9 + $0x40] sm:$0xff]  ;;  %198 = vst [vmem:[%s1424_s7] sm:$0xff] %v197_v0  ;;  %202 = vst [vmem:[%s1424_s7 + $0x8] sm:$0xff] %v201_v2  ;;  %v203_v3 = vld [vmem:[%s1428_s9 + $0x48] sm:$0xff]  ;;  %p214_p0 = scmp.ge.s32.totalorder %s213_s8, %s1603_s6  ;;  %p190_p1 = scmp.ge.s32.totalorder %s191_s23, %s1603_s6 }
  0x36   : >> { %200 = vst [vmem:[%s1424_s7 + $0x20] sm:$0xff] %v199_v1  ;;  %v207_v5 = vld [vmem:[%s1428_s9 + $0x50] sm:$0xff]  ;;  %204 = vst [vmem:[%s1424_s7 + $0x28] sm:$0xff] %v203_v3  ;;  %v209_v6 = vld [vmem:[%s1428_s9 + $0x18] sm:$0xff] }
  0x37   : >> { %206 = vst [vmem:[%s1424_s7 + $0x10] sm:$0xff] %v205_v4  ;;  %208 = vst [vmem:[%s1424_s7 + $0x30] sm:$0xff] %v207_v5  ;;  %v211_v7 = vld [vmem:[%s1428_s9 + $0x58] sm:$0xff]  ;;  %s1844_s8 = smov (%p214_p0, %s213_s8), 0  ;;  %193 = sbr.rel (!%p190_p1) target bundleno = 52 (0x34), region = 173 }
  0x38   : >> { %210 = vst [vmem:[%s1424_s7 + $0x18] sm:$0xff] %v209_v6  ;;  %212 = vst [vmem:[%s1424_s7 + $0x38] sm:$0xff] %v211_v7  ;;  %s905_s24 = sshll.u32 %s1844_s8, 7  ;;  %s906_s26 = sshll.u32 %s1844_s8, 6 }
  0x39   : >> { %s218_s9 = scalar_lea.vmem %s1598_s28, %s905_s24   ;;  %s219_s7 = scalar_lea.vmem %s1600_s29, %s906_s26 [#allocation3]  }
  0x3a   : >> { %s1824_s11 = smov %s1844_s8 }
  0x3e PF: > { %s1636_s27 = sand.u32 1, %s1842_s10   ;;  %s940_s25 = sshll.u32 %s1603_s6, 7 }
  0x3f   : > { %s1640_s24 = scalar_lea.vmem %s1598_s28, %s940_s25   ;;  %s941_s26 = sshll.u32 %s1603_s6, 6 }
  0x40   : > { %s1644_s0 = scalar_lea.vmem %s1600_s29, %s941_s26 [#allocation3]   ;;  %p910_p2 = scmp.le.s32.totalorder %s1636_s27, 0 }
  0x41   : > { %s1825_s7 = smov (!%p910_p2), %s1644_s0  ;;  %s1826_s9 = smov (!%p910_p2), %s1640_s24 }
  0x42   : > { %803 = sbr.rel (%p910_p2) target bundleno = 83 (0x53), region = 178  ;;  %s1446_s11 = smov (!%p910_p2), 0  }
  0x43   : > { %s1450_s23 = smov (!%p910_p2), 0  }
  0x49 LB: >> { %v236_v8 = vld [vmem:[%s1444_s9] sm:$0xff]  ;;  %v238_v9 = vld [vmem:[%s1444_s9 + $0x8] sm:$0xff]  ;;  %v240_v10 = vld [vmem:[%s1444_s9 + $0x10] sm:$0xff]  ;;  %s244_s10 = sadd.s32 1, %s1448_s11  ;;  %s230_s23 = sadd.s32 1, %s1452_s23   ;;  %s1452_s23 = sphi %s1450_s23, %s230_s23   ;;  %s1448_s11 = sphi %s1446_s11, %s1447_s11   ;;  %s1444_s9 = sphi %s1826_s9, %s249_s9   ;;  %s1440_s7 = sphi %s1825_s7, %s250_s7  }
  0x4a   : >> { %237 = vst [vmem:[%s1440_s7] sm:$0xff] %v236_v8  ;;  %239 = vst [vmem:[%s1440_s7 + $0x8] sm:$0xff] %v238_v9  ;;  %v242_v11 = vld [vmem:[%s1444_s9 + $0x18] sm:$0xff]  ;;  %p245_p3 = scmp.ge.s32.totalorder %s244_s10, %s1636_s27  ;;  %p229_p4 = scmp.ge.s32.totalorder %s230_s23, %s1636_s27 }
  0x4b   : >> { %241 = vst [vmem:[%s1440_s7 + $0x10] sm:$0xff] %v240_v10  ;;  %243 = vst [vmem:[%s1440_s7 + $0x18] sm:$0xff] %v242_v11 }
  0x4c   : >> { %s1846_s10 = smov (%p245_p3, %s244_s10), 0  ;;  %232 = sbr.rel (!%p229_p4) target bundleno = 73 (0x49), region = 184 }
  0x4d   : >> { %s911_s28 = sshll.u32 %s1846_s10, 6  ;;  %s912_s29 = sshll.u32 %s1846_s10, 5 }
  0x4e   : >> { %s249_s9 = scalar_lea.vmem %s1640_s24, %s911_s28   ;;  %s250_s7 = scalar_lea.vmem %s1644_s0, %s912_s29 [#allocation3]  }
  0x4f   : >> { %s1447_s11 = smov %s1846_s10  }
  0x53 PF: > { %p913_p5 = scmp.ge.s32.totalorder %s1420_s20, 1  ;;  %p267_p6 = scmp.lt.s32.totalorder %s1420_s20, 5 }
  0x55   : > { %p268_p7 = pnand %p913_p5, %p267_p6 }
  0x56   : > { %s274_s6 = sand.u32 (!%p268_p7), 1, %s1396_s14   ;;  %s304_s8 = sand.u32 (!%p268_p7), 1, %s1388_s12  }
  0x57   : > { %271 = sbr.rel (%p268_p7) target bundleno = 428 (0x1ac), region = 58  ;;  %s914_s25 = sshll.u32 (!%p268_p7), %s274_s6, 6 }
  0x58   : > { %s915_s26 = sshll.u32 (!%p268_p7), %s304_s8, 4  ;;  %s916_s9 = sshll.u32 (!%p268_p7), %s1404_s16, 6 }
  0x59   : > { %p315_p8 = scmp.lt.s32.totalorder (!%p268_p7), %s916_s9, 127  ;;  %s1673_s11 = scalar_lea.vmem (!%p268_p7), [#allocation3], %s914_s25 }
  0x5a   : > { %s1675_s23 = scalar_lea.vmem (!%p268_p7), [#allocation4], %s915_s26   ;;  %p918_p10 = scmp.ne.s32.totalorder (!%p268_p7), %s1404_s16, 0 }
  0x5e   : > { %s1848_s9 = smov (!%p315_p8, %s916_s9), 127  ;;  %334 = sbr.rel (%p918_p10) target bundleno = 101 (0x65), region = 66 }
  0x5f   : > { %s917_s0 = sshll.u32 %s1848_s9, 3  ;;  %v1486_v12 = vmov (!%p918_p10), 0.0  }
  0x60   : > { %s1671_s7 = scalar_lea.vmem %s1815_s1, %s917_s0  ;;  %335 = vst [vmem:[#allocation2] sm:$0xff] (!%p918_p10), %v1486_v12  ;;  %336 = vst [vmem:[#allocation2 + $0x8] sm:$0xff] (!%p918_p10), %v1486_v12 }
  0x65 PF: > { %v363_v13 = vld [vmem:[%s1671_s7 + $0x80] sm:$0xff]  ;;  %v364_v14 = vld [vmem:[%s1671_s7 + $0x88] sm:$0xff]  ;;  %v365_v24 = vld [vmem:[%s1671_s7 + $0x90] sm:$0xff]  ;;  %p919_p11 = scmp.ne.s32.totalorder %s1404_s16, 1 }
  0x66   : > { %v395_v15 = vld [vmem:[%s1671_s7 + $0x180] sm:$0xff]  ;;  %v1021_v16 = vpack.c.bf16 %v364_v14, %v363_v13  ;;  %v396_v17 = vld [vmem:[%s1671_s7 + $0x188] sm:$0xff]  ;;  %v366_v26 = vld [vmem:[%s1671_s7 + $0x98] sm:$0xff] }
  0x67   : > { %v347_v18 = vld [vmem:[%s1671_s7] sm:$0xff]  ;;  %v348_v19 = vld [vmem:[%s1671_s7 + $0x8] sm:$0xff]  ;;  %v1053_v20 = vpack.c.bf16 %v396_v17, %v395_v15  ;;  %v397_v27 = vld [vmem:[%s1671_s7 + $0x190] sm:$0xff]  ;;  %v1025_v29 = vpack.c.bf16 %v366_v26, %v365_v24 }
  0x68   : > { %v1023_v21 = vpack.c.bf16 %v348_v19, %v347_v18  ;;  %v379_v22 = vld [vmem:[%s1671_s7 + $0x100] sm:$0xff]  ;;  %v380_v23 = vld [vmem:[%s1671_s7 + $0x108] sm:$0xff]  ;;  %1022 = vmatprep.subr.bf16.mxu0 %v1021_v16  ;;  %v398_v28 = vld [vmem:[%s1671_s7 + $0x198] sm:$0xff] }
  0x69   : > { %v1055_v25 = vpack.c.bf16 %v380_v23, %v379_v22  ;;  %1054 = vmatprep.subr.bf16.mxu1 %v1053_v20  ;;  %v1057_v30 = vpack.c.bf16 %v398_v28, %v397_v27  ;;  %v349_v31 = vld [vmem:[%s1671_s7 + $0x10] sm:$0xff]  ;;  %v350_v32 = vld [vmem:[%s1671_s7 + $0x18] sm:$0xff]  ;;  %v367_v36 = vld [vmem:[%s1671_s7 + $0xa0] sm:$0xff] }
  0x6a   : > { %1024 = vmatpush3.bf16.msra.mxu0 %v1023_v21  ;;  %v381_v33 = vld [vmem:[%s1671_s7 + $0x110] sm:$0xff]  ;;  %v1027_v34 = vpack.c.bf16 %v350_v32, %v349_v31  ;;  %v382_v35 = vld [vmem:[%s1671_s7 + $0x118] sm:$0xff]  ;;  %v368_v37 = vld [vmem:[%s1671_s7 + $0xa8] sm:$0xff] }
  0x6b   : > { %1056 = vmatpush3.bf16.msra.mxu1 %v1055_v25  ;;  %1026 = vmatprep.subr.bf16.mxu0 %v1025_v29  ;;  %v1059_v38 = vpack.c.bf16 %v382_v35, %v381_v33  ;;  %v1029_v39 = vpack.c.bf16 %v368_v37, %v367_v36  ;;  %v399_v40 = vld [vmem:[%s1671_s7 + $0x1a0] sm:$0xff]  ;;  %v400_v41 = vld [vmem:[%s1671_s7 + $0x1a8] sm:$0xff]  ;;  %v369_v48 = vld [vmem:[%s1671_s7 + $0xb0] sm:$0xff] }
  0x6c   : > { %1058 = vmatprep.subr.bf16.mxu1 %v1057_v30  ;;  %v351_v42 = vld [vmem:[%s1671_s7 + $0x20] sm:$0xff]  ;;  %v1061_v43 = vpack.c.bf16 %v400_v41, %v399_v40  ;;  %v352_v44 = vld [vmem:[%s1671_s7 + $0x28] sm:$0xff]  ;;  %v370_v49 = vld [vmem:[%s1671_s7 + $0xb8] sm:$0xff] }
  0x6d   : > { %v383_v45 = vld [vmem:[%s1671_s7 + $0x120] sm:$0xff]  ;;  %v384_v46 = vld [vmem:[%s1671_s7 + $0x128] sm:$0xff]  ;;  %v1031_v47 = vpack.c.bf16 %v352_v44, %v351_v42  ;;  %v401_v50 = vld [vmem:[%s1671_s7 + $0x1b0] sm:$0xff]  ;;  %v1033_v52 = vpack.c.bf16 %v370_v49, %v369_v48 }
  0x6e   : > { %1028 = vmatpush3.bf16.msra.mxu0 %v1027_v34  ;;  %v1063_v51 = vpack.c.bf16 %v384_v46, %v383_v45  ;;  %v402_v53 = vld [vmem:[%s1671_s7 + $0x1b8] sm:$0xff]  ;;  %v353_v54 = vld [vmem:[%s1671_s7 + $0x30] sm:$0xff]  ;;  %v371_v59 = vld [vmem:[%s1671_s7 + $0xc0] sm:$0xff] }
  0x6f   : > { %1060 = vmatpush3.bf16.msra.mxu1 %v1059_v38  ;;  %1030 = vmatprep.subr.bf16.mxu0 %v1029_v39  ;;  %v354_v55 = vld [vmem:[%s1671_s7 + $0x38] sm:$0xff]  ;;  %v1065_v56 = vpack.c.bf16 %v402_v53, %v401_v50  ;;  %v385_v57 = vld [vmem:[%s1671_s7 + $0x130] sm:$0xff]  ;;  %v372_v60 = vld [vmem:[%s1671_s7 + $0xc8] sm:$0xff] }
  0x70   : > { %1062 = vmatprep.subr.bf16.mxu1 %v1061_v43  ;;  %v386_v58 = vld [vmem:[%s1671_s7 + $0x138] sm:$0xff]  ;;  %v403_v61 = vld [vmem:[%s1671_s7 + $0x1c0] sm:$0xff]  ;;  %v404_v62 = vld [vmem:[%s1671_s7 + $0x1c8] sm:$0xff]  ;;  %v1035_v63 = vpack.c.bf16 %v354_v55, %v353_v54  ;;  %v1037_v1 = vpack.c.bf16 %v372_v60, %v371_v59 }
  0x71   : > { %v1067_v0 = vpack.c.bf16 %v386_v58, %v385_v57  ;;  %v355_v2 = vld [vmem:[%s1671_s7 + $0x40] sm:$0xff]  ;;  %v356_v3 = vld [vmem:[%s1671_s7 + $0x48] sm:$0xff]  ;;  %v1069_v5 = vpack.c.bf16 %v404_v62, %v403_v61  ;;  %v373_v7 = vld [vmem:[%s1671_s7 + $0xd0] sm:$0xff] }
  0x72   : > { %1032 = vmatpush3.bf16.msra.mxu0 %v1031_v47  ;;  %v387_v4 = vld [vmem:[%s1671_s7 + $0x140] sm:$0xff]  ;;  %v388_v6 = vld [vmem:[%s1671_s7 + $0x148] sm:$0xff]  ;;  %v374_v8 = vld [vmem:[%s1671_s7 + $0xd8] sm:$0xff]  ;;  %v1039_v11 = vpack.c.bf16 %v356_v3, %v355_v2 }
  0x73   : > { %1064 = vmatpush3.bf16.msra.mxu1 %v1063_v51  ;;  %1034 = vmatprep.subr.bf16.mxu0 %v1033_v52  ;;  %v405_v9 = vld [vmem:[%s1671_s7 + $0x1d0] sm:$0xff]  ;;  %v406_v10 = vld [vmem:[%s1671_s7 + $0x1d8] sm:$0xff]  ;;  %v1071_v12 = vpack.c.bf16 %v388_v6, %v387_v4  ;;  %v1041_v13 = vpack.c.bf16 %v374_v8, %v373_v7  ;;  %v375_v19 = vld [vmem:[%s1671_s7 + $0xe0] sm:$0xff] }
  0x74   : > { %1066 = vmatprep.subr.bf16.mxu1 %v1065_v56  ;;  %v357_v14 = vld [vmem:[%s1671_s7 + $0x50] sm:$0xff]  ;;  %v358_v15 = vld [vmem:[%s1671_s7 + $0x58] sm:$0xff]  ;;  %v1073_v17 = vpack.c.bf16 %v406_v10, %v405_v9  ;;  %v376_v20 = vld [vmem:[%s1671_s7 + $0xe8] sm:$0xff] }
  0x75   : > { %v389_v16 = vld [vmem:[%s1671_s7 + $0x150] sm:$0xff]  ;;  %v390_v18 = vld [vmem:[%s1671_s7 + $0x158] sm:$0xff]  ;;  %v407_v21 = vld [vmem:[%s1671_s7 + $0x1e0] sm:$0xff]  ;;  %v1043_v23 = vpack.c.bf16 %v358_v15, %v357_v14  ;;  %v1045_v27 = vpack.c.bf16 %v376_v20, %v375_v19 }
  0x76   : > { %1036 = vmatpush3.bf16.msra.mxu0 %v1035_v63  ;;  %v408_v22 = vld [vmem:[%s1671_s7 + $0x1e8] sm:$0xff]  ;;  %v359_v24 = vld [vmem:[%s1671_s7 + $0x60] sm:$0xff]  ;;  %v1075_v26 = vpack.c.bf16 %v390_v18, %v389_v16  ;;  %v340_v29 = vld [vmem:[%s1673_s11 + $0x8] sm:$0xff] }
  0x77   : > { %1068 = vmatpush3.bf16.msra.mxu1 %v1067_v0  ;;  %1038 = vmatprep.subr.bf16.mxu0 %v1037_v1  ;;  %v360_v25 = vld [vmem:[%s1671_s7 + $0x68] sm:$0xff]  ;;  %v391_v28 = vld [vmem:[%s1671_s7 + $0x160] sm:$0xff]  ;;  %v1077_v31 = vpack.c.bf16 %v408_v22, %v407_v21  ;;  %v377_v33 = vld [vmem:[%s1671_s7 + $0xf0] sm:$0xff] }
  0x78   : > { %1070 = vmatprep.subr.bf16.mxu1 %v1069_v5  ;;  %v342_v30 = vld [vmem:[%s1673_s11 + $0x18] sm:$0xff]  ;;  %v378_v34 = vld [vmem:[%s1671_s7 + $0xf8] sm:$0xff]  ;;  %475 = vmatprep.mubr.f32.mxu0 %v340_v29  ;;  %v409_v35 = vld [vmem:[%s1671_s7 + $0x1f0] sm:$0xff]  ;;  %v1047_v37 = vpack.c.bf16 %v360_v25, %v359_v24 }
  0x79   : > { %v392_v32 = vld [vmem:[%s1671_s7 + $0x168] sm:$0xff]  ;;  %v410_v36 = vld [vmem:[%s1671_s7 + $0x1f8] sm:$0xff]  ;;  %550 = vmatprep.mubr.f32.mxu1 %v342_v30  ;;  %v1049_v39 = vpack.c.bf16 %v378_v34, %v377_v33  ;;  %v361_v40 = vld [vmem:[%s1671_s7 + $0x70] sm:$0xff] }
  0x7a   : > { %1040 = vmatpush3.bf16.msra.mxu0 %v1039_v11  ;;  %v1079_v38 = vpack.c.bf16 %v392_v32, %v391_v28  ;;  %v362_v41 = vld [vmem:[%s1671_s7 + $0x78] sm:$0xff]  ;;  %v1081_v42 = vpack.c.bf16 %v410_v36, %v409_v35  ;;  %v393_v43 = vld [vmem:[%s1671_s7 + $0x170] sm:$0xff]  ;;  %v341_v48 = vld [vmem:[%s1673_s11 + $0x10] sm:$0xff] }
  0x7b   : > { %1072 = vmatpush3.bf16.msra.mxu1 %v1071_v12  ;;  %1042 = vmatprep.subr.bf16.mxu0 %v1041_v13  ;;  %v394_v44 = vld [vmem:[%s1671_s7 + $0x178] sm:$0xff]  ;;  %v1051_v45 = vpack.c.bf16 %v362_v41, %v361_v40  ;;  %v339_v47 = vld [vmem:[%s1673_s11] sm:$0xff]  ;;  %v346_v50 = vld [vmem:[%s1673_s11 + $0x38] sm:$0xff] }
  0x7c   : > { %1074 = vmatprep.subr.bf16.mxu1 %v1073_v17  ;;  %v1083_v46 = vpack.c.bf16 %v394_v44, %v393_v43  ;;  %v344_v49 = vld [vmem:[%s1673_s11 + $0x28] sm:$0xff]  ;;  %v343_v51 = vld [vmem:[%s1673_s11 + $0x20] sm:$0xff]  ;;  %v345_v52 = vld [vmem:[%s1673_s11 + $0x30] sm:$0xff] }
  0x7d   : > { %v337_v59 = vld [vmem:[#allocation2] sm:$0xff]  ;;  %v338_v4 = vld [vmem:[#allocation2 + $0x8] sm:$0xff] }
  0x7e   : > { %1044 = vmatpush3.bf16.msra.mxu0 %v1043_v23  ;;  %v920_v8 = vld [vmem:[%s1816_s2] ss:$0 sm:$0xff] (!%p919_p11) }
  0x7f   : > { %1076 = vmatpush3.bf16.msra.mxu1 %v1075_v26  ;;  %1046 = vmatprep.subr.bf16.mxu0 %v1045_v27 }
  0x80   : > { %1078 = vmatprep.subr.bf16.mxu1 %v1077_v31 }
  0x82   : > { %1048 = vmatpush3.bf16.msra.mxu0 %v1047_v37 }
  0x83   : > { %1080 = vmatpush3.bf16.msra.mxu1 %v1079_v38  ;;  %1050 = vmatprep.subr.bf16.mxu0 %v1049_v39 }
  0x84   : > { %1082 = vmatprep.subr.bf16.mxu1 %v1081_v42 }
  0x86   : > { %1052 = vmatpush3.bf16.msra.mxu0 %v1051_v45 }
  0x87   : > { %1084 = vmatpush3.bf16.msra.mxu1 %v1083_v46 }
  0x89   : > { %476 = vmatmul.mubr.f32.vlgmr.msra.gmra.mrb[0].mxu0 %v339_v47 }
  0x8a   : > { %551 = vmatmul.mubr.f32.vlgmr.msra.gmra.mrb[0].mxu1 %v341_v48  ;;  %480 = vmatprep.mubr.f32.mxu0 %v344_v49 }
  0x8b   : > { %555 = vmatprep.mubr.f32.mxu1 %v346_v50 }
  0x8d   : > { %481 = vmatmul.mubr.f32.gmra.mrb[2].mxu0 %v343_v51 }
  0x8e   : > { %556 = vmatmul.mubr.f32.gmra.mrb[2].mxu1 %v345_v52 }
 0x15c   : > { %v977_v53 = vpop.f32.mrb[0].mxu0 }
 0x15d   : > { %v1015_v54 = vpop.f32.mrb[0].mxu1  ;;  %v978_v55 = vpop.f32.mrb[1].mxu0 }
 0x15e   : > { %v979_v56 = vadd.f32 %v978_v55, %v977_v53  ;;  %v1016_v57 = vpop.f32.mrb[1].mxu1 }
 0x15f   : > { %v1017_v58 = vadd.f32 %v1016_v57, %v1015_v54 }
 0x160   : > { %v980_v60 = vpop.f32.mrb[2].mxu0 }
 0x161   : > { %v553_v61 = vadd.f32 %v1017_v58, %v979_v56  ;;  %v1018_v62 = vpop.f32.mrb[2].mxu1  ;;  %v981_v63 = vpop.f32.mrb[3].mxu0 }
 0x162   : > { %v982_v0 = vadd.f32 %v981_v63, %v980_v60  ;;  %v1019_v1 = vpop.f32.mrb[3].mxu1 }
 0x163   : > { %v561_v2 = vadd.f32 %v553_v61, %v337_v59  ;;  %v1020_v3 = vadd.f32 %v1019_v1, %v1018_v62  ;;  %568 = sbr.rel (%p919_p11) target bundleno = 372 (0x174), region = 70 }
 0x165   : > { %563 = vst [vmem:[#allocation2] sm:$0xff] %v561_v2  ;;  %v558_v5 = vadd.f32 %v1020_v3, %v982_v0 }
 0x167   : > { %v562_v6 = vadd.f32 %v558_v5, %v338_v4 }
 0x169   : > { %564 = vst [vmem:[#allocation2 + $0x8] sm:$0xff] %v562_v6 }
 0x16c   : > { %v569_v7 = vld [vmem:[#allocation2] sm:$0xff] }
 0x16d   : > { %v578_v10 = vadd.f32 %v920_v8, %v569_v7 }
 0x16f   : > { %580 = vst [vmem:[%s1675_s23] sm:$0xff] %v578_v10 }
 0x170   : > { %v570_v9 = vld [vmem:[#allocation2 + $0x8] sm:$0xff] }
 0x171   : > { %v579_v11 = vadd.f32 %v920_v8, %v570_v9 }
 0x173   : > { %581 = vst [vmem:[%s1675_s23 + $0x8] sm:$0xff] %v579_v11 }
 0x174 PF: > { %588 = sbr.rel (!%p1575_p9) target bundleno = 428 (0x1ac), region = 74  ;;  %s922_s16 = sshll.u32 (%p1575_p9), %s1408_s17, 1 }
 0x175   : > { %s942_s10 = sshll.u32 (%p1575_p9), %s1408_s17, 4  ;;  %s590_s28 = ssub.s32 (%p1575_p9), 3, %s922_s16 }
 0x176   : > { %s1763_s8 = scalar_lea.vmem (%p1575_p9), %s1817_s3, %s942_s10   ;;  %p591_p12 = scmp.lt.s32.totalorder (%p1575_p9), %s590_s28, 2 }
 0x17b   : > { %s1850_s28 = smov (!%p591_p12, %s590_s28), 2 }
 0x17c   : > { %s923_s25 = sshll.u32 %s1850_s28, 7 }
 0x17d   : > { %p926_p13 = scmp.eq.s32.totalorder %s923_s25, 0 }
 0x17e   : > { %s1769_s30 = sshrl.u32 (!%p926_p13), %s1850_s28, 1 }
 0x17f   : > { %600 = sbr.rel (%p926_p13) target bundleno = 428 (0x1ac), region = 78  ;;  %p927_p9 = scmp.le.s32.totalorder (!%p926_p13), %s1769_s30, 0 }
 0x186   : > { %817 = sbr.rel (%p927_p9) target bundleno = 407 (0x197), region = 189  ;;  %s1454_s17 = smov (!%p927_p9), %s1763_s8  }
 0x187   : > { %s1458_s26 = smov (!%p927_p9), %s1675_s23   ;;  %s1462_s9 = smov (!%p927_p9), 0  }
 0x188   : > { %s1466_s0 = smov (!%p927_p9), 0  }
 0x18d LB: >> { %v664_v12 = vld [vmem:[%s1460_s26] sm:$0xff]  ;;  %v666_v13 = vld [vmem:[%s1460_s26 + $0x8] sm:$0xff]  ;;  %s668_s27 = sadd.s32 1, %s1464_s9  ;;  %s658_s0 = sadd.s32 1, %s1468_s0   ;;  %s1468_s0 = sphi %s1466_s0, %s658_s0   ;;  %s1464_s9 = sphi %s1462_s9, %s1463_s9   ;;  %s1460_s26 = sphi %s1458_s26, %s673_s26   ;;  %s1456_s17 = sphi %s1454_s17, %s674_s17  }
 0x18e   : >> { %665 = vst [vmem:[%s1456_s17] sm:$0xff] %v664_v12  ;;  %667 = vst [vmem:[%s1456_s17 + $0x8] sm:$0xff] %v666_v13  ;;  %p669_p0 = scmp.ge.s32.totalorder %s668_s27, %s1769_s30  ;;  %p657_p1 = scmp.ge.s32.totalorder %s658_s0, %s1769_s30 }
 0x190   : >> { %s1852_s27 = smov (%p669_p0, %s668_s27), 0  ;;  %660 = sbr.rel (!%p657_p1) target bundleno = 397 (0x18d), region = 195 }
 0x191   : >> { %s928_s24 = sshll.u32 %s1852_s27, 4  ;;  %s1463_s9 = smov %s1852_s27  }
 0x192   : >> { %s673_s26 = scalar_lea.vmem %s1675_s23, %s928_s24 [#allocation4]   ;;  %s674_s17 = scalar_lea.vmem %s1763_s8, %s928_s24  }
 0x197 PF: > { %s1779_s7 = sand.u32 1, %s1850_s28   ;;  %s943_s11 = sshll.u32 %s1769_s30, 4 }
 0x198   : > { %s679_s12 = scalar_lea.vmem %s1675_s23, %s943_s11 [#allocation4]   ;;  %s681_s14 = scalar_lea.vmem %s1763_s8, %s943_s11  }
 0x199   : > { %p933_p2 = scmp.le.s32.totalorder %s1779_s7, 0 }
 0x19a   : > { %s1470_s16 = smov (!%p933_p2), %s681_s14   ;;  %s1474_s10 = smov (!%p933_p2), %s679_s12  }
 0x19b   : > { %831 = sbr.rel (%p933_p2) target bundleno = 428 (0x1ac), region = 200  ;;  %s1478_s29 = smov (!%p933_p2), 0  }
 0x19c   : > { %s1482_s6 = smov (!%p933_p2), 0  }
 0x1a2 LB: >> { %v691_v14 = vld [vmem:[%s1476_s10] sm:$0xff]  ;;  %s693_s28 = sadd.s32 1, %s1480_s29  ;;  %s685_s6 = sadd.s32 1, %s1484_s6   ;;  %s1484_s6 = sphi %s1482_s6, %s685_s6   ;;  %s1480_s29 = sphi %s1478_s29, %s1479_s29   ;;  %s1476_s10 = sphi %s1474_s10, %s698_s10   ;;  %s1472_s16 = sphi %s1470_s16, %s699_s16  }
 0x1a3   : >> { %692 = vst [vmem:[%s1472_s16] sm:$0xff] %v691_v14  ;;  %p694_p3 = scmp.ge.s32.totalorder %s693_s28, %s1779_s7  ;;  %p684_p4 = scmp.ge.s32.totalorder %s685_s6, %s1779_s7 }
 0x1a5   : >> { %s1854_s28 = smov (%p694_p3, %s693_s28), 0  ;;  %687 = sbr.rel (!%p684_p4) target bundleno = 418 (0x1a2), region = 206 }
 0x1a6   : >> { %s934_s23 = sshll.u32 %s1854_s28, 3  ;;  %s1479_s29 = smov %s1854_s28  }
 0x1a7   : >> { %s698_s10 = scalar_lea.vmem %s679_s12, %s934_s23 [#allocation4]   ;;  %s699_s16 = scalar_lea.vmem %s681_s14, %s934_s23  }
 0x1ac PF: > { %s13_s20 = sadd.s32 1, %s1420_s20   ;;  %s1827_s12 = smov %s1392_s13 }
 0x1ad   : > { %p10_p5 = scmp.ge.s32.totalorder %s13_s20, 6   ;;  %s1828_s13 = smov %s1580_s4 }
 0x1ae   : > { %s1829_s14 = smov %s1400_s15  ;;  %s1830_s15 = smov %s1583_s5 }
 0x1af   : > { %s1831_s16 = smov %s1412_s18  ;;  %s1832_s17 = smov %s1416_s19 }
 0x1b0   : > { %s1833_s18 = smov %s1836_s21  ;;  %s1834_s19 = smov %s1840_s22 }
 0x1b1   :  { %12 = sbr.rel (!%p10_p5) target bundleno = 7 (0x7), region = 217 }

// kernel: multiscale_discriminator_forward.47
= control target key start
LH: loop header
LB: loop body
LE: loop exit
PB: predicated region body
PF: predicated region fallthrough
CT: control target
= control target key end

     0   :  { %s521_s9 = smov 0   ;;  %s523_s10 = smov 0   ;;  %s619_s0 = inlined_call_operand.vmem [shape: f32[32,2048], index: 0, kind: input, shape index: {}]   ;;  %s620_s1 = inlined_call_operand.vmem [shape: f32[1,2048], index: 1, kind: input, shape index: {}]   ;;  %s621_s2 = inlined_call_operand.vmem [shape: f32[32,1], index: 2, kind: output, shape index: {}]  }
   0x1   :  { %s525_s11 = smov 0   ;;  %s527_s12 = smov 0  }
   0x2   :  { %s529_s13 = smov 0   ;;  %s531_s14 = smov 0  }
   0x3   :  { %s533_s15 = smov 0  }
   0x4 LB: > { %s21_s16 = sadd.s32 1, %s495_s13  ;;  %s24_s17 = sadd.s32 1, %s499_s14  ;;  %s503_s15 = sphi %s533_s15, %s12_s15   ;;  %s499_s14 = sphi %s531_s14, %s627_s14   ;;  %s495_s13 = sphi %s529_s13, %s626_s13   ;;  %s491_s12 = sphi %s527_s12, %s625_s12   ;;  %s487_s11 = sphi %s525_s11, %s624_s11   ;;  %s483_s10 = sphi %s523_s10, %s623_s10   ;;  %s479_s9 = sphi %s521_s9, %s622_s9  }
   0x5   : > { %p22_p0 = scmp.ge.s32.totalorder %s21_s16, 4  ;;  %p40_p1 = scmp.ne.s32.totalorder %s483_s10, %s479_s9 }
   0x6   : > { %p41_p2 = scmp.eq.s32.totalorder %s503_s15, 0  ;;  %s33_s21 = sadd.s32 1, %s483_s10 }
   0x7   : > { %s629_s16 = smov (%p22_p0, %s21_s16), 0  ;;  %s631_s17 = smov (!%p22_p0, %s24_s17), %s499_s14 }
   0x8   : > { %p42_p3 = por %p41_p2, %p40_p1  ;;  %p26_p4 = scmp.ge.s32.totalorder %s631_s17, 2 }
   0x9   : > { %s29_s18 = ssub.s32 %s495_s13, %s629_s16  ;;  %p376_p6 = scmp.ge.s32.totalorder %s503_s15, 8 }
   0xa   : > { %s633_s17 = smov (%p26_p4, %s631_s17), 0 }
   0xb   : > { %s28_s19 = ssub.s32 %s499_s14, %s633_s17  ;;  %118 = sbr.rel (%p376_p6) target bundleno = 29 (0x1d), region = 16 }
   0xc   : > { %s30_s20 = sor.u32 %s29_s18, %s28_s19 }
   0xd   : > { %p31_p5 = scmp.eq.s32.totalorder %s30_s20, 0 }
   0xf   : > { %s572_s22 = scalar_select %p31_p5, %s483_s10, %s33_s21  }
  0x12   : > { %121 = sbr.rel (!%p42_p3) target bundleno = 29 (0x1d), region = 20  ;;  %s123_s23 = sand.u32 (%p42_p3), 1, %s483_s10  }
  0x13   : > { %s379_s24 = sshll.u32 (%p42_p3), %s495_s13, 2  ;;  %s377_s25 = sshll.u32 (%p42_p3), %s123_s23, 6 }
  0x14   : > { %s391_s26 = sshll.u32 (%p42_p3), %s499_s14, 5  ;;  %s125_s4 = scalar_lea.vmem (%p42_p3), [#allocation3], %s377_s25 }
  0x15   : > { %s129_s27 = sadd.s32 (%p42_p3), %s391_s26, %s379_s24 }
  0x16   : > { %s381_s28 = sshll.u32 (%p42_p3), %s129_s27, 3 }
  0x17   : > { %s131_s3 = scalar_lea.vmem (%p42_p3), %s619_s0, %s381_s28 }
  0x18   : > { %v144_v0 = vld [vmem:[%s131_s3] sm:$0xff] (%p42_p3)  ;;  %v146_v1 = vld [vmem:[%s131_s3 + $0x8] sm:$0xff] (%p42_p3)  ;;  %v148_v2 = vld [vmem:[%s131_s3 + $0x10] sm:$0xff] (%p42_p3) }
  0x19   : > { %145 = vst [vmem:[%s125_s4] sm:$0xff] %v144_v0  ;;  %147 = vst [vmem:[%s125_s4 + $0x8] sm:$0xff] %v146_v1  ;;  %v150_v3 = vld [vmem:[%s131_s3 + $0x18] sm:$0xff]  ;;  %v152_v4 = vld [vmem:[%s131_s3 + $0x80] sm:$0xff] }
  0x1a   : > { %149 = vst [vmem:[%s125_s4 + $0x10] sm:$0xff] %v148_v2  ;;  %v154_v5 = vld [vmem:[%s131_s3 + $0x88] sm:$0xff]  ;;  %151 = vst [vmem:[%s125_s4 + $0x18] sm:$0xff] %v150_v3  ;;  %v156_v6 = vld [vmem:[%s131_s3 + $0x90] sm:$0xff] }
  0x1b   : > { %153 = vst [vmem:[%s125_s4 + $0x20] sm:$0xff] %v152_v4  ;;  %155 = vst [vmem:[%s125_s4 + $0x28] sm:$0xff] %v154_v5  ;;  %v158_v7 = vld [vmem:[%s131_s3 + $0x98] sm:$0xff] }
  0x1c   : > { %157 = vst [vmem:[%s125_s4 + $0x30] sm:$0xff] %v156_v6  ;;  %159 = vst [vmem:[%s125_s4 + $0x38] sm:$0xff] %v158_v7 }
  0x1d PF: > { %p382_p7 = scmp.ge.s32.totalorder %s503_s15, 1  ;;  %p172_p8 = scmp.lt.s32.totalorder %s503_s15, 9 }
  0x1f   : > { %p173_p9 = pnand %p382_p7, %p172_p8 }
  0x20   : > { %s179_s5 = sand.u32 (!%p173_p9), 1, %s479_s9   ;;  %s384_s6 = sshll.u32 (!%p173_p9), %s487_s11, 2 }
  0x21   : > { %176 = sbr.rel (%p173_p9) target bundleno = 222 (0xde), region = 47  ;;  %s383_s7 = sshll.u32 (!%p173_p9), %s179_s5, 6 }
  0x22   : > { %p207_p10 = scmp.lt.s32.totalorder (!%p173_p9), %s384_s6, 15  ;;  %s385_s8 = sshll.u32 (!%p173_p9), %s491_s12, 1 }
  0x23   : > { %p212_p11 = scmp.lt.s32.totalorder (!%p173_p9), %s385_s8, 3  ;;  %s181_s26 = scalar_lea.vmem (!%p173_p9), [#allocation3], %s383_s7 }
  0x24   : > { %p387_p12 = scmp.ne.s32.totalorder (!%p173_p9), %s487_s11, 0 }
  0x28   : > { %s635_s6 = smov (!%p207_p10, %s384_s6), 15  ;;  %s637_s8 = smov (!%p212_p11, %s385_s8), 3 }
  0x29   : > { %s209_s20 = scalar_lea.vmem %s620_s1, %s635_s6  ;;  %s386_s21 = sshll.u32 %s637_s8, 3  ;;  %vm221_vm0 = vcmask (!%p387_p12), 7168   ;;  %v505_v8 = vmov (!%p387_p12), 0.0  }
  0x2a   : > { %s592_s25 = scalar_lea.vmem %s621_s2, %s386_s21  ;;  %220 = sbr.rel (%p387_p12) target bundleno = 49 (0x31), region = 55  ;;  %222 = vst.msk [vmem:[#allocation2] sm:$0xff] (!%p387_p12), %vm221_vm0, %v505_v8  ;;  %223 = vst.msk [vmem:[#allocation2 + $0x8] sm:$0xff] (!%p387_p12), %vm221_vm0, %v505_v8 }
  0x31 PF: > { %v234_v9 = vlaneseq  ;;  %v232_v11 = vld [vmem:[%s209_s20] sm:$0xf]  ;;  %v224_v16 = vld [vmem:[%s181_s26] sm:$0xff]  ;;  %v225_v17 = vld [vmem:[%s181_s26 + $0x8] sm:$0xff]  ;;  %vm276_vm1 = vcmask 7168   ;;  %p388_p13 = scmp.ne.s32.totalorder %s487_s11, 3 }
  0x32   : > { %v226_v18 = vld [vmem:[%s181_s26 + $0x10] sm:$0xff]  ;;  %v228_v23 = vld [vmem:[%s181_s26 + $0x20] sm:$0xff]  ;;  %v229_v24 = vld [vmem:[%s181_s26 + $0x28] sm:$0xff] }
  0x33   : > { %v235_v10 = vshrl.u32 %v234_v9, 7  ;;  %v230_v25 = vld [vmem:[%s181_s26 + $0x30] sm:$0xff]  ;;  %v227_v26 = vld [vmem:[%s181_s26 + $0x18] sm:$0xff] }
  0x34   : > { %v231_v30 = vld [vmem:[%s181_s26 + $0x38] sm:$0xff]  ;;  %v262_v42 = vld [vmem:[#allocation2] sm:$0xff] }
  0x35   : > { %v236_v12 = vsub.s32 0, %v235_v10  ;;  %v240_v13 = vsub.s32 1, %v235_v10  ;;  %v244_v14 = vsub.s32 2, %v235_v10  ;;  %v248_v15 = vsub.s32 3, %v235_v10  ;;  %v263_v45 = vld [vmem:[#allocation2 + $0x8] sm:$0xff] }
  0x37   : > { %v237_v19 = vrot.slane %v232_v11, %v236_v12  ;;  %v241_v20 = vrot.slane %v232_v11, %v240_v13  ;;  %v245_v21 = vrot.slane %v232_v11, %v244_v14  ;;  %v249_v22 = vrot.slane %v232_v11, %v248_v15 }
  0x39   : > { %v254_v27 = vmul.f32 %v237_v19, %v224_v16  ;;  %v255_v28 = vmul.f32 %v241_v20, %v225_v17  ;;  %v256_v29 = vmul.f32 %v245_v21, %v226_v18  ;;  %v258_v31 = vmul.f32 %v237_v19, %v228_v23 }
  0x3a   : > { %v259_v32 = vmul.f32 %v241_v20, %v229_v24  ;;  %v260_v33 = vmul.f32 %v245_v21, %v230_v25  ;;  %v257_v34 = vmul.f32 %v249_v22, %v227_v26  ;;  %v261_v38 = vmul.f32 %v249_v22, %v231_v30 }
  0x3b   : > { %v264_v35 = vadd.f32 %v255_v28, %v254_v27 }
  0x3c   : > { %v269_v36 = vadd.f32 %v259_v32, %v258_v31 }
  0x3d   : > { %v265_v37 = vadd.f32 %v264_v35, %v256_v29 }
  0x3e   : > { %v270_v39 = vadd.f32 %v269_v36, %v260_v33 }
  0x3f   : > { %v266_v40 = vadd.f32 %v265_v37, %v257_v34 }
  0x40   : > { %v271_v41 = vadd.f32 %v270_v39, %v261_v38 }
  0x41   : > { %267 = vadd.xlane.f32.xlu0 %v266_v40 }
  0x45   : > { %272 = vadd.xlane.f32.xlu0 %v271_v41 }
  0xce   : > { %v268_v43 = vpop.xlane.xlu0 %267 }
  0xcf   : > { %v274_v44 = vadd.f32 %v268_v43, %v262_v42  ;;  %282 = sbr.rel (%p388_p13) target bundleno = 222 (0xde), region = 59 }
  0xd1   : > { %277 = vst.msk [vmem:[#allocation2] sm:$0xff] %vm276_vm1, %v274_v44 }
  0xd2   : > { %v273_v46 = vpop.xlane.xlu0 %272 }
  0xd3   : > { %v275_v47 = vadd.f32 %v273_v46, %v263_v45 }
  0xd5   : > { %278 = vst.msk [vmem:[#allocation2 + $0x8] sm:$0xff] %vm276_vm1, %v275_v47 }
  0xd8   : > { %v283_v48 = vld [vmem:[#allocation2] sm:$0xff] }
  0xd9   : > { %285 = vst.msk [vmem:[%s592_s25] sm:$0xff] %vm276_vm1, %v283_v48 }
  0xdc   : > { %v284_v49 = vld [vmem:[#allocation2 + $0x8] sm:$0xff] }
  0xdd   : > { %286 = vst.msk [vmem:[%s592_s25 + $0x8] sm:$0xff] %vm276_vm1, %v284_v49 }
  0xde PF: > { %s12_s15 = sadd.s32 1, %s503_s15   ;;  %s622_s9 = smov %s483_s10 }
  0xdf   : > { %p9_p0 = scmp.ge.s32.totalorder %s12_s15, 10   ;;  %s623_s10 = smov %s572_s22 }
  0xe0   : > { %s624_s11 = smov %s495_s13  ;;  %s625_s12 = smov %s499_s14 }
  0xe1   : > { %s626_s13 = smov %s629_s16  ;;  %s627_s14 = smov %s633_s17 }
  0xe2   :  { %11 = sbr.rel (!%p9_p0) target bundleno = 4 (0x4), region = 97 }

</bundles_post_ra>
